<compile_context>
chip_gen: v6e
topology: v6e:2x2x1
jax: 0.10.0
libtpu: 0.0.40
codegen_flags: <defaults>
</compile_context>

<pallas_src>
import functools

import jax
import jax.numpy as jnp
from jax import lax
from jax.experimental import pallas as pl
from jax.experimental.pallas import tpu as pltpu

# Match both the kernel's f32 dots and the pure-JAX autograd reference.
jax.config.update("jax_default_matmul_precision", "highest")

XI = 0.1
EPS = 1.0
IP = 1


def _softmax_rows(logits):
    # Exact division: (q_hat - pred) is a tiny difference of two softmaxes, so
    # an approximate reciprocal here would destroy the cancellation.
    m = jnp.max(logits, axis=-1, keepdims=True)
    e = jnp.exp(logits - m)
    return e / jnp.sum(e, axis=-1, keepdims=True)


def _l2_normalize_rows(d):
    # Per-sample L2 norm over the flattened feature axis (PyTorch _l2_normalize).
    # Single EUP push (rsqrt) per normalize instead of a sqrt -> reciprocal chain.
    sumsq = jnp.sum(d * d, axis=-1, keepdims=True)
    return d * lax.rsqrt(sumsq + 1e-16)


def vat_fused_kernel(x_ref, w_ref, wt_ref, b_ref, d0_ref, r_ref, *, xi, eps, ip):
    B, D = x_ref.shape
    K = w_ref.shape[1]
    w = w_ref[...]                                   # (D, K) forward weight
    wt = wt_ref[...]                                 # (K, D) pre-transposed for backward
    bias = jnp.broadcast_to(b_ref[...], (B, K))      # explicit broadcast, hoisted once

    # base logits + detached prediction; stay resident in VMEM/registers.
    base = jnp.dot(x_ref[...], w, preferred_element_type=jnp.float32) + bias
    pred = _softmax_rows(base)

    # d = rand(x.shape) - 0.5 (drawn in the wrapper), L2-normalized per sample.
    d = _l2_normalize_rows(d0_ref[...])

    # Power iteration.  The xi/B prefactor of the analytic KL gradient is
    # dropped: it cancels under the L2 normalize that immediately follows.
    for _ in range(ip):                              # ip is a small static trip count
        delta = jnp.dot(d, w, preferred_element_type=jnp.float32)       # (B, K)
        q_hat = _softmax_rows(base + jnp.float32(xi) * delta)
        g = q_hat - pred                                                # ∝ dKL/dlogits_hat
        grad = jnp.dot(g, wt, preferred_element_type=jnp.float32)       # (B, D)
        d = _l2_normalize_rows(grad)

    r_ref[...] = d * jnp.float32(eps)


def vat_perturbation(x, w, b, key, xi=XI, eps=EPS, ip=IP):
    """Forward pass of VATPerturbation against the synthetic linear model.

    Returns (r_adv, d0); d0 is the raw uniform draw (pre-normalize) used to
    seed the power iteration, so a host-side autograd reference can verify r_adv.
    """
    B = x.shape[0]
    x_flat = x.reshape(B, -1).astype(jnp.float32)
    D = x_flat.shape[1]
    K = w.shape[1]

    # torch.rand(x.shape).sub(0.5), drawn host-side for portability (see header).
    d0 = jax.random.uniform(key, (B, D), jnp.float32) - 0.5

    w = jnp.asarray(w, jnp.float32)
    w_t = jnp.asarray(w.T)                           # transposed once, outside the kernel
    b = jnp.asarray(b, jnp.float32).reshape(1, K)

    flops = 2 * B * D * K * (1 + 2 * ip)             # fwd + ip * (fwd-probe + bwd) matmuls
    transcendentals = B * ((K + 1) * (1 + ip))       # exp rows + rsqrt per normalize
    bytes_accessed = 4 * (x_flat.size + w.size + w_t.size + b.size + d0.size + B * D)

    r_adv = pl.pallas_call(
        functools.partial(vat_fused_kernel, xi=xi, eps=eps, ip=ip),
        out_shape=jax.ShapeDtypeStruct((B, D), jnp.float32),
        in_specs=[pl.BlockSpec(memory_space=pltpu.MemorySpace.VMEM),   # x_flat
                  pl.BlockSpec(memory_space=pltpu.MemorySpace.VMEM),   # W   (D, K)
                  pl.BlockSpec(memory_space=pltpu.MemorySpace.VMEM),   # W^T (K, D)
                  pl.BlockSpec(memory_space=pltpu.MemorySpace.VMEM),   # b
                  pl.BlockSpec(memory_space=pltpu.MemorySpace.VMEM)],  # d0
        out_specs=pl.BlockSpec(memory_space=pltpu.MemorySpace.VMEM),
        cost_estimate=pl.CostEstimate(flops=flops,
                                      transcendentals=transcendentals,
                                      bytes_accessed=bytes_accessed),
    )(x_flat, w, w_t, b, d0)
    return r_adv.reshape(x.shape), d0


# ---------------- pure-JAX autograd reference (for sanity check) ----------------

def _ref_vat_from_d0(x, w, b, d0_raw, xi=XI, eps=EPS, ip=IP):
    B = x.shape[0]
    x_flat = x.reshape(B, -1)
    pred = jax.nn.softmax(x_flat @ w + b, axis=1)

    def norm(d):
        return d / (jnp.linalg.norm(d, axis=1, keepdims=True) + 1e-8)

    d = norm(d0_raw)

    def kl(dd):
        logp_hat = jax.nn.log_softmax((x_flat + xi * dd) @ w + b, axis=1)
        return jnp.sum(pred * (jnp.log(pred) - logp_hat)) / B

    for _ in range(ip):
        d = norm(jax.grad(kl)(d))
    return (d * eps).reshape(x.shape)


if __name__ == "__main__":
    key = jax.random.PRNGKey(0)
    kx, kw, kb, kd = jax.random.split(key, 4)

    B, C, H, W = 2, 4, 16, 16          # x: NCHW
    K = 10                             # num classes of the synthetic model
    D = C * H * W

    x = jax.random.normal(kx, (B, C, H, W), jnp.float32)
    w = jax.random.normal(kw, (D, K), jnp.float32) * 0.02   # deterministic params
    b = jax.random.normal(kb, (1, K), jnp.float32) * 0.01

    r_adv, d0 = vat_perturbation(x, w, b, kd, xi=XI, eps=EPS, ip=IP)
    jax.block_until_ready(r_adv)

    # Shape/dtype + RNG range checks, then verify the full VAT math against a
    # pure-JAX autograd reference seeded with the same random draw d0.
    assert r_adv.shape == x.shape and r_adv.dtype == jnp.float32
    assert bool(jnp.all(d0 >= -0.5)) and bool(jnp.all(d0 < 0.5)), "bad uniform range"

    r_ref = _ref_vat_from_d0(x, w, b, d0, xi=XI, eps=EPS, ip=IP)
    assert jnp.allclose(r_adv, r_ref, rtol=3e-3, atol=3e-4), "mismatch vs reference"

    print("KERNEL_OK")
</pallas_src>

<mosaic_0001>
module attributes {stable_mosaic.version = 11 : i64} {
  func.func @vat_fused_kernel(%arg0: memref<2x1024xf32, #tpu.memory_space<vmem>>, %arg1: memref<1024x10xf32, #tpu.memory_space<vmem>>, %arg2: memref<10x1024xf32, #tpu.memory_space<vmem>>, %arg3: memref<1x10xf32, #tpu.memory_space<vmem>>, %arg4: memref<2x1024xf32, #tpu.memory_space<vmem>>, %arg5: memref<2x1024xf32, #tpu.memory_space<vmem>>) attributes {dimension_semantics = [], scalar_prefetch = 0 : i64, scratch_operands = 0 : i64, tpu.core_type = #tpu.core_type<tc>} {
    %c0 = arith.constant 0 : index
    %c0_0 = arith.constant 0 : index
    %0 = vector.load %arg1[%c0, %c0_0] : memref<1024x10xf32, #tpu.memory_space<vmem>>, vector<1024x10xf32>
    %c0_1 = arith.constant 0 : index
    %c0_2 = arith.constant 0 : index
    %1 = vector.load %arg2[%c0_1, %c0_2] : memref<10x1024xf32, #tpu.memory_space<vmem>>, vector<10x1024xf32>
    %c0_3 = arith.constant 0 : index
    %c0_4 = arith.constant 0 : index
    %2 = vector.load %arg3[%c0_3, %c0_4] : memref<1x10xf32, #tpu.memory_space<vmem>>, vector<1x10xf32>
    %3 = vector.shape_cast %2 : vector<1x10xf32> to vector<1x10xf32>
    %4 = vector.broadcast %3 : vector<1x10xf32> to vector<2x10xf32>
    %c0_5 = arith.constant 0 : index
    %c0_6 = arith.constant 0 : index
    %5 = vector.load %arg0[%c0_5, %c0_6] : memref<2x1024xf32, #tpu.memory_space<vmem>>, vector<2x1024xf32>
    %cst = arith.constant dense<0.000000e+00> : vector<2x10xf32>
    %6 = tpu.matmul %5, %0, %cst {dimension_numbers = #tpu.dot_dimension_numbers<[1], [0], [0], [1], [0, 0, 1, 1], [], []>, precision = #tpu.contract_precision<fp32>} : vector<2x1024xf32>, vector<1024x10xf32>, vector<2x10xf32> -> vector<2x10xf32>
    %7 = arith.addf %6, %4 : vector<2x10xf32>
    %cst_7 = arith.constant dense<0xFF800000> : vector<2xf32>
    %8 = vector.multi_reduction <maximumf>, %7, %cst_7 [1] : vector<2x10xf32> to vector<2xf32>
    %9 = vector.shape_cast %8 : vector<2xf32> to vector<2x1xf32>
    %10 = vector.broadcast %9 : vector<2x1xf32> to vector<2x10xf32>
    %11 = arith.subf %7, %10 : vector<2x10xf32>
    %12 = math.exp %11 : vector<2x10xf32>
    %cst_8 = arith.constant dense<0.000000e+00> : vector<2xf32>
    %13 = vector.multi_reduction <add>, %12, %cst_8 [1] : vector<2x10xf32> to vector<2xf32>
    %14 = vector.shape_cast %13 : vector<2xf32> to vector<2x1xf32>
    %15 = vector.broadcast %14 : vector<2x1xf32> to vector<2x10xf32>
    %16 = arith.divf %12, %15 : vector<2x10xf32>
    %c0_9 = arith.constant 0 : index
    %c0_10 = arith.constant 0 : index
    %17 = vector.load %arg4[%c0_9, %c0_10] : memref<2x1024xf32, #tpu.memory_space<vmem>>, vector<2x1024xf32>
    %18 = arith.mulf %17, %17 : vector<2x1024xf32>
    %cst_11 = arith.constant dense<0.000000e+00> : vector<2xf32>
    %19 = vector.multi_reduction <add>, %18, %cst_11 [1] : vector<2x1024xf32> to vector<2xf32>
    %20 = vector.shape_cast %19 : vector<2xf32> to vector<2x1xf32>
    %cst_12 = arith.constant 1.000000e-16 : f32
    %21 = vector.broadcast %cst_12 : f32 to vector<2x1xf32>
    %22 = arith.addf %20, %21 : vector<2x1xf32>
    %23 = math.rsqrt %22 : vector<2x1xf32>
    %24 = vector.broadcast %23 : vector<2x1xf32> to vector<2x1024xf32>
    %25 = arith.mulf %17, %24 : vector<2x1024xf32>
    %cst_13 = arith.constant dense<0.000000e+00> : vector<2x10xf32>
    %26 = tpu.matmul %25, %0, %cst_13 {dimension_numbers = #tpu.dot_dimension_numbers<[1], [0], [0], [1], [0, 0, 1, 1], [], []>, precision = #tpu.contract_precision<fp32>} : vector<2x1024xf32>, vector<1024x10xf32>, vector<2x10xf32> -> vector<2x10xf32>
    %cst_14 = arith.constant 1.000000e-01 : f32
    %27 = vector.broadcast %cst_14 : f32 to vector<2x10xf32>
    %28 = arith.mulf %27, %26 : vector<2x10xf32>
    %29 = arith.addf %7, %28 : vector<2x10xf32>
    %cst_15 = arith.constant dense<0xFF800000> : vector<2xf32>
    %30 = vector.multi_reduction <maximumf>, %29, %cst_15 [1] : vector<2x10xf32> to vector<2xf32>
    %31 = vector.shape_cast %30 : vector<2xf32> to vector<2x1xf32>
    %32 = vector.broadcast %31 : vector<2x1xf32> to vector<2x10xf32>
    %33 = arith.subf %29, %32 : vector<2x10xf32>
    %34 = math.exp %33 : vector<2x10xf32>
    %cst_16 = arith.constant dense<0.000000e+00> : vector<2xf32>
    %35 = vector.multi_reduction <add>, %34, %cst_16 [1] : vector<2x10xf32> to vector<2xf32>
    %36 = vector.shape_cast %35 : vector<2xf32> to vector<2x1xf32>
    %37 = vector.broadcast %36 : vector<2x1xf32> to vector<2x10xf32>
    %38 = arith.divf %34, %37 : vector<2x10xf32>
    %39 = arith.subf %38, %16 : vector<2x10xf32>
    %cst_17 = arith.constant dense<0.000000e+00> : vector<2x1024xf32>
    %40 = tpu.matmul %39, %1, %cst_17 {dimension_numbers = #tpu.dot_dimension_numbers<[1], [0], [0], [1], [0, 0, 1, 1], [], []>, precision = #tpu.contract_precision<fp32>} : vector<2x10xf32>, vector<10x1024xf32>, vector<2x1024xf32> -> vector<2x1024xf32>
    %41 = arith.mulf %40, %40 : vector<2x1024xf32>
    %cst_18 = arith.constant dense<0.000000e+00> : vector<2xf32>
    %42 = vector.multi_reduction <add>, %41, %cst_18 [1] : vector<2x1024xf32> to vector<2xf32>
    %43 = vector.shape_cast %42 : vector<2xf32> to vector<2x1xf32>
    %cst_19 = arith.constant 1.000000e-16 : f32
    %44 = vector.broadcast %cst_19 : f32 to vector<2x1xf32>
    %45 = arith.addf %43, %44 : vector<2x1xf32>
    %46 = math.rsqrt %45 : vector<2x1xf32>
    %47 = vector.broadcast %46 : vector<2x1xf32> to vector<2x1024xf32>
    %48 = arith.mulf %40, %47 : vector<2x1024xf32>
    %cst_20 = arith.constant 1.000000e+00 : f32
    %49 = vector.broadcast %cst_20 : f32 to vector<2x1024xf32>
    %50 = arith.mulf %48, %49 : vector<2x1024xf32>
    %c0_21 = arith.constant 0 : index
    %c0_22 = arith.constant 0 : index
    %51 = vector.load %arg5[%c0_21, %c0_22] : memref<2x1024xf32, #tpu.memory_space<vmem>>, vector<2x1024xf32>
    tpu.vector_store %arg5[%c0_21, %c0_22], %50 {strides = array<i32>} : memref<2x1024xf32, #tpu.memory_space<vmem>>, vector<2x1024xf32>,
    return
  }
}

</mosaic_0001>

<bundles_post_ra>
// kernel: tpu_custom_call.1
= control target key start
LH: loop header
LB: loop body
LE: loop exit
PB: predicated region body
PF: predicated region fallthrough
CT: control target
= control target key end

     0   :  { %v11073_v16 = vmov 1983009808   ;;  %s15512_s0 = inlined_call_operand.vmem [shape: f32[2,1024], index: 0, kind: input, shape index: {}]   ;;  %s15513_s1 = inlined_call_operand.vmem [shape: f32[1024,10], index: 1, kind: input, shape index: {}]   ;;  %s15514_s2 = inlined_call_operand.vmem [shape: f32[10,1024], index: 2, kind: input, shape index: {}]   ;;  %s15515_s3 = inlined_call_operand.vmem [shape: f32[1,10], index: 3, kind: input, shape index: {}]   ;;  %s15516_s4 = inlined_call_operand.vmem [shape: f32[2,1024], index: 4, kind: input, shape index: {}]   ;;  %s15517_s5 = inlined_call_operand.hbm [shape: f32[2,1024], index: 5, kind: output, shape index: {}]  }
   0x1   :  { %v52_v0 = vld [vmem:[%s15513_s1 + $0xf8] sm:$0xff]  ;;  %v51_v2 = vld [vmem:[%s15513_s1 + $0xf0] sm:$0xff]  ;;  %v50_v7 = vld [vmem:[%s15513_s1 + $0xe8] sm:$0xff]  ;;  %v11148_v17 = vunpack.c.l.s4 %v11073_v16 }
   0x2   :  { %v36_v1 = vld [vmem:[%s15513_s1 + $0x78] sm:$0xff]  ;;  %v11116_v3 = vand.u32 4294901760, %v52_v0  ;;  %v11120_v5 = vand.u32 4294901760, %v51_v2  ;;  %v35_v6 = vld [vmem:[%s15513_s1 + $0x70] sm:$0xff]  ;;  %v34_v8 = vld [vmem:[%s15513_s1 + $0x68] sm:$0xff]  ;;  %v11133_v11 = vand.u32 4294901760, %v50_v7 }
   0x3   :  { %v11118_v4 = vand.u32 4294901760, %v36_v1  ;;  %v11131_v10 = vand.u32 4294901760, %v35_v6  ;;  %v11135_v12 = vand.u32 4294901760, %v34_v8  ;;  %v49_v13 = vld [vmem:[%s15513_s1 + $0xe0] sm:$0xff]  ;;  %v11146_v15 = vld [vmem:[%s15513_s1 + $0xd8] sm:$0xff]  ;;  %v11169_v23 = vld [vmem:[%s15513_s1 + $0xd0] sm:$0xff] }
   0x4   :  { %16378 = vst [vmem:[#allocation5_spill] sm:$0xff] %v11116_v3  ;;  %16380 = vst [vmem:[#allocation7_spill] sm:$0xff] %v11120_v5  ;;  %v33_v14 = vld [vmem:[%s15513_s1 + $0x60] sm:$0xff]  ;;  %9351 = vmatprep.subr.mxu0 %v11116_v3  ;;  %v11151_v18 = vand.u32 4294901760, %v49_v13  ;;  %v11156_v20 = vand.u32 4294901760, %v11146_v15  ;;  %v11159_v21 = vsub.f32 %v52_v0, %v11116_v3  ;;  %v11164_v22 = vld [vmem:[%s15513_s1 + $0x58] sm:$0xff]  ;;  %v11187_v28 = vsub.f32 %v51_v2, %v11120_v5 }
   0x5   :  { %16379 = vst [vmem:[#allocation6_spill] sm:$0xff] %v11118_v4  ;;  %16381 = vst [vmem:[#allocation8_spill] sm:$0xff] %v11131_v10  ;;  %v11153_v19 = vand.u32 4294901760, %v33_v14  ;;  %v11174_v24 = vld [vmem:[%s15513_s1 + $0x50] sm:$0xff]  ;;  %9352 = vmatpush3.msra.mxu0 %v11118_v4  ;;  %v11178_v25 = vand.u32 4294901760, %v11164_v22  ;;  %v11181_v26 = vsub.f32 %v36_v1, %v11118_v4  ;;  %v11184_v27 = vand.u32 4294901760, %v11169_v23 }
   0x6   :  { %16382 = vst [vmem:[#allocation9_spill] sm:$0xff] %v11133_v11  ;;  %16383 = vst [vmem:[#allocation10_spill] sm:$0xff] %v11135_v12  ;;  %v11192_v29 = vld [vmem:[%s15513_s1 + $0xc8] sm:$0xff]  ;;  %v11202_v31 = vld [vmem:[%s15513_s1 + $0xc0] sm:$0xff]  ;;  %9353 = vmatprep.subr.mxu0 %v11120_v5  ;;  %v11206_v32 = vand.u32 4294901760, %v11159_v21  ;;  %v11209_v33 = vand.u32 4294901760, %v11174_v24  ;;  %v11212_v34 = vsub.f32 %v35_v6, %v11131_v10  ;;  %v11225_v38 = vsub.f32 %v50_v7, %v11133_v11 }
   0x7   :  { %16384 = vst [vmem:[#allocation11_spill] sm:$0xff] %v11151_v18  ;;  %16385 = vst [vmem:[#allocation12_spill] sm:$0xff] %v11153_v19  ;;  %v11197_v30 = vld [vmem:[%s15513_s1 + $0x48] sm:$0xff]  ;;  %v11215_v35 = vand.u32 4294901760, %v11192_v29  ;;  %9354 = vmatpush3.msra.mxu0 %v11131_v10  ;;  %v11219_v36 = vand.u32 4294901760, %v11181_v26  ;;  %v11222_v37 = vand.u32 4294901760, %v11187_v28  ;;  %v11242_v43 = vsub.f32 %v34_v8, %v11135_v12 }
   0x8   :  { %16386 = vst [vmem:[#allocation13_spill] sm:$0xff] %v11156_v20  ;;  %16387 = vst [vmem:[#allocation14_spill] sm:$0xff] %v11159_v21  ;;  %v11228_v39 = vand.u32 4294901760, %v11197_v30  ;;  %v11233_v40 = vld [vmem:[%s15513_s1 + $0x40] sm:$0xff]  ;;  %9355 = vmatprep.subr.mxu0 %v11133_v11  ;;  %v446_v41 = vsub.f32 %v11159_v21, %v11206_v32  ;;  %v11239_v42 = vand.u32 4294901760, %v11212_v34  ;;  %v11245_v44 = vand.u32 4294901760, %v11202_v31 }
   0x9   :  { %16388 = vst [vmem:[#allocation15_spill] sm:$0xff] %v11178_v25  ;;  %16389 = vst [vmem:[#allocation16_spill] sm:$0xff] %v11181_v26  ;;  %9356 = vmatpush3.msra.mxu0 %v11135_v12  ;;  %v334_v45 = vsub.f32 %v11181_v26, %v11219_v36  ;;  %v453_v46 = vsub.f32 %v11187_v28, %v11222_v37  ;;  %v11253_v47 = vand.u32 4294901760, %v11225_v38  ;;  %v11261_v49 = vld [vmem:[%s15513_s1 + $0xb8] sm:$0xff]  ;;  %v11269_v52 = vand.u32 4294901760, %v11242_v43  ;;  %v11292_v59 = vld [vmem:[%s15513_s1 + $0xb0] sm:$0xff] }
   0xa   :  { %16390 = vst [vmem:[#allocation17_spill] sm:$0xff] %v11184_v27  ;;  %16391 = vst [vmem:[#allocation18_spill] sm:$0xff] %v11187_v28  ;;  %v11256_v48 = vsub.f32 %v49_v13, %v11151_v18  ;;  %9357 = vmatprep.subr.mxu0 %v11151_v18  ;;  %v11264_v50 = vand.u32 4294901760, %v446_v41  ;;  %v341_v51 = vsub.f32 %v11212_v34, %v11239_v42  ;;  %v11272_v53 = vand.u32 4294901760, %v11233_v40  ;;  %v11277_v54 = vld [vmem:[%s15513_s1 + $0x38] sm:$0xff]  ;;  %v11309_v0 = vld [vmem:[%s15513_s1 + $0x30] sm:$0xff] }
   0xb   :  { %16392 = vst [vmem:[#allocation19_spill] sm:$0xff] %v11206_v32  ;;  %16393 = vst [vmem:[#allocation20_spill] sm:$0xff] %v11209_v33  ;;  %9358 = vmatpush3.msra.mxu0 %v11153_v19  ;;  %v11280_v55 = vand.u32 4294901760, %v334_v45  ;;  %v11282_v56 = vand.u32 4294901760, %v453_v46  ;;  %v460_v57 = vsub.f32 %v11225_v38, %v11253_v47  ;;  %v348_v61 = vsub.f32 %v11242_v43, %v11269_v52  ;;  %v11327_v8 = vld [vmem:[%s15513_s1 + $0xa8] sm:$0xff]  ;;  %v11379_v9 = vld [vmem:[%s15513_s1 + $0xa0] sm:$0xff] }
   0xc   :  { %16394 = vst [vmem:[#allocation21_spill] sm:$0xff] %v11212_v34  ;;  %16395 = vst [vmem:[#allocation22_spill] sm:$0xff] %v11215_v35  ;;  %v11287_v58 = vand.u32 4294901760, %v11256_v48  ;;  %9359 = vmatprep.subr.mxu0 %v11156_v20  ;;  %9386 = vmatprep.subr.mxu1 %v11264_v50  ;;  %v11296_v60 = vand.u32 4294901760, %v341_v51  ;;  %v11301_v62 = vsub.f32 %v33_v14, %v11153_v19  ;;  %v11304_v63 = vand.u32 4294901760, %v11261_v49  ;;  %v11346_v41 = vld [vmem:[%s15513_s1 + $0x28] sm:$0xff] }
   0xd   :  { %16396 = vst [vmem:[#allocation23_spill] sm:$0xff] %v11219_v36  ;;  %16397 = vst [vmem:[#allocation24_spill] sm:$0xff] %v11222_v37  ;;  %9360 = vmatpush3.msra.mxu0 %v11178_v25  ;;  %9387 = vmatpush3.msra.mxu1 %v11280_v55  ;;  %v11313_v1 = vand.u32 4294901760, %v460_v57  ;;  %v11319_v6 = vsub.f32 %v11146_v15, %v11156_v20  ;;  %v11322_v7 = vand.u32 4294901760, %v11277_v54  ;;  %v11331_v13 = vand.u32 4294901760, %v348_v61  ;;  %v11480_v37 = vld [vmem:[%s15513_s1 + $0x10] sm:$0xff] }
   0xe   :  { %16398 = vst [vmem:[#allocation25_spill] sm:$0xff] %v11225_v38  ;;  %16399 = vst [vmem:[#allocation26_spill] sm:$0xff] %v11228_v39  ;;  %v467_v2 = vsub.f32 %v11256_v48, %v11287_v58  ;;  %9361 = vmatprep.subr.mxu0 %v11184_v27  ;;  %9388 = vmatprep.subr.mxu1 %v11282_v56  ;;  %v11334_v14 = vand.u32 4294901760, %v11301_v62  ;;  %v11338_v15 = vsub.f32 %v11164_v22, %v11178_v25  ;;  %v11499_v32 = vld [vmem:[%s15513_s1 + $0x88] sm:$0xff] }
   0xf   :  { %16400 = vst [vmem:[#allocation27_spill] sm:$0xff] %v11239_v42  ;;  %16401 = vst [vmem:[#allocation28_spill] sm:$0xff] %v11242_v43  ;;  %v11341_v16 = vand.u32 4294901760, %v11292_v59  ;;  %9362 = vmatpush3.msra.mxu0 %v11209_v33  ;;  %9389 = vmatpush3.msra.mxu1 %v11296_v60  ;;  %v11353_v46 = vand.u32 4294901760, %v11319_v6  ;;  %v11357_v22 = vsub.f32 %v11169_v23, %v11184_v27  ;;  %v11360_v51 = vand.u32 4294901760, %v11309_v0  ;;  %v11463_v42 = vld [vmem:[%s15513_s1 + $0x90] sm:$0xff] }
  0x10   :  { %16402 = vst [vmem:[#allocation29_spill] sm:$0xff] %v11245_v44  ;;  %16403 = vst [vmem:[#allocation30_spill] sm:$0xff] %v11253_v47  ;;  %v11350_v45 = vand.u32 4294901760, %v467_v2  ;;  %9363 = vmatprep.subr.mxu0 %v11215_v35  ;;  %9390 = vmatprep.subr.mxu1 %v11313_v1  ;;  %v355_v57 = vsub.f32 %v11301_v62, %v11334_v14  ;;  %v11367_v61 = vand.u32 4294901760, %v11338_v15  ;;  %v11374_v23 = vand.u32 4294901760, %v11327_v8  ;;  %v11445_v47 = vld [vmem:[%s15513_s1 + $0x18] sm:$0xff] }
  0x11   :  { %16404 = vst [vmem:[#allocation31_spill] sm:$0xff] %v11256_v48  ;;  %16405 = vst [vmem:[#allocation32_spill] sm:$0xff] %v11264_v50  ;;  %v11371_v2 = vsub.f32 %v11174_v24, %v11209_v33  ;;  %9364 = vmatpush3.msra.mxu0 %v11228_v39  ;;  %9391 = vmatpush3.msra.mxu1 %v11331_v13  ;;  %v11390_v24 = vsub.f32 %v11192_v29, %v11215_v35  ;;  %v11411_v29 = vld [vmem:[%s15513_s1 + $0x20] sm:$0xff]  ;;  %v11494_v36 = vand.u32 4294901760, %v11445_v47 }
  0x12   :  { %16406 = vst [vmem:[#allocation33_spill] sm:$0xff] %v11269_v52  ;;  %16407 = vst [vmem:[#allocation34_spill] sm:$0xff] %v11272_v53  ;;  %9365 = vmatprep.subr.mxu0 %v11245_v44  ;;  %9392 = vmatprep.subr.mxu1 %v11350_v45  ;;  %v11440_v52 = vsub.f32 %v11202_v31, %v11245_v44  ;;  %v11458_v31 = vsub.f32 %v11233_v40, %v11272_v53 }
  0x13   :  { %16408 = vst [vmem:[#allocation35_spill] sm:$0xff] %v11280_v55  ;;  %16409 = vst [vmem:[#allocation36_spill] sm:$0xff] %v11282_v56  ;;  %v11393_v56 = vand.u32 4294901760, %v11346_v41  ;;  %v11397_v55 = vand.u32 4294901760, %v355_v57  ;;  %v11402_v50 = vand.u32 4294901760, %v11371_v2  ;;  %9366 = vmatpush3.msra.mxu0 %v11272_v53 }
  0x14   :  { %16410 = vst [vmem:[#allocation37_spill] sm:$0xff] %v11287_v58  ;;  %16411 = vst [vmem:[#allocation38_spill] sm:$0xff] %v11296_v60  ;;  %v11386_v60 = vand.u32 4294901760, %v11357_v22  ;;  %9367 = vmatprep.subr.mxu0 %v11304_v63 }
  0x15   :  { %16412 = vst [vmem:[#allocation39_spill] sm:$0xff] %v11301_v62  ;;  %16413 = vst [vmem:[#allocation40_spill] sm:$0xff] %v11304_v63  ;;  %9393 = vmatpush3.msra.mxu1 %v11397_v55  ;;  %9368 = vmatpush3.msra.mxu0 %v11322_v7 }
  0x16   :  { %16414 = vst [vmem:[#allocation41_spill] sm:$0xff] %v11313_v1  ;;  %16415 = vst [vmem:[#allocation42_spill] sm:$0xff] %v11319_v6  ;;  %v474_v1 = vsub.f32 %v11319_v6, %v11353_v46  ;;  %v481_v57 = vsub.f32 %v11357_v22, %v11386_v60  ;;  %9369 = vmatprep.subr.mxu0 %v11341_v16 }
  0x17   :  { %16416 = vst [vmem:[#allocation43_spill] sm:$0xff] %v11322_v7  ;;  %16417 = vst [vmem:[#allocation44_spill] sm:$0xff] %v11331_v13  ;;  %v362_v13 = vsub.f32 %v11338_v15, %v11367_v61  ;;  %9370 = vmatpush3.msra.mxu0 %v11360_v51 }
  0x18   :  { %16418 = vst [vmem:[#allocation45_spill] sm:$0xff] %v11334_v14  ;;  %16419 = vst [vmem:[#allocation46_spill] sm:$0xff] %v11338_v15  ;;  %v11422_v14 = vand.u32 4294901760, %v11379_v9 }
  0x19   :  { %16420 = vst [vmem:[#allocation47_spill] sm:$0xff] %v11341_v16  ;;  %16421 = vst [vmem:[#allocation48_spill] sm:$0xff] %v11350_v45  ;;  %v11414_v45 = vand.u32 4294901760, %v474_v1  ;;  %v11431_v1 = vand.u32 4294901760, %v362_v13  ;;  %v11449_v13 = vand.u32 4294901760, %v481_v57 }
  0x1a   :  { %16422 = vst [vmem:[#allocation49_spill] sm:$0xff] %v11353_v46  ;;  %16423 = vst [vmem:[#allocation50_spill] sm:$0xff] %v11357_v22  ;;  %v11406_v46 = vsub.f32 %v11197_v30, %v11228_v39  ;;  %v11427_v30 = vld [vmem:[%s15513_s1 + $0x98] sm:$0xff] }
  0x1b   :  { %16424 = vst [vmem:[#allocation51_spill] sm:$0xff] %v11360_v51  ;;  %16425 = vst [vmem:[#allocation52_spill] sm:$0xff] %v11367_v61  ;;  %v11419_v61 = vand.u32 4294901760, %v11390_v24  ;;  %9394 = vmatprep.subr.mxu1 %v11414_v45  ;;  %v11475_v40 = vand.u32 4294901760, %v11427_v30 }
  0x1c   :  { %16426 = vst [vmem:[#allocation53_spill] sm:$0xff] %v11371_v2  ;;  %16427 = vst [vmem:[#allocation54_spill] sm:$0xff] %v11374_v23  ;;  %v11436_v58 = vand.u32 4294901760, %v11406_v46  ;;  %9395 = vmatpush3.msra.mxu1 %v11431_v1 }
  0x1d   :  { %16428 = vst [vmem:[#allocation55_spill] sm:$0xff] %v11386_v60  ;;  %16429 = vst [vmem:[#allocation56_spill] sm:$0xff] %v11390_v24  ;;  %v369_v60 = vsub.f32 %v11371_v2, %v11402_v50  ;;  %9396 = vmatprep.subr.mxu1 %v11449_v13 }
  0x1e   :  { %16430 = vst [vmem:[#allocation57_spill] sm:$0xff] %v11393_v56  ;;  %16431 = vst [vmem:[#allocation58_spill] sm:$0xff] %v11397_v55  ;;  %v488_v55 = vsub.f32 %v11390_v24, %v11419_v61 }
  0x1f   :  { %16432 = vst [vmem:[#allocation59_spill] sm:$0xff] %v11402_v50  ;;  %16433 = vst [vmem:[#allocation60_spill] sm:$0xff] %v11406_v46  ;;  %v11454_v50 = vand.u32 4294901760, %v11411_v29  ;;  %v11467_v57 = vand.u32 4294901760, %v369_v60 }
  0x20   :  { %16434 = vst [vmem:[#allocation61_spill] sm:$0xff] %v11414_v45  ;;  %16435 = vst [vmem:[#allocation62_spill] sm:$0xff] %v11419_v61  ;;  %v376_v45 = vsub.f32 %v11406_v46, %v11436_v58  ;;  %v11472_v61 = vand.u32 4294901760, %v11440_v52  ;;  %v11484_v60 = vand.u32 4294901760, %v488_v55 }
  0x21   :  { %16436 = vst [vmem:[#allocation63_spill] sm:$0xff] %v11422_v14  ;;  %16437 = vst [vmem:[#allocation64_spill] sm:$0xff] %v11431_v1  ;;  %v11487_v1 = vand.u32 4294901760, %v11458_v31 }
  0x22   :  { %16438 = vst [vmem:[#allocation65_spill] sm:$0xff] %v11436_v58  ;;  %16439 = vst [vmem:[#allocation66_spill] sm:$0xff] %v11440_v52  ;;  %v11491_v58 = vsub.f32 %v11261_v49, %v11304_v63 }
  0x23   :  { %16440 = vst [vmem:[#allocation67_spill] sm:$0xff] %v11449_v13  ;;  %16441 = vst [vmem:[#allocation68_spill] sm:$0xff] %v11454_v50 }
  0x24   :  { %16442 = vst [vmem:[#allocation69_spill] sm:$0xff] %v11458_v31  ;;  %16443 = vst [vmem:[#allocation70_spill] sm:$0xff] %v11467_v57 }
  0x25   :  { %16444 = vst [vmem:[#allocation71_spill] sm:$0xff] %v11472_v61  ;;  %16445 = vst [vmem:[#allocation72_spill] sm:$0xff] %v11475_v40 }
  0x26   :  { %16446 = vst [vmem:[#allocation73_spill] sm:$0xff] %v11484_v60  ;;  %16447 = vst [vmem:[#allocation74_spill] sm:$0xff] %v11487_v1 }
  0x27   :  { %16448 = vst [vmem:[#allocation75_spill] sm:$0xff] %v11491_v58  ;;  %16449 = vst [vmem:[#allocation76_spill] sm:$0xff] %v11494_v36 }
  0x28   :  { %10 = vsyncpa [#allocation3], 0  ;;  %9397 = vmatpush3.msra.mxu1 %v11467_v57  ;;  %9371 = vmatprep.subr.mxu0 %v11374_v23  ;;  %v11503_v55 = vand.u32 4294901760, %v376_v45  ;;  %v495_v13 = vsub.f32 %v11440_v52, %v11472_v61  ;;  %v11509_v49 = vsub.f32 %v11277_v54, %v11322_v7  ;;  %v11512_v63 = vand.u32 4294901760, %v11463_v42  ;;  %v11531_v7 = vld [vmem:[%s15513_s1 + $0x8] sm:$0xff]  ;;  %v11550_v53 = vld [vmem:[%s15513_s1 + $0x80] sm:$0xff] }
  0x29   :  { %9398 = vmatprep.subr.mxu1 %v11484_v60  ;;  %9372 = vmatpush3.msra.mxu0 %v11393_v56  ;;  %v383_v57 = vsub.f32 %v11458_v31, %v11487_v1  ;;  %v11519_v45 = vand.u32 4294901760, %v11491_v58  ;;  %v11523_v61 = vsub.f32 %v11292_v59, %v11341_v16  ;;  %v11526_v54 = vand.u32 4294901760, %v11480_v37 }
  0x2a   :  { %16450 = vst [vmem:[#allocation77_spill] sm:$0xff] %v11503_v55  ;;  %16451 = vst [vmem:[#allocation78_spill] sm:$0xff] %v11509_v49  ;;  %9399 = vmatpush3.msra.mxu1 %v11503_v55  ;;  %9373 = vmatprep.subr.mxu0 %v11422_v14  ;;  %v11535_v60 = vand.u32 4294901760, %v495_v13  ;;  %v11538_v1 = vand.u32 4294901760, %v11509_v49  ;;  %v11542_v59 = vsub.f32 %v11309_v0, %v11360_v51  ;;  %v11545_v16 = vand.u32 4294901760, %v11499_v32 }
  0x2b   :  { %16452 = vst [vmem:[#allocation79_spill] sm:$0xff] %v11512_v63  ;;  %16453 = vst [vmem:[#allocation80_spill] sm:$0xff] %v11519_v45  ;;  %9374 = vmatpush3.msra.mxu0 %v11454_v50  ;;  %v11553_v55 = vand.u32 4294901760, %v383_v57  ;;  %v502_v13 = vsub.f32 %v11491_v58, %v11519_v45  ;;  %v11558_v44 = vand.u32 4294901760, %v11523_v61  ;;  %v11562_v0 = vsub.f32 %v11327_v8, %v11374_v23  ;;  %v11581_v8 = vld [vmem:[%s15513_s1] sm:$0xff] }
  0x2c   :  { %16454 = vst [vmem:[#allocation81_spill] sm:$0xff] %v11523_v61  ;;  %16455 = vst [vmem:[#allocation82_spill] sm:$0xff] %v11526_v54  ;;  %9400 = vmatprep.subr.mxu1 %v11535_v60  ;;  %9375 = vmatprep.subr.mxu0 %v11475_v40  ;;  %v390_v51 = vsub.f32 %v11509_v49, %v11538_v1  ;;  %v11569_v57 = vand.u32 4294901760, %v11542_v59  ;;  %v11572_v31 = vand.u32 4294901760, %v11531_v7  ;;  %vm3726_vm0 = vcmask 1041408  }
  0x2d   :  { %16456 = vst [vmem:[#allocation83_spill] sm:$0xff] %v11535_v60  ;;  %16457 = vst [vmem:[#allocation84_spill] sm:$0xff] %v11538_v1  ;;  %v11576_v45 = vsub.f32 %v11346_v41, %v11393_v56  ;;  %9401 = vmatpush3.msra.mxu1 %v11553_v55  ;;  %v11584_v60 = vand.u32 4294901760, %v502_v13  ;;  %9376 = vmatpush3.msra.mxu0 %v11494_v36  ;;  %v509_v1 = vsub.f32 %v11523_v61, %v11558_v44  ;;  %vm3666_vm1 = vcmask 74752  }
  0x2e   :  { %16458 = vst [vmem:[#allocation85_spill] sm:$0xff] %v11542_v59  ;;  %16459 = vst [vmem:[#allocation86_spill] sm:$0xff] %v11545_v16  ;;  %v11590_v23 = vand.u32 4294901760, %v11562_v0  ;;  %v11593_v41 = vand.u32 4294901760, %v11550_v53  ;;  %v11595_v56 = vand.u32 4294901760, %v390_v51  ;;  %9377 = vmatprep.subr.mxu0 %v11512_v63  ;;  %v11605_v49 = vsub.f32 %v11379_v9, %v11422_v14 }
  0x2f   :  { %16460 = vst [vmem:[#allocation87_spill] sm:$0xff] %v11553_v55  ;;  %16461 = vst [vmem:[#allocation88_spill] sm:$0xff] %v11558_v44  ;;  %v397_v55 = vsub.f32 %v11542_v59, %v11569_v57  ;;  %v11601_v13 = vand.u32 4294901760, %v11576_v45  ;;  %9402 = vmatprep.subr.mxu1 %v11584_v60  ;;  %v11608_v44 = vand.u32 4294901760, %v509_v1  ;;  %9378 = vmatpush3.msra.mxu0 %v11526_v54  ;;  %v11614_v61 = vand.u32 4294901760, %v11581_v8 }
  0x30   :  { %16462 = vst [vmem:[#allocation89_spill] sm:$0xff] %v11562_v0  ;;  %16463 = vst [vmem:[#allocation90_spill] sm:$0xff] %v11569_v57  ;;  %v516_v51 = vsub.f32 %v11562_v0, %v11590_v23  ;;  %v11618_v57 = vsub.f32 %v11411_v29, %v11454_v50  ;;  %9403 = vmatpush3.msra.mxu1 %v11595_v56  ;;  %9379 = vmatprep.subr.mxu0 %v11545_v16  ;;  %vm7263_vm2 = vcmask 80896  }
  0x31   :  { %16464 = vst [vmem:[#allocation91_spill] sm:$0xff] %v11572_v31  ;;  %16465 = vst [vmem:[#allocation92_spill] sm:$0xff] %v11576_v45  ;;  %v11621_v9 = vand.u32 4294901760, %v397_v55  ;;  %v404_v1 = vsub.f32 %v11576_v45, %v11601_v13  ;;  %9404 = vmatprep.subr.mxu1 %v11608_v44  ;;  %9380 = vmatpush3.msra.mxu0 %v11572_v31  ;;  %v179_v55 = vunpack.c.0.s8 %v11148_v17 }
  0x32   :  { %16466 = vst [vmem:[#allocation93_spill] sm:$0xff] %v11584_v60  ;;  %16467 = vst [vmem:[#allocation94_spill] sm:$0xff] %v11590_v23  ;;  %v11627_v60 = vand.u32 4294901760, %v11605_v49  ;;  %v11630_v23 = vand.u32 4294901760, %v516_v51  ;;  %v11634_v29 = vand.u32 4294901760, %v11618_v57  ;;  %9381 = vmatprep.subr.mxu0 %v11593_v41  ;;  %v11653_v17 = vsub.f32 %v11427_v30, %v11475_v40 }
  0x33   :  { %16468 = vst [vmem:[#allocation95_spill] sm:$0xff] %v11593_v41  ;;  %16469 = vst [vmem:[#allocation96_spill] sm:$0xff] %v11595_v56  ;;  %v16479_v56 = vlaneseq  ;;  %9405 = vmatpush3.msra.mxu1 %v11621_v9  ;;  %9382 = vmatpush3.msra.mxu0 %v11614_v61 }
  0x34   :  { %16470 = vst [vmem:[#allocation97_spill] sm:$0xff] %v11601_v13  ;;  %16471 = vst [vmem:[#allocation98_spill] sm:$0xff] %v11605_v49  ;;  %v11641_v13 = vand.u32 4294901760, %v404_v1  ;;  %v523_v51 = vsub.f32 %v11605_v49, %v11627_v60  ;;  %9406 = vmatprep.subr.mxu1 %v11630_v23  ;;  %v411_v1 = vsub.f32 %v11618_v57, %v11634_v29  ;;  %9421 = vmatprep.subr.mxu0 %v11159_v21 }
  0x35   :  { %16472 = vst [vmem:[#allocation99_spill] sm:$0xff] %v11608_v44  ;;  %16473 = vst [vmem:[#allocation100_spill] sm:$0xff] %v11614_v61  ;;  %v11638_v50 = vshrl.u32 %v16479_v56, 7  ;;  %v11649_v44 = vld [vmem:[%s15512_s0] sm:$0xff]  ;;  %v11657_v56 = vsub.f32 %v11445_v47, %v11494_v36  ;;  %v11674_v47 = vand.u32 4294901760, %v11653_v17 }
  0x36   :  { %16474 = vst [vmem:[#allocation101_spill] sm:$0xff] %v11618_v57  ;;  %16475 = vst [vmem:[#allocation102_spill] sm:$0xff] %v11621_v9  ;;  %9407 = vmatpush3.msra.mxu1 %v11641_v13  ;;  %v11671_v30 = vand.u32 4294901760, %v523_v51 }
  0x37   :  { %16476 = vst [vmem:[#allocation103_spill] sm:$0xff] %v11627_v60  ;;  %16477 = vst [vmem:[#allocation104_spill] sm:$0xff] %v11630_v23  ;;  %v11664_v9 = vsub.s32 %v179_v55, %v11638_v50  ;;  %v11668_v60 = vsub.f32 %v11463_v42, %v11512_v63  ;;  %v11678_v23 = vand.u32 4294901760, %v11657_v56  ;;  %v11682_v55 = vsub.f32 %v11480_v37, %v11526_v54 }
  0x38   :  { %16478 = vst [vmem:[#allocation105_spill] sm:$0xff] %v11634_v29  ;;  %16480 = vst [vmem:[#allocation106_spill] sm:$0xff] %v11638_v50  ;;  %v11684_v50 = vand.u32 4294901760, %v411_v1  ;;  %9408 = vmatprep.subr.mxu1 %v11671_v30  ;;  %v530_v21 = vsub.f32 %v11653_v17, %v11674_v47 }
  0x39   :  { %16481 = vst [vmem:[#allocation107_spill] sm:$0xff] %v11641_v13  ;;  %16482 = vst [vmem:[#allocation108_spill] sm:$0xff] %v11649_v44  ;;  %v183_v42 = vrot.slane %v11649_v44, %v11664_v9  ;;  %v11689_v51 = vand.u32 4294901760, %v11668_v60  ;;  %v11693_v13 = vsub.f32 %v11499_v32, %v11545_v16  ;;  %v418_v37 = vsub.f32 %v11657_v56, %v11678_v23 }
  0x3a   :  { %16483 = vst [vmem:[#allocation109_spill] sm:$0xff] %v11653_v17  ;;  %16484 = vst [vmem:[#allocation110_spill] sm:$0xff] %v11657_v56  ;;  %v11701_v1 = vand.u32 4294901760, %v11682_v55  ;;  %9409 = vmatpush3.msra.mxu1 %v11684_v50  ;;  %v11715_v29 = vand.u32 4294901760, %v530_v21 }
  0x3b   :  { %16485 = vst [vmem:[#allocation111_spill] sm:$0xff] %v11664_v9  ;;  %16486 = vst [vmem:[#allocation112_spill] sm:$0xff] %v11668_v60  ;;  %v11705_v9 = vsub.f32 %v11531_v7, %v11572_v31  ;;  %v191_v44 = vcombine.high %v183_v42, %v183_v42  ;;  %v11708_v32 = vand.u32 4294901760, %v183_v42 }
  0x3c   :  { %16487 = vst [vmem:[#allocation113_spill] sm:$0xff] %v11671_v30  ;;  %16488 = vst [vmem:[#allocation114_spill] sm:$0xff] %v11674_v47  ;;  %v537_v30 = vsub.f32 %v11668_v60, %v11689_v51  ;;  %v11713_v47 = vand.u32 4294901760, %v11693_v13  ;;  %v425_v16 = vsub.f32 %v11682_v55, %v11701_v1  ;;  %9410 = vmatprep.subr.mxu1 %v11715_v29 }
  0x3d   :  { %16489 = vst [vmem:[#allocation115_spill] sm:$0xff] %v11678_v23  ;;  %16490 = vst [vmem:[#allocation116_spill] sm:$0xff] %v11682_v55  ;;  %v11717_v23 = vand.u32 4294901760, %v418_v37  ;;  %v11722_v7 = vand.u32 4294901760, %v11705_v9  ;;  %v11727_v31 = vsub.f32 %v183_v42, %v11708_v32  ;;  %v11744_v42 = vsub.f32 %v11581_v8, %v11614_v61 }
  0x3e   :  { %16491 = vst [vmem:[#allocation117_spill] sm:$0xff] %v11684_v50  ;;  %16492 = vst [vmem:[#allocation118_spill] sm:$0xff] %v11689_v51  ;;  %v11724_v50 = vand.u32 4294901760, %v191_v44  ;;  %v11729_v54 = vand.u32 4294901760, %v537_v30  ;;  %v544_v51 = vsub.f32 %v11693_v13, %v11713_v47  ;;  %v11734_v21 = vand.u32 4294901760, %v425_v16 }
  0x3f   :  { %16493 = vst [vmem:[#allocation119_spill] sm:$0xff] %v11693_v13  ;;  %16494 = vst [vmem:[#allocation120_spill] sm:$0xff] %v11701_v1  ;;  %v432_v37 = vsub.f32 %v11705_v9, %v11722_v7  ;;  %v11740_v1 = vsub.f32 %v11550_v53, %v11593_v41  ;;  %9411 = vmatpush3.msra.mxu1 %v11717_v23  ;;  %v11761_v8 = vand.u32 4294901760, %v11744_v42 }
  0x40   :  { %16495 = vst [vmem:[#allocation121_spill] sm:$0xff] %v11705_v9  ;;  %16496 = vst [vmem:[#allocation122_spill] sm:$0xff] %v11713_v47  ;;  %v11747_v30 = vsub.f32 %v191_v44, %v11724_v50  ;;  %v15643_v47 = vand.u32 4294901760, %v11727_v31  ;;  %v11751_v16 = vand.u32 4294901760, %v544_v51  ;;  %555 = vmatprep.mubr.f32.mxu1 %v11724_v50  ;;  %9412 = vmatprep.subr.mxu1 %v11729_v54 }
  0x41   :  { %16497 = vst [vmem:[#allocation123_spill] sm:$0xff] %v11715_v29  ;;  %16498 = vst [vmem:[#allocation124_spill] sm:$0xff] %v11717_v23  ;;  %v11755_v29 = vand.u32 4294901760, %v432_v37  ;;  %v11758_v53 = vand.u32 4294901760, %v11740_v1  ;;  %9413 = vmatpush3.msra.mxu1 %v11734_v21  ;;  %v439_v37 = vsub.f32 %v11744_v42, %v11761_v8 }
  0x42   :  { %16499 = vst [vmem:[#allocation125_spill] sm:$0xff] %v11722_v7  ;;  %16500 = vst [vmem:[#allocation126_spill] sm:$0xff] %v11724_v50  ;;  %v15645_v44 = vand.u32 4294901760, %v11747_v30  ;;  %v323_v23 = vsub.f32 %v11727_v31, %v15643_v47  ;;  %9414 = vmatprep.subr.mxu1 %v11751_v16 }
  0x43   :  { %16501 = vst [vmem:[#allocation127_spill] sm:$0xff] %v11729_v54  ;;  %16502 = vst [vmem:[#allocation128_spill] sm:$0xff] %v11734_v21  ;;  %v551_v51 = vsub.f32 %v11740_v1, %v11758_v53  ;;  %9415 = vmatpush3.msra.mxu1 %v11755_v29  ;;  %v11779_v47 = vand.u32 4294901760, %v439_v37  ;;  %v16516_v37 = vld [vmem:[#allocation81_spill] sm:$0xff] }
  0x44   :  { %16503 = vst [vmem:[#allocation129_spill] sm:$0xff] %v11740_v1  ;;  %16504 = vst [vmem:[#allocation130_spill] sm:$0xff] %v11744_v42  ;;  %v317_v54 = vsub.f32 %v11747_v30, %v15645_v44  ;;  %v324_v7 = vand.u32 4294901760, %v323_v23  ;;  %v16511_v23 = vld [vmem:[#allocation69_spill] sm:$0xff]  ;;  %v16517_v44 = vld [vmem:[#allocation43_spill] sm:$0xff] }
  0x45   :  { %16505 = vst [vmem:[#allocation131_spill] sm:$0xff] %v11751_v16  ;;  %16506 = vst [vmem:[#allocation132_spill] sm:$0xff] %v11755_v29  ;;  %v11777_v50 = vand.u32 4294901760, %v551_v51  ;;  %v16515_v51 = vld [vmem:[#allocation40_spill] sm:$0xff]  ;;  %v63_v29 = vld [vmem:[%s15513_s1 + $0x150] sm:$0xff] }
  0x46   :  { %16507 = vst [vmem:[#allocation133_spill] sm:$0xff] %v11758_v53  ;;  %16508 = vst [vmem:[#allocation134_spill] sm:$0xff] %v11761_v8  ;;  %v318_v21 = vand.u32 4294901760, %v317_v54  ;;  %v16512_v54 = vld [vmem:[#allocation29_spill] sm:$0xff]  ;;  %v16568_v16 = vld [vmem:[#allocation114_spill] sm:$0xff] }
  0x47   :  { %16509 = vst [vmem:[#allocation135_spill] sm:$0xff] %v11777_v50  ;;  %16510 = vst [vmem:[#allocation136_spill] sm:$0xff] %v11779_v47  ;;  %9416 = vmatprep.subr.mxu1 %v11777_v50  ;;  %v16564_v50 = vld [vmem:[#allocation105_spill] sm:$0xff] }
  0x48   :  { %319 = vmatprep.mubr.f32.mxu0 %v318_v21  ;;  %9417 = vmatpush3.msra.mxu1 %v11779_v47  ;;  %v16514_v21 = vld [vmem:[#allocation78_spill] sm:$0xff]  ;;  %v16561_v47 = vld [vmem:[#allocation103_spill] sm:$0xff] }
  0x49   :  { %325 = vmatmul.mubr.f32.vlgmr.msra.gmra.mxu0 %v324_v7  ;;  %557 = vmatmul.mubr.f32.vlgmr.msra.gmra.mxu1 %v11708_v32  ;;  %v16513_v7 = vld [vmem:[#allocation34_spill] sm:$0xff] }
  0x4a   :  { %9422 = vmatpush3.msra.mxu0 %v11181_v26  ;;  %9456 = vmatprep.subr.mxu1 %v11116_v3  ;;  %v16572_v26 = vld [vmem:[#allocation115_spill] sm:$0xff] }
  0x4b   :  { %9423 = vmatprep.subr.mxu0 %v11187_v28  ;;  %9457 = vmatpush3.msra.mxu1 %v11118_v4  ;;  %v78_v28 = vld [vmem:[%s15513_s1 + $0x1c8] sm:$0xff] }
  0x4c   :  { %9424 = vmatpush3.msra.mxu0 %v11212_v34  ;;  %9458 = vmatprep.subr.mxu1 %v11120_v5 }
  0x4d   :  { %9425 = vmatprep.subr.mxu0 %v11225_v38  ;;  %9459 = vmatpush3.msra.mxu1 %v11131_v10 }
  0x4e   :  { %9426 = vmatpush3.msra.mxu0 %v11242_v43  ;;  %9460 = vmatprep.subr.mxu1 %v11133_v11 }
  0x4f   :  { %9427 = vmatprep.subr.mxu0 %v11256_v48  ;;  %9461 = vmatpush3.msra.mxu1 %v11135_v12 }
  0x50   :  { %9428 = vmatpush3.msra.mxu0 %v11301_v62  ;;  %9462 = vmatprep.subr.mxu1 %v11151_v18  ;;  %v16559_v62 = vld [vmem:[#allocation97_spill] sm:$0xff] }
  0x51   :  { %9429 = vmatprep.subr.mxu0 %v11319_v6  ;;  %9463 = vmatpush3.msra.mxu1 %v11153_v19  ;;  %v65_v6 = vld [vmem:[%s15513_s1 + $0x160] sm:$0xff] }
  0x52   :  { %9430 = vmatpush3.msra.mxu0 %v11338_v15  ;;  %9464 = vmatprep.subr.mxu1 %v11156_v20 }
  0x53   :  { %9431 = vmatprep.subr.mxu0 %v11357_v22  ;;  %9465 = vmatpush3.msra.mxu1 %v11178_v25  ;;  %v16553_v22 = vld [vmem:[#allocation90_spill] sm:$0xff] }
  0x54   :  { %9432 = vmatpush3.msra.mxu0 %v11371_v2  ;;  %9466 = vmatprep.subr.mxu1 %v11184_v27 }
  0x55   :  { %9433 = vmatprep.subr.mxu0 %v11390_v24  ;;  %9467 = vmatpush3.msra.mxu1 %v11209_v33 }
  0x56   :  { %9434 = vmatpush3.msra.mxu0 %v11406_v46  ;;  %9468 = vmatprep.subr.mxu1 %v11215_v35  ;;  %v16550_v46 = vld [vmem:[#allocation88_spill] sm:$0xff] }
  0x57   :  { %9435 = vmatprep.subr.mxu0 %v11440_v52  ;;  %9469 = vmatpush3.msra.mxu1 %v11228_v39  ;;  %v16518_v52 = vld [vmem:[#allocation47_spill] sm:$0xff] }
  0x58   :  { %9436 = vmatpush3.msra.mxu0 %v16511_v23  ;;  %9470 = vmatprep.subr.mxu1 %v16512_v54  ;;  %v16519_v23 = vld [vmem:[#allocation51_spill] sm:$0xff] }
  0x59   :  { %9437 = vmatprep.subr.mxu0 %v11491_v58  ;;  %9471 = vmatpush3.msra.mxu1 %v16513_v7  ;;  %v16520_v58 = vld [vmem:[#allocation54_spill] sm:$0xff] }
  0x5a   :  { %9438 = vmatpush3.msra.mxu0 %v16514_v21  ;;  %9472 = vmatprep.subr.mxu1 %v16515_v51  ;;  %v16521_v21 = vld [vmem:[#allocation57_spill] sm:$0xff] }
  0x5b   :  { %9439 = vmatprep.subr.mxu0 %v16516_v37  ;;  %9473 = vmatpush3.msra.mxu1 %v16517_v44  ;;  %v16549_v37 = vld [vmem:[#allocation84_spill] sm:$0xff] }
  0x5c   :  { %9440 = vmatpush3.msra.mxu0 %v11542_v59  ;;  %9474 = vmatprep.subr.mxu1 %v16518_v52 }
  0x5d   :  { %9441 = vmatprep.subr.mxu0 %v11562_v0  ;;  %9475 = vmatpush3.msra.mxu1 %v16519_v23  ;;  %v16522_v0 = vld [vmem:[#allocation68_spill] sm:$0xff] }
  0x5e   :  { %9442 = vmatpush3.msra.mxu0 %v11576_v45  ;;  %9476 = vmatprep.subr.mxu1 %v16520_v58  ;;  %v16533_v45 = vld [vmem:[#allocation33_spill] sm:$0xff] }
  0x5f   :  { %9443 = vmatprep.subr.mxu0 %v11605_v49  ;;  %9477 = vmatpush3.msra.mxu1 %v16521_v21  ;;  %v16532_v49 = vand.u32 4294901760, %v11727_v31 }
  0x60   :  { %9444 = vmatpush3.msra.mxu0 %v11618_v57  ;;  %9478 = vmatprep.subr.mxu1 %v11422_v14  ;;  %v16527_v57 = vld [vmem:[#allocation23_spill] sm:$0xff] }
  0x61   :  { %9445 = vmatprep.subr.mxu0 %v11653_v17  ;;  %692 = vmatprep.mubr.f32.mxu0 %v11747_v30  ;;  %v16523_v17 = vld [vmem:[#allocation82_spill] sm:$0xff] }
  0x62   :  { %9446 = vmatpush3.msra.mxu0 %v11657_v56  ;;  %9479 = vmatpush3.msra.mxu1 %v16522_v0  ;;  %v16524_v56 = vld [vmem:[#allocation86_spill] sm:$0xff] }
  0x63   :  { %9447 = vmatprep.subr.mxu0 %v11668_v60  ;;  %9480 = vmatprep.subr.mxu1 %v11475_v40  ;;  %v16525_v60 = vld [vmem:[#allocation91_spill] sm:$0xff] }
  0x64   :  { %9448 = vmatpush3.msra.mxu0 %v11682_v55  ;;  %9481 = vmatpush3.msra.mxu1 %v11494_v36  ;;  %v16526_v55 = vld [vmem:[#allocation19_spill] sm:$0xff] }
  0x65   :  { %9449 = vmatprep.subr.mxu0 %v11693_v13  ;;  %9482 = vmatprep.subr.mxu1 %v11512_v63  ;;  %v16528_v13 = vld [vmem:[#allocation24_spill] sm:$0xff] }
  0x66   :  { %9450 = vmatpush3.msra.mxu0 %v11705_v9  ;;  %9483 = vmatpush3.msra.mxu1 %v16523_v17  ;;  %v16529_v9 = vld [vmem:[#allocation27_spill] sm:$0xff] }
  0x67   :  { %9451 = vmatprep.subr.mxu0 %v11740_v1  ;;  %9484 = vmatprep.subr.mxu1 %v16524_v56  ;;  %v16530_v1 = vand.u32 4294901760, %v11747_v30  ;;  %v84_v30 = vld [vmem:[%s15513_s1 + $0x1f8] sm:$0xff] }
  0x68   :  { %9452 = vmatpush3.msra.mxu0 %v11744_v42  ;;  %9485 = vmatpush3.msra.mxu1 %v16525_v60  ;;  %v16531_v42 = vld [vmem:[#allocation30_spill] sm:$0xff] }
  0x69   :  { %695 = vmatmul.mubr.f32.vlgmr.msra.gmra.mxu0 %v11727_v31  ;;  %9491 = vmatprep.subr.mxu0 %v16526_v55  ;;  %v16538_v31 = vld [vmem:[#allocation55_spill] sm:$0xff]  ;;  %v16546_v55 = vld [vmem:[#allocation80_spill] sm:$0xff] }
  0x6a   :  { %9492 = vmatpush3.msra.mxu0 %v16527_v57  ;;  %9486 = vmatprep.subr.mxu1 %v11593_v41  ;;  %v16534_v57 = vld [vmem:[#allocation37_spill] sm:$0xff] }
  0x6b   :  { %9493 = vmatprep.subr.mxu0 %v16528_v13  ;;  %9487 = vmatpush3.msra.mxu1 %v11614_v61  ;;  %v16535_v13 = vld [vmem:[#allocation45_spill] sm:$0xff] }
  0x6c   :  { %9494 = vmatpush3.msra.mxu0 %v16529_v9  ;;  %799 = vmatprep.mubr.f32.mxu1 %v16530_v1  ;;  %v16536_v9 = vld [vmem:[#allocation49_spill] sm:$0xff]  ;;  %v16537_v1 = vld [vmem:[#allocation52_spill] sm:$0xff] }
  0x6d   :  { %9495 = vmatprep.subr.mxu0 %v16531_v42  ;;  %803 = vmatmul.mubr.f32.vlgmr.msra.gmra.mxu1 %v16532_v49  ;;  %v16539_v49 = vld [vmem:[#allocation59_spill] sm:$0xff]  ;;  %v82_v42 = vld [vmem:[%s15513_s1 + $0x1e8] sm:$0xff] }
  0x6e   :  { %9496 = vmatpush3.msra.mxu0 %v16533_v45  ;;  %9526 = vmatprep.subr.mxu1 %v11116_v3  ;;  %v16544_v45 = vld [vmem:[#allocation74_spill] sm:$0xff]  ;;  %v11912_v24 = vand.u32 4294901760, %v82_v42 }
  0x6f   :  { %9497 = vmatprep.subr.mxu0 %v16534_v57  ;;  %9527 = vmatpush3.msra.mxu1 %v11118_v4  ;;  %v16542_v57 = vld [vmem:[#allocation71_spill] sm:$0xff] }
  0x70   :  { %9498 = vmatpush3.msra.mxu0 %v16535_v13  ;;  %9528 = vmatprep.subr.mxu1 %v11120_v5  ;;  %v16540_v13 = vld [vmem:[#allocation62_spill] sm:$0xff]  ;;  %16551 = vst [vmem:[#allocation141_spill] sm:$0xff] %v11912_v24  ;;  %v11957_v48 = vsub.f32 %v82_v42, %v11912_v24 }
  0x71   :  { %9499 = vmatprep.subr.mxu0 %v16536_v9  ;;  %9529 = vmatpush3.msra.mxu1 %v11131_v10  ;;  %v16541_v9 = vld [vmem:[#allocation65_spill] sm:$0xff]  ;;  %v76_v10 = vld [vmem:[%s15513_s1 + $0x1b8] sm:$0xff] }
  0x72   :  { %9500 = vmatpush3.msra.mxu0 %v16537_v1  ;;  %9530 = vmatprep.subr.mxu1 %v11133_v11  ;;  %v68_v1 = vld [vmem:[%s15513_s1 + $0x178] sm:$0xff]  ;;  %16563 = vst [vmem:[#allocation149_spill] sm:$0xff] %v11957_v48 }
  0x73   :  { %9501 = vmatprep.subr.mxu0 %v16538_v31  ;;  %9531 = vmatpush3.msra.mxu1 %v11135_v12  ;;  %v67_v31 = vld [vmem:[%s15513_s1 + $0x170] sm:$0xff] }
  0x74   :  { %9502 = vmatpush3.msra.mxu0 %v16539_v49  ;;  %9532 = vmatprep.subr.mxu1 %v11151_v18  ;;  %v83_v49 = vld [vmem:[%s15513_s1 + $0x1f0] sm:$0xff] }
  0x75   :  { %9503 = vmatprep.subr.mxu0 %v16540_v13  ;;  %9533 = vmatpush3.msra.mxu1 %v11153_v19  ;;  %v11890_v13 = vand.u32 4294901760, %v84_v30  ;;  %v11901_v59 = vand.u32 4294901760, %v83_v49  ;;  %v16588_v18 = vld [vmem:[#allocation125_spill] sm:$0xff] }
  0x76   :  { %9504 = vmatpush3.msra.mxu0 %v16541_v9  ;;  %9534 = vmatprep.subr.mxu1 %v11156_v20  ;;  %v11894_v9 = vand.u32 4294901760, %v68_v1 }
  0x77   :  { %9505 = vmatprep.subr.mxu0 %v16542_v57  ;;  %9535 = vmatpush3.msra.mxu1 %v11178_v25  ;;  %16543 = vst [vmem:[#allocation137_spill] sm:$0xff] %v11890_v13  ;;  %16547 = vst [vmem:[#allocation139_spill] sm:$0xff] %v11901_v59  ;;  %v11903_v57 = vand.u32 4294901760, %v67_v31  ;;  %v11918_v2 = vsub.f32 %v84_v30, %v11890_v13  ;;  %v11933_v30 = vsub.f32 %v83_v49, %v11901_v59 }
  0x78   :  { %9506 = vmatpush3.msra.mxu0 %v16544_v45  ;;  %9536 = vmatprep.subr.mxu1 %v11184_v27  ;;  %16545 = vst [vmem:[#allocation138_spill] sm:$0xff] %v11894_v9  ;;  %v66_v45 = vld [vmem:[%s15513_s1 + $0x168] sm:$0xff]  ;;  %v11925_v15 = vsub.f32 %v68_v1, %v11894_v9  ;;  %v16584_v27 = vld [vmem:[#allocation122_spill] sm:$0xff] }
  0x79   :  { %9507 = vmatprep.subr.mxu0 %v16546_v55  ;;  %9537 = vmatpush3.msra.mxu1 %v11209_v33  ;;  %16548 = vst [vmem:[#allocation140_spill] sm:$0xff] %v11903_v57  ;;  %v81_v55 = vld [vmem:[%s15513_s1 + $0x1e0] sm:$0xff]  ;;  %16552 = vst [vmem:[#allocation142_spill] sm:$0xff] %v11918_v2  ;;  %v11948_v49 = vand.u32 4294901760, %v11918_v2 }
  0x7a   :  { %9508 = vmatpush3.msra.mxu0 %v16549_v37  ;;  %9538 = vmatprep.subr.mxu1 %v11215_v35  ;;  %v11922_v37 = vand.u32 4294901760, %v66_v45  ;;  %16555 = vst [vmem:[#allocation144_spill] sm:$0xff] %v11925_v15  ;;  %16557 = vst [vmem:[#allocation145_spill] sm:$0xff] %v11933_v30  ;;  %v11940_v1 = vand.u32 4294901760, %v81_v55  ;;  %v11964_v43 = vand.u32 4294901760, %v11925_v15  ;;  %v61_v35 = vld [vmem:[%s15513_s1 + $0x140] sm:$0xff] }
  0x7b   :  { %9509 = vmatprep.subr.mxu0 %v16550_v46  ;;  %9539 = vmatpush3.msra.mxu1 %v11228_v39  ;;  %v16556_v46 = vld [vmem:[#allocation94_spill] sm:$0xff]  ;;  %16562 = vst [vmem:[#allocation148_spill] sm:$0xff] %v11948_v49  ;;  %v16580_v39 = vld [vmem:[#allocation120_spill] sm:$0xff] }
  0x7c   :  { %9510 = vmatpush3.msra.mxu0 %v16553_v22  ;;  %9540 = vmatprep.subr.mxu1 %v16512_v54  ;;  %16554 = vst [vmem:[#allocation143_spill] sm:$0xff] %v11922_v37  ;;  %v11936_v22 = vsub.f32 %v67_v31, %v11903_v57  ;;  %16560 = vst [vmem:[#allocation147_spill] sm:$0xff] %v11940_v1  ;;  %v64_v31 = vld [vmem:[%s15513_s1 + $0x158] sm:$0xff]  ;;  %v11970_v38 = vsub.f32 %v66_v45, %v11922_v37  ;;  %v12006_v54 = vand.u32 4294901760, %v11957_v48 }
  0x7d   :  { %9511 = vmatprep.subr.mxu0 %v16556_v46  ;;  %9541 = vmatpush3.msra.mxu1 %v16513_v7  ;;  %v80_v46 = vld [vmem:[%s15513_s1 + $0x1d8] sm:$0xff]  ;;  %16566 = vst [vmem:[#allocation151_spill] sm:$0xff] %v11964_v43  ;;  %v11987_v45 = vand.u32 4294901760, %v64_v31 }
  0x7e   :  { %16558 = vst [vmem:[#allocation146_spill] sm:$0xff] %v11936_v22  ;;  %9512 = vmatpush3.msra.mxu0 %v16559_v62  ;;  %9542 = vmatprep.subr.mxu1 %v16515_v51  ;;  %v79_v62 = vld [vmem:[%s15513_s1 + $0x1d0] sm:$0xff]  ;;  %16567 = vst [vmem:[#allocation152_spill] sm:$0xff] %v11970_v38  ;;  %v11974_v42 = vand.u32 4294901760, %v80_v46  ;;  %v11980_v34 = vand.u32 4294901760, %v11936_v22  ;;  %v16577_v7 = vld [vmem:[#allocation118_spill] sm:$0xff]  ;;  %v1196_v51 = vsub.f32 %v11925_v15, %v11964_v43 }
  0x7f   :  { %9513 = vmatprep.subr.mxu0 %v16561_v47  ;;  %9543 = vmatpush3.msra.mxu1 %v16517_v44  ;;  %v11961_v47 = vand.u32 4294901760, %v65_v6  ;;  %16573 = vst [vmem:[#allocation156_spill] sm:$0xff] %v11987_v45  ;;  %v16576_v44 = vld [vmem:[#allocation108_spill] sm:$0xff]  ;;  %16579 = vst [vmem:[#allocation159_spill] sm:$0xff] %v12006_v54  ;;  %v12045_v12 = vsub.f32 %v64_v31, %v11987_v45 }
  0x80   :  { %9514 = vmatpush3.msra.mxu0 %v16564_v50  ;;  %9544 = vmatprep.subr.mxu1 %v16518_v52  ;;  %16569 = vst [vmem:[#allocation153_spill] sm:$0xff] %v11974_v42  ;;  %v11977_v50 = vand.u32 4294901760, %v11933_v30  ;;  %16571 = vst [vmem:[#allocation155_spill] sm:$0xff] %v11980_v34  ;;  %v11995_v52 = vsub.f32 %v81_v55, %v11940_v1  ;;  %v77_v55 = vld [vmem:[%s15513_s1 + $0x1c0] sm:$0xff]  ;;  %v1203_v25 = vsub.f32 %v11936_v22, %v11980_v34 }
  0x81   :  { %16565 = vst [vmem:[#allocation150_spill] sm:$0xff] %v11961_v47  ;;  %9515 = vmatprep.subr.mxu0 %v16568_v16  ;;  %9545 = vmatpush3.msra.mxu1 %v16519_v23  ;;  %v11989_v16 = vand.u32 4294901760, %v79_v62  ;;  %v62_v23 = vld [vmem:[%s15513_s1 + $0x148] sm:$0xff]  ;;  %v12024_v33 = vsub.f32 %v65_v6, %v11961_v47  ;;  %v12035_v19 = vsub.f32 %v80_v46, %v11974_v42  ;;  %v12039_v6 = vand.u32 4294901760, %v77_v55 }
  0x82   :  { %16570 = vst [vmem:[#allocation154_spill] sm:$0xff] %v11977_v50  ;;  %9516 = vmatpush3.msra.mxu0 %v16572_v26  ;;  %9546 = vmatprep.subr.mxu1 %v16520_v58  ;;  %16575 = vst [vmem:[#allocation158_spill] sm:$0xff] %v11995_v52  ;;  %v1308_v26 = vsub.f32 %v11918_v2, %v11948_v49  ;;  %v12003_v58 = vand.u32 4294901760, %v63_v29  ;;  %v12032_v20 = vand.u32 4294901760, %v62_v23  ;;  %v16615_v49 = vld [vmem:[#allocation111_spill] sm:$0xff] }
  0x83   :  { %16574 = vst [vmem:[#allocation157_spill] sm:$0xff] %v11989_v16  ;;  %9517 = vmatprep.subr.mxu0 %v16577_v7  ;;  %9547 = vmatpush3.msra.mxu1 %v16521_v21  ;;  %v12015_v7 = vand.u32 4294901760, %v78_v28  ;;  %v12018_v21 = vand.u32 4294901760, %v11970_v38  ;;  %16583 = vst [vmem:[#allocation162_spill] sm:$0xff] %v12024_v33  ;;  %v12048_v11 = vsub.f32 %v79_v62, %v11989_v16  ;;  %v12066_v62 = vand.u32 4294901760, %v1196_v51 }
  0x84   :  { %16578 = vst [vmem:[#allocation108_spill] sm:$0xff] %v12003_v58  ;;  %9518 = vmatpush3.msra.mxu0 %v16580_v39  ;;  %9548 = vmatprep.subr.mxu1 %v11422_v14  ;;  %v16585_v39 = vld [vmem:[#allocation126_spill] sm:$0xff]  ;;  %v1315_v14 = vsub.f32 %v11933_v30, %v11977_v50  ;;  %16587 = vst [vmem:[#allocation163_spill] sm:$0xff] %v12035_v19  ;;  %v12052_v46 = vand.u32 4294901760, %v1308_v26  ;;  %v12062_v31 = vsub.f32 %v63_v29, %v12003_v58 }
  0x85   :  { %16581 = vst [vmem:[#allocation160_spill] sm:$0xff] %v12015_v7  ;;  %16582 = vst [vmem:[#allocation161_spill] sm:$0xff] %v12018_v21  ;;  %9519 = vmatprep.subr.mxu0 %v16584_v27  ;;  %969 = vmatprep.mubr.f32.mxu0 %v16585_v39  ;;  %v12042_v27 = vand.u32 4294901760, %v11995_v52  ;;  %v1210_v26 = vsub.f32 %v11970_v38, %v12018_v21  ;;  %v12077_v5 = vsub.f32 %v78_v28, %v12015_v7 }
  0x86   :  { %16586 = vst [vmem:[#allocation126_spill] sm:$0xff] %v12032_v20  ;;  %9520 = vmatpush3.msra.mxu0 %v16588_v18  ;;  %9549 = vmatpush3.msra.mxu1 %v16522_v0  ;;  %16589 = vst [vmem:[#allocation164_spill] sm:$0xff] %v12039_v6  ;;  %v1322_v18 = vsub.f32 %v11957_v48, %v12006_v54  ;;  %v12056_v0 = vand.u32 4294901760, %v61_v35  ;;  %v12081_v29 = vand.u32 4294901760, %v1315_v14  ;;  %v12083_v51 = vand.u32 4294901760, %v1203_v25 }
  0x87   :  { %16590 = vst [vmem:[#allocation165_spill] sm:$0xff] %v12042_v27  ;;  %16591 = vst [vmem:[#allocation166_spill] sm:$0xff] %v12045_v12  ;;  %9521 = vmatprep.subr.mxu0 %v11758_v53  ;;  %9550 = vmatprep.subr.mxu1 %v11475_v40  ;;  %v12071_v53 = vand.u32 4294901760, %v12024_v33  ;;  %v60_v40 = vld [vmem:[%s15513_s1 + $0x138] sm:$0xff]  ;;  %v12094_v4 = vsub.f32 %v62_v23, %v12032_v20  ;;  %v1329_v28 = vsub.f32 %v11995_v52, %v12042_v27 }
  0x88   :  { %16592 = vst [vmem:[#allocation167_spill] sm:$0xff] %v12048_v11  ;;  %16593 = vst [vmem:[#allocation168_spill] sm:$0xff] %v12052_v46  ;;  %9522 = vmatpush3.msra.mxu0 %v11761_v8  ;;  %9551 = vmatpush3.msra.mxu1 %v11494_v36  ;;  %v12086_v8 = vand.u32 4294901760, %v12035_v19  ;;  %v12091_v36 = vld [vmem:[%s15513_s1 + $0x1b0] sm:$0xff]  ;;  %v12100_v25 = vand.u32 4294901760, %v76_v10  ;;  %v12103_v14 = vand.u32 4294901760, %v12045_v12  ;;  %v12118_v27 = vsub.f32 %v77_v55, %v12039_v6 }
  0x89   :  { %16594 = vst [vmem:[#allocation169_spill] sm:$0xff] %v12056_v0  ;;  %16595 = vst [vmem:[#allocation170_spill] sm:$0xff] %v12062_v31  ;;  %971 = vmatmul.mubr.f32.vlgmr.msra.gmra.mxu0 %v11708_v32  ;;  %9561 = vmatprep.subr.mxu0 %v11890_v13  ;;  %v12106_v3 = vand.u32 4294901760, %v12048_v11  ;;  %v12110_v23 = vand.u32 4294901760, %v1322_v18  ;;  %v12112_v21 = vand.u32 4294901760, %v60_v40  ;;  %v12122_v54 = vand.u32 4294901760, %v1210_v26 }
  0x8a   :  { %16596 = vst [vmem:[#allocation171_spill] sm:$0xff] %v12066_v62  ;;  %16597 = vst [vmem:[#allocation172_spill] sm:$0xff] %v12071_v53  ;;  %9562 = vmatpush3.msra.mxu0 %v11894_v9  ;;  %9552 = vmatprep.subr.mxu1 %v11512_v63  ;;  %v12115_v63 = vand.u32 4294901760, %v12062_v31  ;;  %v1217_v34 = vsub.f32 %v12024_v33, %v12071_v53  ;;  %v12127_v18 = vand.u32 4294901760, %v12091_v36  ;;  %v12135_v55 = vld [vmem:[%s15513_s1 + $0x1a8] sm:$0xff]  ;;  %v12138_v50 = vand.u32 4294901760, %v12077_v5 }
  0x8b   :  { %16598 = vst [vmem:[#allocation173_spill] sm:$0xff] %v12077_v5  ;;  %16599 = vst [vmem:[#allocation174_spill] sm:$0xff] %v12081_v29  ;;  %9563 = vmatprep.subr.mxu0 %v11901_v59  ;;  %9553 = vmatpush3.msra.mxu1 %v16523_v17  ;;  %v59_v17 = vld [vmem:[%s15513_s1 + $0x130] sm:$0xff]  ;;  %v1336_v26 = vsub.f32 %v12035_v19, %v12086_v8  ;;  %v12150_v53 = vand.u32 4294901760, %v12094_v4  ;;  %v12153_v43 = vsub.f32 %v61_v35, %v12056_v0 }
  0x8c   :  { %16600 = vst [vmem:[#allocation175_spill] sm:$0xff] %v12083_v51  ;;  %16601 = vst [vmem:[#allocation176_spill] sm:$0xff] %v12086_v8  ;;  %9564 = vmatpush3.msra.mxu0 %v11903_v57  ;;  %9554 = vmatprep.subr.mxu1 %v16524_v56  ;;  %v12147_v56 = vld [vmem:[%s15513_s1 + $0x128] sm:$0xff]  ;;  %v1224_v8 = vsub.f32 %v12045_v12, %v12103_v14  ;;  %v1343_v59 = vsub.f32 %v12048_v11, %v12106_v3 }
  0x8d   :  { %16602 = vst [vmem:[#allocation177_spill] sm:$0xff] %v12094_v4  ;;  %16603 = vst [vmem:[#allocation178_spill] sm:$0xff] %v12100_v25  ;;  %9565 = vmatprep.subr.mxu0 %v11912_v24  ;;  %9555 = vmatpush3.msra.mxu1 %v16525_v60  ;;  %v16616_v24 = vcombine.high %v16576_v44, %v16576_v44  ;;  %v12163_v60 = vand.u32 4294901760, %v1329_v28  ;;  %v12170_v35 = vsub.f32 %v76_v10, %v12100_v25 }
  0x8e   :  { %16604 = vst [vmem:[#allocation179_spill] sm:$0xff] %v12103_v14  ;;  %16605 = vst [vmem:[#allocation180_spill] sm:$0xff] %v12106_v3  ;;  %9566 = vmatpush3.msra.mxu0 %v11922_v37  ;;  %9556 = vmatprep.subr.mxu1 %v11593_v41  ;;  %v1231_v44 = vsub.f32 %v12062_v31, %v12115_v63  ;;  %v12179_v28 = vand.u32 4294901760, %v12135_v55  ;;  %v12184_v41 = vld [vmem:[%s15513_s1 + $0x1a0] sm:$0xff]  ;;  %v12187_v10 = vand.u32 4294901760, %v12118_v27 }
  0x8f   :  { %16606 = vst [vmem:[#allocation181_spill] sm:$0xff] %v12110_v23  ;;  %16607 = vst [vmem:[#allocation182_spill] sm:$0xff] %v12112_v21  ;;  %v12159_v57 = vrot.slane %v16616_v24, %v16615_v49  ;;  %9567 = vmatprep.subr.mxu0 %v11940_v1  ;;  %9557 = vmatpush3.msra.mxu1 %v11614_v61  ;;  %v12174_v24 = vand.u32 4294901760, %v59_v17  ;;  %v12191_v61 = vand.u32 4294901760, %v1217_v34  ;;  %v57_v3 = vld [vmem:[%s15513_s1 + $0x120] sm:$0xff]  ;;  %v56_v1 = vld [vmem:[%s15513_s1 + $0x118] sm:$0xff] }
  0x90   :  { %16608 = vst [vmem:[#allocation183_spill] sm:$0xff] %v12115_v63  ;;  %16609 = vst [vmem:[#allocation184_spill] sm:$0xff] %v12118_v27  ;;  %1073 = vmatprep.mubr.f32.mxu1 %v16585_v39  ;;  %9568 = vmatpush3.msra.mxu0 %v11961_v47  ;;  %v1350_v49 = vsub.f32 %v12077_v5, %v12138_v50  ;;  %v12196_v63 = vand.u32 4294901760, %v12147_v56  ;;  %v12202_v14 = vsub.f32 %v60_v40, %v12112_v21  ;;  %v72_v47 = vld [vmem:[%s15513_s1 + $0x198] sm:$0xff] }
  0x91   :  { %16610 = vst [vmem:[#allocation185_spill] sm:$0xff] %v12122_v54  ;;  %16611 = vst [vmem:[#allocation186_spill] sm:$0xff] %v12127_v18  ;;  %1075 = vmatmul.mubr.f32.vlgmr.msra.gmra.mxu1 %v11708_v32  ;;  %9569 = vmatprep.subr.mxu0 %v11974_v42  ;;  %v12206_v39 = vand.u32 4294901760, %v1336_v26  ;;  %v1238_v34 = vsub.f32 %v12094_v4, %v12150_v53  ;;  %v192_v40 = vcombine.high %v12159_v57, %v12159_v57 }
  0x92   :  { %16612 = vst [vmem:[#allocation187_spill] sm:$0xff] %v12138_v50  ;;  %16613 = vst [vmem:[#allocation188_spill] sm:$0xff] %v12150_v53  ;;  %v12211_v50 = vand.u32 4294901760, %v12153_v43  ;;  %9596 = vmatprep.subr.mxu1 %v12052_v46  ;;  %9570 = vmatpush3.msra.mxu0 %v11987_v45  ;;  %v12220_v32 = vand.u32 4294901760, %v1224_v8  ;;  %v12222_v26 = vand.u32 4294901760, %v1343_v59  ;;  %v12225_v53 = vand.u32 4294901760, %v12184_v41 }
  0x93   :  { %16614 = vst [vmem:[#allocation189_spill] sm:$0xff] %v12153_v43  ;;  %16617 = vst [vmem:[#allocation190_spill] sm:$0xff] %v12163_v60  ;;  %v12228_v42 = vand.u32 4294901760, %v12170_v35  ;;  %9597 = vmatpush3.msra.mxu1 %v12066_v62  ;;  %9571 = vmatprep.subr.mxu0 %v11989_v16  ;;  %v12235_v46 = vand.u32 4294901760, %v1231_v44  ;;  %v1357_v59 = vsub.f32 %v12118_v27, %v12187_v10  ;;  %v12239_v8 = vand.u32 4294901760, %v57_v3  ;;  %v71_v45 = vld [vmem:[%s15513_s1 + $0x190] sm:$0xff] }
  0x94   :  { %16618 = vst [vmem:[#allocation191_spill] sm:$0xff] %v12170_v35  ;;  %16619 = vst [vmem:[#allocation192_spill] sm:$0xff] %v12174_v24  ;;  %v12246_v37 = vsub.f32 %v12091_v36, %v12127_v18  ;;  %9598 = vmatprep.subr.mxu1 %v12081_v29  ;;  %9572 = vmatpush3.msra.mxu0 %v12003_v58  ;;  %v12250_v62 = vand.u32 4294901760, %v1350_v49  ;;  %v12252_v44 = vand.u32 4294901760, %v72_v47  ;;  %v55_v16 = vld [vmem:[%s15513_s1 + $0x110] sm:$0xff]  ;;  %v12265_v36 = vand.u32 4294901760, %v1238_v34 }
  0x95   :  { %16620 = vst [vmem:[#allocation193_spill] sm:$0xff] %v12179_v28  ;;  %16621 = vst [vmem:[#allocation194_spill] sm:$0xff] %v12187_v10  ;;  %v12255_v10 = vand.u32 4294901760, %v12202_v14  ;;  %v12261_v27 = vsub.f32 %v59_v17, %v12174_v24  ;;  %9599 = vmatpush3.msra.mxu1 %v12083_v51  ;;  %9573 = vmatprep.subr.mxu0 %v12015_v7  ;;  %v1245_v49 = vsub.f32 %v12153_v43, %v12211_v50  ;;  %v70_v58 = vld [vmem:[%s15513_s1 + $0x188] sm:$0xff] }
  0x96   :  { %16622 = vst [vmem:[#allocation195_spill] sm:$0xff] %v12191_v61  ;;  %16623 = vst [vmem:[#allocation196_spill] sm:$0xff] %v12196_v63  ;;  %v12269_v29 = vand.u32 4294901760, %v56_v1  ;;  %v12274_v4 = vand.u32 4294901760, %v192_v40  ;;  %9600 = vmatprep.subr.mxu1 %v12110_v23  ;;  %9574 = vmatpush3.msra.mxu0 %v12032_v20  ;;  %v1364_v17 = vsub.f32 %v12170_v35, %v12228_v42  ;;  %v12280_v34 = vand.u32 4294901760, %v71_v45  ;;  %v69_v35 = vld [vmem:[%s15513_s1 + $0x180] sm:$0xff] }
  0x97   :  { %16624 = vst [vmem:[#allocation197_spill] sm:$0xff] %v12202_v14  ;;  %16625 = vst [vmem:[#allocation198_spill] sm:$0xff] %v12206_v39  ;;  %v12284_v51 = vsub.f32 %v12135_v55, %v12179_v28  ;;  %v12290_v7 = vand.u32 4294901760, %v12159_v57  ;;  %9601 = vmatpush3.msra.mxu1 %v12122_v54  ;;  %9575 = vmatprep.subr.mxu0 %v12039_v6  ;;  %v12294_v23 = vand.u32 4294901760, %v1357_v59  ;;  %v12299_v20 = vand.u32 4294901760, %v55_v16 }
  0x98   :  { %16626 = vst [vmem:[#allocation199_spill] sm:$0xff] %v12211_v50  ;;  %16627 = vst [vmem:[#allocation200_spill] sm:$0xff] %v12220_v32  ;;  %v54_v50 = vld [vmem:[%s15513_s1 + $0x108] sm:$0xff]  ;;  %v12303_v55 = vsub.f32 %v12147_v56, %v12196_v63  ;;  %9602 = vmatprep.subr.mxu1 %v12163_v60  ;;  %9576 = vmatpush3.msra.mxu0 %v12056_v0  ;;  %v1252_v54 = vsub.f32 %v12202_v14, %v12255_v10  ;;  %v12310_v6 = vand.u32 4294901760, %v12261_v27 }
  0x99   :  { %16628 = vst [vmem:[#allocation201_spill] sm:$0xff] %v12222_v26  ;;  %16629 = vst [vmem:[#allocation202_spill] sm:$0xff] %v12225_v53  ;;  %v12312_v59 = vand.u32 4294901760, %v70_v58  ;;  %v12319_v56 = vsub.f32 %v12184_v41, %v12225_v53  ;;  %9603 = vmatpush3.msra.mxu1 %v12191_v61  ;;  %9577 = vmatprep.subr.mxu0 %v12100_v25  ;;  %v12323_v60 = vand.u32 4294901760, %v1245_v49  ;;  %v12335_v41 = vand.u32 4294901760, %v1364_v17  ;;  %v53_v49 = vld [vmem:[%s15513_s1 + $0x100] sm:$0xff] }
  0x9a   :  { %16630 = vst [vmem:[#allocation203_spill] sm:$0xff] %v12228_v42  ;;  %16631 = vst [vmem:[#allocation204_spill] sm:$0xff] %v12235_v46  ;;  %v12297_v42 = vand.u32 4294901760, %v12246_v37  ;;  %v12328_v0 = vsub.f32 %v192_v40, %v12274_v4  ;;  %v12331_v14 = vsub.f32 %v57_v3, %v12239_v8  ;;  %9604 = vmatprep.subr.mxu1 %v12206_v39  ;;  %9578 = vmatpush3.msra.mxu0 %v12112_v21 }
  0x9b   :  { %16632 = vst [vmem:[#allocation205_spill] sm:$0xff] %v12239_v8  ;;  %16633 = vst [vmem:[#allocation206_spill] sm:$0xff] %v12246_v37  ;;  %v12338_v61 = vand.u32 4294901760, %v12284_v51  ;;  %v12345_v40 = vsub.f32 %v12159_v57, %v12290_v7  ;;  %v12348_v3 = vsub.f32 %v72_v47, %v12252_v44  ;;  %9605 = vmatpush3.msra.mxu1 %v12220_v32  ;;  %9579 = vmatprep.subr.mxu0 %v12127_v18 }
  0x9c   :  { %16634 = vst [vmem:[#allocation207_spill] sm:$0xff] %v12250_v62  ;;  %16635 = vst [vmem:[#allocation208_spill] sm:$0xff] %v12252_v44  ;;  %v1371_v17 = vsub.f32 %v12246_v37, %v12297_v42  ;;  %v12355_v39 = vand.u32 4294901760, %v12303_v55  ;;  %v12357_v21 = vand.u32 4294901760, %v69_v35  ;;  %v12360_v25 = vsub.f32 %v56_v1, %v12269_v29  ;;  %9606 = vmatprep.subr.mxu1 %v12222_v26 }
  0x9d   :  { %16636 = vst [vmem:[#allocation209_spill] sm:$0xff] %v12255_v10  ;;  %16637 = vst [vmem:[#allocation210_spill] sm:$0xff] %v12261_v27  ;;  %v12325_v10 = vand.u32 4294901760, %v54_v50  ;;  %9580 = vmatpush3.msra.mxu0 %v12174_v24  ;;  %v12364_v57 = vand.u32 4294901760, %v1252_v54  ;;  %v1259_v47 = vsub.f32 %v12261_v27, %v12310_v6  ;;  %v12369_v32 = vand.u32 4294901760, %v12319_v56  ;;  %9607 = vmatpush3.msra.mxu1 %v12235_v46 }
  0x9e   :  { %16638 = vst [vmem:[#allocation211_spill] sm:$0xff] %v12265_v36  ;;  %16639 = vst [vmem:[#allocation212_spill] sm:$0xff] %v12269_v29  ;;  %9581 = vmatprep.subr.mxu0 %v12179_v28  ;;  %v12376_v1 = vand.u32 4294901760, %v53_v49  ;;  %v12380_v54 = vand.u32 4294901760, %v12331_v14  ;;  %v12383_v24 = vsub.f32 %v55_v16, %v12299_v20  ;;  %9608 = vmatprep.subr.mxu1 %v12250_v62  ;;  %v12398_v16 = vand.u32 4294901760, %v1371_v17 }
  0x9f   :  { %16640 = vst [vmem:[#allocation213_spill] sm:$0xff] %v12280_v34  ;;  %16641 = vst [vmem:[#allocation214_spill] sm:$0xff] %v12284_v51  ;;  %9582 = vmatpush3.msra.mxu0 %v12196_v63  ;;  %v12394_v26 = vsub.f32 %v70_v58, %v12312_v59  ;;  %9609 = vmatpush3.msra.mxu1 %v12265_v36  ;;  %v1266_v62 = vsub.f32 %v12303_v55, %v12355_v39  ;;  %v12403_v63 = vand.u32 4294901760, %v12360_v25 }
  0xa0   :  { %16642 = vst [vmem:[#allocation215_spill] sm:$0xff] %v12294_v23  ;;  %16643 = vst [vmem:[#allocation216_spill] sm:$0xff] %v12297_v42  ;;  %v12372_v42 = vsub.f32 %v71_v45, %v12280_v34  ;;  %v1378_v45 = vsub.f32 %v12284_v51, %v12338_v61  ;;  %9583 = vmatprep.subr.mxu0 %v12225_v53  ;;  %v12406_v46 = vsub.f32 %v54_v50, %v12325_v10 }
  0xa1   :  { %16644 = vst [vmem:[#allocation217_spill] sm:$0xff] %v12299_v20  ;;  %16645 = vst [vmem:[#allocation218_spill] sm:$0xff] %v12303_v55  ;;  %9610 = vmatprep.subr.mxu1 %v12294_v23  ;;  %9584 = vmatpush3.msra.mxu0 %v12239_v8  ;;  %v12410_v58 = vand.u32 4294901760, %v1259_v47  ;;  %v1385_v36 = vsub.f32 %v12319_v56, %v12369_v32  ;;  %v16672_v50 = vand.u32 4294901760, %v12328_v0 }
  0xa2   :  { %16646 = vst [vmem:[#allocation219_spill] sm:$0xff] %v12310_v6  ;;  %16647 = vst [vmem:[#allocation220_spill] sm:$0xff] %v12312_v59  ;;  %v12391_v6 = vand.u32 4294901760, %v12348_v3  ;;  %v12415_v17 = vand.u32 4294901760, %v12372_v42  ;;  %9611 = vmatpush3.msra.mxu1 %v12323_v60  ;;  %9585 = vmatprep.subr.mxu0 %v12252_v44  ;;  %v1273_v47 = vsub.f32 %v12331_v14, %v12380_v54 }
  0xa3   :  { %16648 = vst [vmem:[#allocation221_spill] sm:$0xff] %v12319_v56  ;;  %16649 = vst [vmem:[#allocation222_spill] sm:$0xff] %v12323_v60  ;;  %v1179_v23 = vsub.f32 %v12328_v0, %v16672_v50  ;;  %9612 = vmatprep.subr.mxu1 %v12335_v41  ;;  %9586 = vmatpush3.msra.mxu0 %v12269_v29  ;;  %v16676_v60 = vand.u32 4294901760, %v12345_v40 }
  0xa4   :  { %16650 = vst [vmem:[#allocation223_spill] sm:$0xff] %v12325_v10  ;;  %16651 = vst [vmem:[#allocation224_spill] sm:$0xff] %v12331_v14  ;;  %v1392_v50 = vsub.f32 %v12348_v3, %v12391_v6  ;;  %9613 = vmatpush3.msra.mxu1 %v12364_v57  ;;  %9587 = vmatprep.subr.mxu0 %v12280_v34 }
  0xa5   :  { %16652 = vst [vmem:[#allocation225_spill] sm:$0xff] %v12335_v41  ;;  %16653 = vst [vmem:[#allocation226_spill] sm:$0xff] %v12338_v61  ;;  %v12428_v61 = vand.u32 4294901760, %v12383_v24  ;;  %v1185_v44 = vsub.f32 %v12345_v40, %v16676_v60  ;;  %v12452_v41 = vand.u32 4294901760, %v12406_v46  ;;  %9614 = vmatprep.subr.mxu1 %v12398_v16  ;;  %9588 = vmatpush3.msra.mxu0 %v12299_v20  ;;  %v12456_v60 = vand.u32 4294901760, %v1385_v36 }
  0xa6   :  { %16654 = vst [vmem:[#allocation227_spill] sm:$0xff] %v12348_v3  ;;  %16655 = vst [vmem:[#allocation228_spill] sm:$0xff] %v12355_v39  ;;  %v12418_v39 = vsub.f32 %v69_v35, %v12357_v21  ;;  %v12435_v35 = vand.u32 4294901760, %v1378_v45  ;;  %v1280_v45 = vsub.f32 %v12360_v25, %v12403_v63  ;;  %9615 = vmatpush3.msra.mxu1 %v12410_v58  ;;  %9589 = vmatprep.subr.mxu0 %v12312_v59 }
  0xa7   :  { %16656 = vst [vmem:[#allocation229_spill] sm:$0xff] %v12357_v21  ;;  %16657 = vst [vmem:[#allocation230_spill] sm:$0xff] %v12360_v25  ;;  %9590 = vmatpush3.msra.mxu0 %v12325_v10  ;;  %v1186_v36 = vand.u32 4294901760, %v1185_v44  ;;  %1417 = vmatprep.mubr.f32.mxu1 %v12274_v4 }
  0xa8   :  { %16658 = vst [vmem:[#allocation231_spill] sm:$0xff] %v12364_v57  ;;  %16659 = vst [vmem:[#allocation232_spill] sm:$0xff] %v12369_v32  ;;  %v12431_v32 = vsub.f32 %v53_v49, %v12376_v1  ;;  %v12447_v49 = vand.u32 4294901760, %v1266_v62  ;;  %v12461_v57 = vand.u32 4294901760, %v12418_v39  ;;  %v1180_v62 = vand.u32 4294901760, %v1179_v23  ;;  %9616 = vmatprep.subr.mxu1 %v12435_v35  ;;  %9591 = vmatprep.subr.mxu0 %v12357_v21 }
  0xa9   :  { %16660 = vst [vmem:[#allocation233_spill] sm:$0xff] %v12372_v42  ;;  %16661 = vst [vmem:[#allocation234_spill] sm:$0xff] %v12376_v1  ;;  %v12480_v23 = vand.u32 4294901760, %v1280_v45  ;;  %9592 = vmatpush3.msra.mxu0 %v12376_v1 }
  0xaa   :  { %16662 = vst [vmem:[#allocation235_spill] sm:$0xff] %v12380_v54  ;;  %16663 = vst [vmem:[#allocation236_spill] sm:$0xff] %v12383_v24  ;;  %v12443_v54 = vand.u32 4294901760, %v12394_v26  ;;  %v12470_v20 = vand.u32 4294901760, %v12431_v32  ;;  %9617 = vmatpush3.msra.mxu1 %v12447_v49  ;;  %v1413_v44 = vsub.f32 %v12418_v39, %v12461_v57  ;;  %1181 = vmatprep.mubr.f32.mxu0 %v1180_v62 }
  0xab   :  { %16664 = vst [vmem:[#allocation237_spill] sm:$0xff] %v12391_v6  ;;  %16665 = vst [vmem:[#allocation238_spill] sm:$0xff] %v12394_v26  ;;  %v1399_v6 = vsub.f32 %v12372_v42, %v12415_v17  ;;  %9618 = vmatprep.subr.mxu1 %v12456_v60  ;;  %1187 = vmatmul.mubr.f32.vlgmr.msra.gmra.mxu0 %v1186_v36  ;;  %v16693_v36 = vld [vmem:[#allocation140_spill] sm:$0xff] }
  0xac   :  { %16666 = vst [vmem:[#allocation239_spill] sm:$0xff] %v12398_v16  ;;  %16667 = vst [vmem:[#allocation240_spill] sm:$0xff] %v12403_v63  ;;  %v12465_v63 = vand.u32 4294901760, %v1273_v47  ;;  %v1287_v16 = vsub.f32 %v12383_v24, %v12428_v61  ;;  %v1294_v47 = vsub.f32 %v12406_v46, %v12452_v41  ;;  %v1301_v45 = vsub.f32 %v12431_v32, %v12470_v20 }
  0xad   :  { %16668 = vst [vmem:[#allocation241_spill] sm:$0xff] %v12406_v46  ;;  %16669 = vst [vmem:[#allocation242_spill] sm:$0xff] %v12410_v58  ;;  %v1406_v58 = vsub.f32 %v12394_v26, %v12443_v54  ;;  %9631 = vmatprep.subr.mxu0 %v11918_v2  ;;  %1554 = vmatprep.mubr.f32.mxu0 %v12328_v0  ;;  %v111_v2 = vld [vmem:[%s15513_s1 + $0x2d0] sm:$0xff] }
  0xae   :  { %16670 = vst [vmem:[#allocation243_spill] sm:$0xff] %v12415_v17  ;;  %16671 = vst [vmem:[#allocation244_spill] sm:$0xff] %v12418_v39  ;;  %v12474_v17 = vand.u32 4294901760, %v1392_v50  ;;  %9619 = vmatpush3.msra.mxu1 %v12465_v63  ;;  %v12491_v50 = vand.u32 4294901760, %v1287_v16  ;;  %9632 = vmatpush3.msra.mxu0 %v11925_v15  ;;  %v12504_v16 = vand.u32 4294901760, %v1413_v44  ;;  %v12508_v62 = vand.u32 4294901760, %v1301_v45 }
  0xaf   :  { %16673 = vst [vmem:[#allocation245_spill] sm:$0xff] %v12428_v61  ;;  %16674 = vst [vmem:[#allocation246_spill] sm:$0xff] %v12431_v32  ;;  %9633 = vmatprep.subr.mxu0 %v11933_v30  ;;  %v16695_v44 = vld [vmem:[#allocation177_spill] sm:$0xff]  ;;  %v16696_v45 = vld [vmem:[#allocation143_spill] sm:$0xff] }
  0xb0   :  { %16675 = vst [vmem:[#allocation247_spill] sm:$0xff] %v12435_v35  ;;  %16677 = vst [vmem:[#allocation248_spill] sm:$0xff] %v12443_v54  ;;  %v12486_v35 = vand.u32 4294901760, %v1399_v6  ;;  %9620 = vmatprep.subr.mxu1 %v12474_v17  ;;  %v12500_v6 = vand.u32 4294901760, %v1294_v47  ;;  %9634 = vmatpush3.msra.mxu0 %v11936_v22  ;;  %v16694_v47 = vld [vmem:[#allocation141_spill] sm:$0xff]  ;;  %v112_v30 = vld [vmem:[%s15513_s1 + $0x2d8] sm:$0xff] }
  0xb1   :  { %16678 = vst [vmem:[#allocation249_spill] sm:$0xff] %v12447_v49  ;;  %16679 = vst [vmem:[#allocation250_spill] sm:$0xff] %v12452_v41  ;;  %v12496_v49 = vand.u32 4294901760, %v1406_v58  ;;  %9621 = vmatpush3.msra.mxu1 %v12480_v23  ;;  %9635 = vmatprep.subr.mxu0 %v11957_v48  ;;  %v16692_v58 = vld [vmem:[#allocation139_spill] sm:$0xff]  ;;  %v16750_v15 = vld [vmem:[#allocation228_spill] sm:$0xff] }
  0xb2   :  { %16680 = vst [vmem:[#allocation251_spill] sm:$0xff] %v12456_v60  ;;  %16681 = vst [vmem:[#allocation252_spill] sm:$0xff] %v12461_v57  ;;  %9622 = vmatprep.subr.mxu1 %v12486_v35  ;;  %9636 = vmatpush3.msra.mxu0 %v11970_v38  ;;  %v16737_v38 = vld [vmem:[#allocation203_spill] sm:$0xff] }
  0xb3   :  { %16682 = vst [vmem:[#allocation253_spill] sm:$0xff] %v12465_v63  ;;  %16683 = vst [vmem:[#allocation254_spill] sm:$0xff] %v12470_v20  ;;  %9623 = vmatpush3.msra.mxu1 %v12491_v50  ;;  %9637 = vmatprep.subr.mxu0 %v11995_v52 }
  0xb4   :  { %16684 = vst [vmem:[#allocation255_spill] sm:$0xff] %v12474_v17  ;;  %16685 = vst [vmem:[#allocation256_spill] sm:$0xff] %v12480_v23  ;;  %9624 = vmatprep.subr.mxu1 %v12496_v49  ;;  %9638 = vmatpush3.msra.mxu0 %v12024_v33  ;;  %v16700_v33 = vld [vmem:[#allocation191_spill] sm:$0xff] }
  0xb5   :  { %16686 = vst [vmem:[#allocation257_spill] sm:$0xff] %v12486_v35  ;;  %16687 = vst [vmem:[#allocation258_spill] sm:$0xff] %v12491_v50  ;;  %9625 = vmatpush3.msra.mxu1 %v12500_v6  ;;  %9639 = vmatprep.subr.mxu0 %v12035_v19  ;;  %v16697_v19 = vld [vmem:[#allocation184_spill] sm:$0xff] }
  0xb6   :  { %16688 = vst [vmem:[#allocation259_spill] sm:$0xff] %v12496_v49  ;;  %16689 = vst [vmem:[#allocation260_spill] sm:$0xff] %v12500_v6  ;;  %9626 = vmatprep.subr.mxu1 %v12504_v16  ;;  %9640 = vmatpush3.msra.mxu0 %v12045_v12  ;;  %v16698_v12 = vld [vmem:[#allocation147_spill] sm:$0xff]  ;;  %v16742_v49 = vld [vmem:[#allocation216_spill] sm:$0xff] }
  0xb7   :  { %16690 = vst [vmem:[#allocation261_spill] sm:$0xff] %v12504_v16  ;;  %16691 = vst [vmem:[#allocation262_spill] sm:$0xff] %v12508_v62  ;;  %9627 = vmatpush3.msra.mxu1 %v12508_v62  ;;  %9641 = vmatprep.subr.mxu0 %v12048_v11  ;;  %v16699_v11 = vld [vmem:[#allocation150_spill] sm:$0xff]  ;;  %v16702_v62 = vld [vmem:[#allocation197_spill] sm:$0xff] }
  0xb8   :  { %1419 = vmatmul.mubr.f32.vlgmr.msra.gmra.mxu1 %v12290_v7  ;;  %9666 = vmatprep.subr.mxu1 %v11890_v13  ;;  %v98_v16 = vld [vmem:[%s15513_s1 + $0x268] sm:$0xff] }
  0xb9   :  { %9667 = vmatpush3.msra.mxu1 %v11894_v9  ;;  %9642 = vmatpush3.msra.mxu0 %v12062_v31  ;;  %v16701_v31 = vld [vmem:[#allocation153_spill] sm:$0xff]  ;;  %v12646_v50 = vand.u32 4294901760, %v98_v16 }
  0xba   :  { %9668 = vmatprep.subr.mxu1 %v16692_v58  ;;  %9643 = vmatprep.subr.mxu0 %v12077_v5  ;;  %v16703_v5 = vld [vmem:[#allocation156_spill] sm:$0xff] }
  0xbb   :  { %9669 = vmatpush3.msra.mxu1 %v16693_v36  ;;  %9644 = vmatpush3.msra.mxu0 %v16695_v44  ;;  %v16704_v44 = vld [vmem:[#allocation157_spill] sm:$0xff]  ;;  %16744 = vst [vmem:[#allocation270_spill] sm:$0xff] %v12646_v50  ;;  %v12694_v60 = vsub.f32 %v98_v16, %v12646_v50  ;;  %v12709_v16 = vand.u32 4294901760, %v111_v2 }
  0xbc   :  { %9670 = vmatprep.subr.mxu1 %v16694_v47  ;;  %9645 = vmatprep.subr.mxu0 %v16697_v19  ;;  %v16705_v19 = vld [vmem:[#allocation108_spill] sm:$0xff] }
  0xbd   :  { %9671 = vmatpush3.msra.mxu1 %v16696_v45  ;;  %9646 = vmatpush3.msra.mxu0 %v12153_v43  ;;  %v16706_v43 = vld [vmem:[#allocation160_spill] sm:$0xff]  ;;  %16756 = vst [vmem:[#allocation278_spill] sm:$0xff] %v12694_v60  ;;  %16762 = vst [vmem:[#allocation282_spill] sm:$0xff] %v12709_v16 }
  0xbe   :  { %9672 = vmatprep.subr.mxu1 %v16698_v12  ;;  %9647 = vmatprep.subr.mxu0 %v16700_v33  ;;  %v16707_v33 = vld [vmem:[#allocation126_spill] sm:$0xff] }
  0xbf   :  { %9673 = vmatpush3.msra.mxu1 %v16699_v11  ;;  %9648 = vmatpush3.msra.mxu0 %v16702_v62  ;;  %v16708_v62 = vld [vmem:[#allocation164_spill] sm:$0xff] }
  0xc0   :  { %9674 = vmatprep.subr.mxu1 %v16701_v31  ;;  %9649 = vmatprep.subr.mxu0 %v12246_v37  ;;  %v16709_v37 = vld [vmem:[#allocation169_spill] sm:$0xff] }
  0xc1   :  { %9675 = vmatpush3.msra.mxu1 %v16703_v5  ;;  %9650 = vmatpush3.msra.mxu0 %v12261_v27  ;;  %v16710_v27 = vld [vmem:[#allocation178_spill] sm:$0xff] }
  0xc2   :  { %9676 = vmatprep.subr.mxu1 %v16704_v44  ;;  %9651 = vmatprep.subr.mxu0 %v12284_v51  ;;  %v16711_v51 = vld [vmem:[#allocation182_spill] sm:$0xff] }
  0xc3   :  { %9677 = vmatpush3.msra.mxu1 %v16705_v19  ;;  %9652 = vmatpush3.msra.mxu0 %v12303_v55  ;;  %v16726_v55 = vld [vmem:[#allocation176_spill] sm:$0xff] }
  0xc4   :  { %9678 = vmatprep.subr.mxu1 %v16706_v43  ;;  %9653 = vmatprep.subr.mxu0 %v12319_v56  ;;  %v16712_v56 = vld [vmem:[#allocation192_spill] sm:$0xff] }
  0xc5   :  { %9679 = vmatpush3.msra.mxu1 %v16707_v33  ;;  %9654 = vmatpush3.msra.mxu0 %v12331_v14  ;;  %v16721_v14 = vld [vmem:[#allocation161_spill] sm:$0xff] }
  0xc6   :  { %9680 = vmatprep.subr.mxu1 %v16708_v62  ;;  %9655 = vmatprep.subr.mxu0 %v12348_v3  ;;  %v16713_v3 = vld [vmem:[#allocation196_spill] sm:$0xff] }
  0xc7   :  { %9681 = vmatpush3.msra.mxu1 %v16709_v37  ;;  %9656 = vmatpush3.msra.mxu0 %v12360_v25  ;;  %v16720_v25 = vld [vmem:[#allocation159_spill] sm:$0xff] }
  0xc8   :  { %9682 = vmatprep.subr.mxu1 %v16710_v27  ;;  %9657 = vmatprep.subr.mxu0 %v12372_v42  ;;  %v16718_v42 = vld [vmem:[#allocation217_spill] sm:$0xff] }
  0xc9   :  { %9683 = vmatpush3.msra.mxu1 %v16711_v51  ;;  %9658 = vmatpush3.msra.mxu0 %v12383_v24  ;;  %v16714_v24 = vld [vmem:[#allocation208_spill] sm:$0xff] }
  0xca   :  { %9684 = vmatprep.subr.mxu1 %v12127_v18  ;;  %9659 = vmatprep.subr.mxu0 %v12394_v26  ;;  %v16715_v26 = vld [vmem:[#allocation148_spill] sm:$0xff] }
  0xcb   :  { %9685 = vmatpush3.msra.mxu1 %v16712_v56  ;;  %9660 = vmatpush3.msra.mxu0 %v12406_v46  ;;  %v16716_v46 = vld [vmem:[#allocation151_spill] sm:$0xff] }
  0xcc   :  { %9686 = vmatprep.subr.mxu1 %v12179_v28  ;;  %9661 = vmatprep.subr.mxu0 %v12418_v39  ;;  %v16717_v39 = vld [vmem:[#allocation154_spill] sm:$0xff] }
  0xcd   :  { %9687 = vmatpush3.msra.mxu1 %v16713_v3  ;;  %9662 = vmatpush3.msra.mxu0 %v12431_v32  ;;  %v16719_v32 = vld [vmem:[#allocation155_spill] sm:$0xff] }
  0xce   :  { %9688 = vmatprep.subr.mxu1 %v12225_v53  ;;  %1557 = vmatmul.mubr.f32.vlgmr.msra.gmra.mxu0 %v12345_v40 }
  0xcf   :  { %9689 = vmatpush3.msra.mxu1 %v12239_v8  ;;  %9701 = vmatprep.subr.mxu0 %v16715_v26  ;;  %v16722_v26 = vld [vmem:[#allocation165_spill] sm:$0xff] }
  0xd0   :  { %9690 = vmatprep.subr.mxu1 %v16714_v24  ;;  %9702 = vmatpush3.msra.mxu0 %v16716_v46  ;;  %v16724_v46 = vld [vmem:[#allocation172_spill] sm:$0xff] }
  0xd1   :  { %9691 = vmatpush3.msra.mxu1 %v12269_v29  ;;  %9703 = vmatprep.subr.mxu0 %v16717_v39  ;;  %v16723_v39 = vand.u32 4294901760, %v12328_v0  ;;  %v100_v0 = vld [vmem:[%s15513_s1 + $0x278] sm:$0xff] }
  0xd2   :  { %9692 = vmatprep.subr.mxu1 %v12280_v34  ;;  %9704 = vmatpush3.msra.mxu0 %v16719_v32  ;;  %v16725_v32 = vand.u32 4294901760, %v12345_v40 }
  0xd3   :  { %9693 = vmatpush3.msra.mxu1 %v16718_v42  ;;  %9705 = vmatprep.subr.mxu0 %v16720_v25  ;;  %v16727_v25 = vld [vmem:[#allocation179_spill] sm:$0xff] }
  0xd4   :  { %9694 = vmatprep.subr.mxu1 %v12312_v59  ;;  %9706 = vmatpush3.msra.mxu0 %v16721_v14  ;;  %v16728_v14 = vld [vmem:[#allocation180_spill] sm:$0xff] }
  0xd5   :  { %9695 = vmatpush3.msra.mxu1 %v12325_v10  ;;  %9707 = vmatprep.subr.mxu0 %v16722_v26  ;;  %v116_v26 = vld [vmem:[%s15513_s1 + $0x2f8] sm:$0xff] }
  0xd6   :  { %9696 = vmatprep.subr.mxu1 %v12357_v21  ;;  %1661 = vmatprep.mubr.f32.mxu1 %v16723_v39  ;;  %v16729_v39 = vld [vmem:[#allocation183_spill] sm:$0xff]  ;;  %v12606_v40 = vand.u32 4294901760, %v116_v26 }
  0xd7   :  { %9697 = vmatpush3.msra.mxu1 %v12376_v1  ;;  %9708 = vmatpush3.msra.mxu0 %v16724_v46  ;;  %v16734_v46 = vld [vmem:[#allocation194_spill] sm:$0xff] }
  0xd8   :  { %1665 = vmatmul.mubr.f32.vlgmr.msra.gmra.mxu1 %v16725_v32  ;;  %9709 = vmatprep.subr.mxu0 %v16726_v55  ;;  %v16730_v32 = vld [vmem:[#allocation187_spill] sm:$0xff]  ;;  %16731 = vst [vmem:[#allocation263_spill] sm:$0xff] %v12606_v40  ;;  %v12613_v55 = vand.u32 4294901760, %v100_v0 }
  0xd9   :  { %9736 = vmatprep.subr.mxu1 %v11890_v13  ;;  %9710 = vmatpush3.msra.mxu0 %v16727_v25  ;;  %v115_v25 = vld [vmem:[%s15513_s1 + $0x2f0] sm:$0xff] }
  0xda   :  { %9737 = vmatpush3.msra.mxu1 %v11894_v9  ;;  %9711 = vmatprep.subr.mxu0 %v16728_v14  ;;  %v16732_v14 = vld [vmem:[#allocation188_spill] sm:$0xff]  ;;  %16733 = vst [vmem:[#allocation264_spill] sm:$0xff] %v12613_v55  ;;  %v12622_v52 = vand.u32 4294901760, %v115_v25  ;;  %v12640_v48 = vsub.f32 %v100_v0, %v12613_v55  ;;  %v97_v0 = vld [vmem:[%s15513_s1 + $0x260] sm:$0xff]  ;;  %v12767_v9 = vsub.f32 %v111_v2, %v12709_v16 }
  0xdb   :  { %9738 = vmatprep.subr.mxu1 %v16692_v58  ;;  %9712 = vmatpush3.msra.mxu0 %v16729_v39  ;;  %v99_v39 = vld [vmem:[%s15513_s1 + $0x270] sm:$0xff]  ;;  %v12685_v17 = vand.u32 4294901760, %v97_v0 }
  0xdc   :  { %9739 = vmatpush3.msra.mxu1 %v16693_v36  ;;  %9713 = vmatprep.subr.mxu0 %v16730_v32  ;;  %v16735_v32 = vld [vmem:[#allocation199_spill] sm:$0xff]  ;;  %16736 = vst [vmem:[#allocation265_spill] sm:$0xff] %v12622_v52  ;;  %v12632_v6 = vand.u32 4294901760, %v99_v39  ;;  %16741 = vst [vmem:[#allocation268_spill] sm:$0xff] %v12640_v48  ;;  %v12678_v23 = vand.u32 4294901760, %v12640_v48 }
  0xdd   :  { %9740 = vmatprep.subr.mxu1 %v16694_v47  ;;  %9714 = vmatpush3.msra.mxu0 %v16732_v14  ;;  %v114_v14 = vld [vmem:[%s15513_s1 + $0x2e8] sm:$0xff]  ;;  %16754 = vst [vmem:[#allocation276_spill] sm:$0xff] %v12685_v17  ;;  %v12735_v47 = vand.u32 4294901760, %v12694_v60  ;;  %v93_v36 = vld [vmem:[%s15513_s1 + $0x240] sm:$0xff]  ;;  %16776 = vst [vmem:[#allocation294_spill] sm:$0xff] %v12767_v9 }
  0xde   :  { %9741 = vmatpush3.msra.mxu1 %v16696_v45  ;;  %9715 = vmatprep.subr.mxu0 %v16734_v46  ;;  %16738 = vst [vmem:[#allocation266_spill] sm:$0xff] %v12632_v6  ;;  %v12635_v46 = vsub.f32 %v116_v26, %v12606_v40  ;;  %v12644_v22 = vand.u32 4294901760, %v114_v14  ;;  %v113_v26 = vld [vmem:[%s15513_s1 + $0x2e0] sm:$0xff]  ;;  %16752 = vst [vmem:[#allocation275_spill] sm:$0xff] %v12678_v23 }
  0xdf   :  { %9742 = vmatprep.subr.mxu1 %v16698_v12  ;;  %9716 = vmatpush3.msra.mxu0 %v16735_v32  ;;  %v16740_v32 = vld [vmem:[#allocation209_spill] sm:$0xff]  ;;  %v16767_v12 = vld [vmem:[#allocation243_spill] sm:$0xff]  ;;  %16769 = vst [vmem:[#allocation287_spill] sm:$0xff] %v12735_v47  ;;  %v2072_v2 = vsub.f32 %v12694_v60, %v12735_v47 }
  0xe0   :  { %9743 = vmatpush3.msra.mxu1 %v16699_v11  ;;  %9717 = vmatprep.subr.mxu0 %v16737_v38  ;;  %16739 = vst [vmem:[#allocation267_spill] sm:$0xff] %v12635_v46  ;;  %16743 = vst [vmem:[#allocation269_spill] sm:$0xff] %v12644_v22  ;;  %v16745_v38 = vld [vmem:[#allocation219_spill] sm:$0xff]  ;;  %v12665_v35 = vand.u32 4294901760, %v12635_v46  ;;  %v12691_v63 = vsub.f32 %v114_v14, %v12644_v22 }
  0xe1   :  { %9744 = vmatprep.subr.mxu1 %v16701_v31  ;;  %9718 = vmatpush3.msra.mxu0 %v16740_v32  ;;  %v12657_v32 = vsub.f32 %v115_v25, %v12622_v52  ;;  %v12672_v25 = vand.u32 4294901760, %v113_v26 }
  0xe2   :  { %9745 = vmatpush3.msra.mxu1 %v16703_v5  ;;  %9719 = vmatprep.subr.mxu0 %v16742_v49  ;;  %v16747_v49 = vld [vmem:[#allocation226_spill] sm:$0xff]  ;;  %16748 = vst [vmem:[#allocation272_spill] sm:$0xff] %v12665_v35  ;;  %16755 = vst [vmem:[#allocation277_spill] sm:$0xff] %v12691_v63  ;;  %v2170_v14 = vsub.f32 %v12635_v46, %v12665_v35  ;;  %v2058_v5 = vsub.f32 %v12640_v48, %v12678_v23  ;;  %v12732_v45 = vand.u32 4294901760, %v12691_v63 }
  0xe3   :  { %9746 = vmatprep.subr.mxu1 %v16704_v44  ;;  %9720 = vmatpush3.msra.mxu0 %v16745_v38  ;;  %16746 = vst [vmem:[#allocation271_spill] sm:$0xff] %v12657_v32  ;;  %v12668_v38 = vsub.f32 %v99_v39, %v12632_v6  ;;  %16751 = vst [vmem:[#allocation274_spill] sm:$0xff] %v12672_v25  ;;  %v16753_v39 = vld [vmem:[#allocation232_spill] sm:$0xff]  ;;  %v12727_v11 = vsub.f32 %v113_v26, %v12672_v25  ;;  %v12845_v23 = vand.u32 4294901760, %v2072_v2 }
  0xe4   :  { %9747 = vmatpush3.msra.mxu1 %v16705_v19  ;;  %9721 = vmatprep.subr.mxu0 %v16747_v49  ;;  %v96_v49 = vld [vmem:[%s15513_s1 + $0x258] sm:$0xff]  ;;  %v12698_v19 = vand.u32 4294901760, %v112_v30  ;;  %16768 = vst [vmem:[#allocation286_spill] sm:$0xff] %v12732_v45 }
  0xe5   :  { %16749 = vst [vmem:[#allocation273_spill] sm:$0xff] %v12668_v38  ;;  %9748 = vmatprep.subr.mxu1 %v16706_v43  ;;  %9722 = vmatpush3.msra.mxu0 %v16750_v15  ;;  %v95_v15 = vld [vmem:[%s15513_s1 + $0x250] sm:$0xff]  ;;  %v16757_v43 = vld [vmem:[#allocation235_spill] sm:$0xff]  ;;  %v12707_v44 = vand.u32 4294901760, %v96_v49  ;;  %16766 = vst [vmem:[#allocation285_spill] sm:$0xff] %v12727_v11 }
  0xe6   :  { %9749 = vmatpush3.msra.mxu1 %v16707_v33  ;;  %9723 = vmatprep.subr.mxu0 %v16753_v39  ;;  %16758 = vst [vmem:[#allocation279_spill] sm:$0xff] %v12698_v19  ;;  %v12701_v39 = vand.u32 4294901760, %v12657_v32  ;;  %v16760_v33 = vld [vmem:[#allocation237_spill] sm:$0xff]  ;;  %v12724_v31 = vand.u32 4294901760, %v95_v15  ;;  %v12755_v58 = vsub.f32 %v112_v30, %v12698_v19  ;;  %v12771_v30 = vand.u32 4294901760, %v2058_v5  ;;  %16795 = vst [vmem:[#allocation313_spill] sm:$0xff] %v12845_v23 }
  0xe7   :  { %9750 = vmatprep.subr.mxu1 %v16708_v62  ;;  %9724 = vmatpush3.msra.mxu0 %v16757_v43  ;;  %16761 = vst [vmem:[#allocation281_spill] sm:$0xff] %v12707_v44  ;;  %v12712_v62 = vand.u32 4294901760, %v12668_v38  ;;  %v110_v43 = vld [vmem:[%s15513_s1 + $0x2c8] sm:$0xff]  ;;  %v2184_v5 = vsub.f32 %v12691_v63, %v12732_v45 }
  0xe8   :  { %16759 = vst [vmem:[#allocation280_spill] sm:$0xff] %v12701_v39  ;;  %9751 = vmatpush3.msra.mxu1 %v16709_v37  ;;  %9725 = vmatprep.subr.mxu0 %v16760_v33  ;;  %v94_v37 = vld [vmem:[%s15513_s1 + $0x248] sm:$0xff]  ;;  %16765 = vst [vmem:[#allocation284_spill] sm:$0xff] %v12724_v31  ;;  %v2177_v26 = vsub.f32 %v12657_v32, %v12701_v39 }
  0xe9   :  { %16763 = vst [vmem:[#allocation283_spill] sm:$0xff] %v12712_v62  ;;  %9752 = vmatprep.subr.mxu1 %v16710_v27  ;;  %v16764_v33 = vld [vmem:[#allocation240_spill] sm:$0xff]  ;;  %v12741_v27 = vsub.f32 %v97_v0, %v12685_v17  ;;  %16773 = vst [vmem:[#allocation291_spill] sm:$0xff] %v12755_v58  ;;  %v12759_v0 = vand.u32 4294901760, %v2170_v14  ;;  %v12776_v14 = vand.u32 4294901760, %v12727_v11  ;;  %1831 = vmatprep.mubr.f32.mxu0 %v12274_v4 }
  0xea   :  { %9726 = vmatpush3.msra.mxu0 %v16764_v33  ;;  %9753 = vmatpush3.msra.mxu1 %v16711_v51  ;;  %v109_v33 = vld [vmem:[%s15513_s1 + $0x2c0] sm:$0xff]  ;;  %v12749_v51 = vand.u32 4294901760, %v94_v37  ;;  %16777 = vst [vmem:[#allocation295_spill] sm:$0xff] %v12771_v30 }
  0xeb   :  { %9727 = vmatprep.subr.mxu0 %v16767_v12  ;;  %16770 = vst [vmem:[#allocation288_spill] sm:$0xff] %v12741_v27  ;;  %9754 = vmatprep.subr.mxu1 %v12127_v18  ;;  %v12747_v12 = vand.u32 4294901760, %v110_v43  ;;  %16774 = vst [vmem:[#allocation292_spill] sm:$0xff] %v12759_v0  ;;  %v12764_v18 = vsub.f32 %v96_v49, %v12707_v44  ;;  %v12782_v49 = vsub.f32 %v95_v15, %v12724_v31  ;;  %v92_v15 = vld [vmem:[%s15513_s1 + $0x238] sm:$0xff] }
  0xec   :  { %9728 = vmatpush3.msra.mxu0 %v12428_v61  ;;  %16772 = vst [vmem:[#allocation290_spill] sm:$0xff] %v12749_v51  ;;  %9755 = vmatpush3.msra.mxu1 %v16712_v56  ;;  %v2065_v61 = vsub.f32 %v12668_v38, %v12712_v62  ;;  %v12773_v56 = vand.u32 4294901760, %v109_v33  ;;  %16779 = vst [vmem:[#allocation297_spill] sm:$0xff] %v12776_v14  ;;  %v12809_v47 = vsub.f32 %v94_v37, %v12749_v51 }
  0xed   :  { %16771 = vst [vmem:[#allocation289_spill] sm:$0xff] %v12747_v12  ;;  %9729 = vmatprep.subr.mxu0 %v12443_v54  ;;  %16775 = vst [vmem:[#allocation293_spill] sm:$0xff] %v12764_v18  ;;  %9756 = vmatprep.subr.mxu1 %v12179_v28  ;;  %v108_v54 = vld [vmem:[%s15513_s1 + $0x2b8] sm:$0xff]  ;;  %v12793_v28 = vand.u32 4294901760, %v12741_v27  ;;  %v12806_v13 = vsub.f32 %v110_v43, %v12747_v12  ;;  %v12824_v43 = vand.u32 4294901760, %v12767_v9  ;;  %v12830_v37 = vand.u32 4294901760, %v92_v15 }
  0xee   :  { %9730 = vmatpush3.msra.mxu0 %v12452_v41  ;;  %16778 = vst [vmem:[#allocation296_spill] sm:$0xff] %v12773_v56  ;;  %16780 = vst [vmem:[#allocation298_spill] sm:$0xff] %v12782_v49  ;;  %9757 = vmatpush3.msra.mxu1 %v16713_v3  ;;  %v12790_v41 = vand.u32 4294901760, %v93_v36  ;;  %v12803_v3 = vand.u32 4294901760, %v12755_v58  ;;  %v12813_v45 = vand.u32 4294901760, %v2065_v61  ;;  %v2191_v61 = vsub.f32 %v12727_v11, %v12776_v14 }
  0xef   :  { %9731 = vmatprep.subr.mxu0 %v12461_v57  ;;  %16782 = vst [vmem:[#allocation300_spill] sm:$0xff] %v12793_v28  ;;  %9758 = vmatprep.subr.mxu1 %v12225_v53  ;;  %v12800_v57 = vand.u32 4294901760, %v2177_v26  ;;  %16785 = vst [vmem:[#allocation303_spill] sm:$0xff] %v12806_v13  ;;  %v12815_v53 = vand.u32 4294901760, %v108_v54  ;;  %v12818_v26 = vand.u32 4294901760, %v12764_v18  ;;  %v12836_v62 = vand.u32 4294901760, %v12782_v49 }
  0xf0   :  { %16781 = vst [vmem:[#allocation299_spill] sm:$0xff] %v12790_v41  ;;  %9732 = vmatpush3.msra.mxu0 %v12470_v20  ;;  %16784 = vst [vmem:[#allocation302_spill] sm:$0xff] %v12803_v3  ;;  %9759 = vmatpush3.msra.mxu1 %v12239_v8  ;;  %v107_v20 = vld [vmem:[%s15513_s1 + $0x2b0] sm:$0xff]  ;;  %v12839_v39 = vsub.f32 %v109_v33, %v12773_v56  ;;  %v2079_v14 = vsub.f32 %v12741_v27, %v12793_v28  ;;  %v12862_v2 = vand.u32 4294901760, %v12806_v13 }
  0xf1   :  { %16783 = vst [vmem:[#allocation301_spill] sm:$0xff] %v12800_v57  ;;  %16786 = vst [vmem:[#allocation304_spill] sm:$0xff] %v12809_v47  ;;  %1833 = vmatmul.mubr.f32.vlgmr.msra.gmra.mxu0 %v12290_v7  ;;  %9760 = vmatprep.subr.mxu1 %v16714_v24  ;;  %v91_v8 = vld [vmem:[%s15513_s1 + $0x230] sm:$0xff]  ;;  %v12843_v24 = vand.u32 4294901760, %v2184_v5  ;;  %v12850_v35 = vsub.f32 %v93_v36, %v12790_v41  ;;  %v2198_v33 = vsub.f32 %v12755_v58, %v12803_v3  ;;  %v106_v5 = vld [vmem:[%s15513_s1 + $0x2a8] sm:$0xff] }
  0xf2   :  { %16787 = vst [vmem:[#allocation305_spill] sm:$0xff] %v12813_v45  ;;  %16788 = vst [vmem:[#allocation306_spill] sm:$0xff] %v12815_v53  ;;  %9771 = vmatprep.subr.mxu0 %v12606_v40  ;;  %9761 = vmatpush3.msra.mxu1 %v12269_v29  ;;  %v12856_v40 = vand.u32 4294901760, %v107_v20  ;;  %v12865_v29 = vand.u32 4294901760, %v12809_v47  ;;  %v12870_v36 = vld [vmem:[%s15512_s0 + $0x8] sm:$0xff]  ;;  %v2205_v3 = vsub.f32 %v12767_v9, %v12824_v43  ;;  %v12878_v28 = vand.u32 4294901760, %v91_v8 }
  0xf3   :  { %16789 = vst [vmem:[#allocation307_spill] sm:$0xff] %v12818_v26  ;;  %16790 = vst [vmem:[#allocation308_spill] sm:$0xff] %v12824_v43  ;;  %9772 = vmatpush3.msra.mxu0 %v12613_v55  ;;  %9762 = vmatprep.subr.mxu1 %v12280_v34  ;;  %v2086_v34 = vsub.f32 %v12764_v18, %v12818_v26  ;;  %v12881_v55 = vsub.f32 %v108_v54, %v12815_v53  ;;  %v12885_v58 = vand.u32 4294901760, %v2191_v61  ;;  %v90_v61 = vld [vmem:[%s15513_s1 + $0x228] sm:$0xff] }
  0xf4   :  { %16791 = vst [vmem:[#allocation309_spill] sm:$0xff] %v12830_v37  ;;  %16792 = vst [vmem:[#allocation310_spill] sm:$0xff] %v12836_v62  ;;  %9773 = vmatprep.subr.mxu0 %v12622_v52  ;;  %9763 = vmatpush3.msra.mxu1 %v16718_v42  ;;  %v2093_v42 = vsub.f32 %v12782_v49, %v12836_v62  ;;  %v12890_v52 = vand.u32 4294901760, %v12839_v39  ;;  %v12893_v26 = vsub.f32 %v92_v15, %v12830_v37  ;;  %v16809_v62 = vld [vmem:[#allocation111_spill] sm:$0xff] }
  0xf5   :  { %16793 = vst [vmem:[#allocation311_spill] sm:$0xff] %v12839_v39  ;;  %16794 = vst [vmem:[#allocation312_spill] sm:$0xff] %v12843_v24  ;;  %9774 = vmatpush3.msra.mxu0 %v12632_v6  ;;  %9764 = vmatprep.subr.mxu1 %v12312_v59  ;;  %v12897_v54 = vand.u32 4294901760, %v2079_v14  ;;  %v12899_v43 = vand.u32 4294901760, %v106_v5  ;;  %v12905_v59 = vand.u32 4294901760, %v12850_v35  ;;  %v12909_v6 = vrot.slane %v12870_v36, %v16809_v62 }
  0xf6   :  { %16796 = vst [vmem:[#allocation314_spill] sm:$0xff] %v12850_v35  ;;  %16797 = vst [vmem:[#allocation315_spill] sm:$0xff] %v12856_v40  ;;  %9775 = vmatprep.subr.mxu0 %v12644_v22  ;;  %9765 = vmatpush3.msra.mxu1 %v12325_v10  ;;  %v12913_v15 = vand.u32 4294901760, %v2198_v33  ;;  %v2212_v14 = vsub.f32 %v12806_v13, %v12862_v2  ;;  %v2100_v10 = vsub.f32 %v12809_v47, %v12865_v29  ;;  %v105_v22 = vld [vmem:[%s15513_s1 + $0x2a0] sm:$0xff] }
  0xf7   :  { %16798 = vst [vmem:[#allocation316_spill] sm:$0xff] %v12862_v2  ;;  %16799 = vst [vmem:[#allocation317_spill] sm:$0xff] %v12865_v29  ;;  %9776 = vmatpush3.msra.mxu0 %v12646_v50  ;;  %9766 = vmatprep.subr.mxu1 %v12357_v21  ;;  %v12923_v49 = vsub.f32 %v107_v20, %v12856_v40  ;;  %v12927_v21 = vand.u32 4294901760, %v2086_v34  ;;  %v12929_v33 = vand.u32 4294901760, %v2205_v3  ;;  %v12937_v29 = vand.u32 4294901760, %v12881_v55 }
  0xf8   :  { %16800 = vst [vmem:[#allocation318_spill] sm:$0xff] %v12870_v36  ;;  %16801 = vst [vmem:[#allocation319_spill] sm:$0xff] %v12878_v28  ;;  %9777 = vmatprep.subr.mxu0 %v12672_v25  ;;  %9767 = vmatpush3.msra.mxu1 %v12376_v1  ;;  %v12934_v36 = vld [vmem:[%s15513_s1 + $0x220] sm:$0xff]  ;;  %v12940_v2 = vsub.f32 %v91_v8, %v12878_v28  ;;  %v12944_v20 = vand.u32 4294901760, %v2093_v42  ;;  %v12946_v34 = vand.u32 4294901760, %v90_v61  ;;  %v12953_v1 = vld [vmem:[%s15513_s1 + $0x298] sm:$0xff] }
  0xf9   :  { %16802 = vst [vmem:[#allocation320_spill] sm:$0xff] %v12881_v55  ;;  %16803 = vst [vmem:[#allocation321_spill] sm:$0xff] %v12885_v58  ;;  %1935 = vmatprep.mubr.f32.mxu1 %v12274_v4  ;;  %9778 = vmatpush3.msra.mxu0 %v12685_v17  ;;  %v2219_v3 = vsub.f32 %v12839_v39, %v12890_v52  ;;  %v12956_v25 = vand.u32 4294901760, %v12893_v26  ;;  %v3678_v4 = vld [vmem:[%s15516_s4] sm:$0xff]  ;;  %v12963_v42 = vand.u32 4294901760, %v105_v22 }
  0xfa   :  { %16804 = vst [vmem:[#allocation322_spill] sm:$0xff] %v12890_v52  ;;  %16805 = vst [vmem:[#allocation323_spill] sm:$0xff] %v12893_v26  ;;  %1937 = vmatmul.mubr.f32.vlgmr.msra.gmra.mxu1 %v12290_v7  ;;  %9779 = vmatprep.subr.mxu0 %v12698_v19  ;;  %v2107_v8 = vsub.f32 %v12850_v35, %v12905_v59  ;;  %v88_v52 = vld [vmem:[%s15513_s1 + $0x218] sm:$0xff]  ;;  %v12971_v17 = vsub.f32 %v106_v5, %v12899_v43  ;;  %v12977_v7 = vand.u32 4294901760, %v2212_v14  ;;  %v12987_v35 = vld [vmem:[%s15513_s1 + $0x290] sm:$0xff] }
  0xfb   :  { %16806 = vst [vmem:[#allocation324_spill] sm:$0xff] %v12897_v54  ;;  %16807 = vst [vmem:[#allocation325_spill] sm:$0xff] %v12899_v43  ;;  %v208_v39 = vcombine.high %v12909_v6, %v12909_v6  ;;  %9806 = vmatprep.subr.mxu1 %v12759_v0  ;;  %9780 = vmatpush3.msra.mxu0 %v12707_v44  ;;  %v12979_v19 = vand.u32 4294901760, %v2100_v10  ;;  %v12990_v5 = vand.u32 4294901760, %v12923_v49  ;;  %v12995_v14 = vand.u32 4294901760, %v12953_v1  ;;  %v13002_v0 = vld [vmem:[%s15513_s1 + $0x210] sm:$0xff] }
  0xfc   :  { %16808 = vst [vmem:[#allocation326_spill] sm:$0xff] %v12905_v59  ;;  %16810 = vst [vmem:[#allocation327_spill] sm:$0xff] %v12913_v15  ;;  %v12982_v59 = vand.u32 4294901760, %v12934_v36  ;;  %9807 = vmatpush3.msra.mxu1 %v12771_v30  ;;  %9781 = vmatprep.subr.mxu0 %v12709_v16  ;;  %v2226_v10 = vsub.f32 %v12881_v55, %v12937_v29  ;;  %v13005_v44 = vand.u32 4294901760, %v12940_v2  ;;  %v13011_v30 = vand.u32 4294901760, %v2219_v3  ;;  %v13020_v55 = vld [vmem:[%s15513_s1 + $0x288] sm:$0xff] }
  0xfd   :  { %16811 = vst [vmem:[#allocation328_spill] sm:$0xff] %v12923_v49  ;;  %16812 = vst [vmem:[#allocation329_spill] sm:$0xff] %v12927_v21  ;;  %v13007_v50 = vmul.f32 %v3678_v4, %v3678_v4  ;;  %9808 = vmatprep.subr.mxu1 %v12800_v57  ;;  %9782 = vmatpush3.msra.mxu0 %v12724_v31  ;;  %v13013_v16 = vand.u32 4294901760, %v88_v52  ;;  %v13023_v47 = vsub.f32 %v90_v61, %v12946_v34 }
  0xfe   :  { %16813 = vst [vmem:[#allocation330_spill] sm:$0xff] %v12929_v33  ;;  %16814 = vst [vmem:[#allocation331_spill] sm:$0xff] %v12937_v29  ;;  %v2114_v29 = vsub.f32 %v12893_v26, %v12956_v25  ;;  %9809 = vmatpush3.msra.mxu1 %v12813_v45  ;;  %9783 = vmatprep.subr.mxu0 %v12747_v12  ;;  %v13027_v4 = vand.u32 4294901760, %v2107_v8  ;;  %v13030_v3 = vand.u32 4294901760, %v12987_v35  ;;  %v13033_v57 = vand.u32 4294901760, %v12971_v17  ;;  %v13050_v45 = vld [vmem:[%s15513_s1 + $0x280] sm:$0xff] }
  0xff   :  { %16815 = vst [vmem:[#allocation332_spill] sm:$0xff] %v12940_v2  ;;  %16816 = vst [vmem:[#allocation333_spill] sm:$0xff] %v12944_v20  ;;  %v13038_v31 = vand.u32 4294901760, %v208_v39  ;;  %9810 = vmatprep.subr.mxu1 %v12843_v24  ;;  %9784 = vmatpush3.msra.mxu0 %v12749_v51  ;;  %v2233_v61 = vsub.f32 %v12923_v49, %v12990_v5  ;;  %v13045_v8 = vand.u32 4294901760, %v13002_v0  ;;  %v13056_v26 = vand.u32 4294901760, %v12909_v6 }
 0x100   :  { %16817 = vst [vmem:[#allocation334_spill] sm:$0xff] %v12946_v34  ;;  %16818 = vst [vmem:[#allocation335_spill] sm:$0xff] %v12956_v25  ;;  %v86_v25 = vld [vmem:[%s15513_s1 + $0x208] sm:$0xff]  ;;  %v13053_v12 = vsub.f32 %v105_v22, %v12963_v42  ;;  %9811 = vmatpush3.msra.mxu1 %v12845_v23  ;;  %9785 = vmatprep.subr.mxu0 %v12773_v56  ;;  %v13060_v24 = vand.u32 4294901760, %v2226_v10  ;;  %v13065_v51 = vand.u32 4294901760, %v13020_v55  ;;  %v13071_v22 = vand.u32 4294901760, %v2114_v29 }
 0x101   :  { %16819 = vst [vmem:[#allocation336_spill] sm:$0xff] %v12963_v42  ;;  %16820 = vst [vmem:[#allocation337_spill] sm:$0xff] %v12971_v17  ;;  %v3691_v49 = vrot.slane %v13007_v50, %v16809_v62  ;;  %9812 = vmatprep.subr.mxu1 %v12885_v58  ;;  %9786 = vmatpush3.msra.mxu0 %v12790_v41  ;;  %v13073_v23 = vand.u32 4294901760, %v86_v25  ;;  %v13076_v10 = vand.u32 4294901760, %v13023_v47  ;;  %v13090_v58 = vand.u32 4294901760, %v13050_v45 }
 0x102   :  { %16821 = vst [vmem:[#allocation338_spill] sm:$0xff] %v12977_v7  ;;  %16822 = vst [vmem:[#allocation339_spill] sm:$0xff] %v12979_v19  ;;  %v13083_v56 = vsub.f32 %v12934_v36, %v12982_v59  ;;  %9813 = vmatpush3.msra.mxu1 %v12897_v54  ;;  %9787 = vmatprep.subr.mxu0 %v12815_v53  ;;  %v2240_v29 = vsub.f32 %v12971_v17, %v13033_v57  ;;  %v13101_v36 = vand.u32 4294901760, %v2233_v61 }
 0x103   :  { %16823 = vst [vmem:[#allocation340_spill] sm:$0xff] %v12982_v59  ;;  %16824 = vst [vmem:[#allocation341_spill] sm:$0xff] %v12990_v5  ;;  %v2121_v5 = vsub.f32 %v12940_v2, %v13005_v44  ;;  %v13093_v41 = vsub.f32 %v208_v39, %v13038_v31  ;;  %v13097_v2 = vsub.f32 %v12953_v1, %v12995_v14  ;;  %9814 = vmatprep.subr.mxu1 %v12913_v15 }
 0x104   :  { %16825 = vst [vmem:[#allocation342_spill] sm:$0xff] %v12995_v14  ;;  %16826 = vst [vmem:[#allocation343_spill] sm:$0xff] %v13005_v44  ;;  %v85_v44 = vld [vmem:[%s15513_s1 + $0x200] sm:$0xff]  ;;  %9788 = vmatpush3.msra.mxu0 %v12830_v37  ;;  %v13104_v54 = vand.u32 4294901760, %v13053_v12  ;;  %v13111_v39 = vsub.f32 %v88_v52, %v13013_v16  ;;  %9815 = vmatpush3.msra.mxu1 %v12927_v21  ;;  %v3684_v61 = vcombine.high %v13007_v50, %v13007_v50 }
 0x105   :  { %16827 = vst [vmem:[#allocation344_spill] sm:$0xff] %v13011_v30  ;;  %16828 = vst [vmem:[#allocation345_spill] sm:$0xff] %v13013_v16  ;;  %9789 = vmatprep.subr.mxu0 %v12856_v40  ;;  %v13115_v1 = vand.u32 4294901760, %v2121_v5  ;;  %v13117_v15 = vand.u32 4294901760, %v85_v44  ;;  %v3699_v37 = vcombine.high %v3691_v49, %v3691_v49  ;;  %9816 = vmatprep.subr.mxu1 %v12929_v33  ;;  %v13134_v50 = vand.u32 4294901760, %v2240_v29 }
 0x106   :  { %16829 = vst [vmem:[#allocation346_spill] sm:$0xff] %v13023_v47  ;;  %16830 = vst [vmem:[#allocation347_spill] sm:$0xff] %v13027_v4  ;;  %9790 = vmatpush3.msra.mxu0 %v12878_v28  ;;  %v2128_v52 = vsub.f32 %v13023_v47, %v13076_v10  ;;  %v13130_v5 = vsub.f32 %v12987_v35, %v13030_v3  ;;  %9817 = vmatpush3.msra.mxu1 %v12944_v20  ;;  %v13138_v21 = vand.u32 4294901760, %v13097_v2 }
 0x107   :  { %16831 = vst [vmem:[#allocation348_spill] sm:$0xff] %v13030_v3  ;;  %16832 = vst [vmem:[#allocation349_spill] sm:$0xff] %v13033_v57  ;;  %v13108_v57 = vsub.f32 %v12909_v6, %v13056_v26  ;;  %v13126_v6 = vand.u32 4294901760, %v13083_v56  ;;  %9791 = vmatprep.subr.mxu0 %v12899_v43  ;;  %9818 = vmatprep.subr.mxu1 %v12977_v7  ;;  %v2247_v35 = vsub.f32 %v13053_v12, %v13104_v54 }
 0x108   :  { %16833 = vst [vmem:[#allocation350_spill] sm:$0xff] %v13045_v8  ;;  %16834 = vst [vmem:[#allocation351_spill] sm:$0xff] %v13053_v12  ;;  %9792 = vmatpush3.msra.mxu0 %v12946_v34  ;;  %v13150_v29 = vand.u32 4294901760, %v13111_v39  ;;  %v13154_v33 = vsub.f32 %v13020_v55, %v13065_v51  ;;  %9819 = vmatpush3.msra.mxu1 %v12979_v19  ;;  %v3698_v7 = vrot.slane %v3684_v61, %v16809_v62 }
 0x109   :  { %16835 = vst [vmem:[#allocation352_spill] sm:$0xff] %v13060_v24  ;;  %16836 = vst [vmem:[#allocation353_spill] sm:$0xff] %v13065_v51  ;;  %9793 = vmatprep.subr.mxu0 %v12963_v42  ;;  %v3728_v20 = vsel %vm3726_vm0, %v3699_v37, 0.0  ;;  %9820 = vmatprep.subr.mxu1 %v13011_v30  ;;  %v13166_v34 = vand.u32 4294901760, %v2128_v52  ;;  %v2135_v55 = vsub.f32 %v13083_v56, %v13126_v6  ;;  %v13171_v19 = vand.u32 4294901760, %v13130_v5 }
 0x10a   :  { %16837 = vst [vmem:[#allocation354_spill] sm:$0xff] %v13071_v22  ;;  %16838 = vst [vmem:[#allocation355_spill] sm:$0xff] %v13073_v23  ;;  %9794 = vmatpush3.msra.mxu0 %v12982_v59  ;;  %9821 = vmatpush3.msra.mxu1 %v13027_v4  ;;  %v16859_v37 = vand.u32 4294901760, %v13093_v41  ;;  %v2254_v52 = vsub.f32 %v13097_v2, %v13138_v21  ;;  %v16862_v4 = vand.u32 4294901760, %v13108_v57  ;;  %v3730_v59 = vsel %vm3726_vm0, %v3698_v7, 0.0 }
 0x10b   :  { %16839 = vst [vmem:[#allocation356_spill] sm:$0xff] %v13076_v10  ;;  %16840 = vst [vmem:[#allocation357_spill] sm:$0xff] %v13083_v56  ;;  %v13142_v10 = vsub.f32 %v13002_v0, %v13045_v8  ;;  %v13159_v0 = vsub.f32 %v86_v25, %v13073_v23  ;;  %v13175_v25 = vsub.f32 %v13050_v45, %v13090_v58  ;;  %9795 = vmatprep.subr.mxu0 %v12995_v14 }
 0x10c   :  { %16841 = vst [vmem:[#allocation358_spill] sm:$0xff] %v13090_v58  ;;  %16842 = vst [vmem:[#allocation359_spill] sm:$0xff] %v13097_v2  ;;  %v2041_v61 = vsub.f32 %v13093_v41, %v16859_v37  ;;  %v13191_v45 = vsub.f32 %v85_v44, %v13117_v15  ;;  %9822 = vmatprep.subr.mxu1 %v13060_v24  ;;  %9796 = vmatpush3.msra.mxu0 %v13013_v16  ;;  %v13201_v14 = vand.u32 4294901760, %v13154_v33 }
 0x10d   :  { %16843 = vst [vmem:[#allocation360_spill] sm:$0xff] %v13101_v36  ;;  %16844 = vst [vmem:[#allocation361_spill] sm:$0xff] %v13104_v54  ;;  %v3727_v54 = vsel %vm3726_vm0, %v3691_v49, 0.0  ;;  %v3679_v49 = vld [vmem:[%s15516_s4 + $0x8] sm:$0xff]  ;;  %v13188_v30 = vand.u32 4294901760, %v13142_v10  ;;  %v2142_v37 = vsub.f32 %v13111_v39, %v13150_v29  ;;  %9823 = vmatpush3.msra.mxu1 %v13071_v22  ;;  %9797 = vmatprep.subr.mxu0 %v13030_v3  ;;  %v13206_v44 = vand.u32 4294901760, %v13159_v0 }
 0x10e   :  { %16845 = vst [vmem:[#allocation362_spill] sm:$0xff] %v13111_v39  ;;  %16846 = vst [vmem:[#allocation363_spill] sm:$0xff] %v13115_v1  ;;  %v3681_v24 = vmul.f32 %v3679_v49, %v3679_v49  ;;  %v3700_v16 = vcombine.high %v3698_v7, %v3698_v7  ;;  %9824 = vmatprep.subr.mxu1 %v13101_v36  ;;  %9798 = vmatpush3.msra.mxu0 %v13045_v8  ;;  %v2042_v49 = vand.u32 4294901760, %v2041_v61 }
 0x10f   :  { %16847 = vst [vmem:[#allocation364_spill] sm:$0xff] %v13117_v15  ;;  %16848 = vst [vmem:[#allocation365_spill] sm:$0xff] %v13126_v6  ;;  %v2047_v6 = vsub.f32 %v13108_v57, %v16862_v4  ;;  %v13211_v4 = vand.u32 4294901760, %v2247_v35  ;;  %9825 = vmatpush3.msra.mxu1 %v13115_v1  ;;  %9799 = vmatprep.subr.mxu0 %v13065_v51  ;;  %v13220_v22 = vand.u32 4294901760, %v2135_v55  ;;  %v13225_v36 = vand.u32 4294901760, %v13191_v45 }
 0x110   :  { %16849 = vst [vmem:[#allocation366_spill] sm:$0xff] %v13130_v5  ;;  %16850 = vst [vmem:[#allocation367_spill] sm:$0xff] %v13134_v50  ;;  %v2149_v7 = vsub.f32 %v13142_v10, %v13188_v30  ;;  %9826 = vmatprep.subr.mxu1 %v13134_v50  ;;  %9800 = vmatpush3.msra.mxu0 %v13073_v23  ;;  %v2268_v1 = vsub.f32 %v13154_v33, %v13201_v14  ;;  %v13235_v55 = vand.u32 4294901760, %v2142_v37 }
 0x111   :  { %16851 = vst [vmem:[#allocation368_spill] sm:$0xff] %v13138_v21  ;;  %16852 = vst [vmem:[#allocation369_spill] sm:$0xff] %v13142_v10  ;;  %v3729_v21 = vadd.f32 %v3728_v20, %v3727_v54  ;;  %v2261_v54 = vsub.f32 %v13130_v5, %v13171_v19  ;;  %v13216_v20 = vand.u32 4294901760, %v13175_v25  ;;  %v2048_v35 = vand.u32 4294901760, %v2047_v6  ;;  %9827 = vmatpush3.msra.mxu1 %v13166_v34 }
 0x112   :  { %16853 = vst [vmem:[#allocation370_spill] sm:$0xff] %v13150_v29  ;;  %16854 = vst [vmem:[#allocation371_spill] sm:$0xff] %v13154_v33  ;;  %9801 = vmatprep.subr.mxu0 %v13090_v58  ;;  %v2156_v61 = vsub.f32 %v13159_v0, %v13206_v44  ;;  %v3708_v50 = vrot.slane %v3681_v24, %v16809_v62  ;;  %9828 = vmatprep.subr.mxu1 %v13211_v4 }
 0x113   :  { %16855 = vst [vmem:[#allocation372_spill] sm:$0xff] %v13159_v0  ;;  %16856 = vst [vmem:[#allocation373_spill] sm:$0xff] %v13166_v34  ;;  %v3731_v29 = vadd.f32 %v3730_v59, %v3729_v21  ;;  %9802 = vmatpush3.msra.mxu0 %v13117_v15  ;;  %v13243_v6 = vand.u32 4294901760, %v2261_v54  ;;  %v2275_v21 = vsub.f32 %v13175_v25, %v13216_v20  ;;  %2043 = vmatprep.mubr.f32.mxu0 %v2042_v49 }
 0x114   :  { %16857 = vst [vmem:[#allocation374_spill] sm:$0xff] %v13171_v19  ;;  %16858 = vst [vmem:[#allocation375_spill] sm:$0xff] %v13175_v25  ;;  %v13229_v19 = vand.u32 4294901760, %v2254_v52  ;;  %9829 = vmatpush3.msra.mxu1 %v13220_v22  ;;  %v13248_v59 = vand.u32 4294901760, %v2149_v7  ;;  %v2163_v52 = vsub.f32 %v13191_v45, %v13225_v36  ;;  %2049 = vmatmul.mubr.f32.vlgmr.msra.gmra.mxu0 %v2048_v35  ;;  %v13257_v54 = vand.u32 4294901760, %v2156_v61  ;;  %v16877_v61 = vld [vmem:[#allocation291_spill] sm:$0xff] }
 0x115   :  { %16860 = vst [vmem:[#allocation376_spill] sm:$0xff] %v13188_v30  ;;  %16861 = vst [vmem:[#allocation377_spill] sm:$0xff] %v13191_v45  ;;  %v3732_v30 = vsel %vm3726_vm0, %v3700_v16, 0.0  ;;  %v13253_v16 = vand.u32 4294901760, %v2268_v1  ;;  %9841 = vmatprep.subr.mxu0 %v12635_v46  ;;  %v3701_v49 = vcombine.high %v3681_v24, %v3681_v24  ;;  %v3734_v7 = vsel %vm3726_vm0, %v3708_v50, 0.0  ;;  %2279 = vmatprep.mubr.f32.mxu1 %v13038_v31  ;;  %v143_v46 = vld [vmem:[%s15513_s1 + $0x3d0] sm:$0xff] }
 0x116   :  { %16863 = vst [vmem:[#allocation378_spill] sm:$0xff] %v13201_v14  ;;  %16864 = vst [vmem:[#allocation379_spill] sm:$0xff] %v13206_v44  ;;  %9830 = vmatprep.subr.mxu1 %v13229_v19  ;;  %v3733_v37 = vadd.f32 %v3732_v30, %v3731_v29  ;;  %9842 = vmatpush3.msra.mxu0 %v12640_v48  ;;  %v13262_v35 = vand.u32 4294901760, %v2275_v21  ;;  %v13266_v30 = vand.u32 4294901760, %v2163_v52  ;;  %v16878_v52 = vld [vmem:[#allocation263_spill] sm:$0xff] }
 0x117   :  { %16865 = vst [vmem:[#allocation380_spill] sm:$0xff] %v13211_v4  ;;  %16866 = vst [vmem:[#allocation381_spill] sm:$0xff] %v13216_v20  ;;  %9831 = vmatpush3.msra.mxu1 %v13235_v55  ;;  %v3716_v4 = vcombine.high %v3708_v50, %v3708_v50  ;;  %9843 = vmatprep.subr.mxu0 %v12657_v32  ;;  %v3715_v1 = vrot.slane %v3701_v49, %v16809_v62  ;;  %v16880_v49 = vld [vmem:[#allocation265_spill] sm:$0xff] }
 0x118   :  { %16867 = vst [vmem:[#allocation382_spill] sm:$0xff] %v13220_v22  ;;  %16868 = vst [vmem:[#allocation383_spill] sm:$0xff] %v13225_v36  ;;  %9832 = vmatprep.subr.mxu1 %v13243_v6  ;;  %9844 = vmatpush3.msra.mxu0 %v12668_v38  ;;  %v3735_v24 = vadd.f32 %v3734_v7, %v3733_v37  ;;  %v16879_v37 = vld [vmem:[#allocation264_spill] sm:$0xff]  ;;  %v16881_v7 = vld [vmem:[#allocation298_spill] sm:$0xff] }
 0x119   :  { %16869 = vst [vmem:[#allocation384_spill] sm:$0xff] %v13229_v19  ;;  %16870 = vst [vmem:[#allocation385_spill] sm:$0xff] %v13235_v55  ;;  %9833 = vmatpush3.msra.mxu1 %v13248_v59  ;;  %9845 = vmatprep.subr.mxu0 %v12691_v63  ;;  %v3736_v50 = vsel %vm3726_vm0, %v3716_v4, 0.0  ;;  %v3717_v21 = vcombine.high %v3715_v1, %v3715_v1  ;;  %v3738_v4 = vsel %vm3726_vm0, %v3715_v1, 0.0  ;;  %v16883_v1 = vld [vmem:[#allocation269_spill] sm:$0xff]  ;;  %v16938_v38 = vld [vmem:[#allocation356_spill] sm:$0xff] }
 0x11a   :  { %16871 = vst [vmem:[#allocation386_spill] sm:$0xff] %v13243_v6  ;;  %16872 = vst [vmem:[#allocation387_spill] sm:$0xff] %v13248_v59  ;;  %9834 = vmatprep.subr.mxu1 %v13253_v16  ;;  %9846 = vmatpush3.msra.mxu0 %v12694_v60  ;;  %v3737_v29 = vadd.f32 %v3736_v50, %v3735_v24  ;;  %v16882_v50 = vld [vmem:[#allocation266_spill] sm:$0xff]  ;;  %v16941_v32 = vld [vmem:[#allocation361_spill] sm:$0xff] }
 0x11b   :  { %16873 = vst [vmem:[#allocation388_spill] sm:$0xff] %v13253_v16  ;;  %16874 = vst [vmem:[#allocation389_spill] sm:$0xff] %v13257_v54  ;;  %9835 = vmatpush3.msra.mxu1 %v13257_v54  ;;  %9847 = vmatprep.subr.mxu0 %v12727_v11  ;;  %v16888_v11 = vld [vmem:[#allocation314_spill] sm:$0xff]  ;;  %v16897_v54 = vld [vmem:[#allocation284_spill] sm:$0xff] }
 0x11c   :  { %16875 = vst [vmem:[#allocation390_spill] sm:$0xff] %v13262_v35  ;;  %16876 = vst [vmem:[#allocation391_spill] sm:$0xff] %v13266_v30  ;;  %9836 = vmatprep.subr.mxu1 %v13262_v35  ;;  %9848 = vmatpush3.msra.mxu0 %v12741_v27  ;;  %v3739_v24 = vadd.f32 %v3738_v4, %v3737_v29  ;;  %v16884_v27 = vld [vmem:[#allocation304_spill] sm:$0xff]  ;;  %v16893_v35 = vld [vmem:[#allocation281_spill] sm:$0xff] }
 0x11d   :  { %9837 = vmatpush3.msra.mxu1 %v13266_v30  ;;  %9849 = vmatprep.subr.mxu0 %v16877_v61  ;;  %v3740_v61 = vsel %vm3726_vm0, %v3717_v21, 0.0  ;;  %v16886_v30 = vld [vmem:[#allocation311_spill] sm:$0xff]  ;;  %v16889_v29 = vld [vmem:[#allocation276_spill] sm:$0xff]  ;;  %v16895_v60 = vld [vmem:[#allocation282_spill] sm:$0xff] }
 0x11e   :  { %2281 = vmatmul.mubr.f32.vlgmr.msra.gmra.mxu1 %v13056_v26  ;;  %9876 = vmatprep.subr.mxu1 %v16878_v52  ;;  %v16890_v4 = vld [vmem:[#allocation320_spill] sm:$0xff]  ;;  %v16892_v21 = vld [vmem:[#allocation323_spill] sm:$0xff]  ;;  %v16936_v16 = vld [vmem:[#allocation349_spill] sm:$0xff] }
 0x11f   :  { %9850 = vmatpush3.msra.mxu0 %v12764_v18  ;;  %9877 = vmatpush3.msra.mxu1 %v16879_v37  ;;  %v16885_v18 = vld [vmem:[#allocation270_spill] sm:$0xff]  ;;  %v16943_v6 = vld [vmem:[#allocation365_spill] sm:$0xff]  ;;  %v16947_v22 = vld [vmem:[#allocation368_spill] sm:$0xff] }
 0x120   :  { %9851 = vmatprep.subr.mxu0 %v12767_v9  ;;  %9878 = vmatprep.subr.mxu1 %v16880_v49  ;;  %v16887_v9 = vld [vmem:[#allocation274_spill] sm:$0xff] }
 0x121   :  { %9852 = vmatpush3.msra.mxu0 %v16881_v7  ;;  %9879 = vmatpush3.msra.mxu1 %v16882_v50  ;;  %v3741_v7 = vadd.f32 %v3740_v61, %v3739_v24  ;;  %v16898_v61 = vld [vmem:[#allocation289_spill] sm:$0xff]  ;;  %v16899_v24 = vld [vmem:[#allocation290_spill] sm:$0xff] }
 0x122   :  { %9853 = vmatprep.subr.mxu0 %v12806_v13  ;;  %9880 = vmatprep.subr.mxu1 %v16883_v1  ;;  %v16891_v13 = vld [vmem:[#allocation279_spill] sm:$0xff]  ;;  %v128_v55 = vld [vmem:[%s15513_s1 + $0x358] sm:$0xff] }
 0x123   :  { %9854 = vmatpush3.msra.mxu0 %v16884_v27  ;;  %9881 = vmatpush3.msra.mxu1 %v16885_v18  ;;  %v16894_v27 = vld [vmem:[#allocation328_spill] sm:$0xff] }
 0x124   :  { %9855 = vmatprep.subr.mxu0 %v16886_v30  ;;  %9882 = vmatprep.subr.mxu1 %v16887_v9  ;;  %v16896_v30 = vld [vmem:[#allocation332_spill] sm:$0xff] }
 0x125   :  { %9856 = vmatpush3.msra.mxu0 %v16888_v11  ;;  %9883 = vmatpush3.msra.mxu1 %v16889_v29 }
 0x126   :  { %9857 = vmatprep.subr.mxu0 %v16890_v4  ;;  %9884 = vmatprep.subr.mxu1 %v16891_v13  ;;  %v16931_v4 = vld [vmem:[#allocation341_spill] sm:$0xff] }
 0x127   :  { %9858 = vmatpush3.msra.mxu0 %v16892_v21  ;;  %9885 = vmatpush3.msra.mxu1 %v16893_v35  ;;  %v16900_v21 = vld [vmem:[#allocation296_spill] sm:$0xff] }
 0x128   :  { %9859 = vmatprep.subr.mxu0 %v16894_v27  ;;  %9886 = vmatprep.subr.mxu1 %v16895_v60  ;;  %v16901_v27 = vld [vmem:[#allocation299_spill] sm:$0xff] }
 0x129   :  { %3742 = vadd.xlane.f32.xlu0 %v3741_v7  ;;  %9860 = vmatpush3.msra.mxu0 %v16896_v30  ;;  %v16902_v7 = vld [vmem:[#allocation309_spill] sm:$0xff]  ;;  %v16929_v30 = vld [vmem:[#allocation335_spill] sm:$0xff] }
 0x12a   :  { %9887 = vmatpush3.msra.mxu1 %v16897_v54  ;;  %9861 = vmatprep.subr.mxu0 %v12971_v17  ;;  %v16928_v17 = vld [vmem:[#allocation331_spill] sm:$0xff] }
 0x12b   :  { %9888 = vmatprep.subr.mxu1 %v16898_v61  ;;  %9862 = vmatpush3.msra.mxu0 %v13023_v47  ;;  %v16917_v47 = vld [vmem:[#allocation302_spill] sm:$0xff] }
 0x12c   :  { %9889 = vmatpush3.msra.mxu1 %v16899_v24  ;;  %9863 = vmatprep.subr.mxu0 %v13053_v12  ;;  %v16912_v12 = vld [vmem:[#allocation287_spill] sm:$0xff] }
 0x12d   :  { %9890 = vmatprep.subr.mxu1 %v16900_v21  ;;  %9864 = vmatpush3.msra.mxu0 %v13083_v56  ;;  %v16911_v56 = vld [vmem:[#allocation286_spill] sm:$0xff] }
 0x12e   :  { %9891 = vmatpush3.msra.mxu1 %v16901_v27  ;;  %9865 = vmatprep.subr.mxu0 %v13097_v2  ;;  %v16903_v2 = vld [vmem:[#allocation334_spill] sm:$0xff] }
 0x12f   :  { %9892 = vmatprep.subr.mxu1 %v12815_v53  ;;  %9866 = vmatpush3.msra.mxu0 %v13111_v39  ;;  %v16907_v39 = vld [vmem:[#allocation345_spill] sm:$0xff] }
 0x130   :  { %9893 = vmatpush3.msra.mxu1 %v16902_v7  ;;  %9867 = vmatprep.subr.mxu0 %v13130_v5  ;;  %v16904_v5 = vld [vmem:[#allocation340_spill] sm:$0xff] }
 0x131   :  { %9894 = vmatprep.subr.mxu1 %v12856_v40  ;;  %9868 = vmatpush3.msra.mxu0 %v13142_v10  ;;  %v16905_v10 = vld [vmem:[#allocation342_spill] sm:$0xff] }
 0x132   :  { %9895 = vmatpush3.msra.mxu1 %v12878_v28  ;;  %9869 = vmatprep.subr.mxu0 %v13154_v33  ;;  %v16906_v33 = vld [vmem:[#allocation272_spill] sm:$0xff] }
 0x133   :  { %9896 = vmatprep.subr.mxu1 %v12899_v43  ;;  %9870 = vmatpush3.msra.mxu0 %v13159_v0  ;;  %v16908_v0 = vld [vmem:[#allocation275_spill] sm:$0xff] }
 0x134   :  { %9897 = vmatpush3.msra.mxu1 %v16903_v2  ;;  %9871 = vmatprep.subr.mxu0 %v13175_v25  ;;  %v16909_v25 = vld [vmem:[#allocation280_spill] sm:$0xff] }
 0x135   :  { %9898 = vmatprep.subr.mxu1 %v12963_v42  ;;  %9872 = vmatpush3.msra.mxu0 %v13191_v45  ;;  %v16910_v45 = vld [vmem:[#allocation283_spill] sm:$0xff] }
 0x136   :  { %2416 = vmatprep.mubr.f32.mxu0 %v13093_v41  ;;  %9899 = vmatpush3.msra.mxu1 %v16904_v5 }
 0x137   :  { %2419 = vmatmul.mubr.f32.vlgmr.msra.gmra.mxu0 %v13108_v57  ;;  %9900 = vmatprep.subr.mxu1 %v16905_v10 }
 0x138   :  { %9911 = vmatprep.subr.mxu0 %v16906_v33  ;;  %9901 = vmatpush3.msra.mxu1 %v16907_v39  ;;  %v16913_v33 = vld [vmem:[#allocation297_spill] sm:$0xff] }
 0x139   :  { %9912 = vmatpush3.msra.mxu0 %v16908_v0  ;;  %9902 = vmatprep.subr.mxu1 %v13030_v3  ;;  %v16915_v0 = vld [vmem:[#allocation300_spill] sm:$0xff] }
 0x13a   :  { %9913 = vmatprep.subr.mxu0 %v16909_v25  ;;  %9903 = vmatpush3.msra.mxu1 %v13045_v8  ;;  %v16914_v25 = vand.u32 4294901760, %v13093_v41  ;;  %v148_v41 = vld [vmem:[%s15513_s1 + $0x3f8] sm:$0xff] }
 0x13b   :  { %9914 = vmatpush3.msra.mxu0 %v16910_v45  ;;  %9904 = vmatprep.subr.mxu1 %v13065_v51  ;;  %v16916_v45 = vand.u32 4294901760, %v13108_v57  ;;  %v132_v57 = vld [vmem:[%s15513_s1 + $0x378] sm:$0xff] }
 0x13c   :  { %9915 = vmatprep.subr.mxu0 %v16911_v56  ;;  %9905 = vmatpush3.msra.mxu1 %v13073_v23  ;;  %v16918_v56 = vld [vmem:[#allocation307_spill] sm:$0xff] }
 0x13d   :  { %9916 = vmatpush3.msra.mxu0 %v16912_v12  ;;  %9906 = vmatprep.subr.mxu1 %v13090_v58  ;;  %v16919_v12 = vld [vmem:[#allocation308_spill] sm:$0xff] }
 0x13e   :  { %9917 = vmatprep.subr.mxu0 %v16913_v33  ;;  %9907 = vmatpush3.msra.mxu1 %v13117_v15  ;;  %v16926_v33 = vld [vmem:[#allocation326_spill] sm:$0xff] }
 0x13f   :  { %2523 = vmatprep.mubr.f32.mxu1 %v16914_v25  ;;  %9918 = vmatpush3.msra.mxu0 %v16915_v0  ;;  %v16920_v25 = vld [vmem:[#allocation310_spill] sm:$0xff]  ;;  %v13378_v0 = vand.u32 4294901760, %v132_v57 }
 0x140   :  { %2527 = vmatmul.mubr.f32.vlgmr.msra.gmra.mxu1 %v16916_v45  ;;  %9919 = vmatprep.subr.mxu0 %v16917_v47  ;;  %v16921_v45 = vld [vmem:[#allocation316_spill] sm:$0xff]  ;;  %v13374_v47 = vand.u32 4294901760, %v148_v41 }
 0x141   :  { %9946 = vmatprep.subr.mxu1 %v16878_v52  ;;  %9920 = vmatpush3.msra.mxu0 %v16918_v56  ;;  %v16922_v56 = vld [vmem:[#allocation317_spill] sm:$0xff]  ;;  %16925 = vst [vmem:[#allocation393_spill] sm:$0xff] %v13378_v0  ;;  %v13403_v11 = vsub.f32 %v132_v57, %v13378_v0  ;;  %v145_v57 = vld [vmem:[%s15513_s1 + $0x3e0] sm:$0xff] }
 0x142   :  { %9947 = vmatpush3.msra.mxu1 %v16879_v37  ;;  %9921 = vmatprep.subr.mxu0 %v16919_v12  ;;  %v147_v12 = vld [vmem:[%s15513_s1 + $0x3f0] sm:$0xff]  ;;  %16923 = vst [vmem:[#allocation392_spill] sm:$0xff] %v13374_v47  ;;  %v13439_v48 = vand.u32 4294901760, %v145_v57 }
 0x143   :  { %9948 = vmatprep.subr.mxu1 %v16880_v49  ;;  %9922 = vmatpush3.msra.mxu0 %v16920_v25  ;;  %v16924_v25 = vld [vmem:[#allocation322_spill] sm:$0xff]  ;;  %16932 = vst [vmem:[#allocation396_spill] sm:$0xff] %v13403_v11 }
 0x144   :  { %9949 = vmatpush3.msra.mxu1 %v16882_v50  ;;  %9923 = vmatprep.subr.mxu0 %v16921_v45  ;;  %v13382_v45 = vand.u32 4294901760, %v147_v12  ;;  %16944 = vst [vmem:[#allocation403_spill] sm:$0xff] %v13439_v48  ;;  %v16978_v49 = vld [vmem:[#allocation318_spill] sm:$0xff] }
 0x145   :  { %9950 = vmatprep.subr.mxu1 %v16883_v1  ;;  %9924 = vmatpush3.msra.mxu0 %v16922_v56  ;;  %v131_v56 = vld [vmem:[%s15513_s1 + $0x370] sm:$0xff]  ;;  %v193_v37 = vcombine.high %v16978_v49, %v16978_v49 }
 0x146   :  { %9951 = vmatpush3.msra.mxu1 %v16885_v18  ;;  %9925 = vmatprep.subr.mxu0 %v16924_v25  ;;  %16927 = vst [vmem:[#allocation394_spill] sm:$0xff] %v13382_v45  ;;  %v13395_v25 = vsub.f32 %v148_v41, %v13374_v47  ;;  %v13407_v63 = vand.u32 4294901760, %v131_v56  ;;  %v13410_v41 = vsub.f32 %v147_v12, %v13382_v45  ;;  %v129_v12 = vld [vmem:[%s15513_s1 + $0x360] sm:$0xff] }
 0x147   :  { %9952 = vmatprep.subr.mxu1 %v16887_v9  ;;  %9926 = vmatpush3.msra.mxu0 %v16926_v33  ;;  %v146_v33 = vld [vmem:[%s15513_s1 + $0x3e8] sm:$0xff] }
 0x148   :  { %9953 = vmatpush3.msra.mxu1 %v16889_v29  ;;  %9927 = vmatprep.subr.mxu0 %v16928_v17  ;;  %16930 = vst [vmem:[#allocation395_spill] sm:$0xff] %v13395_v25  ;;  %v130_v17 = vld [vmem:[%s15513_s1 + $0x368] sm:$0xff]  ;;  %16934 = vst [vmem:[#allocation397_spill] sm:$0xff] %v13407_v63  ;;  %v13430_v59 = vand.u32 4294901760, %v13395_v25  ;;  %v13451_v19 = vsub.f32 %v131_v56, %v13407_v63 }
 0x149   :  { %9954 = vmatprep.subr.mxu1 %v16891_v13  ;;  %9928 = vmatpush3.msra.mxu0 %v16929_v30  ;;  %v16933_v30 = vld [vmem:[#allocation343_spill] sm:$0xff]  ;;  %16935 = vst [vmem:[#allocation398_spill] sm:$0xff] %v13410_v41 }
 0x14a   :  { %9955 = vmatpush3.msra.mxu1 %v16893_v35  ;;  %9929 = vmatprep.subr.mxu0 %v16931_v4  ;;  %v13414_v4 = vand.u32 4294901760, %v146_v33  ;;  %16940 = vst [vmem:[#allocation401_spill] sm:$0xff] %v13430_v59  ;;  %16946 = vst [vmem:[#allocation405_spill] sm:$0xff] %v13451_v19  ;;  %v3032_v56 = vsub.f32 %v13395_v25, %v13430_v59  ;;  %v13496_v35 = vsub.f32 %v145_v57, %v13439_v48 }
 0x14b   :  { %9956 = vmatprep.subr.mxu1 %v16895_v60  ;;  %9930 = vmatpush3.msra.mxu0 %v16933_v30  ;;  %v13421_v30 = vand.u32 4294901760, %v130_v17  ;;  %v126_v60 = vld [vmem:[%s15513_s1 + $0x348] sm:$0xff] }
 0x14c   :  { %9957 = vmatpush3.msra.mxu1 %v16897_v54  ;;  %9931 = vmatprep.subr.mxu0 %v16936_v16  ;;  %16937 = vst [vmem:[#allocation399_spill] sm:$0xff] %v13414_v4  ;;  %v144_v16 = vld [vmem:[%s15513_s1 + $0x3d8] sm:$0xff]  ;;  %v13478_v54 = vand.u32 4294901760, %v143_v46  ;;  %16959 = vst [vmem:[#allocation414_spill] sm:$0xff] %v13496_v35  ;;  %v13511_v29 = vand.u32 4294901760, %v3032_v56  ;;  %v125_v56 = vld [vmem:[%s15513_s1 + $0x340] sm:$0xff] }
 0x14d   :  { %9958 = vmatprep.subr.mxu1 %v16898_v61  ;;  %9932 = vmatpush3.msra.mxu0 %v16938_v38  ;;  %16939 = vst [vmem:[#allocation400_spill] sm:$0xff] %v13421_v30  ;;  %v13435_v38 = vand.u32 4294901760, %v13403_v11  ;;  %v13457_v34 = vand.u32 4294901760, %v144_v16  ;;  %v13474_v61 = vand.u32 4294901760, %v128_v55  ;;  %v13570_v1 = vand.u32 4294901760, %v125_v56 }
 0x14e   :  { %9959 = vmatpush3.msra.mxu1 %v16899_v24  ;;  %9933 = vmatprep.subr.mxu0 %v16941_v32  ;;  %v13448_v32 = vand.u32 4294901760, %v13410_v41  ;;  %v16951_v24 = vld [vmem:[#allocation370_spill] sm:$0xff]  ;;  %16955 = vst [vmem:[#allocation411_spill] sm:$0xff] %v13478_v54  ;;  %16963 = vst [vmem:[#allocation418_spill] sm:$0xff] %v13511_v29 }
 0x14f   :  { %9960 = vmatprep.subr.mxu1 %v16900_v21  ;;  %16942 = vst [vmem:[#allocation402_spill] sm:$0xff] %v13435_v38  ;;  %9934 = vmatpush3.msra.mxu0 %v16943_v6  ;;  %v13455_v6 = vand.u32 4294901760, %v129_v12  ;;  %16949 = vst [vmem:[#allocation407_spill] sm:$0xff] %v13457_v34  ;;  %v13463_v21 = vsub.f32 %v146_v33, %v13414_v4  ;;  %v2920_v33 = vsub.f32 %v13403_v11, %v13435_v38 }
 0x150   :  { %9961 = vmatpush3.msra.mxu1 %v16901_v27  ;;  %16945 = vst [vmem:[#allocation404_spill] sm:$0xff] %v13448_v32  ;;  %9935 = vmatprep.subr.mxu0 %v16947_v22  ;;  %v127_v27 = vld [vmem:[%s15513_s1 + $0x350] sm:$0xff]  ;;  %v13470_v22 = vsub.f32 %v130_v17, %v13421_v30  ;;  %16954 = vst [vmem:[#allocation410_spill] sm:$0xff] %v13474_v61  ;;  %v3039_v17 = vsub.f32 %v13410_v41, %v13448_v32 }
 0x151   :  { %9962 = vmatprep.subr.mxu1 %v12815_v53  ;;  %16948 = vst [vmem:[#allocation406_spill] sm:$0xff] %v13455_v6  ;;  %16950 = vst [vmem:[#allocation408_spill] sm:$0xff] %v13463_v21  ;;  %9936 = vmatpush3.msra.mxu0 %v16951_v24  ;;  %v16953_v53 = vld [vmem:[#allocation374_spill] sm:$0xff]  ;;  %v142_v24 = vld [vmem:[%s15513_s1 + $0x3c8] sm:$0xff]  ;;  %v13507_v13 = vsub.f32 %v144_v16, %v13457_v34  ;;  %v13523_v16 = vand.u32 4294901760, %v2920_v33  ;;  %v13629_v38 = vrot.slane %v193_v37, %v16809_v62 }
 0x152   :  { %9963 = vmatpush3.msra.mxu1 %v16902_v7  ;;  %16952 = vst [vmem:[#allocation409_spill] sm:$0xff] %v13470_v22  ;;  %9937 = vmatprep.subr.mxu0 %v16953_v53  ;;  %v16956_v7 = vld [vmem:[#allocation376_spill] sm:$0xff]  ;;  %v13487_v53 = vand.u32 4294901760, %v127_v27  ;;  %v13513_v57 = vand.u32 4294901760, %v142_v24  ;;  %16976 = vst [vmem:[#allocation431_spill] sm:$0xff] %v13570_v1 }
 0x153   :  { %9964 = vmatprep.subr.mxu1 %v12856_v40  ;;  %9938 = vmatpush3.msra.mxu0 %v16956_v7  ;;  %v13490_v40 = vand.u32 4294901760, %v13451_v19  ;;  %v13501_v7 = vand.u32 4294901760, %v13463_v21  ;;  %16962 = vst [vmem:[#allocation417_spill] sm:$0xff] %v13507_v13  ;;  %16966 = vst [vmem:[#allocation421_spill] sm:$0xff] %v13523_v16  ;;  %v13561_v18 = vand.u32 4294901760, %v13507_v13 }
 0x154   :  { %9965 = vmatpush3.msra.mxu1 %v12878_v28  ;;  %16957 = vst [vmem:[#allocation412_spill] sm:$0xff] %v13487_v53  ;;  %9939 = vmatprep.subr.mxu0 %v13201_v14  ;;  %v13504_v28 = vsub.f32 %v129_v12, %v13455_v6  ;;  %16964 = vst [vmem:[#allocation419_spill] sm:$0xff] %v13513_v57  ;;  %v13516_v14 = vand.u32 4294901760, %v13470_v22  ;;  %v13525_v12 = vand.u32 4294901760, %v126_v60 }
 0x155   :  { %16958 = vst [vmem:[#allocation413_spill] sm:$0xff] %v13490_v40  ;;  %9966 = vmatprep.subr.mxu1 %v12899_v43  ;;  %16960 = vst [vmem:[#allocation415_spill] sm:$0xff] %v13501_v7  ;;  %9940 = vmatpush3.msra.mxu0 %v13206_v44  ;;  %v141_v43 = vld [vmem:[%s15513_s1 + $0x3c0] sm:$0xff]  ;;  %v13531_v44 = vsub.f32 %v128_v55, %v13474_v61  ;;  %v2927_v33 = vsub.f32 %v13451_v19, %v13490_v40  ;;  %v140_v55 = vld [vmem:[%s15513_s1 + $0x3b8] sm:$0xff] }
 0x156   :  { %16961 = vst [vmem:[#allocation416_spill] sm:$0xff] %v13504_v28  ;;  %9967 = vmatpush3.msra.mxu1 %v16903_v2  ;;  %16965 = vst [vmem:[#allocation420_spill] sm:$0xff] %v13516_v14  ;;  %9941 = vmatprep.subr.mxu0 %v13216_v20  ;;  %v13534_v2 = vsub.f32 %v143_v46, %v13478_v54  ;;  %v13538_v20 = vand.u32 4294901760, %v3039_v17  ;;  %v13549_v9 = vsub.f32 %v127_v27, %v13487_v53  ;;  %v124_v27 = vld [vmem:[%s15513_s1 + $0x338] sm:$0xff] }
 0x157   :  { %9968 = vmatprep.subr.mxu1 %v12963_v42  ;;  %16967 = vst [vmem:[#allocation422_spill] sm:$0xff] %v13525_v12  ;;  %16968 = vst [vmem:[#allocation423_spill] sm:$0xff] %v13531_v44  ;;  %9942 = vmatpush3.msra.mxu0 %v13225_v36  ;;  %v13543_v42 = vand.u32 4294901760, %v13496_v35  ;;  %v3046_v46 = vsub.f32 %v13463_v21, %v13501_v7  ;;  %v13555_v17 = vand.u32 4294901760, %v141_v43  ;;  %v13558_v36 = vand.u32 4294901760, %v13504_v28 }
 0x158   :  { %16969 = vst [vmem:[#allocation424_spill] sm:$0xff] %v13534_v2  ;;  %2693 = vmatprep.mubr.f32.mxu0 %v13038_v31  ;;  %16970 = vst [vmem:[#allocation425_spill] sm:$0xff] %v13538_v20  ;;  %9969 = vmatpush3.msra.mxu1 %v16904_v5  ;;  %v2934_v5 = vsub.f32 %v13470_v22, %v13516_v14  ;;  %v13573_v50 = vsub.f32 %v142_v24, %v13513_v57  ;;  %v13579_v52 = vand.u32 4294901760, %v140_v55 }
 0x159   :  { %16971 = vst [vmem:[#allocation426_spill] sm:$0xff] %v13543_v42  ;;  %16972 = vst [vmem:[#allocation427_spill] sm:$0xff] %v13549_v9  ;;  %2695 = vmatmul.mubr.f32.vlgmr.msra.gmra.mxu0 %v13056_v26  ;;  %9970 = vmatprep.subr.mxu1 %v16905_v10  ;;  %v13582_v10 = vand.u32 4294901760, %v13531_v44  ;;  %v13585_v7 = vand.u32 4294901760, %v13534_v2  ;;  %v13588_v14 = vsub.f32 %v126_v60, %v13525_v12  ;;  %v13592_v49 = vand.u32 4294901760, %v2927_v33 }
 0x15a   :  { %16973 = vst [vmem:[#allocation428_spill] sm:$0xff] %v13555_v17  ;;  %16974 = vst [vmem:[#allocation429_spill] sm:$0xff] %v13558_v36  ;;  %9981 = vmatprep.subr.mxu0 %v13374_v47  ;;  %9971 = vmatpush3.msra.mxu1 %v16907_v39  ;;  %v3053_v24 = vsub.f32 %v13496_v35, %v13543_v42  ;;  %v13596_v39 = vand.u32 4294901760, %v124_v27  ;;  %v13599_v40 = vand.u32 4294901760, %v13549_v9  ;;  %v13603_v60 = vand.u32 4294901760, %v3046_v46  ;;  %v139_v42 = vld [vmem:[%s15513_s1 + $0x3b0] sm:$0xff] }
 0x15b   :  { %16975 = vst [vmem:[#allocation430_spill] sm:$0xff] %v13561_v18  ;;  %16977 = vst [vmem:[#allocation432_spill] sm:$0xff] %v13573_v50  ;;  %9982 = vmatpush3.msra.mxu0 %v13378_v0  ;;  %9972 = vmatprep.subr.mxu1 %v13030_v3  ;;  %v2941_v3 = vsub.f32 %v13504_v28, %v13558_v36  ;;  %v3060_v33 = vsub.f32 %v13507_v13, %v13561_v18  ;;  %v123_v46 = vld [vmem:[%s15513_s1 + $0x330] sm:$0xff]  ;;  %v13623_v36 = vand.u32 4294901760, %v13573_v50 }
 0x15c   :  { %16979 = vst [vmem:[#allocation318_spill] sm:$0xff] %v13579_v52  ;;  %16980 = vst [vmem:[#allocation433_spill] sm:$0xff] %v13582_v10  ;;  %9983 = vmatprep.subr.mxu0 %v13382_v45  ;;  %9973 = vmatpush3.msra.mxu1 %v13045_v8  ;;  %v13613_v32 = vsub.f32 %v141_v43, %v13555_v17  ;;  %v13617_v8 = vand.u32 4294901760, %v2934_v5  ;;  %v13626_v18 = vsub.f32 %v125_v56, %v13570_v1 }
 0x15d   :  { %16981 = vst [vmem:[#allocation434_spill] sm:$0xff] %v13585_v7  ;;  %16982 = vst [vmem:[#allocation435_spill] sm:$0xff] %v13588_v14  ;;  %9984 = vmatpush3.msra.mxu0 %v13407_v63  ;;  %9974 = vmatprep.subr.mxu1 %v13065_v51  ;;  %v2948_v43 = vsub.f32 %v13531_v44, %v13582_v10  ;;  %v3067_v5 = vsub.f32 %v13534_v2, %v13585_v7  ;;  %v138_v51 = vld [vmem:[%s15513_s1 + $0x3a8] sm:$0xff]  ;;  %v13641_v56 = vand.u32 4294901760, %v13588_v14 }
 0x15e   :  { %16983 = vst [vmem:[#allocation436_spill] sm:$0xff] %v13592_v49  ;;  %16984 = vst [vmem:[#allocation437_spill] sm:$0xff] %v13596_v39  ;;  %9985 = vmatprep.subr.mxu0 %v13414_v4  ;;  %9975 = vmatpush3.msra.mxu1 %v13073_v23  ;;  %v13644_v37 = vsub.f32 %v140_v55, %v13579_v52  ;;  %v13648_v23 = vand.u32 4294901760, %v3053_v24  ;;  %v13650_v62 = vand.u32 4294901760, %v139_v42  ;;  %v13659_v55 = vand.u32 4294901760, %v2941_v3  ;;  %v122_v24 = vld [vmem:[%s15513_s1 + $0x328] sm:$0xff] }
 0x15f   :  { %16985 = vst [vmem:[#allocation438_spill] sm:$0xff] %v13599_v40  ;;  %16986 = vst [vmem:[#allocation439_spill] sm:$0xff] %v13603_v60  ;;  %9986 = vmatpush3.msra.mxu0 %v13421_v30  ;;  %9976 = vmatprep.subr.mxu1 %v13090_v58  ;;  %v2955_v7 = vsub.f32 %v13549_v9, %v13599_v40  ;;  %v13655_v10 = vsub.f32 %v124_v27, %v13596_v39  ;;  %v13661_v59 = vand.u32 4294901760, %v3060_v33  ;;  %v137_v3 = vld [vmem:[%s15513_s1 + $0x3a0] sm:$0xff] }
 0x160   :  { %16987 = vst [vmem:[#allocation440_spill] sm:$0xff] %v13613_v32  ;;  %16988 = vst [vmem:[#allocation441_spill] sm:$0xff] %v13617_v8  ;;  %9987 = vmatprep.subr.mxu0 %v13439_v48  ;;  %9977 = vmatpush3.msra.mxu1 %v13117_v15  ;;  %v13663_v58 = vand.u32 4294901760, %v123_v46  ;;  %v13669_v48 = vand.u32 4294901760, %v13613_v32  ;;  %v13673_v27 = vand.u32 4294901760, %v138_v51  ;;  %v121_v33 = vld [vmem:[%s15513_s1 + $0x320] sm:$0xff]  ;;  %v209_v40 = vcombine.high %v13629_v38, %v13629_v38 }
 0x161   :  { %16989 = vst [vmem:[#allocation442_spill] sm:$0xff] %v13623_v36  ;;  %16990 = vst [vmem:[#allocation443_spill] sm:$0xff] %v13626_v18  ;;  %2797 = vmatprep.mubr.f32.mxu1 %v13038_v31  ;;  %9988 = vmatpush3.msra.mxu0 %v13455_v6  ;;  %v3074_v31 = vsub.f32 %v13573_v50, %v13623_v36  ;;  %v13684_v15 = vand.u32 4294901760, %v13626_v18  ;;  %v13692_v36 = vand.u32 4294901760, %v3067_v5  ;;  %v13697_v30 = vand.u32 4294901760, %v13644_v37 }
 0x162   :  { %16991 = vst [vmem:[#allocation444_spill] sm:$0xff] %v13641_v56  ;;  %16992 = vst [vmem:[#allocation445_spill] sm:$0xff] %v13644_v37  ;;  %2799 = vmatmul.mubr.f32.vlgmr.msra.gmra.mxu1 %v13056_v26  ;;  %9989 = vmatprep.subr.mxu0 %v13457_v34  ;;  %v13690_v26 = vand.u32 4294901760, %v2948_v43  ;;  %v2962_v6 = vsub.f32 %v13588_v14, %v13641_v56  ;;  %v13701_v4 = vand.u32 4294901760, %v2955_v7  ;;  %v13703_v50 = vand.u32 4294901760, %v122_v24  ;;  %v136_v43 = vld [vmem:[%s15513_s1 + $0x398] sm:$0xff] }
 0x163   :  { %16993 = vst [vmem:[#allocation446_spill] sm:$0xff] %v13648_v23  ;;  %16994 = vst [vmem:[#allocation447_spill] sm:$0xff] %v13650_v62  ;;  %10016 = vmatprep.subr.mxu1 %v13511_v29  ;;  %9990 = vmatpush3.msra.mxu0 %v13474_v61  ;;  %v13709_v5 = vand.u32 4294901760, %v13655_v10  ;;  %v13712_v29 = vsub.f32 %v139_v42, %v13650_v62  ;;  %v13716_v56 = vand.u32 4294901760, %v137_v3  ;;  %v120_v61 = vld [vmem:[%s15513_s1 + $0x318] sm:$0xff]  ;;  %v13730_v42 = vand.u32 4294901760, %v3074_v31 }
 0x164   :  { %16995 = vst [vmem:[#allocation448_spill] sm:$0xff] %v13655_v10  ;;  %16996 = vst [vmem:[#allocation449_spill] sm:$0xff] %v13659_v55  ;;  %10017 = vmatpush3.msra.mxu1 %v13523_v16  ;;  %9991 = vmatprep.subr.mxu0 %v13478_v54  ;;  %v3081_v7 = vsub.f32 %v13613_v32, %v13669_v48  ;;  %v13720_v16 = vand.u32 4294901760, %v121_v33  ;;  %v13726_v34 = vsub.f32 %v123_v46, %v13663_v58 }
 0x165   :  { %16997 = vst [vmem:[#allocation450_spill] sm:$0xff] %v13661_v59  ;;  %16998 = vst [vmem:[#allocation451_spill] sm:$0xff] %v13663_v58  ;;  %10018 = vmatprep.subr.mxu1 %v13538_v20  ;;  %9992 = vmatpush3.msra.mxu0 %v13487_v53  ;;  %v2969_v20 = vsub.f32 %v13626_v18, %v13684_v15  ;;  %v13738_v54 = vsub.f32 %v138_v51, %v13673_v27  ;;  %v13740_v32 = vand.u32 4294901760, %v209_v40 }
 0x166   :  { %16999 = vst [vmem:[#allocation452_spill] sm:$0xff] %v13669_v48  ;;  %17000 = vst [vmem:[#allocation453_spill] sm:$0xff] %v13673_v27  ;;  %10019 = vmatpush3.msra.mxu1 %v13592_v49  ;;  %v135_v48 = vld [vmem:[%s15513_s1 + $0x390] sm:$0xff]  ;;  %9993 = vmatprep.subr.mxu0 %v13513_v57  ;;  %v13744_v46 = vand.u32 4294901760, %v2962_v6  ;;  %v13746_v31 = vand.u32 4294901760, %v136_v43  ;;  %v3088_v49 = vsub.f32 %v13644_v37, %v13697_v30  ;;  %v13754_v51 = vand.u32 4294901760, %v13629_v38 }
 0x167   :  { %17001 = vst [vmem:[#allocation454_spill] sm:$0xff] %v13684_v15  ;;  %17002 = vst [vmem:[#allocation455_spill] sm:$0xff] %v13690_v26  ;;  %10020 = vmatprep.subr.mxu1 %v13603_v60  ;;  %v119_v15 = vld [vmem:[%s15513_s1 + $0x310] sm:$0xff]  ;;  %9994 = vmatpush3.msra.mxu0 %v13525_v12  ;;  %v13758_v57 = vand.u32 4294901760, %v120_v61  ;;  %v2976_v6 = vsub.f32 %v13655_v10, %v13709_v5  ;;  %v13763_v60 = vand.u32 4294901760, %v13712_v29  ;;  %v13775_v12 = vand.u32 4294901760, %v135_v48 }
 0x168   :  { %17003 = vst [vmem:[#allocation456_spill] sm:$0xff] %v13692_v36  ;;  %17004 = vst [vmem:[#allocation457_spill] sm:$0xff] %v13697_v30  ;;  %10021 = vmatpush3.msra.mxu1 %v13617_v8  ;;  %v134_v30 = vld [vmem:[%s15513_s1 + $0x388] sm:$0xff]  ;;  %v13769_v53 = vsub.f32 %v122_v24, %v13703_v50  ;;  %9995 = vmatprep.subr.mxu0 %v13555_v17  ;;  %v13773_v8 = vand.u32 4294901760, %v3081_v7  ;;  %v13781_v10 = vsub.f32 %v137_v3, %v13716_v56 }
 0x169   :  { %17005 = vst [vmem:[#allocation458_spill] sm:$0xff] %v13701_v4  ;;  %17006 = vst [vmem:[#allocation459_spill] sm:$0xff] %v13703_v50  ;;  %10022 = vmatprep.subr.mxu1 %v13648_v23  ;;  %9996 = vmatpush3.msra.mxu0 %v13570_v1  ;;  %v13785_v24 = vand.u32 4294901760, %v2969_v20  ;;  %v13787_v37 = vand.u32 4294901760, %v119_v15  ;;  %v13790_v23 = vand.u32 4294901760, %v13738_v54  ;;  %v118_v7 = vld [vmem:[%s15513_s1 + $0x308] sm:$0xff]  ;;  %v13796_v17 = vsub.f32 %v209_v40, %v13740_v32 }
 0x16a   :  { %17007 = vst [vmem:[#allocation460_spill] sm:$0xff] %v13709_v5  ;;  %17008 = vst [vmem:[#allocation461_spill] sm:$0xff] %v13712_v29  ;;  %v13778_v5 = vand.u32 4294901760, %v13726_v34  ;;  %10023 = vmatpush3.msra.mxu1 %v13659_v55  ;;  %9997 = vmatprep.subr.mxu0 %v13579_v52  ;;  %v13800_v3 = vand.u32 4294901760, %v3088_v49  ;;  %v13802_v20 = vand.u32 4294901760, %v134_v30  ;;  %v133_v55 = vld [vmem:[%s15513_s1 + $0x380] sm:$0xff]  ;;  %v13808_v1 = vsub.f32 %v121_v33, %v13720_v16 }
 0x16b   :  { %17009 = vst [vmem:[#allocation462_spill] sm:$0xff] %v13716_v56  ;;  %17010 = vst [vmem:[#allocation463_spill] sm:$0xff] %v13720_v16  ;;  %10024 = vmatprep.subr.mxu1 %v13661_v59  ;;  %v13812_v18 = vsub.f32 %v13629_v38, %v13754_v51  ;;  %9998 = vmatpush3.msra.mxu0 %v13596_v39  ;;  %v13816_v40 = vand.u32 4294901760, %v2976_v6  ;;  %v3095_v49 = vsub.f32 %v13712_v29, %v13763_v60  ;;  %v117_v33 = vld [vmem:[%s15513_s1 + $0x300] sm:$0xff] }
 0x16c   :  { %17011 = vst [vmem:[#allocation464_spill] sm:$0xff] %v13726_v34  ;;  %17012 = vst [vmem:[#allocation465_spill] sm:$0xff] %v13730_v42  ;;  %10025 = vmatpush3.msra.mxu1 %v13690_v26  ;;  %v13821_v59 = vand.u32 4294901760, %v13769_v53  ;;  %v13827_v52 = vsub.f32 %v136_v43, %v13746_v31  ;;  %9999 = vmatprep.subr.mxu0 %v13650_v62  ;;  %v2983_v38 = vsub.f32 %v13726_v34, %v13778_v5 }
 0x16d   :  { %17013 = vst [vmem:[#allocation466_spill] sm:$0xff] %v13738_v54  ;;  %17014 = vst [vmem:[#allocation467_spill] sm:$0xff] %v13744_v46  ;;  %10026 = vmatprep.subr.mxu1 %v13692_v36  ;;  %v13833_v6 = vand.u32 4294901760, %v118_v7  ;;  %v13836_v26 = vand.u32 4294901760, %v13781_v10  ;;  %10000 = vmatpush3.msra.mxu0 %v13663_v58  ;;  %v3102_v43 = vsub.f32 %v13738_v54, %v13790_v23  ;;  %v13845_v62 = vand.u32 4294901760, %v133_v55 }
 0x16e   :  { %17015 = vst [vmem:[#allocation468_spill] sm:$0xff] %v13746_v31  ;;  %17016 = vst [vmem:[#allocation469_spill] sm:$0xff] %v13758_v57  ;;  %10027 = vmatpush3.msra.mxu1 %v13701_v4  ;;  %10001 = vmatprep.subr.mxu0 %v13673_v27  ;;  %v13856_v58 = vand.u32 4294901760, %v13808_v1  ;;  %v2990_v36 = vsub.f32 %v13769_v53, %v13821_v59  ;;  %v13872_v27 = vsub.f32 %v134_v30, %v13802_v20 }
 0x16f   :  { %17017 = vst [vmem:[#allocation470_spill] sm:$0xff] %v13763_v60  ;;  %17018 = vst [vmem:[#allocation471_spill] sm:$0xff] %v13769_v53  ;;  %v13839_v60 = vsub.f32 %v120_v61, %v13758_v57  ;;  %10028 = vmatprep.subr.mxu1 %v13730_v42  ;;  %v13853_v61 = vand.u32 4294901760, %v117_v33  ;;  %10002 = vmatpush3.msra.mxu0 %v13703_v50  ;;  %v13869_v42 = vand.u32 4294901760, %v13827_v52  ;;  %v13888_v30 = vand.u32 4294901760, %v3102_v43 }
 0x170   :  { %17019 = vst [vmem:[#allocation472_spill] sm:$0xff] %v13773_v8  ;;  %17020 = vst [vmem:[#allocation473_spill] sm:$0xff] %v13775_v12  ;;  %10029 = vmatpush3.msra.mxu1 %v13744_v46  ;;  %10003 = vmatprep.subr.mxu0 %v13716_v56  ;;  %v3109_v4 = vsub.f32 %v13781_v10, %v13836_v26  ;;  %v13884_v46 = vsub.f32 %v118_v7, %v13833_v6  ;;  %v17050_v43 = vand.u32 4294901760, %v13812_v18 }
 0x171   :  { %17021 = vst [vmem:[#allocation474_spill] sm:$0xff] %v13778_v5  ;;  %17022 = vst [vmem:[#allocation475_spill] sm:$0xff] %v13781_v10  ;;  %v13849_v5 = vsub.f32 %v135_v48, %v13775_v12  ;;  %v13864_v48 = vand.u32 4294901760, %v3095_v49  ;;  %10030 = vmatprep.subr.mxu1 %v13773_v8  ;;  %v13881_v49 = vand.u32 4294901760, %v13839_v60  ;;  %10004 = vmatpush3.msra.mxu0 %v13720_v16 }
 0x172   :  { %17023 = vst [vmem:[#allocation476_spill] sm:$0xff] %v13785_v24  ;;  %17024 = vst [vmem:[#allocation477_spill] sm:$0xff] %v13787_v37  ;;  %10031 = vmatpush3.msra.mxu1 %v13785_v24  ;;  %10005 = vmatprep.subr.mxu0 %v13746_v31  ;;  %v2997_v7 = vsub.f32 %v13808_v1, %v13856_v58  ;;  %v2909_v24 = vsub.f32 %v13812_v18, %v17050_v43  ;;  %v13923_v43 = vand.u32 4294901760, %v3109_v4 }
 0x173   :  { %17025 = vst [vmem:[#allocation478_spill] sm:$0xff] %v13790_v23  ;;  %17026 = vst [vmem:[#allocation479_spill] sm:$0xff] %v13800_v3  ;;  %v13860_v23 = vsub.f32 %v119_v15, %v13787_v37  ;;  %v13876_v15 = vand.u32 4294901760, %v2983_v38  ;;  %v13894_v8 = vand.u32 4294901760, %v13849_v5  ;;  %10032 = vmatprep.subr.mxu1 %v13800_v3  ;;  %10006 = vmatpush3.msra.mxu0 %v13758_v57  ;;  %v13928_v57 = vand.u32 4294901760, %v13884_v46 }
 0x174   :  { %17027 = vst [vmem:[#allocation480_spill] sm:$0xff] %v13802_v20  ;;  %17028 = vst [vmem:[#allocation481_spill] sm:$0xff] %v13808_v1  ;;  %10033 = vmatpush3.msra.mxu1 %v13816_v40  ;;  %v3116_v3 = vsub.f32 %v13827_v52, %v13869_v42  ;;  %10007 = vmatprep.subr.mxu0 %v13775_v12  ;;  %v13939_v4 = vand.u32 4294901760, %v2997_v7 }
 0x175   :  { %17029 = vst [vmem:[#allocation482_spill] sm:$0xff] %v13816_v40  ;;  %17030 = vst [vmem:[#allocation483_spill] sm:$0xff] %v13821_v59  ;;  %v17047_v59 = vand.u32 4294901760, %v13796_v17  ;;  %v13907_v16 = vand.u32 4294901760, %v13860_v23  ;;  %10034 = vmatprep.subr.mxu1 %v13864_v48  ;;  %10008 = vmatpush3.msra.mxu0 %v13787_v37  ;;  %v3123_v40 = vsub.f32 %v13849_v5, %v13894_v8 }
 0x176   :  { %17031 = vst [vmem:[#allocation484_spill] sm:$0xff] %v13827_v52  ;;  %17032 = vst [vmem:[#allocation485_spill] sm:$0xff] %v13833_v6  ;;  %10035 = vmatpush3.msra.mxu1 %v13876_v15  ;;  %10009 = vmatprep.subr.mxu0 %v13802_v20  ;;  %v3018_v7 = vsub.f32 %v13884_v46, %v13928_v57 }
 0x177   :  { %17033 = vst [vmem:[#allocation486_spill] sm:$0xff] %v13836_v26  ;;  %17034 = vst [vmem:[#allocation487_spill] sm:$0xff] %v13839_v60  ;;  %v2903_v38 = vsub.f32 %v13796_v17, %v17047_v59  ;;  %v13897_v26 = vsub.f32 %v133_v55, %v13845_v62  ;;  %v13910_v59 = vsub.f32 %v117_v33, %v13853_v61  ;;  %v13914_v55 = vand.u32 4294901760, %v2990_v36 }
 0x178   :  { %17035 = vst [vmem:[#allocation488_spill] sm:$0xff] %v13845_v62  ;;  %17036 = vst [vmem:[#allocation489_spill] sm:$0xff] %v13849_v5  ;;  %v3004_v33 = vsub.f32 %v13839_v60, %v13881_v49  ;;  %10036 = vmatprep.subr.mxu1 %v13888_v30  ;;  %10010 = vmatpush3.msra.mxu0 %v13833_v6 }
 0x179   :  { %17037 = vst [vmem:[#allocation490_spill] sm:$0xff] %v13853_v61  ;;  %17038 = vst [vmem:[#allocation491_spill] sm:$0xff] %v13856_v58  ;;  %v13919_v58 = vand.u32 4294901760, %v13872_v27  ;;  %v2904_v36 = vand.u32 4294901760, %v2903_v38  ;;  %v13944_v37 = vand.u32 4294901760, %v13910_v59  ;;  %10037 = vmatpush3.msra.mxu1 %v13914_v55  ;;  %v13948_v38 = vand.u32 4294901760, %v3116_v3  ;;  %10011 = vmatprep.subr.mxu0 %v13845_v62 }
 0x17a   :  { %17039 = vst [vmem:[#allocation492_spill] sm:$0xff] %v13860_v23  ;;  %17040 = vst [vmem:[#allocation493_spill] sm:$0xff] %v13864_v48  ;;  %v2910_v48 = vand.u32 4294901760, %v2909_v24  ;;  %10038 = vmatprep.subr.mxu1 %v13923_v43  ;;  %v13954_v24 = vand.u32 4294901760, %v3004_v33  ;;  %10012 = vmatpush3.msra.mxu0 %v13853_v61 }
 0x17b   :  { %17041 = vst [vmem:[#allocation494_spill] sm:$0xff] %v13869_v42  ;;  %17042 = vst [vmem:[#allocation495_spill] sm:$0xff] %v13872_v27  ;;  %v13935_v42 = vand.u32 4294901760, %v13897_v26  ;;  %2905 = vmatprep.mubr.f32.mxu0 %v2904_v36  ;;  %10039 = vmatpush3.msra.mxu1 %v13939_v4  ;;  %v3025_v33 = vsub.f32 %v13910_v59, %v13944_v37  ;;  %v17069_v36 = vld [vmem:[#allocation399_spill] sm:$0xff] }
 0x17c   :  { %17043 = vst [vmem:[#allocation496_spill] sm:$0xff] %v13876_v15  ;;  %17044 = vst [vmem:[#allocation497_spill] sm:$0xff] %v13881_v49  ;;  %v3011_v49 = vsub.f32 %v13860_v23, %v13907_v16  ;;  %v3130_v15 = vsub.f32 %v13872_v27, %v13919_v58  ;;  %2911 = vmatmul.mubr.f32.vlgmr.msra.gmra.mxu0 %v2910_v48  ;;  %10040 = vmatprep.subr.mxu1 %v13948_v38 }
 0x17d   :  { %17045 = vst [vmem:[#allocation498_spill] sm:$0xff] %v13884_v46  ;;  %17046 = vst [vmem:[#allocation499_spill] sm:$0xff] %v13888_v30  ;;  %v13959_v30 = vand.u32 4294901760, %v3123_v40  ;;  %v3137_v3 = vsub.f32 %v13897_v26, %v13935_v42  ;;  %10051 = vmatprep.subr.mxu0 %v13395_v25  ;;  %10041 = vmatpush3.msra.mxu1 %v13954_v24  ;;  %v13974_v40 = vand.u32 4294901760, %v3018_v7  ;;  %v17070_v7 = vld [vmem:[#allocation400_spill] sm:$0xff]  ;;  %v17148_v25 = vld [vmem:[#allocation43_spill] sm:$0xff] }
 0x17e   :  { %17048 = vst [vmem:[#allocation500_spill] sm:$0xff] %v13894_v8  ;;  %17049 = vst [vmem:[#allocation501_spill] sm:$0xff] %v13897_v26  ;;  %10052 = vmatpush3.msra.mxu0 %v13403_v11  ;;  %3141 = vmatprep.mubr.f32.mxu1 %v13740_v32  ;;  %v17145_v11 = vld [vmem:[#allocation58_spill] sm:$0xff] }
 0x17f   :  { %17051 = vst [vmem:[#allocation502_spill] sm:$0xff] %v13907_v16  ;;  %17052 = vst [vmem:[#allocation503_spill] sm:$0xff] %v13910_v59  ;;  %10042 = vmatprep.subr.mxu1 %v13959_v30  ;;  %10053 = vmatprep.subr.mxu0 %v13410_v41  ;;  %v13978_v48 = vand.u32 4294901760, %v3137_v3  ;;  %v17071_v3 = vld [vmem:[#allocation440_spill] sm:$0xff] }
 0x180   :  { %17053 = vst [vmem:[#allocation504_spill] sm:$0xff] %v13914_v55  ;;  %17054 = vst [vmem:[#allocation505_spill] sm:$0xff] %v13919_v58  ;;  %v13964_v55 = vand.u32 4294901760, %v3011_v49  ;;  %10054 = vmatpush3.msra.mxu0 %v13451_v19  ;;  %v13982_v49 = vand.u32 4294901760, %v3025_v33  ;;  %v17072_v33 = vld [vmem:[#allocation403_spill] sm:$0xff]  ;;  %3278 = vmatprep.mubr.f32.mxu0 %v13796_v17 }
 0x181   :  { %17055 = vst [vmem:[#allocation506_spill] sm:$0xff] %v13923_v43  ;;  %17056 = vst [vmem:[#allocation507_spill] sm:$0xff] %v13928_v57  ;;  %v13970_v43 = vand.u32 4294901760, %v3130_v15  ;;  %10055 = vmatprep.subr.mxu0 %v13463_v21  ;;  %v17068_v15 = vld [vmem:[#allocation432_spill] sm:$0xff]  ;;  %v17137_v21 = vld [vmem:[#allocation38_spill] sm:$0xff] }
 0x182   :  { %17057 = vst [vmem:[#allocation508_spill] sm:$0xff] %v13935_v42  ;;  %17058 = vst [vmem:[#allocation509_spill] sm:$0xff] %v13939_v4  ;;  %10043 = vmatpush3.msra.mxu1 %v13964_v55  ;;  %10056 = vmatpush3.msra.mxu0 %v13470_v22  ;;  %v17134_v22 = vld [vmem:[#allocation17_spill] sm:$0xff]  ;;  %v17150_v4 = vld [vmem:[#allocation47_spill] sm:$0xff] }
 0x183   :  { %17059 = vst [vmem:[#allocation510_spill] sm:$0xff] %v13944_v37  ;;  %17060 = vst [vmem:[#allocation511_spill] sm:$0xff] %v13948_v38  ;;  %10044 = vmatprep.subr.mxu1 %v13970_v43  ;;  %10057 = vmatprep.subr.mxu0 %v13496_v35  ;;  %v17132_v35 = vld [vmem:[#allocation15_spill] sm:$0xff] }
 0x184   :  { %17061 = vst [vmem:[#allocation512_spill] sm:$0xff] %v13954_v24  ;;  %17062 = vst [vmem:[#allocation513_spill] sm:$0xff] %v13959_v30  ;;  %10045 = vmatpush3.msra.mxu1 %v13974_v40  ;;  %10058 = vmatpush3.msra.mxu0 %v13504_v28  ;;  %v17077_v28 = vld [vmem:[#allocation448_spill] sm:$0xff]  ;;  %v17147_v24 = vld [vmem:[#allocation61_spill] sm:$0xff] }
 0x185   :  { %17063 = vst [vmem:[#allocation514_spill] sm:$0xff] %v13964_v55  ;;  %17064 = vst [vmem:[#allocation515_spill] sm:$0xff] %v13970_v43  ;;  %10046 = vmatprep.subr.mxu1 %v13978_v48  ;;  %10059 = vmatprep.subr.mxu0 %v13507_v13  ;;  %v17075_v13 = vld [vmem:[#allocation445_spill] sm:$0xff]  ;;  %v17138_v43 = vld [vmem:[#allocation22_spill] sm:$0xff] }
 0x186   :  { %17065 = vst [vmem:[#allocation516_spill] sm:$0xff] %v13974_v40  ;;  %17066 = vst [vmem:[#allocation517_spill] sm:$0xff] %v13978_v48  ;;  %10047 = vmatpush3.msra.mxu1 %v13982_v49  ;;  %10060 = vmatpush3.msra.mxu0 %v13531_v44  ;;  %v17073_v44 = vld [vmem:[#allocation443_spill] sm:$0xff]  ;;  %v17135_v40 = vld [vmem:[#allocation36_spill] sm:$0xff] }
 0x187   :  { %17067 = vst [vmem:[#allocation518_spill] sm:$0xff] %v13982_v49  ;;  %3143 = vmatmul.mubr.f32.vlgmr.msra.gmra.mxu1 %v13754_v51  ;;  %10086 = vmatprep.subr.mxu1 %v13374_v47  ;;  %v17102_v49 = vld [vmem:[#allocation430_spill] sm:$0xff]  ;;  %v17133_v48 = vld [vmem:[#allocation35_spill] sm:$0xff]  ;;  %v17141_v55 = vld [vmem:[#allocation44_spill] sm:$0xff] }
 0x188   :  { %10087 = vmatpush3.msra.mxu1 %v13378_v0  ;;  %10061 = vmatprep.subr.mxu0 %v13534_v2  ;;  %v17074_v2 = vld [vmem:[#allocation406_spill] sm:$0xff]  ;;  %v17143_v30 = vld [vmem:[#allocation48_spill] sm:$0xff] }
 0x189   :  { %10088 = vmatprep.subr.mxu1 %v13382_v45  ;;  %10062 = vmatpush3.msra.mxu0 %v13549_v9  ;;  %v17076_v9 = vld [vmem:[#allocation407_spill] sm:$0xff] }
 0x18a   :  { %10089 = vmatpush3.msra.mxu1 %v13407_v63  ;;  %10063 = vmatprep.subr.mxu0 %v17068_v15  ;;  %v17078_v15 = vld [vmem:[#allocation410_spill] sm:$0xff] }
 0x18b   :  { %10090 = vmatprep.subr.mxu1 %v17069_v36  ;;  %10064 = vmatpush3.msra.mxu0 %v13588_v14  ;;  %v17079_v14 = vld [vmem:[#allocation411_spill] sm:$0xff] }
 0x18c   :  { %10091 = vmatpush3.msra.mxu1 %v17070_v7  ;;  %10065 = vmatprep.subr.mxu0 %v17071_v3  ;;  %v17080_v3 = vld [vmem:[#allocation412_spill] sm:$0xff] }
 0x18d   :  { %10092 = vmatprep.subr.mxu1 %v17072_v33  ;;  %10066 = vmatpush3.msra.mxu0 %v17073_v44  ;;  %v17081_v44 = vld [vmem:[#allocation419_spill] sm:$0xff] }
 0x18e   :  { %10093 = vmatpush3.msra.mxu1 %v17074_v2  ;;  %10067 = vmatprep.subr.mxu0 %v17075_v13  ;;  %v17082_v13 = vld [vmem:[#allocation422_spill] sm:$0xff] }
 0x18f   :  { %10094 = vmatprep.subr.mxu1 %v17076_v9  ;;  %10068 = vmatpush3.msra.mxu0 %v17077_v28  ;;  %v17083_v28 = vld [vmem:[#allocation428_spill] sm:$0xff] }
 0x190   :  { %10095 = vmatpush3.msra.mxu1 %v17078_v15  ;;  %10069 = vmatprep.subr.mxu0 %v13712_v29  ;;  %v17084_v29 = vld [vmem:[#allocation431_spill] sm:$0xff] }
 0x191   :  { %10096 = vmatprep.subr.mxu1 %v17079_v14  ;;  %10070 = vmatpush3.msra.mxu0 %v13726_v34  ;;  %v17085_v34 = vld [vmem:[#allocation318_spill] sm:$0xff] }
 0x192   :  { %10097 = vmatpush3.msra.mxu1 %v17080_v3  ;;  %10071 = vmatprep.subr.mxu0 %v13738_v54  ;;  %v17097_v54 = vld [vmem:[#allocation420_spill] sm:$0xff] }
 0x193   :  { %10098 = vmatprep.subr.mxu1 %v17081_v44  ;;  %10072 = vmatpush3.msra.mxu0 %v13769_v53  ;;  %v17086_v53 = vld [vmem:[#allocation447_spill] sm:$0xff] }
 0x194   :  { %10099 = vmatpush3.msra.mxu1 %v17082_v13  ;;  %10073 = vmatprep.subr.mxu0 %v13781_v10  ;;  %v17087_v10 = vld [vmem:[#allocation451_spill] sm:$0xff] }
 0x195   :  { %10100 = vmatprep.subr.mxu1 %v17083_v28  ;;  %10074 = vmatpush3.msra.mxu0 %v13808_v1  ;;  %v17088_v1 = vld [vmem:[#allocation453_spill] sm:$0xff] }
 0x196   :  { %10101 = vmatpush3.msra.mxu1 %v17084_v29  ;;  %10075 = vmatprep.subr.mxu0 %v13827_v52  ;;  %v17096_v52 = vld [vmem:[#allocation415_spill] sm:$0xff] }
 0x197   :  { %10102 = vmatprep.subr.mxu1 %v17085_v34  ;;  %10076 = vmatpush3.msra.mxu0 %v13839_v60  ;;  %v17094_v60 = vld [vmem:[#allocation477_spill] sm:$0xff] }
 0x198   :  { %10103 = vmatpush3.msra.mxu1 %v13596_v39  ;;  %10077 = vmatprep.subr.mxu0 %v13849_v5  ;;  %v17089_v5 = vld [vmem:[#allocation463_spill] sm:$0xff] }
 0x199   :  { %10104 = vmatprep.subr.mxu1 %v17086_v53  ;;  %10078 = vmatpush3.msra.mxu0 %v13860_v23  ;;  %v17091_v23 = vld [vmem:[#allocation469_spill] sm:$0xff] }
 0x19a   :  { %10105 = vmatpush3.msra.mxu1 %v17087_v10  ;;  %10079 = vmatprep.subr.mxu0 %v13872_v27  ;;  %v17090_v27 = vld [vmem:[#allocation401_spill] sm:$0xff] }
 0x19b   :  { %10106 = vmatprep.subr.mxu1 %v17088_v1  ;;  %10080 = vmatpush3.msra.mxu0 %v13884_v46  ;;  %v17092_v46 = vld [vmem:[#allocation402_spill] sm:$0xff] }
 0x19c   :  { %10107 = vmatpush3.msra.mxu1 %v13703_v50  ;;  %10081 = vmatprep.subr.mxu0 %v13897_v26  ;;  %v17093_v26 = vld [vmem:[#allocation404_spill] sm:$0xff] }
 0x19d   :  { %10108 = vmatprep.subr.mxu1 %v13716_v56  ;;  %10082 = vmatpush3.msra.mxu0 %v13910_v59  ;;  %v17095_v59 = vld [vmem:[#allocation413_spill] sm:$0xff] }
 0x19e   :  { %10109 = vmatpush3.msra.mxu1 %v17089_v5  ;;  %3281 = vmatmul.mubr.f32.vlgmr.msra.gmra.mxu0 %v13812_v18 }
 0x19f   :  { %10110 = vmatprep.subr.mxu1 %v13746_v31  ;;  %10121 = vmatprep.subr.mxu0 %v17090_v27  ;;  %v17098_v27 = vld [vmem:[#allocation426_spill] sm:$0xff] }
 0x1a0   :  { %10111 = vmatpush3.msra.mxu1 %v17091_v23  ;;  %10122 = vmatpush3.msra.mxu0 %v17092_v46  ;;  %v17100_v46 = vld [vmem:[#allocation429_spill] sm:$0xff] }
 0x1a1   :  { %10112 = vmatprep.subr.mxu1 %v13775_v12  ;;  %10123 = vmatprep.subr.mxu0 %v17093_v26  ;;  %v17099_v26 = vand.u32 4294901760, %v13796_v17  ;;  %v17106_v17 = vld [vmem:[#allocation442_spill] sm:$0xff] }
 0x1a2   :  { %10113 = vmatpush3.msra.mxu1 %v17094_v60  ;;  %10124 = vmatpush3.msra.mxu0 %v17095_v59  ;;  %v17101_v59 = vand.u32 4294901760, %v13812_v18  ;;  %v17107_v18 = vld [vmem:[#allocation444_spill] sm:$0xff] }
 0x1a3   :  { %10114 = vmatprep.subr.mxu1 %v13802_v20  ;;  %10125 = vmatprep.subr.mxu0 %v17096_v52  ;;  %v17103_v52 = vld [vmem:[#allocation433_spill] sm:$0xff] }
 0x1a4   :  { %10115 = vmatpush3.msra.mxu1 %v13833_v6  ;;  %10126 = vmatpush3.msra.mxu0 %v17097_v54  ;;  %v17104_v54 = vld [vmem:[#allocation434_spill] sm:$0xff] }
 0x1a5   :  { %10116 = vmatprep.subr.mxu1 %v13845_v62  ;;  %10127 = vmatprep.subr.mxu0 %v17098_v27  ;;  %v17105_v27 = vld [vmem:[#allocation438_spill] sm:$0xff] }
 0x1a6   :  { %10117 = vmatpush3.msra.mxu1 %v13853_v61  ;;  %3385 = vmatprep.mubr.f32.mxu1 %v17099_v26  ;;  %v17108_v26 = vld [vmem:[#allocation452_spill] sm:$0xff] }
 0x1a7   :  { %10128 = vmatpush3.msra.mxu0 %v17100_v46  ;;  %3389 = vmatmul.mubr.f32.vlgmr.msra.gmra.mxu1 %v17101_v59  ;;  %v17109_v59 = vld [vmem:[#allocation454_spill] sm:$0xff]  ;;  %v17131_v46 = vld [vmem:[#allocation32_spill] sm:$0xff] }
 0x1a8   :  { %10129 = vmatprep.subr.mxu0 %v17102_v49  ;;  %10156 = vmatprep.subr.mxu1 %v13374_v47  ;;  %v17347_v47 = vld [vmem:[#allocation244_spill] sm:$0xff] }
 0x1a9   :  { %10130 = vmatpush3.msra.mxu0 %v17103_v52  ;;  %10157 = vmatpush3.msra.mxu1 %v13378_v0  ;;  %v17115_v52 = vld [vmem:[#allocation483_spill] sm:$0xff] }
 0x1aa   :  { %10131 = vmatprep.subr.mxu0 %v17104_v54  ;;  %10158 = vmatprep.subr.mxu1 %v13382_v45  ;;  %v17110_v54 = vld [vmem:[#allocation457_spill] sm:$0xff]  ;;  %v17345_v45 = vld [vmem:[#allocation238_spill] sm:$0xff] }
 0x1ab   :  { %10132 = vmatpush3.msra.mxu0 %v17105_v27  ;;  %10159 = vmatpush3.msra.mxu1 %v13407_v63  ;;  %v17111_v27 = vld [vmem:[#allocation460_spill] sm:$0xff] }
 0x1ac   :  { %10133 = vmatprep.subr.mxu0 %v17106_v17  ;;  %10160 = vmatprep.subr.mxu1 %v17069_v36  ;;  %v17112_v17 = vld [vmem:[#allocation470_spill] sm:$0xff]  ;;  %v17343_v36 = vld [vmem:[#allocation233_spill] sm:$0xff] }
 0x1ad   :  { %10134 = vmatpush3.msra.mxu0 %v17107_v18  ;;  %10161 = vmatpush3.msra.mxu1 %v17070_v7  ;;  %v17113_v18 = vld [vmem:[#allocation474_spill] sm:$0xff] }
 0x1ae   :  { %10135 = vmatprep.subr.mxu0 %v17108_v26  ;;  %10162 = vmatprep.subr.mxu1 %v17072_v33 }
 0x1af   :  { %10136 = vmatpush3.msra.mxu0 %v17109_v59  ;;  %10163 = vmatpush3.msra.mxu1 %v17074_v2  ;;  %v17114_v59 = vld [vmem:[#allocation478_spill] sm:$0xff] }
 0x1b0   :  { %10137 = vmatprep.subr.mxu0 %v17110_v54  ;;  %10164 = vmatprep.subr.mxu1 %v17076_v9  ;;  %v17338_v2 = vld [vmem:[#allocation218_spill] sm:$0xff] }
 0x1b1   :  { %10138 = vmatpush3.msra.mxu0 %v17111_v27  ;;  %10165 = vmatpush3.msra.mxu1 %v17078_v15  ;;  %v17116_v27 = vld [vmem:[#allocation486_spill] sm:$0xff] }
 0x1b2   :  { %10139 = vmatprep.subr.mxu0 %v17112_v17  ;;  %10166 = vmatprep.subr.mxu1 %v17079_v14  ;;  %v3743_v26 = vpop.xlane.xlu0 %3742  ;;  %v17117_v17 = vld [vmem:[#allocation491_spill] sm:$0xff] }
 0x1b3   :  { %10140 = vmatpush3.msra.mxu0 %v17113_v18  ;;  %10167 = vmatpush3.msra.mxu1 %v17080_v3  ;;  %v3744_v54 = vadd.f32 1e-16, %v3743_v26  ;;  %v17118_v18 = vld [vmem:[#allocation494_spill] sm:$0xff]  ;;  %v17119_v26 = vld [vmem:[#allocation497_spill] sm:$0xff] }
 0x1b4   :  { %10141 = vmatprep.subr.mxu0 %v17114_v59  ;;  %10168 = vmatprep.subr.mxu1 %v17081_v44  ;;  %v11074_v59 = vmov 269488144   ;;  %v17332_v3 = vld [vmem:[#allocation189_spill] sm:$0xff] }
 0x1b5   :  { %10142 = vmatpush3.msra.mxu0 %v17115_v52  ;;  %10169 = vmatpush3.msra.mxu1 %v17082_v13  ;;  %11037 = vrsqrt.f32 %v3744_v54  ;;  %v3748_v49 = vunpack.c.l.s4 %v11074_v59  ;;  %v17120_v59 = vld [vmem:[#allocation106_spill] sm:$0xff]  ;;  %v17130_v52 = vld [vmem:[#allocation13_spill] sm:$0xff] }
 0x1b6   :  { %10143 = vmatprep.subr.mxu0 %v17116_v27  ;;  %10170 = vmatprep.subr.mxu1 %v17083_v28  ;;  %v17129_v27 = vld [vmem:[#allocation12_spill] sm:$0xff] }
 0x1b7   :  { %10144 = vmatpush3.msra.mxu0 %v17117_v17  ;;  %10171 = vmatpush3.msra.mxu1 %v17084_v29  ;;  %v3749_v54 = vunpack.c.0.s8 %v3748_v49  ;;  %v17121_v49 = vld [vmem:[#allocation5_spill] sm:$0xff]  ;;  %v17178_v29 = vld [vmem:[#allocation123_spill] sm:$0xff]  ;;  %v17184_v28 = vld [vmem:[#allocation128_spill] sm:$0xff] }
 0x1b8   :  { %10145 = vmatprep.subr.mxu0 %v17118_v18  ;;  %10172 = vmatprep.subr.mxu1 %v17085_v34  ;;  %v17174_v34 = vld [vmem:[#allocation95_spill] sm:$0xff] }
 0x1b9   :  { %10146 = vmatpush3.msra.mxu0 %v17119_v26  ;;  %10173 = vmatpush3.msra.mxu1 %v13596_v39  ;;  %v11049_v26 = vld [vmem:[%s15516_s4] sm:$0xff] }
 0x1ba   :  { %10147 = vmatprep.subr.mxu0 %v13894_v8  ;;  %10174 = vmatprep.subr.mxu1 %v17086_v53  ;;  %v17126_v8 = vld [vmem:[#allocation10_spill] sm:$0xff]  ;;  %v17172_v53 = vld [vmem:[#allocation91_spill] sm:$0xff] }
 0x1bb   :  { %10148 = vmatpush3.msra.mxu0 %v13907_v16  ;;  %10175 = vmatpush3.msra.mxu1 %v17087_v10  ;;  %v3752_v16 = vsub.s32 %v3749_v54, %v17120_v59  ;;  %v17124_v54 = vld [vmem:[#allocation8_spill] sm:$0xff]  ;;  %v17125_v59 = vld [vmem:[#allocation9_spill] sm:$0xff] }
 0x1bc   :  { %10149 = vmatprep.subr.mxu0 %v13919_v58  ;;  %10176 = vmatprep.subr.mxu1 %v17088_v1  ;;  %v17170_v1 = vld [vmem:[#allocation86_spill] sm:$0xff] }
 0x1bd   :  { %10150 = vmatpush3.msra.mxu0 %v13928_v57  ;;  %10177 = vmatpush3.msra.mxu1 %v13703_v50  ;;  %v17122_v57 = vld [vmem:[#allocation6_spill] sm:$0xff] }
 0x1be   :  { %10151 = vmatprep.subr.mxu0 %v13935_v42  ;;  %10178 = vmatprep.subr.mxu1 %v13716_v56  ;;  %v17166_v56 = vld [vmem:[#allocation79_spill] sm:$0xff]  ;;  %v17168_v50 = vld [vmem:[#allocation82_spill] sm:$0xff] }
 0x1bf   :  { %10152 = vmatpush3.msra.mxu0 %v13944_v37  ;;  %3555 = vmatprep.mubr.f32.mxu0 %v13740_v32  ;;  %v17123_v37 = vld [vmem:[#allocation7_spill] sm:$0xff] }
 0x1c0   :  { %10179 = vmatpush3.msra.mxu1 %v17089_v5  ;;  %3557 = vmatmul.mubr.f32.vlgmr.msra.gmra.mxu0 %v13754_v51  ;;  %v17165_v5 = vld [vmem:[#allocation96_spill] sm:$0xff] }
 0x1c1   :  { %10180 = vmatprep.subr.mxu1 %v13746_v31  ;;  %10191 = vmatprep.subr.mxu0 %v17121_v49  ;;  %v17164_v31 = vld [vmem:[#allocation76_spill] sm:$0xff] }
 0x1c2   :  { %10181 = vmatpush3.msra.mxu1 %v17091_v23  ;;  %10192 = vmatpush3.msra.mxu0 %v17122_v57  ;;  %v11038_v42 = vpop.eup %11037  ;;  %v17163_v23 = vld [vmem:[#allocation93_spill] sm:$0xff] }
 0x1c3   :  { %10182 = vmatprep.subr.mxu1 %v13775_v12  ;;  %10193 = vmatprep.subr.mxu0 %v17123_v37  ;;  %v14121_v58 = vrot.slane %v11038_v42, %v3752_v16  ;;  %v17127_v16 = vld [vmem:[#allocation11_spill] sm:$0xff] }
 0x1c4   :  { %10183 = vmatpush3.msra.mxu1 %v17094_v60  ;;  %10194 = vmatpush3.msra.mxu0 %v17124_v54  ;;  %v17128_v42 = vld [vmem:[#allocation111_spill] sm:$0xff] }
 0x1c5   :  { %10184 = vmatprep.subr.mxu1 %v13802_v20  ;;  %10195 = vmatprep.subr.mxu0 %v17125_v59  ;;  %v14133_v18 = vmul.f32 %v11049_v26, %v14121_v58  ;;  %v17158_v20 = vld [vmem:[#allocation63_spill] sm:$0xff] }
 0x1c6   :  { %10185 = vmatpush3.msra.mxu1 %v13833_v6  ;;  %10196 = vmatpush3.msra.mxu0 %v17126_v8  ;;  %v17156_v6 = vld [vmem:[#allocation57_spill] sm:$0xff]  ;;  %v17159_v60 = vld [vmem:[#allocation83_spill] sm:$0xff] }
 0x1c7   :  { %10186 = vmatprep.subr.mxu1 %v13845_v62  ;;  %10197 = vmatprep.subr.mxu0 %v17127_v16  ;;  %v3766_v17 = vrot.slane %v14133_v18, %v17128_v42  ;;  %v17154_v62 = vld [vmem:[#allocation54_spill] sm:$0xff]  ;;  %v17161_v12 = vld [vmem:[#allocation87_spill] sm:$0xff] }
 0x1c8   :  { %10187 = vmatpush3.msra.mxu1 %v13853_v61  ;;  %3659 = vmatprep.mubr.f32.mxu1 %v13740_v32  ;;  %v17136_v32 = vld [vmem:[#allocation20_spill] sm:$0xff]  ;;  %v17152_v61 = vld [vmem:[#allocation51_spill] sm:$0xff] }
 0x1c9   :  { %10198 = vmatpush3.msra.mxu0 %v17129_v27  ;;  %3661 = vmatmul.mubr.f32.vlgmr.msra.gmra.mxu1 %v13754_v51  ;;  %v3774_v26 = vcombine.high %v3766_v17, %v3766_v17  ;;  %v17139_v51 = vld [vmem:[#allocation41_spill] sm:$0xff]  ;;  %v14157_v41 = vand.u32 4294901760, %v3766_v17 }
 0x1ca   :  { %10199 = vmatprep.subr.mxu0 %v17130_v52  ;;  %10226 = vmatprep.subr.mxu1 %v17131_v46  ;;  %v17140_v46 = vld [vmem:[#allocation26_spill] sm:$0xff] }
 0x1cb   :  { %10200 = vmatpush3.msra.mxu0 %v17132_v35  ;;  %10227 = vmatpush3.msra.mxu1 %v17133_v48  ;;  %v14153_v19 = vand.u32 4294901760, %v3774_v26  ;;  %v17142_v48 = vld [vmem:[#allocation29_spill] sm:$0xff]  ;;  %v14171_v38 = vsub.f32 %v3766_v17, %v14157_v41 }
 0x1cc   :  { %10201 = vmatprep.subr.mxu0 %v17134_v22  ;;  %10228 = vmatprep.subr.mxu1 %v17135_v40  ;;  %v17144_v40 = vld [vmem:[#allocation34_spill] sm:$0xff] }
 0x1cd   :  { %10202 = vmatpush3.msra.mxu0 %v17136_v32  ;;  %10229 = vmatpush3.msra.mxu1 %v17137_v21  ;;  %v17146_v21 = vld [vmem:[#allocation40_spill] sm:$0xff]  ;;  %v16353_v17 = vand.u32 4294901760, %v14171_v38 }
 0x1ce   :  { %10203 = vmatprep.subr.mxu0 %v17138_v43  ;;  %10230 = vmatprep.subr.mxu1 %v17139_v51  ;;  %v14166_v51 = vsub.f32 %v3774_v26, %v14153_v19 }
 0x1cf   :  { %10204 = vmatpush3.msra.mxu0 %v17140_v46  ;;  %10231 = vmatpush3.msra.mxu1 %v17141_v55  ;;  %v17149_v55 = vld [vmem:[#allocation64_spill] sm:$0xff] }
 0x1d0   :  { %10205 = vmatprep.subr.mxu0 %v17142_v48  ;;  %10232 = vmatprep.subr.mxu1 %v17143_v30  ;;  %v17151_v30 = vld [vmem:[#allocation67_spill] sm:$0xff]  ;;  %v3899_v26 = vand.u32 4294901760, %v14166_v51 }
 0x1d1   :  { %10206 = vmatpush3.msra.mxu0 %v17144_v40  ;;  %10233 = vmatpush3.msra.mxu1 %v17145_v11  ;;  %v17153_v11 = vld [vmem:[#allocation70_spill] sm:$0xff] }
 0x1d2   :  { %10207 = vmatprep.subr.mxu0 %v17146_v21  ;;  %10234 = vmatprep.subr.mxu1 %v17147_v24  ;;  %v17155_v24 = vld [vmem:[#allocation73_spill] sm:$0xff] }
 0x1d3   :  { %10208 = vmatpush3.msra.mxu0 %v17148_v25  ;;  %10235 = vmatpush3.msra.mxu1 %v17149_v55  ;;  %v17157_v55 = vld [vmem:[#allocation77_spill] sm:$0xff] }
 0x1d4   :  { %10209 = vmatprep.subr.mxu0 %v17150_v4  ;;  %10236 = vmatprep.subr.mxu1 %v17151_v30  ;;  %v17160_v30 = vld [vmem:[#allocation68_spill] sm:$0xff] }
 0x1d5   :  { %10210 = vmatpush3.msra.mxu0 %v17152_v61  ;;  %10237 = vmatpush3.msra.mxu1 %v17153_v11  ;;  %v17162_v11 = vld [vmem:[#allocation72_spill] sm:$0xff] }
 0x1d6   :  { %10211 = vmatprep.subr.mxu0 %v17154_v62  ;;  %10238 = vmatprep.subr.mxu1 %v17155_v24  ;;  %v3900_v24 = vsub.f32 %v14166_v51, %v3899_v26 }
 0x1d7   :  { %10212 = vmatpush3.msra.mxu0 %v17156_v6  ;;  %10239 = vmatpush3.msra.mxu1 %v17157_v55  ;;  %v3906_v55 = vsub.f32 %v14171_v38, %v16353_v17  ;;  %v17175_v17 = vld [vmem:[#allocation113_spill] sm:$0xff] }
 0x1d8   :  { %10213 = vmatprep.subr.mxu0 %v17158_v20  ;;  %10240 = vmatprep.subr.mxu1 %v17159_v60  ;;  %v17167_v60 = vld [vmem:[#allocation99_spill] sm:$0xff]  ;;  %v3901_v10 = vand.u32 4294901760, %v3900_v24  ;;  %v17179_v24 = vld [vmem:[#allocation14_spill] sm:$0xff] }
 0x1d9   :  { %10214 = vmatpush3.msra.mxu0 %v17160_v30  ;;  %10241 = vmatpush3.msra.mxu1 %v17161_v12  ;;  %v17169_v12 = vld [vmem:[#allocation102_spill] sm:$0xff]  ;;  %v3907_v39 = vand.u32 4294901760, %v3906_v55  ;;  %v17182_v55 = vld [vmem:[#allocation127_spill] sm:$0xff] }
 0x1da   :  { %10215 = vmatprep.subr.mxu0 %v17162_v11  ;;  %10242 = vmatprep.subr.mxu1 %v17163_v23  ;;  %v17171_v23 = vld [vmem:[#allocation104_spill] sm:$0xff] }
 0x1db   :  { %10216 = vmatpush3.msra.mxu0 %v17164_v31  ;;  %10243 = vmatpush3.msra.mxu1 %v17165_v5  ;;  %v17173_v5 = vld [vmem:[#allocation107_spill] sm:$0xff] }
 0x1dc   :  { %10217 = vmatprep.subr.mxu0 %v17166_v56  ;;  %10244 = vmatprep.subr.mxu1 %v17167_v60  ;;  %v17176_v60 = vld [vmem:[#allocation100_spill] sm:$0xff] }
 0x1dd   :  { %10218 = vmatpush3.msra.mxu0 %v17168_v50  ;;  %10245 = vmatpush3.msra.mxu1 %v17169_v12  ;;  %v17177_v12 = vld [vmem:[#allocation117_spill] sm:$0xff] }
 0x1de   :  { %10219 = vmatprep.subr.mxu0 %v17170_v1  ;;  %10246 = vmatprep.subr.mxu1 %v17171_v23  ;;  %v17180_v23 = vld [vmem:[#allocation124_spill] sm:$0xff] }
 0x1df   :  { %10220 = vmatpush3.msra.mxu0 %v17172_v53  ;;  %10247 = vmatpush3.msra.mxu1 %v17173_v5  ;;  %v17181_v5 = vld [vmem:[#allocation16_spill] sm:$0xff] }
 0x1e0   :  { %10221 = vmatprep.subr.mxu0 %v17174_v34  ;;  %10248 = vmatprep.subr.mxu1 %v17175_v17  ;;  %v17183_v17 = vld [vmem:[#allocation18_spill] sm:$0xff] }
 0x1e1   :  { %4138 = vmatprep.mubr.f32.mxu1 %v14153_v19  ;;  %10222 = vmatpush3.msra.mxu0 %v17176_v60 }
 0x1e2   :  { %3902 = vmatprep.mubr.f32.mxu0 %v3901_v10  ;;  %10249 = vmatpush3.msra.mxu1 %v17177_v12  ;;  %v17185_v10 = vld [vmem:[#allocation21_spill] sm:$0xff]  ;;  %v17186_v12 = vld [vmem:[#allocation131_spill] sm:$0xff] }
 0x1e3   :  { %3908 = vmatmul.mubr.f32.vlgmr.msra.gmra.mxu0 %v3907_v39  ;;  %10250 = vmatprep.subr.mxu1 %v17178_v29  ;;  %v17187_v39 = vld [vmem:[#allocation25_spill] sm:$0xff]  ;;  %v17188_v29 = vld [vmem:[#allocation132_spill] sm:$0xff] }
 0x1e4   :  { %10261 = vmatprep.subr.mxu0 %v17179_v24  ;;  %10251 = vmatpush3.msra.mxu1 %v17180_v23  ;;  %v17189_v24 = vld [vmem:[#allocation28_spill] sm:$0xff]  ;;  %v17190_v23 = vld [vmem:[#allocation135_spill] sm:$0xff] }
 0x1e5   :  { %10262 = vmatpush3.msra.mxu0 %v17181_v5  ;;  %4275 = vmatprep.mubr.f32.mxu0 %v14166_v51  ;;  %v17191_v5 = vld [vmem:[#allocation31_spill] sm:$0xff]  ;;  %v17192_v51 = vld [vmem:[#allocation136_spill] sm:$0xff] }
 0x1e6   :  { %10252 = vmatprep.subr.mxu1 %v17182_v55  ;;  %10263 = vmatprep.subr.mxu0 %v17183_v17  ;;  %v17193_v55 = vld [vmem:[#allocation39_spill] sm:$0xff]  ;;  %v17195_v17 = vld [vmem:[#allocation46_spill] sm:$0xff] }
 0x1e7   :  { %10253 = vmatpush3.msra.mxu1 %v17184_v28  ;;  %10264 = vmatpush3.msra.mxu0 %v17185_v10  ;;  %v17194_v28 = vld [vmem:[#allocation42_spill] sm:$0xff] }
 0x1e8   :  { %10254 = vmatprep.subr.mxu1 %v17186_v12  ;;  %10265 = vmatprep.subr.mxu0 %v17187_v39  ;;  %v17196_v10 = vld [vmem:[#allocation50_spill] sm:$0xff]  ;;  %v17197_v12 = vld [vmem:[#allocation53_spill] sm:$0xff]  ;;  %v17198_v39 = vld [vmem:[#allocation56_spill] sm:$0xff] }
 0x1e9   :  { %10255 = vmatpush3.msra.mxu1 %v17188_v29  ;;  %10266 = vmatpush3.msra.mxu0 %v17189_v24  ;;  %v17199_v29 = vld [vmem:[#allocation60_spill] sm:$0xff]  ;;  %v17200_v24 = vld [vmem:[#allocation66_spill] sm:$0xff] }
 0x1ea   :  { %10256 = vmatprep.subr.mxu1 %v17190_v23  ;;  %10267 = vmatprep.subr.mxu0 %v17191_v5  ;;  %v17202_v23 = vld [vmem:[#allocation75_spill] sm:$0xff]  ;;  %v17203_v5 = vld [vmem:[#allocation78_spill] sm:$0xff] }
 0x1eb   :  { %10257 = vmatpush3.msra.mxu1 %v17192_v51  ;;  %10268 = vmatpush3.msra.mxu0 %v17193_v55  ;;  %v17204_v51 = vld [vmem:[#allocation81_spill] sm:$0xff] }
 0x1ec   :  { %4140 = vmatmul.mubr.f32.vlgmr.msra.gmra.mxu1 %v14157_v41  ;;  %10269 = vmatprep.subr.mxu0 %v17194_v28  ;;  %v17205_v55 = vld [vmem:[#allocation85_spill] sm:$0xff] }
 0x1ed   :  { %10296 = vmatprep.subr.mxu1 %v17121_v49  ;;  %10270 = vmatpush3.msra.mxu0 %v17195_v17  ;;  %v17206_v28 = vld [vmem:[#allocation89_spill] sm:$0xff]  ;;  %v17207_v17 = vld [vmem:[#allocation92_spill] sm:$0xff] }
 0x1ee   :  { %10297 = vmatpush3.msra.mxu1 %v17122_v57  ;;  %4382 = vmatprep.mubr.f32.mxu1 %v3899_v26  ;;  %v17201_v26 = vld [vmem:[#allocation69_spill] sm:$0xff] }
 0x1ef   :  { %10271 = vmatprep.subr.mxu0 %v17196_v10  ;;  %10298 = vmatprep.subr.mxu1 %v17123_v37  ;;  %v17208_v10 = vld [vmem:[#allocation98_spill] sm:$0xff] }
 0x1f0   :  { %10272 = vmatpush3.msra.mxu0 %v17197_v12  ;;  %10299 = vmatpush3.msra.mxu1 %v17124_v54  ;;  %v17209_v12 = vld [vmem:[#allocation101_spill] sm:$0xff] }
 0x1f1   :  { %10273 = vmatprep.subr.mxu0 %v17198_v39  ;;  %10300 = vmatprep.subr.mxu1 %v17125_v59  ;;  %v17210_v39 = vld [vmem:[#allocation109_spill] sm:$0xff] }
 0x1f2   :  { %10274 = vmatpush3.msra.mxu0 %v17199_v29  ;;  %10301 = vmatpush3.msra.mxu1 %v17126_v8  ;;  %v17211_v29 = vld [vmem:[#allocation110_spill] sm:$0xff] }
 0x1f3   :  { %10275 = vmatprep.subr.mxu0 %v17200_v24  ;;  %10302 = vmatprep.subr.mxu1 %v17127_v16  ;;  %v17212_v24 = vld [vmem:[#allocation112_spill] sm:$0xff] }
 0x1f4   :  { %10276 = vmatpush3.msra.mxu0 %v17201_v26  ;;  %10303 = vmatpush3.msra.mxu1 %v17129_v27  ;;  %v17213_v26 = vld [vmem:[#allocation116_spill] sm:$0xff] }
 0x1f5   :  { %10277 = vmatprep.subr.mxu0 %v17202_v23  ;;  %10304 = vmatprep.subr.mxu1 %v17130_v52  ;;  %v17214_v23 = vld [vmem:[#allocation119_spill] sm:$0xff] }
 0x1f6   :  { %10278 = vmatpush3.msra.mxu0 %v17203_v5  ;;  %10305 = vmatpush3.msra.mxu1 %v17132_v35  ;;  %v17215_v5 = vld [vmem:[#allocation121_spill] sm:$0xff] }
 0x1f7   :  { %10279 = vmatprep.subr.mxu0 %v17204_v51  ;;  %10306 = vmatprep.subr.mxu1 %v17134_v22  ;;  %v17216_v51 = vld [vmem:[#allocation129_spill] sm:$0xff] }
 0x1f8   :  { %10280 = vmatpush3.msra.mxu0 %v17205_v55  ;;  %10307 = vmatpush3.msra.mxu1 %v17136_v32  ;;  %v17217_v55 = vld [vmem:[#allocation130_spill] sm:$0xff] }
 0x1f9   :  { %10281 = vmatprep.subr.mxu0 %v17206_v28  ;;  %10308 = vmatprep.subr.mxu1 %v17138_v43  ;;  %v17218_v28 = vld [vmem:[#allocation19_spill] sm:$0xff] }
 0x1fa   :  { %10282 = vmatpush3.msra.mxu0 %v17207_v17  ;;  %10309 = vmatpush3.msra.mxu1 %v17140_v46  ;;  %v17219_v17 = vld [vmem:[#allocation23_spill] sm:$0xff] }
 0x1fb   :  { %10283 = vmatprep.subr.mxu0 %v17208_v10  ;;  %10310 = vmatprep.subr.mxu1 %v17142_v48  ;;  %v17220_v10 = vld [vmem:[#allocation24_spill] sm:$0xff] }
 0x1fc   :  { %10284 = vmatpush3.msra.mxu0 %v17209_v12  ;;  %10311 = vmatpush3.msra.mxu1 %v17144_v40  ;;  %v17221_v12 = vld [vmem:[#allocation27_spill] sm:$0xff] }
 0x1fd   :  { %10285 = vmatprep.subr.mxu0 %v17210_v39  ;;  %10312 = vmatprep.subr.mxu1 %v17146_v21  ;;  %v17222_v39 = vld [vmem:[#allocation30_spill] sm:$0xff] }
 0x1fe   :  { %10286 = vmatpush3.msra.mxu0 %v17211_v29  ;;  %10313 = vmatpush3.msra.mxu1 %v17148_v25  ;;  %v17223_v29 = vld [vmem:[#allocation33_spill] sm:$0xff] }
 0x1ff   :  { %10287 = vmatprep.subr.mxu0 %v17212_v24  ;;  %10314 = vmatprep.subr.mxu1 %v17150_v4  ;;  %v3759_v24 = vcombine.high %v14133_v18, %v14133_v18  ;;  %v17229_v18 = vld [vmem:[#allocation55_spill] sm:$0xff] }
 0x200   :  { %10288 = vmatpush3.msra.mxu0 %v17213_v26  ;;  %10315 = vmatpush3.msra.mxu1 %v17152_v61  ;;  %v17224_v26 = vld [vmem:[#allocation37_spill] sm:$0xff] }
 0x201   :  { %10289 = vmatprep.subr.mxu0 %v17214_v23  ;;  %10316 = vmatprep.subr.mxu1 %v17154_v62  ;;  %v17225_v23 = vld [vmem:[#allocation45_spill] sm:$0xff] }
 0x202   :  { %10290 = vmatpush3.msra.mxu0 %v17215_v5  ;;  %10317 = vmatpush3.msra.mxu1 %v17156_v6  ;;  %v17226_v5 = vand.u32 4294901760, %v14171_v38 }
 0x203   :  { %10291 = vmatprep.subr.mxu0 %v17216_v51  ;;  %10318 = vmatprep.subr.mxu1 %v17158_v20  ;;  %v17227_v51 = vld [vmem:[#allocation49_spill] sm:$0xff] }
 0x204   :  { %10292 = vmatpush3.msra.mxu0 %v17217_v55  ;;  %10319 = vmatpush3.msra.mxu1 %v17160_v30  ;;  %v17228_v55 = vld [vmem:[#allocation52_spill] sm:$0xff] }
 0x205   :  { %4278 = vmatmul.mubr.f32.vlgmr.msra.gmra.mxu0 %v14171_v38  ;;  %10320 = vmatprep.subr.mxu1 %v17162_v11  ;;  %v17231_v38 = vld [vmem:[#allocation62_spill] sm:$0xff] }
 0x206   :  { %10331 = vmatprep.subr.mxu0 %v17218_v28  ;;  %10321 = vmatpush3.msra.mxu1 %v17164_v31  ;;  %v14300_v28 = vrot.slane %v3759_v24, %v17128_v42  ;;  %v17252_v24 = vld [vmem:[#allocation138_spill] sm:$0xff] }
 0x207   :  { %10332 = vmatpush3.msra.mxu0 %v17219_v17  ;;  %4552 = vmatprep.mubr.f32.mxu0 %v14153_v19  ;;  %v17230_v17 = vld [vmem:[#allocation59_spill] sm:$0xff] }
 0x208   :  { %10322 = vmatprep.subr.mxu1 %v17166_v56  ;;  %10333 = vmatprep.subr.mxu0 %v17220_v10  ;;  %v17232_v10 = vld [vmem:[#allocation65_spill] sm:$0xff] }
 0x209   :  { %10323 = vmatpush3.msra.mxu1 %v17168_v50  ;;  %10334 = vmatpush3.msra.mxu0 %v17221_v12  ;;  %v17237_v12 = vld [vmem:[#allocation88_spill] sm:$0xff] }
 0x20a   :  { %10324 = vmatprep.subr.mxu1 %v17170_v1  ;;  %10335 = vmatprep.subr.mxu0 %v17222_v39  ;;  %v17244_v39 = vld [vmem:[#allocation115_spill] sm:$0xff] }
 0x20b   :  { %10325 = vmatpush3.msra.mxu1 %v17172_v53  ;;  %10336 = vmatpush3.msra.mxu0 %v17223_v29  ;;  %v17245_v29 = vld [vmem:[#allocation118_spill] sm:$0xff] }
 0x20c   :  { %10326 = vmatprep.subr.mxu1 %v17174_v34  ;;  %10337 = vmatprep.subr.mxu0 %v17224_v26  ;;  %v17260_v26 = vld [vmem:[#allocation168_spill] sm:$0xff] }
 0x20d   :  { %10327 = vmatpush3.msra.mxu1 %v17176_v60  ;;  %10338 = vmatpush3.msra.mxu0 %v17225_v23  ;;  %v17262_v23 = vld [vmem:[#allocation171_spill] sm:$0xff] }
 0x20e   :  { %4386 = vmatmul.mubr.f32.vlgmr.msra.gmra.mxu1 %v17226_v5  ;;  %10339 = vmatprep.subr.mxu0 %v17227_v51  ;;  %v17265_v5 = vld [vmem:[#allocation108_spill] sm:$0xff] }
 0x20f   :  { %10366 = vmatprep.subr.mxu1 %v17121_v49  ;;  %10340 = vmatpush3.msra.mxu0 %v17228_v55  ;;  %v3775_v49 = vcombine.high %v14300_v28, %v14300_v28  ;;  %v17267_v51 = vld [vmem:[#allocation160_spill] sm:$0xff]  ;;  %v17269_v55 = vld [vmem:[#allocation126_spill] sm:$0xff] }
 0x210   :  { %10367 = vmatpush3.msra.mxu1 %v17122_v57  ;;  %4656 = vmatprep.mubr.f32.mxu1 %v14153_v19  ;;  %v17233_v19 = vld [vmem:[#allocation71_spill] sm:$0xff]  ;;  %v17234_v57 = vld [vmem:[#allocation74_spill] sm:$0xff] }
 0x211   :  { %10341 = vmatprep.subr.mxu0 %v17229_v18  ;;  %10368 = vmatprep.subr.mxu1 %v17123_v37  ;;  %v17235_v37 = vld [vmem:[#allocation80_spill] sm:$0xff]  ;;  %v17270_v18 = vld [vmem:[#allocation185_spill] sm:$0xff] }
 0x212   :  { %10342 = vmatpush3.msra.mxu0 %v17230_v17  ;;  %10369 = vmatpush3.msra.mxu1 %v17124_v54  ;;  %v14320_v54 = vand.u32 4294901760, %v3775_v49  ;;  %v14391_v17 = vand.u32 4294901760, %v14300_v28 }
 0x213   :  { %10343 = vmatprep.subr.mxu0 %v17231_v38  ;;  %10370 = vmatprep.subr.mxu1 %v17125_v59  ;;  %v17236_v59 = vld [vmem:[#allocation84_spill] sm:$0xff] }
 0x214   :  { %10344 = vmatpush3.msra.mxu0 %v17232_v10  ;;  %10371 = vmatpush3.msra.mxu1 %v17126_v8  ;;  %v17238_v8 = vld [vmem:[#allocation90_spill] sm:$0xff]  ;;  %17271 = vst [vmem:[#allocation106_spill] sm:$0xff] %v14391_v17  ;;  %v17272_v38 = vld [vmem:[#allocation164_spill] sm:$0xff]  ;;  %v17274_v10 = vld [vmem:[#allocation169_spill] sm:$0xff] }
 0x215   :  { %10345 = vmatprep.subr.mxu0 %v17233_v19  ;;  %10372 = vmatprep.subr.mxu1 %v17127_v16  ;;  %v17239_v16 = vld [vmem:[#allocation94_spill] sm:$0xff]  ;;  %v17275_v19 = vld [vmem:[#allocation195_spill] sm:$0xff] }
 0x216   :  { %10346 = vmatpush3.msra.mxu0 %v17234_v57  ;;  %10373 = vmatpush3.msra.mxu1 %v17129_v27  ;;  %v17240_v27 = vld [vmem:[#allocation97_spill] sm:$0xff]  ;;  %v17276_v57 = vld [vmem:[#allocation178_spill] sm:$0xff] }
 0x217   :  { %10347 = vmatprep.subr.mxu0 %v17235_v37  ;;  %10374 = vmatprep.subr.mxu1 %v17130_v52  ;;  %v14331_v52 = vsub.f32 %v3775_v49, %v14320_v54  ;;  %v17273_v49 = vld [vmem:[#allocation190_spill] sm:$0xff] }
 0x218   :  { %10348 = vmatpush3.msra.mxu0 %v17236_v59  ;;  %10375 = vmatpush3.msra.mxu1 %v17132_v35  ;;  %v17241_v35 = vld [vmem:[#allocation103_spill] sm:$0xff]  ;;  %v17277_v37 = vld [vmem:[#allocation198_spill] sm:$0xff] }
 0x219   :  { %10349 = vmatprep.subr.mxu0 %v17237_v12  ;;  %10376 = vmatprep.subr.mxu1 %v17134_v22  ;;  %v17242_v22 = vld [vmem:[#allocation105_spill] sm:$0xff]  ;;  %v17278_v59 = vld [vmem:[#allocation182_spill] sm:$0xff]  ;;  %v17279_v12 = vld [vmem:[#allocation200_spill] sm:$0xff] }
 0x21a   :  { %10350 = vmatpush3.msra.mxu0 %v17238_v8  ;;  %10377 = vmatpush3.msra.mxu1 %v17136_v32  ;;  %v17243_v32 = vld [vmem:[#allocation114_spill] sm:$0xff] }
 0x21b   :  { %10351 = vmatprep.subr.mxu0 %v17239_v16  ;;  %10378 = vmatprep.subr.mxu1 %v17138_v43  ;;  %v16357_v43 = vand.u32 4294901760, %v14331_v52  ;;  %v17280_v8 = vld [vmem:[#allocation186_spill] sm:$0xff]  ;;  %v17281_v16 = vld [vmem:[#allocation201_spill] sm:$0xff] }
 0x21c   :  { %10352 = vmatpush3.msra.mxu0 %v17240_v27  ;;  %10379 = vmatpush3.msra.mxu1 %v17140_v46  ;;  %v17246_v46 = vld [vmem:[#allocation120_spill] sm:$0xff]  ;;  %v14405_v27 = vsub.f32 %v14300_v28, %v14391_v17  ;;  %v17290_v28 = vld [vmem:[#allocation205_spill] sm:$0xff] }
 0x21d   :  { %10353 = vmatprep.subr.mxu0 %v17241_v35  ;;  %10380 = vmatprep.subr.mxu1 %v17142_v48  ;;  %v17247_v48 = vld [vmem:[#allocation122_spill] sm:$0xff]  ;;  %v17282_v35 = vld [vmem:[#allocation192_spill] sm:$0xff] }
 0x21e   :  { %10354 = vmatpush3.msra.mxu0 %v17242_v22  ;;  %10381 = vmatpush3.msra.mxu1 %v17144_v40  ;;  %v4762_v40 = vsub.f32 %v14331_v52, %v16357_v43  ;;  %v17283_v22 = vld [vmem:[#allocation204_spill] sm:$0xff] }
 0x21f   :  { %10355 = vmatprep.subr.mxu0 %v17243_v32  ;;  %10382 = vmatprep.subr.mxu1 %v17146_v21  ;;  %v17248_v21 = vld [vmem:[#allocation125_spill] sm:$0xff] }
 0x220   :  { %10356 = vmatpush3.msra.mxu0 %v17244_v39  ;;  %10383 = vmatpush3.msra.mxu1 %v17148_v25  ;;  %v17249_v25 = vld [vmem:[#allocation133_spill] sm:$0xff]  ;;  %v17285_v39 = vld [vmem:[#allocation207_spill] sm:$0xff] }
 0x221   :  { %10357 = vmatprep.subr.mxu0 %v17245_v29  ;;  %10384 = vmatprep.subr.mxu1 %v17150_v4  ;;  %v17250_v4 = vld [vmem:[#allocation134_spill] sm:$0xff]  ;;  %v17284_v32 = vld [vmem:[#allocation193_spill] sm:$0xff]  ;;  %v17286_v29 = vld [vmem:[#allocation196_spill] sm:$0xff] }
 0x222   :  { %10358 = vmatpush3.msra.mxu0 %v17246_v46  ;;  %10385 = vmatpush3.msra.mxu1 %v17152_v61  ;;  %v17251_v61 = vld [vmem:[#allocation137_spill] sm:$0xff]  ;;  %v17287_v46 = vld [vmem:[#allocation211_spill] sm:$0xff] }
 0x223   :  { %10359 = vmatprep.subr.mxu0 %v17247_v48  ;;  %10386 = vmatprep.subr.mxu1 %v17154_v62  ;;  %v4763_v62 = vand.u32 4294901760, %v4762_v40  ;;  %v17288_v48 = vld [vmem:[#allocation202_spill] sm:$0xff]  ;;  %v17289_v40 = vld [vmem:[#allocation215_spill] sm:$0xff] }
 0x224   :  { %10360 = vmatpush3.msra.mxu0 %v17248_v21  ;;  %10387 = vmatpush3.msra.mxu1 %v17156_v6  ;;  %v17253_v6 = vld [vmem:[#allocation139_spill] sm:$0xff]  ;;  %v16356_v21 = vand.u32 4294901760, %v14405_v27 }
 0x225   :  { %10361 = vmatprep.subr.mxu0 %v17249_v25  ;;  %10388 = vmatprep.subr.mxu1 %v17158_v20  ;;  %v17254_v20 = vld [vmem:[#allocation140_spill] sm:$0xff]  ;;  %v17291_v25 = vld [vmem:[#allocation222_spill] sm:$0xff] }
 0x226   :  { %10362 = vmatpush3.msra.mxu0 %v17250_v4  ;;  %10389 = vmatpush3.msra.mxu1 %v17160_v30  ;;  %v17255_v30 = vld [vmem:[#allocation141_spill] sm:$0xff]  ;;  %v17292_v4 = vld [vmem:[#allocation208_spill] sm:$0xff] }
 0x227   :  { %4554 = vmatmul.mubr.f32.vlgmr.msra.gmra.mxu0 %v14157_v41  ;;  %10390 = vmatprep.subr.mxu1 %v17162_v11  ;;  %v17256_v11 = vld [vmem:[#allocation143_spill] sm:$0xff] }
 0x228   :  { %10401 = vmatprep.subr.mxu0 %v17251_v61  ;;  %10391 = vmatpush3.msra.mxu1 %v17164_v31  ;;  %v17257_v31 = vld [vmem:[#allocation147_spill] sm:$0xff] }
 0x229   :  { %10402 = vmatpush3.msra.mxu0 %v17252_v24  ;;  %4764 = vmatprep.mubr.f32.mxu0 %v4763_v62  ;;  %v17293_v62 = vld [vmem:[#allocation225_spill] sm:$0xff] }
 0x22a   :  { %10392 = vmatprep.subr.mxu1 %v17166_v56  ;;  %10403 = vmatprep.subr.mxu0 %v17253_v6  ;;  %v17258_v56 = vld [vmem:[#allocation150_spill] sm:$0xff] }
 0x22b   :  { %10393 = vmatpush3.msra.mxu1 %v17168_v50  ;;  %10404 = vmatpush3.msra.mxu0 %v17254_v20  ;;  %v17259_v50 = vld [vmem:[#allocation153_spill] sm:$0xff] }
 0x22c   :  { %10394 = vmatprep.subr.mxu1 %v17170_v1  ;;  %10405 = vmatprep.subr.mxu0 %v17255_v30  ;;  %v17261_v1 = vld [vmem:[#allocation156_spill] sm:$0xff] }
 0x22d   :  { %10395 = vmatpush3.msra.mxu1 %v17172_v53  ;;  %10406 = vmatpush3.msra.mxu0 %v17256_v11  ;;  %v17263_v53 = vld [vmem:[#allocation157_spill] sm:$0xff] }
 0x22e   :  { %10396 = vmatprep.subr.mxu1 %v17174_v34  ;;  %10407 = vmatprep.subr.mxu0 %v17257_v31  ;;  %v17264_v34 = vld [vmem:[#allocation174_spill] sm:$0xff] }
 0x22f   :  { %10397 = vmatpush3.msra.mxu1 %v17176_v60  ;;  %10408 = vmatpush3.msra.mxu0 %v17258_v56  ;;  %v17266_v60 = vld [vmem:[#allocation175_spill] sm:$0xff] }
 0x230   :  { %4658 = vmatmul.mubr.f32.vlgmr.msra.gmra.mxu1 %v14157_v41  ;;  %10409 = vmatprep.subr.mxu0 %v17259_v50  ;;  %v17268_v41 = vld [vmem:[#allocation181_spill] sm:$0xff] }
 0x231   :  { %10436 = vmatprep.subr.mxu1 %v17260_v26  ;;  %10410 = vmatpush3.msra.mxu0 %v17261_v1  ;;  %v17294_v26 = vld [vmem:[#allocation212_spill] sm:$0xff] }
 0x232   :  { %10437 = vmatpush3.msra.mxu1 %v17262_v23  ;;  %5000 = vmatprep.mubr.f32.mxu1 %v14320_v54  ;;  %v17295_v23 = vld [vmem:[#allocation231_spill] sm:$0xff] }
 0x233   :  { %10411 = vmatprep.subr.mxu0 %v17263_v53  ;;  %10438 = vmatprep.subr.mxu1 %v17264_v34  ;;  %v17296_v34 = vld [vmem:[#allocation213_spill] sm:$0xff] }
 0x234   :  { %10412 = vmatpush3.msra.mxu0 %v17265_v5  ;;  %10439 = vmatpush3.msra.mxu1 %v17266_v60  ;;  %v17297_v60 = vld [vmem:[#allocation239_spill] sm:$0xff] }
 0x235   :  { %10413 = vmatprep.subr.mxu0 %v17267_v51  ;;  %10440 = vmatprep.subr.mxu1 %v17268_v41  ;;  %v4768_v41 = vsub.f32 %v14405_v27, %v16356_v21  ;;  %v17316_v21 = vld [vmem:[#allocation259_spill] sm:$0xff] }
 0x236   :  { %10414 = vmatpush3.msra.mxu0 %v17269_v55  ;;  %10441 = vmatpush3.msra.mxu1 %v17270_v18  ;;  %v17298_v18 = vld [vmem:[#allocation217_spill] sm:$0xff] }
 0x237   :  { %10415 = vmatprep.subr.mxu0 %v17272_v38  ;;  %10442 = vmatprep.subr.mxu1 %v17273_v49  ;;  %v17299_v49 = vld [vmem:[#allocation242_spill] sm:$0xff] }
 0x238   :  { %10416 = vmatpush3.msra.mxu0 %v17274_v10  ;;  %10443 = vmatpush3.msra.mxu1 %v17275_v19  ;;  %v17300_v19 = vld [vmem:[#allocation220_spill] sm:$0xff] }
 0x239   :  { %10417 = vmatprep.subr.mxu0 %v17276_v57  ;;  %10444 = vmatprep.subr.mxu1 %v17277_v37  ;;  %v17301_v37 = vld [vmem:[#allocation247_spill] sm:$0xff] }
 0x23a   :  { %10418 = vmatpush3.msra.mxu0 %v17278_v59  ;;  %10445 = vmatpush3.msra.mxu1 %v17279_v12  ;;  %v17302_v12 = vld [vmem:[#allocation223_spill] sm:$0xff] }
 0x23b   :  { %10419 = vmatprep.subr.mxu0 %v17280_v8  ;;  %10446 = vmatprep.subr.mxu1 %v17281_v16  ;;  %v17303_v16 = vld [vmem:[#allocation249_spill] sm:$0xff] }
 0x23c   :  { %10420 = vmatpush3.msra.mxu0 %v17282_v35  ;;  %10447 = vmatpush3.msra.mxu1 %v17283_v22  ;;  %v17304_v22 = vld [vmem:[#allocation229_spill] sm:$0xff] }
 0x23d   :  { %10421 = vmatprep.subr.mxu0 %v17284_v32  ;;  %10448 = vmatprep.subr.mxu1 %v17285_v39  ;;  %v17305_v39 = vld [vmem:[#allocation251_spill] sm:$0xff] }
 0x23e   :  { %10422 = vmatpush3.msra.mxu0 %v17286_v29  ;;  %10449 = vmatpush3.msra.mxu1 %v17287_v46  ;;  %v4769_v46 = vand.u32 4294901760, %v4768_v41  ;;  %v17312_v41 = vld [vmem:[#allocation257_spill] sm:$0xff] }
 0x23f   :  { %10423 = vmatprep.subr.mxu0 %v17288_v48  ;;  %10450 = vmatprep.subr.mxu1 %v17289_v40  ;;  %v17306_v40 = vld [vmem:[#allocation234_spill] sm:$0xff] }
 0x240   :  { %10424 = vmatpush3.msra.mxu0 %v17290_v28  ;;  %10451 = vmatpush3.msra.mxu1 %v17291_v25  ;;  %v17307_v25 = vld [vmem:[#allocation253_spill] sm:$0xff] }
 0x241   :  { %10425 = vmatprep.subr.mxu0 %v17292_v4  ;;  %10452 = vmatprep.subr.mxu1 %v17293_v62  ;;  %v17308_v62 = vld [vmem:[#allocation255_spill] sm:$0xff] }
 0x242   :  { %10426 = vmatpush3.msra.mxu0 %v17294_v26  ;;  %10453 = vmatpush3.msra.mxu1 %v17295_v23  ;;  %v14438_v23 = vpop.f32.mrf.mxu0 }
 0x243   :  { %10427 = vmatprep.subr.mxu0 %v17296_v34  ;;  %10454 = vmatprep.subr.mxu1 %v17297_v60  ;;  %v17309_v60 = vld [vmem:[#allocation142_spill] sm:$0xff] }
 0x244   :  { %10428 = vmatpush3.msra.mxu0 %v17298_v18  ;;  %10455 = vmatpush3.msra.mxu1 %v17299_v49  ;;  %v17310_v49 = vld [vmem:[#allocation256_spill] sm:$0xff] }
 0x245   :  { %10429 = vmatprep.subr.mxu0 %v17300_v19  ;;  %10456 = vmatprep.subr.mxu1 %v17301_v37  ;;  %v17311_v37 = vld [vmem:[#allocation144_spill] sm:$0xff] }
 0x246   :  { %10430 = vmatpush3.msra.mxu0 %v17302_v12  ;;  %10457 = vmatpush3.msra.mxu1 %v17303_v16  ;;  %v14444_v16 = vpop.f32.mrf.mxu1 }
 0x247   :  { %10431 = vmatprep.subr.mxu0 %v17304_v22  ;;  %10458 = vmatprep.subr.mxu1 %v17305_v39  ;;  %v17313_v39 = vld [vmem:[#allocation145_spill] sm:$0xff] }
 0x248   :  { %10432 = vmatpush3.msra.mxu0 %v17306_v40  ;;  %10459 = vmatpush3.msra.mxu1 %v17307_v25  ;;  %v17314_v25 = vld [vmem:[#allocation258_spill] sm:$0xff]  ;;  %v14454_v43 = vpop.f32.mrf.mxu1 }
 0x249   :  { %4770 = vmatmul.mubr.f32.vlgmr.msra.gmra.mxu0 %v4769_v46  ;;  %10460 = vmatprep.subr.mxu1 %v17308_v62  ;;  %v17315_v46 = vld [vmem:[#allocation146_spill] sm:$0xff]  ;;  %v9384_v62 = vpop.f32.mrf.mxu0  ;;  %v9420_v0 = vadd.f32 %v14454_v43, %v14444_v16  ;;  %v17350_v16 = vld [vmem:[#allocation151_spill] sm:$0xff] }
 0x24a   :  { %10471 = vmatprep.subr.mxu0 %v17309_v60  ;;  %10461 = vmatpush3.msra.mxu1 %v17310_v49  ;;  %v17317_v60 = vld [vmem:[#allocation149_spill] sm:$0xff]  ;;  %v17318_v49 = vld [vmem:[#allocation260_spill] sm:$0xff]  ;;  %v14462_v44 = vpop.f32.mrf.mxu1 }
 0x24b   :  { %10472 = vmatpush3.msra.mxu0 %v17311_v37  ;;  %5137 = vmatprep.mubr.f32.mxu0 %v14331_v52  ;;  %v17319_v37 = vld [vmem:[#allocation152_spill] sm:$0xff]  ;;  %v14456_v13 = vpop.f32.mrf.mxu0 }
 0x24c   :  { %10462 = vmatprep.subr.mxu1 %v17312_v41  ;;  %10473 = vmatprep.subr.mxu0 %v17313_v39  ;;  %v17320_v41 = vld [vmem:[#allocation261_spill] sm:$0xff]  ;;  %v17321_v39 = vld [vmem:[#allocation158_spill] sm:$0xff] }
 0x24d   :  { %10463 = vmatpush3.msra.mxu1 %v17314_v25  ;;  %10474 = vmatpush3.msra.mxu0 %v17315_v46  ;;  %v17322_v25 = vld [vmem:[#allocation262_spill] sm:$0xff] }
 0x24e   :  { %10464 = vmatprep.subr.mxu1 %v17316_v21  ;;  %10475 = vmatprep.subr.mxu0 %v17317_v60  ;;  %v17323_v46 = vld [vmem:[#allocation162_spill] sm:$0xff]  ;;  %v17324_v21 = vld [vmem:[#allocation163_spill] sm:$0xff] }
 0x24f   :  { %10465 = vmatpush3.msra.mxu1 %v17318_v49  ;;  %10476 = vmatpush3.msra.mxu0 %v17319_v37  ;;  %v17325_v60 = vld [vmem:[#allocation166_spill] sm:$0xff]  ;;  %v14468_v49 = vpop.f32.mrf.mxu0  ;;  %v17326_v37 = vand.u32 4294901760, %v14331_v52  ;;  %v17330_v52 = vld [vmem:[#allocation177_spill] sm:$0xff] }
 0x250   :  { %10466 = vmatprep.subr.mxu1 %v17320_v41  ;;  %10477 = vmatprep.subr.mxu0 %v17321_v39  ;;  %v17327_v41 = vld [vmem:[#allocation167_spill] sm:$0xff]  ;;  %v14475_v39 = vpop.f32.mrf.mxu1 }
 0x251   :  { %10467 = vmatpush3.msra.mxu1 %v17322_v25  ;;  %10478 = vmatpush3.msra.mxu0 %v17323_v46  ;;  %v14477_v25 = vpop.f32.mrf.mxu0  ;;  %v17328_v46 = vld [vmem:[#allocation170_spill] sm:$0xff]  ;;  %v9490_v43 = vadd.f32 %v14475_v39, %v14462_v44  ;;  %v17353_v39 = vld [vmem:[#allocation159_spill] sm:$0xff] }
 0x252   :  { %5002 = vmatmul.mubr.f32.vlgmr.msra.gmra.mxu1 %v14391_v17  ;;  %10479 = vmatprep.subr.mxu0 %v17324_v21  ;;  %v17329_v21 = vld [vmem:[#allocation173_spill] sm:$0xff]  ;;  %v9455_v17 = vadd.f32 %v14468_v49, %v14456_v13  ;;  %v17351_v13 = vld [vmem:[#allocation154_spill] sm:$0xff] }
 0x253   :  { %10506 = vmatprep.subr.mxu1 %v17251_v61  ;;  %10480 = vmatpush3.msra.mxu0 %v17325_v60  ;;  %v14483_v60 = vpop.f32.mrf.mxu1 }
 0x254   :  { %10507 = vmatpush3.msra.mxu1 %v17252_v24  ;;  %5244 = vmatprep.mubr.f32.mxu1 %v17326_v37  ;;  %v17331_v37 = vld [vmem:[#allocation184_spill] sm:$0xff] }
 0x255   :  { %10481 = vmatprep.subr.mxu0 %v17327_v41  ;;  %10508 = vmatprep.subr.mxu1 %v17253_v6  ;;  %v14489_v41 = vpop.f32.mrf.mxu0 }
 0x256   :  { %10482 = vmatpush3.msra.mxu0 %v17328_v46  ;;  %10509 = vmatpush3.msra.mxu1 %v17254_v20  ;;  %v17333_v46 = vld [vmem:[#allocation191_spill] sm:$0xff] }
 0x257   :  { %10483 = vmatprep.subr.mxu0 %v17329_v21  ;;  %10510 = vmatprep.subr.mxu1 %v17255_v30  ;;  %v14495_v21 = vpop.f32.mrf.mxu1  ;;  %v14497_v14 = vpop.f32.mrf.mxu0 }
 0x258   :  { %10484 = vmatpush3.msra.mxu0 %v17330_v52  ;;  %10511 = vmatpush3.msra.mxu1 %v17256_v11  ;;  %v17334_v52 = vld [vmem:[#allocation197_spill] sm:$0xff] }
 0x259   :  { %10485 = vmatprep.subr.mxu0 %v17331_v37  ;;  %10512 = vmatprep.subr.mxu1 %v17257_v31  ;;  %v17335_v37 = vld [vmem:[#allocation206_spill] sm:$0xff]  ;;  %v14503_v15 = vpop.f32.mrf.mxu1  ;;  %v14509_v9 = vpop.f32.mrf.mxu0 }
 0x25a   :  { %10486 = vmatpush3.msra.mxu0 %v17332_v3  ;;  %10513 = vmatpush3.msra.mxu1 %v17258_v56  ;;  %v17336_v3 = vld [vmem:[#allocation210_spill] sm:$0xff] }
 0x25b   :  { %10487 = vmatprep.subr.mxu0 %v17333_v46  ;;  %10514 = vmatprep.subr.mxu1 %v17259_v50  ;;  %v17337_v46 = vld [vmem:[#allocation214_spill] sm:$0xff]  ;;  %v14517_v33 = vpop.f32.mrf.mxu0 }
 0x25c   :  { %10488 = vmatpush3.msra.mxu0 %v17334_v52  ;;  %10515 = vmatpush3.msra.mxu1 %v17261_v1  ;;  %v17339_v52 = vld [vmem:[#allocation221_spill] sm:$0xff] }
 0x25d   :  { %10489 = vmatprep.subr.mxu0 %v17335_v37  ;;  %10516 = vmatprep.subr.mxu1 %v17263_v53  ;;  %v14515_v37 = vpop.f32.mrf.mxu1  ;;  %v14533_v63 = vpop.f32.mrf.mxu0 }
 0x25e   :  { %10490 = vmatpush3.msra.mxu0 %v17336_v3  ;;  %10517 = vmatpush3.msra.mxu1 %v17265_v5  ;;  %v17340_v3 = vld [vmem:[#allocation224_spill] sm:$0xff] }
 0x25f   :  { %10491 = vmatprep.subr.mxu0 %v17337_v46  ;;  %10518 = vmatprep.subr.mxu1 %v17267_v51  ;;  %v17341_v46 = vld [vmem:[#allocation227_spill] sm:$0xff]  ;;  %v14523_v7 = vpop.f32.mrf.mxu1 }
 0x260   :  { %10492 = vmatpush3.msra.mxu0 %v17338_v2  ;;  %10519 = vmatpush3.msra.mxu1 %v17269_v55  ;;  %v17342_v2 = vld [vmem:[#allocation230_spill] sm:$0xff] }
 0x261   :  { %10493 = vmatprep.subr.mxu0 %v17339_v52  ;;  %10520 = vmatprep.subr.mxu1 %v17272_v38  ;;  %v9385_v52 = vadd.f32 %v9384_v62, %v14438_v23  ;;  %v14541_v23 = vpop.f32.mrf.mxu0 }
 0x262   :  { %10494 = vmatpush3.msra.mxu0 %v17340_v3  ;;  %10521 = vmatpush3.msra.mxu1 %v17274_v10  ;;  %v9350_v3 = vld [vmem:[%s15515_s3] ss:$0 sm:$0xff] }
 0x263   :  { %10495 = vmatprep.subr.mxu0 %v17341_v46  ;;  %10522 = vmatprep.subr.mxu1 %v17276_v57  ;;  %v17344_v46 = vld [vmem:[#allocation236_spill] sm:$0xff]  ;;  %v327_v62 = vadd.f32 %v9385_v52, %v9350_v3  ;;  %v9734_v52 = vpop.f32.mrf.mxu0 }
 0x264   :  { %10496 = vmatpush3.msra.mxu0 %v17342_v2  ;;  %10523 = vmatpush3.msra.mxu1 %v17278_v59  ;;  %v14539_v2 = vpop.f32.mrf.mxu1  ;;  %v17349_v3 = vld [vmem:[#allocation148_spill] sm:$0xff] }
 0x265   :  { %10497 = vmatprep.subr.mxu0 %v17343_v36  ;;  %10524 = vmatprep.subr.mxu1 %v17280_v8  ;;  %v17346_v36 = vld [vmem:[#allocation241_spill] sm:$0xff] }
 0x266   :  { %10498 = vmatpush3.msra.mxu0 %v17344_v46  ;;  %10525 = vmatpush3.msra.mxu1 %v17282_v35  ;;  %v14549_v46 = vpop.f32.mrf.mxu1 }
 0x267   :  { %10499 = vmatprep.subr.mxu0 %v17345_v45  ;;  %10526 = vmatprep.subr.mxu1 %v17284_v32  ;;  %v17348_v45 = vld [vmem:[#allocation246_spill] sm:$0xff] }
 0x268   :  { %10500 = vmatpush3.msra.mxu0 %v17346_v36  ;;  %10527 = vmatpush3.msra.mxu1 %v17286_v29  ;;  %v9769_v36 = vpop.f32.mrf.mxu1 }
 0x269   :  { %10501 = vmatprep.subr.mxu0 %v17347_v47  ;;  %10528 = vmatprep.subr.mxu1 %v17288_v48  ;;  %v559_v47 = vadd.f32 %v9420_v0, %v327_v62  ;;  %v17352_v0 = vld [vmem:[#allocation155_spill] sm:$0xff] }
 0x26a   :  { %10502 = vmatpush3.msra.mxu0 %v17348_v45  ;;  %10529 = vmatpush3.msra.mxu1 %v17290_v28  ;;  %v14563_v45 = vpop.f32.mrf.mxu0  ;;  %v14571_v44 = vpop.f32.mrf.mxu1 }
 0x26b   :  { %5140 = vmatmul.mubr.f32.vlgmr.msra.gmra.mxu0 %v14405_v27  ;;  %10530 = vmatprep.subr.mxu1 %v17292_v4  ;;  %v697_v49 = vadd.f32 %v9455_v17, %v559_v47  ;;  %v11050_v17 = vld [vmem:[%s15516_s4 + $0x8] sm:$0xff] }
 0x26c   :  { %10541 = vmatprep.subr.mxu0 %v17349_v3  ;;  %10531 = vmatpush3.msra.mxu1 %v17294_v26  ;;  %v9525_v3 = vadd.f32 %v14489_v41, %v14477_v25  ;;  %v14581_v25 = vmul.f32 %v11050_v17, %v14121_v58  ;;  %v17354_v41 = vld [vmem:[#allocation161_spill] sm:$0xff]  ;;  %v9804_v47 = vpop.f32.mrf.mxu0 }
 0x26d   :  { %10542 = vmatpush3.msra.mxu0 %v17350_v16  ;;  %5414 = vmatprep.mubr.f32.mxu0 %v14320_v54  ;;  %v805_v62 = vadd.f32 %v9490_v43, %v697_v49  ;;  %v9560_v16 = vadd.f32 %v14495_v21, %v14483_v60  ;;  %v9595_v60 = vadd.f32 %v14509_v9, %v14497_v14  ;;  %v17356_v21 = vld [vmem:[#allocation172_spill] sm:$0xff]  ;;  %v9839_v49 = vpop.f32.mrf.mxu1 }
 0x26e   :  { %10532 = vmatprep.subr.mxu1 %v17296_v34  ;;  %10543 = vmatprep.subr.mxu0 %v17351_v13  ;;  %v17355_v13 = vld [vmem:[#allocation165_spill] sm:$0xff]  ;;  %v9873_v58 = vpop.f32.mrf.mxu0  ;;  %v14600_v9 = vrot.slane %v14581_v25, %v17128_v42 }
 0x26f   :  { %10533 = vmatpush3.msra.mxu1 %v17298_v18  ;;  %10544 = vmatpush3.msra.mxu0 %v17352_v0  ;;  %v973_v43 = vadd.f32 %v9525_v3, %v805_v62  ;;  %v17357_v0 = vand.u32 4294901760, %v14405_v27  ;;  %v17359_v3 = vld [vmem:[#allocation179_spill] sm:$0xff]  ;;  %v9908_v14 = vpop.f32.mrf.mxu1  ;;  %v9665_v62 = vadd.f32 %v14533_v63, %v14517_v33 }
 0x270   :  { %10534 = vmatprep.subr.mxu1 %v17300_v19  ;;  %10545 = vmatprep.subr.mxu0 %v17353_v39  ;;  %v17358_v39 = vld [vmem:[#allocation176_spill] sm:$0xff]  ;;  %v3791_v63 = vcombine.high %v14600_v9, %v14600_v9 }
 0x271   :  { %10535 = vmatpush3.msra.mxu1 %v17302_v12  ;;  %10546 = vmatpush3.msra.mxu0 %v17354_v41  ;;  %v1077_v17 = vadd.f32 %v9560_v16, %v973_v43  ;;  %v9630_v41 = vadd.f32 %v14515_v37, %v14503_v15  ;;  %v17360_v16 = vld [vmem:[#allocation180_spill] sm:$0xff]  ;;  %v9874_v15 = vpop.f32.mrf.mxu0  ;;  %v9909_v33 = vpop.f32.mrf.mxu1 }
 0x272   :  { %10536 = vmatprep.subr.mxu1 %v17304_v22  ;;  %10547 = vmatprep.subr.mxu0 %v17355_v13  ;;  %v9700_v13 = vadd.f32 %v14539_v2, %v14523_v7  ;;  %v17363_v43 = vld [vmem:[#allocation188_spill] sm:$0xff]  ;;  %v17365_v2 = vld [vmem:[#allocation199_spill] sm:$0xff] }
 0x273   :  { %10537 = vmatpush3.msra.mxu1 %v17306_v40  ;;  %10548 = vmatpush3.msra.mxu0 %v17356_v21  ;;  %v1189_v27 = vadd.f32 %v9595_v60, %v1077_v17  ;;  %v17364_v60 = vld [vmem:[#allocation194_spill] sm:$0xff]  ;;  %v9978_v7 = vpop.f32.mrf.mxu1  ;;  %v9770_v21 = vadd.f32 %v9769_v36, %v14549_v46  ;;  %v17368_v17 = vld [vmem:[#allocation216_spill] sm:$0xff]  ;;  %v17369_v36 = vld [vmem:[#allocation219_spill] sm:$0xff] }
 0x274   :  { %5248 = vmatmul.mubr.f32.vlgmr.msra.gmra.mxu1 %v17357_v0  ;;  %10549 = vmatprep.subr.mxu0 %v17358_v39  ;;  %v17366_v0 = vld [vmem:[#allocation203_spill] sm:$0xff] }
 0x275   :  { %10576 = vmatprep.subr.mxu1 %v17251_v61  ;;  %10550 = vmatpush3.msra.mxu0 %v17359_v3  ;;  %v17361_v61 = vld [vmem:[#allocation183_spill] sm:$0xff]  ;;  %v1421_v37 = vadd.f32 %v9630_v41, %v1189_v27  ;;  %v9840_v41 = vadd.f32 %v9839_v49, %v14571_v44  ;;  %v17370_v3 = vld [vmem:[#allocation226_spill] sm:$0xff]  ;;  %v9875_v27 = vadd.f32 %v9874_v15, %v9873_v58  ;;  %v17375_v58 = vld [vmem:[#allocation240_spill] sm:$0xff] }
 0x276   :  { %10577 = vmatpush3.msra.mxu1 %v17252_v24  ;;  %5518 = vmatprep.mubr.f32.mxu1 %v14320_v54  ;;  %v17362_v24 = vld [vmem:[#allocation187_spill] sm:$0xff]  ;;  %v9943_v54 = vpop.f32.mrf.mxu0  ;;  %v9910_v49 = vadd.f32 %v9909_v33, %v9908_v14  ;;  %v17377_v14 = vld [vmem:[#allocation245_spill] sm:$0xff] }
 0x277   :  { %10551 = vmatprep.subr.mxu0 %v17360_v16  ;;  %10578 = vmatprep.subr.mxu1 %v17253_v6  ;;  %v1559_v6 = vadd.f32 %v9665_v62, %v1421_v37  ;;  %v17372_v62 = vld [vmem:[#allocation232_spill] sm:$0xff]  ;;  %v17373_v44 = vld [vmem:[#allocation235_spill] sm:$0xff]  ;;  %v17374_v16 = vld [vmem:[#allocation237_spill] sm:$0xff] }
 0x278   :  { %10552 = vmatpush3.msra.mxu0 %v17361_v61  ;;  %10579 = vmatpush3.msra.mxu1 %v17254_v20  ;;  %v9735_v20 = vadd.f32 %v9734_v52, %v14541_v23  ;;  %v9944_v39 = vpop.f32.mrf.mxu0  ;;  %v17367_v23 = vld [vmem:[#allocation209_spill] sm:$0xff]  ;;  %v9805_v52 = vadd.f32 %v9804_v47, %v14563_v45  ;;  %v17371_v47 = vld [vmem:[#allocation228_spill] sm:$0xff] }
 0x279   :  { %10553 = vmatprep.subr.mxu0 %v17362_v24  ;;  %10580 = vmatprep.subr.mxu1 %v17255_v30  ;;  %v1667_v30 = vadd.f32 %v9700_v13, %v1559_v6  ;;  %v9945_v15 = vadd.f32 %v9944_v39, %v9943_v54  ;;  %v17376_v13 = vld [vmem:[#allocation243_spill] sm:$0xff]  ;;  %v17379_v54 = vld [vmem:[#allocation250_spill] sm:$0xff]  ;;  %v17380_v6 = vld [vmem:[#allocation252_spill] sm:$0xff] }
 0x27a   :  { %10554 = vmatpush3.msra.mxu0 %v17363_v43  ;;  %10581 = vmatpush3.msra.mxu1 %v17256_v11  ;;  %v14626_v11 = vand.u32 4294901760, %v3791_v63  ;;  %v10013_v46 = vpop.f32.mrf.mxu0  ;;  %v17384_v39 = vld [vmem:[#allocation264_spill] sm:$0xff] }
 0x27b   :  { %10555 = vmatprep.subr.mxu0 %v17364_v60  ;;  %10582 = vmatprep.subr.mxu1 %v17257_v31  ;;  %v1835_v31 = vadd.f32 %v9735_v20, %v1667_v30  ;;  %v17381_v20 = vld [vmem:[#allocation254_spill] sm:$0xff] }
 0x27c   :  { %10556 = vmatpush3.msra.mxu0 %v17365_v2  ;;  %10583 = vmatpush3.msra.mxu1 %v17258_v56  ;;  %v9979_v56 = vpop.f32.mrf.mxu1  ;;  %v17382_v2 = vld [vmem:[#allocation106_spill] sm:$0xff] }
 0x27d   :  { %10557 = vmatprep.subr.mxu0 %v17366_v0  ;;  %10584 = vmatprep.subr.mxu1 %v17259_v50  ;;  %v1939_v50 = vadd.f32 %v9770_v21, %v1835_v31  ;;  %v9980_v24 = vadd.f32 %v9979_v56, %v9978_v7 }
 0x27e   :  { %10558 = vmatpush3.msra.mxu0 %v17367_v23  ;;  %10585 = vmatpush3.msra.mxu1 %v17261_v1  ;;  %v14639_v1 = vsub.f32 %v3791_v63, %v14626_v11  ;;  %v10048_v45 = vpop.f32.mrf.mxu1  ;;  %v17378_v63 = vld [vmem:[#allocation248_spill] sm:$0xff] }
 0x27f   :  { %10559 = vmatprep.subr.mxu0 %v17368_v17  ;;  %10586 = vmatprep.subr.mxu1 %v17263_v53  ;;  %v2051_v53 = vadd.f32 %v9805_v52, %v1939_v50 }
 0x280   :  { %10560 = vmatpush3.msra.mxu0 %v17369_v36  ;;  %10587 = vmatpush3.msra.mxu1 %v17265_v5  ;;  %v10014_v5 = vpop.f32.mrf.mxu0  ;;  %v5623_v61 = vand.u32 4294901760, %v14639_v1  ;;  %v17388_v36 = vld [vmem:[#allocation270_spill] sm:$0xff] }
 0x281   :  { %10561 = vmatprep.subr.mxu0 %v17370_v3  ;;  %10588 = vmatprep.subr.mxu1 %v17267_v51  ;;  %v2283_v51 = vadd.f32 %v9840_v41, %v2051_v53  ;;  %v10015_v43 = vadd.f32 %v10014_v5, %v10013_v46  ;;  %v17395_v53 = vld [vmem:[#allocation282_spill] sm:$0xff]  ;;  %v17399_v5 = vld [vmem:[#allocation289_spill] sm:$0xff] }
 0x282   :  { %10562 = vmatpush3.msra.mxu0 %v17371_v47  ;;  %10589 = vmatpush3.msra.mxu1 %v17269_v55  ;;  %v10049_v55 = vpop.f32.mrf.mxu1  ;;  %v10083_v37 = vpop.f32.mrf.mxu0  ;;  %v17394_v47 = vld [vmem:[#allocation295_spill] sm:$0xff] }
 0x283   :  { %10563 = vmatprep.subr.mxu0 %v17372_v62  ;;  %10590 = vmatprep.subr.mxu1 %v17272_v38  ;;  %v2421_v38 = vadd.f32 %v9875_v27, %v2283_v51  ;;  %v10050_v7 = vadd.f32 %v10049_v55, %v10048_v45  ;;  %v17392_v45 = vld [vmem:[#allocation292_spill] sm:$0xff]  ;;  %v17398_v62 = vld [vmem:[#allocation305_spill] sm:$0xff]  ;;  %v17401_v51 = vld [vmem:[#allocation290_spill] sm:$0xff] }
 0x284   :  { %10564 = vmatpush3.msra.mxu0 %v17373_v44  ;;  %10591 = vmatpush3.msra.mxu1 %v17274_v10  ;;  %v10118_v10 = vpop.f32.mrf.mxu1  ;;  %v10084_v33 = vpop.f32.mrf.mxu0  ;;  %v17397_v27 = vld [vmem:[#allocation284_spill] sm:$0xff] }
 0x285   :  { %10565 = vmatprep.subr.mxu0 %v17374_v16  ;;  %10592 = vmatprep.subr.mxu1 %v17276_v57  ;;  %v2529_v57 = vadd.f32 %v9910_v49, %v2421_v38  ;;  %v17400_v44 = vld [vmem:[#allocation312_spill] sm:$0xff]  ;;  %v17402_v49 = vld [vmem:[#allocation313_spill] sm:$0xff]  ;;  %v14701_v16 = vand.u32 4294901760, %v14600_v9  ;;  %v17405_v38 = vld [vmem:[#allocation299_spill] sm:$0xff] }
 0x286   :  { %10566 = vmatpush3.msra.mxu0 %v17375_v58  ;;  %10593 = vmatpush3.msra.mxu1 %v17278_v59  ;;  %v5624_v59 = vsub.f32 %v14639_v1, %v5623_v61  ;;  %v17403_v55 = vld [vmem:[#allocation296_spill] sm:$0xff] }
 0x287   :  { %10567 = vmatprep.subr.mxu0 %v17376_v13  ;;  %10594 = vmatprep.subr.mxu1 %v17280_v8  ;;  %v2697_v8 = vadd.f32 %v9945_v15, %v2529_v57  ;;  %v17406_v15 = vld [vmem:[#allocation324_spill] sm:$0xff]  ;;  %v17407_v13 = vld [vmem:[#allocation306_spill] sm:$0xff]  ;;  %v17410_v57 = vld [vmem:[#allocation329_spill] sm:$0xff] }
 0x288   :  { %10568 = vmatpush3.msra.mxu0 %v17377_v14  ;;  %10595 = vmatpush3.msra.mxu1 %v17282_v35  ;;  %v10119_v35 = vpop.f32.mrf.mxu1  ;;  %v5625_v30 = vand.u32 4294901760, %v5624_v59  ;;  %v17409_v14 = vld [vmem:[#allocation309_spill] sm:$0xff]  ;;  %v17412_v59 = vld [vmem:[#allocation330_spill] sm:$0xff] }
 0x289   :  { %10569 = vmatprep.subr.mxu0 %v17378_v63  ;;  %10596 = vmatprep.subr.mxu1 %v17284_v32  ;;  %v10153_v32 = vpop.f32.mrf.mxu0  ;;  %v2801_v60 = vadd.f32 %v9980_v24, %v2697_v8  ;;  %v10120_v52 = vadd.f32 %v10119_v35, %v10118_v10  ;;  %v17408_v10 = vld [vmem:[#allocation327_spill] sm:$0xff]  ;;  %v14716_v63 = vsub.f32 %v14600_v9, %v14701_v16  ;;  %v17415_v8 = vld [vmem:[#allocation325_spill] sm:$0xff]  ;;  %v17420_v9 = vld [vmem:[#allocation344_spill] sm:$0xff] }
 0x28a   :  { %10570 = vmatpush3.msra.mxu0 %v17379_v54  ;;  %10597 = vmatpush3.msra.mxu1 %v17286_v29  ;;  %v17383_v29 = vld [vmem:[#allocation263_spill] sm:$0xff]  ;;  %v10188_v21 = vpop.f32.mrf.mxu1  ;;  %v17414_v54 = vld [vmem:[#allocation333_spill] sm:$0xff] }
 0x28b   :  { %10571 = vmatprep.subr.mxu0 %v17380_v6  ;;  %10598 = vmatprep.subr.mxu1 %v17288_v48  ;;  %v2913_v0 = vadd.f32 %v10015_v43, %v2801_v60  ;;  %v10085_v48 = vadd.f32 %v10084_v33, %v10083_v37  ;;  %v10154_v23 = vpop.f32.mrf.mxu0  ;;  %v17404_v37 = vld [vmem:[#allocation321_spill] sm:$0xff]  ;;  %v17411_v24 = vld [vmem:[#allocation315_spill] sm:$0xff]  ;;  %v17416_v43 = vld [vmem:[#allocation338_spill] sm:$0xff] }
 0x28c   :  { %10572 = vmatpush3.msra.mxu0 %v17381_v20  ;;  %10599 = vmatpush3.msra.mxu1 %v17290_v28  ;;  %v17385_v28 = vld [vmem:[#allocation265_spill] sm:$0xff]  ;;  %v10189_v17 = vpop.f32.mrf.mxu1  ;;  %v10155_v46 = vadd.f32 %v10154_v23, %v10153_v32  ;;  %v17413_v33 = vld [vmem:[#allocation319_spill] sm:$0xff]  ;;  %v17417_v6 = vld [vmem:[#allocation334_spill] sm:$0xff]  ;;  %v5629_v32 = vand.u32 4294901760, %v14716_v63 }
 0x28d   :  { %5416 = vmatmul.mubr.f32.vlgmr.msra.gmra.mxu0 %v17382_v2  ;;  %10600 = vmatprep.subr.mxu1 %v17292_v4  ;;  %v3145_v31 = vadd.f32 %v10050_v7, %v2913_v0  ;;  %v17386_v4 = vld [vmem:[#allocation266_spill] sm:$0xff]  ;;  %v10190_v41 = vadd.f32 %v10189_v17, %v10188_v21  ;;  %v17418_v35 = vld [vmem:[#allocation339_spill] sm:$0xff]  ;;  %v17419_v20 = vld [vmem:[#allocation336_spill] sm:$0xff] }
 0x28e   :  { %10611 = vmatprep.subr.mxu0 %v17383_v29  ;;  %10601 = vmatpush3.msra.mxu1 %v17294_v26  ;;  %v17387_v26 = vld [vmem:[#allocation269_spill] sm:$0xff]  ;;  %v17421_v60 = vld [vmem:[#allocation340_spill] sm:$0xff]  ;;  %v17422_v7 = vld [vmem:[#allocation347_spill] sm:$0xff]  ;;  %v5630_v23 = vsub.f32 %v14716_v63, %v5629_v32 }
 0x28f   :  { %10612 = vmatpush3.msra.mxu0 %v17384_v39  ;;  %5626 = vmatprep.mubr.f32.mxu0 %v5625_v30  ;;  %v3283_v56 = vadd.f32 %v10085_v48, %v3145_v31  ;;  %v17424_v30 = vld [vmem:[#allocation352_spill] sm:$0xff]  ;;  %v17425_v21 = vld [vmem:[#allocation345_spill] sm:$0xff]  ;;  %v17426_v0 = vld [vmem:[#allocation354_spill] sm:$0xff] }
 0x290   :  { %10602 = vmatprep.subr.mxu1 %v17296_v34  ;;  %10613 = vmatprep.subr.mxu0 %v17385_v28  ;;  %v17389_v34 = vld [vmem:[#allocation274_spill] sm:$0xff]  ;;  %v17427_v48 = vld [vmem:[#allocation348_spill] sm:$0xff]  ;;  %v17430_v17 = vld [vmem:[#allocation363_spill] sm:$0xff] }
 0x291   :  { %10603 = vmatpush3.msra.mxu1 %v17298_v18  ;;  %10614 = vmatpush3.msra.mxu0 %v17386_v4  ;;  %v3391_v50 = vadd.f32 %v10120_v52, %v3283_v56  ;;  %v17390_v18 = vld [vmem:[#allocation276_spill] sm:$0xff]  ;;  %v17429_v52 = vld [vmem:[#allocation350_spill] sm:$0xff]  ;;  %v17431_v56 = vld [vmem:[#allocation353_spill] sm:$0xff] }
 0x292   :  { %10604 = vmatprep.subr.mxu1 %v17300_v19  ;;  %10615 = vmatprep.subr.mxu0 %v17387_v26  ;;  %v17391_v19 = vld [vmem:[#allocation279_spill] sm:$0xff]  ;;  %v17428_v31 = vld [vmem:[#allocation360_spill] sm:$0xff] }
 0x293   :  { %10605 = vmatpush3.msra.mxu1 %v17302_v12  ;;  %10616 = vmatpush3.msra.mxu0 %v17388_v36  ;;  %v3559_v3 = vadd.f32 %v10155_v46, %v3391_v50  ;;  %v17393_v12 = vld [vmem:[#allocation281_spill] sm:$0xff]  ;;  %v17432_v46 = vld [vmem:[#allocation367_spill] sm:$0xff] }
 0x294   :  { %10606 = vmatprep.subr.mxu1 %v17304_v22  ;;  %10617 = vmatprep.subr.mxu0 %v17389_v34  ;;  %v17433_v50 = vld [vmem:[#allocation355_spill] sm:$0xff] }
 0x295   :  { %10607 = vmatpush3.msra.mxu1 %v17306_v40  ;;  %10618 = vmatpush3.msra.mxu0 %v17390_v18  ;;  %v14690_v22 = vadd.f32 %v10190_v41, %v3559_v3  ;;  %v17396_v40 = vld [vmem:[#allocation301_spill] sm:$0xff]  ;;  %v17435_v3 = vld [vmem:[#allocation358_spill] sm:$0xff] }
 0x296   :  { %5520 = vmatmul.mubr.f32.vlgmr.msra.gmra.mxu1 %v17382_v2  ;;  %10619 = vmatprep.subr.mxu0 %v17391_v19  ;;  %v17423_v2 = vld [vmem:[#allocation342_spill] sm:$0xff]  ;;  %v17434_v41 = vld [vmem:[#allocation373_spill] sm:$0xff] }
 0x297   :  { %10646 = vmatprep.subr.mxu1 %v17392_v45  ;;  %10620 = vmatpush3.msra.mxu0 %v17393_v12  ;;  %v3667_v58 = vsel %vm3666_vm1, %v14690_v22, -inf  ;;  %v5631_v45 = vand.u32 4294901760, %v5630_v23  ;;  %v17454_v23 = vld [vmem:[#allocation288_spill] sm:$0xff] }
 0x298   :  { %10647 = vmatpush3.msra.mxu1 %v17394_v47  ;;  %5862 = vmatprep.mubr.f32.mxu1 %v14626_v11  ;;  %v17436_v47 = vld [vmem:[#allocation380_spill] sm:$0xff] }
 0x299   :  { %10621 = vmatprep.subr.mxu0 %v17395_v53  ;;  %10648 = vmatprep.subr.mxu1 %v17396_v40  ;;  %v17437_v40 = vld [vmem:[#allocation364_spill] sm:$0xff] }
 0x29a   :  { %10622 = vmatpush3.msra.mxu0 %v17397_v27  ;;  %10649 = vmatpush3.msra.mxu1 %v17398_v62  ;;  %v17438_v62 = vld [vmem:[#allocation382_spill] sm:$0xff] }
 0x29b   :  { %10623 = vmatprep.subr.mxu0 %v17399_v5  ;;  %10650 = vmatprep.subr.mxu1 %v17400_v44  ;;  %v17439_v44 = vld [vmem:[#allocation384_spill] sm:$0xff] }
 0x29c   :  { %10624 = vmatpush3.msra.mxu0 %v17401_v51  ;;  %10651 = vmatpush3.msra.mxu1 %v17402_v49  ;;  %v17440_v49 = vld [vmem:[#allocation267_spill] sm:$0xff] }
 0x29d   :  { %10625 = vmatprep.subr.mxu0 %v17403_v55  ;;  %10652 = vmatprep.subr.mxu1 %v17404_v37  ;;  %v17441_v37 = vld [vmem:[#allocation385_spill] sm:$0xff] }
 0x29e   :  { %10626 = vmatpush3.msra.mxu0 %v17405_v38  ;;  %10653 = vmatpush3.msra.mxu1 %v17406_v15  ;;  %v17443_v15 = vld [vmem:[#allocation386_spill] sm:$0xff] }
 0x29f   :  { %10627 = vmatprep.subr.mxu0 %v17407_v13  ;;  %10654 = vmatprep.subr.mxu1 %v17408_v10  ;;  %v17444_v10 = vld [vmem:[#allocation271_spill] sm:$0xff] }
 0x2a0   :  { %3668 = vmax.xlane.f32.xlu0 %v3667_v58  ;;  %10628 = vmatpush3.msra.mxu0 %v17409_v14  ;;  %v17442_v58 = vld [vmem:[#allocation268_spill] sm:$0xff] }
 0x2a1   :  { %10655 = vmatpush3.msra.mxu1 %v17410_v57  ;;  %10629 = vmatprep.subr.mxu0 %v17411_v24  ;;  %v17445_v57 = vld [vmem:[#allocation387_spill] sm:$0xff] }
 0x2a2   :  { %10656 = vmatprep.subr.mxu1 %v17412_v59  ;;  %10630 = vmatpush3.msra.mxu0 %v17413_v33  ;;  %v17446_v59 = vld [vmem:[#allocation273_spill] sm:$0xff] }
 0x2a3   :  { %10657 = vmatpush3.msra.mxu1 %v17414_v54  ;;  %10631 = vmatprep.subr.mxu0 %v17415_v8  ;;  %v17447_v54 = vld [vmem:[#allocation388_spill] sm:$0xff] }
 0x2a4   :  { %10658 = vmatprep.subr.mxu1 %v17416_v43  ;;  %10632 = vmatpush3.msra.mxu0 %v17417_v6  ;;  %v17448_v43 = vld [vmem:[#allocation277_spill] sm:$0xff] }
 0x2a5   :  { %10659 = vmatpush3.msra.mxu1 %v17418_v35  ;;  %10633 = vmatprep.subr.mxu0 %v17419_v20  ;;  %v17449_v35 = vld [vmem:[#allocation389_spill] sm:$0xff] }
 0x2a6   :  { %10660 = vmatprep.subr.mxu1 %v17420_v9  ;;  %10634 = vmatpush3.msra.mxu0 %v17421_v60  ;;  %v17450_v9 = vld [vmem:[#allocation278_spill] sm:$0xff] }
 0x2a7   :  { %10661 = vmatpush3.msra.mxu1 %v17422_v7  ;;  %10635 = vmatprep.subr.mxu0 %v17423_v2  ;;  %v17451_v7 = vld [vmem:[#allocation390_spill] sm:$0xff] }
 0x2a8   :  { %10662 = vmatprep.subr.mxu1 %v17424_v30  ;;  %10636 = vmatpush3.msra.mxu0 %v17425_v21  ;;  %v17452_v30 = vld [vmem:[#allocation285_spill] sm:$0xff] }
 0x2a9   :  { %10663 = vmatpush3.msra.mxu1 %v17426_v0  ;;  %10637 = vmatprep.subr.mxu0 %v17427_v48  ;;  %v17453_v0 = vld [vmem:[#allocation391_spill] sm:$0xff] }
 0x2aa   :  { %10664 = vmatprep.subr.mxu1 %v17428_v31  ;;  %10638 = vmatpush3.msra.mxu0 %v17429_v52  ;;  %v17455_v31 = vld [vmem:[#allocation291_spill] sm:$0xff] }
 0x2ab   :  { %10665 = vmatpush3.msra.mxu1 %v17430_v17  ;;  %10639 = vmatprep.subr.mxu0 %v17431_v56  ;;  %v17456_v17 = vld [vmem:[#allocation293_spill] sm:$0xff] }
 0x2ac   :  { %10666 = vmatprep.subr.mxu1 %v17432_v46  ;;  %10640 = vmatpush3.msra.mxu0 %v17433_v50  ;;  %v17457_v46 = vld [vmem:[#allocation294_spill] sm:$0xff] }
 0x2ad   :  { %10667 = vmatpush3.msra.mxu1 %v17434_v41  ;;  %10641 = vmatprep.subr.mxu0 %v17435_v3  ;;  %v17458_v41 = vld [vmem:[#allocation298_spill] sm:$0xff] }
 0x2ae   :  { %10668 = vmatprep.subr.mxu1 %v17436_v47  ;;  %10642 = vmatpush3.msra.mxu0 %v17437_v40  ;;  %v17460_v47 = vld [vmem:[#allocation304_spill] sm:$0xff] }
 0x2af   :  { %10669 = vmatpush3.msra.mxu1 %v17438_v62  ;;  %5632 = vmatmul.mubr.f32.vlgmr.msra.gmra.mxu0 %v5631_v45  ;;  %v17459_v45 = vld [vmem:[#allocation303_spill] sm:$0xff] }
 0x2b0   :  { %10670 = vmatprep.subr.mxu1 %v17439_v44  ;;  %10681 = vmatprep.subr.mxu0 %v17440_v49  ;;  %v17461_v62 = vld [vmem:[#allocation311_spill] sm:$0xff]  ;;  %v17465_v49 = vld [vmem:[#allocation328_spill] sm:$0xff] }
 0x2b1   :  { %10671 = vmatpush3.msra.mxu1 %v17441_v37  ;;  %10682 = vmatpush3.msra.mxu0 %v17442_v58  ;;  %v17464_v44 = vld [vmem:[#allocation323_spill] sm:$0xff]  ;;  %v17466_v37 = vld [vmem:[#allocation332_spill] sm:$0xff]  ;;  %v17467_v58 = vld [vmem:[#allocation337_spill] sm:$0xff] }
 0x2b2   :  { %5999 = vmatprep.mubr.f32.mxu0 %v14639_v1  ;;  %10672 = vmatprep.subr.mxu1 %v17443_v15  ;;  %v17462_v1 = vld [vmem:[#allocation314_spill] sm:$0xff] }
 0x2b3   :  { %10683 = vmatprep.subr.mxu0 %v17444_v10  ;;  %10673 = vmatpush3.msra.mxu1 %v17445_v57  ;;  %v17468_v15 = vld [vmem:[#allocation346_spill] sm:$0xff]  ;;  %v17469_v10 = vld [vmem:[#allocation351_spill] sm:$0xff]  ;;  %v17470_v57 = vld [vmem:[#allocation357_spill] sm:$0xff] }
 0x2b4   :  { %10684 = vmatpush3.msra.mxu0 %v17446_v59  ;;  %10674 = vmatprep.subr.mxu1 %v17447_v54  ;;  %v17471_v59 = vld [vmem:[#allocation359_spill] sm:$0xff]  ;;  %v17472_v54 = vld [vmem:[#allocation362_spill] sm:$0xff] }
 0x2b5   :  { %10685 = vmatprep.subr.mxu0 %v17448_v43  ;;  %10675 = vmatpush3.msra.mxu1 %v17449_v35  ;;  %v17473_v43 = vld [vmem:[#allocation366_spill] sm:$0xff]  ;;  %v17474_v35 = vld [vmem:[#allocation369_spill] sm:$0xff] }
 0x2b6   :  { %10686 = vmatpush3.msra.mxu0 %v17450_v9  ;;  %10676 = vmatprep.subr.mxu1 %v17451_v7  ;;  %v17475_v9 = vld [vmem:[#allocation371_spill] sm:$0xff]  ;;  %v17476_v7 = vld [vmem:[#allocation372_spill] sm:$0xff] }
 0x2b7   :  { %10687 = vmatprep.subr.mxu0 %v17452_v30  ;;  %10677 = vmatpush3.msra.mxu1 %v17453_v0  ;;  %v17477_v30 = vld [vmem:[#allocation375_spill] sm:$0xff]  ;;  %v17478_v0 = vld [vmem:[#allocation377_spill] sm:$0xff] }
 0x2b8   :  { %10688 = vmatpush3.msra.mxu0 %v17454_v23  ;;  %5864 = vmatmul.mubr.f32.vlgmr.msra.gmra.mxu1 %v14701_v16  ;;  %v17479_v23 = vld [vmem:[#allocation272_spill] sm:$0xff] }
 0x2b9   :  { %10689 = vmatprep.subr.mxu0 %v17455_v31  ;;  %10716 = vmatprep.subr.mxu1 %v17383_v29  ;;  %v17480_v31 = vld [vmem:[#allocation275_spill] sm:$0xff] }
 0x2ba   :  { %10690 = vmatpush3.msra.mxu0 %v17456_v17  ;;  %10717 = vmatpush3.msra.mxu1 %v17384_v39  ;;  %v17481_v17 = vld [vmem:[#allocation280_spill] sm:$0xff] }
 0x2bb   :  { %6106 = vmatprep.mubr.f32.mxu1 %v5623_v61  ;;  %10691 = vmatprep.subr.mxu0 %v17457_v46  ;;  %v17463_v61 = vld [vmem:[#allocation320_spill] sm:$0xff]  ;;  %v17482_v46 = vld [vmem:[#allocation283_spill] sm:$0xff] }
 0x2bc   :  { %10718 = vmatprep.subr.mxu1 %v17385_v28  ;;  %10692 = vmatpush3.msra.mxu0 %v17458_v41  ;;  %v17483_v41 = vld [vmem:[#allocation286_spill] sm:$0xff] }
 0x2bd   :  { %10719 = vmatpush3.msra.mxu1 %v17386_v4  ;;  %10693 = vmatprep.subr.mxu0 %v17459_v45  ;;  %v17484_v45 = vld [vmem:[#allocation287_spill] sm:$0xff] }
 0x2be   :  { %10720 = vmatprep.subr.mxu1 %v17387_v26  ;;  %10694 = vmatpush3.msra.mxu0 %v17460_v47  ;;  %v3776_v47 = vcombine.high %v14581_v25, %v14581_v25  ;;  %v17489_v25 = vld [vmem:[#allocation308_spill] sm:$0xff] }
 0x2bf   :  { %10721 = vmatpush3.msra.mxu1 %v17388_v36  ;;  %10695 = vmatprep.subr.mxu0 %v17461_v62  ;;  %v17485_v62 = vld [vmem:[#allocation297_spill] sm:$0xff] }
 0x2c0   :  { %10722 = vmatprep.subr.mxu1 %v17389_v34  ;;  %10696 = vmatpush3.msra.mxu0 %v17462_v1  ;;  %v17486_v1 = vld [vmem:[#allocation300_spill] sm:$0xff] }
 0x2c1   :  { %10723 = vmatpush3.msra.mxu1 %v17390_v18  ;;  %10697 = vmatprep.subr.mxu0 %v17463_v61  ;;  %v17487_v61 = vld [vmem:[#allocation302_spill] sm:$0xff] }
 0x2c2   :  { %10724 = vmatprep.subr.mxu1 %v17391_v19  ;;  %10698 = vmatpush3.msra.mxu0 %v17464_v44  ;;  %v17488_v44 = vld [vmem:[#allocation307_spill] sm:$0xff] }
 0x2c3   :  { %10725 = vmatpush3.msra.mxu1 %v17393_v12  ;;  %10699 = vmatprep.subr.mxu0 %v17465_v49  ;;  %v14844_v49 = vrot.slane %v3776_v47, %v17128_v42  ;;  %v17538_v47 = vld [vmem:[#allocation455_spill] sm:$0xff] }
 0x2c4   :  { %10726 = vmatprep.subr.mxu1 %v17395_v53  ;;  %10700 = vmatpush3.msra.mxu0 %v17466_v37  ;;  %v17490_v37 = vld [vmem:[#allocation310_spill] sm:$0xff] }
 0x2c5   :  { %10727 = vmatpush3.msra.mxu1 %v17397_v27  ;;  %10701 = vmatprep.subr.mxu0 %v17467_v58  ;;  %v17497_v58 = vld [vmem:[#allocation341_spill] sm:$0xff] }
 0x2c6   :  { %10728 = vmatprep.subr.mxu1 %v17399_v5  ;;  %10702 = vmatpush3.msra.mxu0 %v17468_v15 }
 0x2c7   :  { %10729 = vmatpush3.msra.mxu1 %v17401_v51  ;;  %10703 = vmatprep.subr.mxu0 %v17469_v10  ;;  %v17505_v10 = vld [vmem:[#allocation374_spill] sm:$0xff] }
 0x2c8   :  { %10730 = vmatprep.subr.mxu1 %v17403_v55  ;;  %10704 = vmatpush3.msra.mxu0 %v17470_v57  ;;  %v17512_v57 = vld [vmem:[#allocation393_spill] sm:$0xff] }
 0x2c9   :  { %10731 = vmatpush3.msra.mxu1 %v17405_v38  ;;  %10705 = vmatprep.subr.mxu0 %v17471_v59  ;;  %v17520_v59 = vld [vmem:[#allocation418_spill] sm:$0xff] }
 0x2ca   :  { %10732 = vmatprep.subr.mxu1 %v17407_v13  ;;  %10706 = vmatpush3.msra.mxu0 %v17472_v54  ;;  %v17522_v54 = vld [vmem:[#allocation421_spill] sm:$0xff] }
 0x2cb   :  { %10733 = vmatpush3.msra.mxu1 %v17409_v14  ;;  %10707 = vmatprep.subr.mxu0 %v17473_v43  ;;  %v17525_v43 = vld [vmem:[#allocation412_spill] sm:$0xff] }
 0x2cc   :  { %10734 = vmatprep.subr.mxu1 %v17411_v24  ;;  %10708 = vmatpush3.msra.mxu0 %v17474_v35  ;;  %v17527_v35 = vld [vmem:[#allocation419_spill] sm:$0xff] }
 0x2cd   :  { %10735 = vmatpush3.msra.mxu1 %v17413_v33  ;;  %10709 = vmatprep.subr.mxu0 %v17475_v9  ;;  %v17529_v9 = vld [vmem:[#allocation422_spill] sm:$0xff] }
 0x2ce   :  { %10736 = vmatprep.subr.mxu1 %v17415_v8  ;;  %10710 = vmatpush3.msra.mxu0 %v17476_v7  ;;  %v14933_v7 = vand.u32 4294901760, %v14844_v49 }
 0x2cf   :  { %10737 = vmatpush3.msra.mxu1 %v17417_v6  ;;  %10711 = vmatprep.subr.mxu0 %v17477_v30  ;;  %v17530_v30 = vld [vmem:[#allocation441_spill] sm:$0xff] }
 0x2d0   :  { %10738 = vmatprep.subr.mxu1 %v17419_v20  ;;  %10712 = vmatpush3.msra.mxu0 %v17478_v0  ;;  %v17531_v0 = vld [vmem:[#allocation428_spill] sm:$0xff] }
 0x2d1   :  { %10739 = vmatpush3.msra.mxu1 %v17421_v60  ;;  %6002 = vmatmul.mubr.f32.vlgmr.msra.gmra.mxu0 %v14716_v63  ;;  %v17491_v63 = vld [vmem:[#allocation316_spill] sm:$0xff] }
 0x2d2   :  { %10740 = vmatprep.subr.mxu1 %v17423_v2  ;;  %10751 = vmatprep.subr.mxu0 %v17479_v23  ;;  %v17532_v23 = vld [vmem:[#allocation446_spill] sm:$0xff] }
 0x2d3   :  { %10741 = vmatpush3.msra.mxu1 %v17425_v21  ;;  %10752 = vmatpush3.msra.mxu0 %v17480_v31  ;;  %v17533_v31 = vld [vmem:[#allocation431_spill] sm:$0xff] }
 0x2d4   :  { %6276 = vmatprep.mubr.f32.mxu0 %v14626_v11  ;;  %10742 = vmatprep.subr.mxu1 %v17427_v48 }
 0x2d5   :  { %10753 = vmatprep.subr.mxu0 %v17481_v17  ;;  %10743 = vmatpush3.msra.mxu1 %v17429_v52  ;;  %v17534_v17 = vld [vmem:[#allocation449_spill] sm:$0xff] }
 0x2d6   :  { %10754 = vmatpush3.msra.mxu0 %v17482_v46  ;;  %10744 = vmatprep.subr.mxu1 %v17431_v56  ;;  %v17535_v46 = vld [vmem:[#allocation318_spill] sm:$0xff] }
 0x2d7   :  { %10755 = vmatprep.subr.mxu0 %v17483_v41  ;;  %10745 = vmatpush3.msra.mxu1 %v17433_v50  ;;  %v17536_v41 = vld [vmem:[#allocation450_spill] sm:$0xff] }
 0x2d8   :  { %10756 = vmatpush3.msra.mxu0 %v17484_v45  ;;  %10746 = vmatprep.subr.mxu1 %v17435_v3  ;;  %v17537_v45 = vld [vmem:[#allocation437_spill] sm:$0xff] }
 0x2d9   :  { %10757 = vmatprep.subr.mxu0 %v17485_v62  ;;  %10747 = vmatpush3.msra.mxu1 %v17437_v40  ;;  %v17539_v62 = vld [vmem:[#allocation447_spill] sm:$0xff] }
 0x2da   :  { %10758 = vmatpush3.msra.mxu0 %v17486_v1  ;;  %6110 = vmatmul.mubr.f32.vlgmr.msra.gmra.mxu1 %v5629_v32  ;;  %v14947_v1 = vsub.f32 %v14844_v49, %v14933_v7 }
 0x2db   :  { %10759 = vmatprep.subr.mxu0 %v17487_v61  ;;  %10786 = vmatprep.subr.mxu1 %v17383_v29  ;;  %v17492_v29 = vld [vmem:[#allocation317_spill] sm:$0xff]  ;;  %v17540_v61 = vld [vmem:[#allocation456_spill] sm:$0xff] }
 0x2dc   :  { %10760 = vmatpush3.msra.mxu0 %v17488_v44  ;;  %10787 = vmatpush3.msra.mxu1 %v17384_v39  ;;  %v3792_v39 = vcombine.high %v14844_v49, %v14844_v49  ;;  %v17541_v44 = vld [vmem:[#allocation451_spill] sm:$0xff]  ;;  %v17548_v49 = vld [vmem:[#allocation472_spill] sm:$0xff] }
 0x2dd   :  { %6380 = vmatprep.mubr.f32.mxu1 %v14626_v11  ;;  %10761 = vmatprep.subr.mxu0 %v17489_v25  ;;  %v17493_v11 = vld [vmem:[#allocation322_spill] sm:$0xff] }
 0x2de   :  { %10788 = vmatprep.subr.mxu1 %v17385_v28  ;;  %10762 = vmatpush3.msra.mxu0 %v17490_v37  ;;  %v17494_v28 = vld [vmem:[#allocation326_spill] sm:$0xff]  ;;  %v14864_v32 = vand.u32 4294901760, %v3792_v39  ;;  %v17543_v37 = vld [vmem:[#allocation453_spill] sm:$0xff] }
 0x2df   :  { %10789 = vmatpush3.msra.mxu1 %v17386_v4  ;;  %10763 = vmatprep.subr.mxu0 %v17491_v63  ;;  %v17495_v4 = vld [vmem:[#allocation331_spill] sm:$0xff]  ;;  %v17542_v25 = vld [vmem:[#allocation458_spill] sm:$0xff]  ;;  %v17544_v63 = vld [vmem:[#allocation465_spill] sm:$0xff] }
 0x2e0   :  { %10790 = vmatprep.subr.mxu1 %v17387_v26  ;;  %10764 = vmatpush3.msra.mxu0 %v17492_v29  ;;  %v17496_v26 = vld [vmem:[#allocation335_spill] sm:$0xff] }
 0x2e1   :  { %10791 = vmatpush3.msra.mxu1 %v17388_v36  ;;  %10765 = vmatprep.subr.mxu0 %v17493_v11  ;;  %v17498_v36 = vld [vmem:[#allocation343_spill] sm:$0xff]  ;;  %v17547_v11 = vld [vmem:[#allocation462_spill] sm:$0xff] }
 0x2e2   :  { %10792 = vmatprep.subr.mxu1 %v17389_v34  ;;  %10766 = vmatpush3.msra.mxu0 %v17494_v28  ;;  %v17499_v34 = vld [vmem:[#allocation349_spill] sm:$0xff]  ;;  %v17545_v29 = vld [vmem:[#allocation459_spill] sm:$0xff]  ;;  %v6491_v28 = vand.u32 4294901760, %v14947_v1 }
 0x2e3   :  { %10793 = vmatpush3.msra.mxu1 %v17390_v18  ;;  %10767 = vmatprep.subr.mxu0 %v17495_v4  ;;  %v17500_v18 = vld [vmem:[#allocation356_spill] sm:$0xff]  ;;  %v17549_v4 = vld [vmem:[#allocation463_spill] sm:$0xff] }
 0x2e4   :  { %10794 = vmatprep.subr.mxu1 %v17391_v19  ;;  %10768 = vmatpush3.msra.mxu0 %v17496_v26  ;;  %v14875_v19 = vsub.f32 %v3792_v39, %v14864_v32  ;;  %v17546_v39 = vld [vmem:[#allocation467_spill] sm:$0xff]  ;;  %v17550_v26 = vld [vmem:[#allocation476_spill] sm:$0xff] }
 0x2e5   :  { %10795 = vmatpush3.msra.mxu1 %v17393_v12  ;;  %10769 = vmatprep.subr.mxu0 %v17497_v58  ;;  %v17501_v12 = vld [vmem:[#allocation361_spill] sm:$0xff]  ;;  %v17551_v58 = vld [vmem:[#allocation468_spill] sm:$0xff] }
 0x2e6   :  { %10796 = vmatprep.subr.mxu1 %v17395_v53  ;;  %10770 = vmatpush3.msra.mxu0 %v17498_v36  ;;  %v17502_v53 = vld [vmem:[#allocation365_spill] sm:$0xff]  ;;  %v6485_v15 = vand.u32 4294901760, %v14875_v19  ;;  %v17552_v36 = vld [vmem:[#allocation479_spill] sm:$0xff] }
 0x2e7   :  { %10797 = vmatpush3.msra.mxu1 %v17397_v27  ;;  %10771 = vmatprep.subr.mxu0 %v17499_v34  ;;  %v17503_v27 = vld [vmem:[#allocation368_spill] sm:$0xff]  ;;  %v17553_v34 = vld [vmem:[#allocation469_spill] sm:$0xff] }
 0x2e8   :  { %10798 = vmatprep.subr.mxu1 %v17399_v5  ;;  %10772 = vmatpush3.msra.mxu0 %v17500_v18  ;;  %v17504_v5 = vld [vmem:[#allocation370_spill] sm:$0xff] }
 0x2e9   :  { %10799 = vmatpush3.msra.mxu1 %v17401_v51  ;;  %10773 = vmatprep.subr.mxu0 %v17501_v12  ;;  %v17506_v51 = vld [vmem:[#allocation376_spill] sm:$0xff]  ;;  %v17554_v18 = vld [vmem:[#allocation482_spill] sm:$0xff]  ;;  %v17555_v12 = vld [vmem:[#allocation473_spill] sm:$0xff] }
 0x2ea   :  { %10800 = vmatprep.subr.mxu1 %v17403_v55  ;;  %10774 = vmatpush3.msra.mxu0 %v17502_v53  ;;  %v17507_v55 = vld [vmem:[#allocation378_spill] sm:$0xff]  ;;  %v6492_v53 = vsub.f32 %v14947_v1, %v6491_v28 }
 0x2eb   :  { %10801 = vmatpush3.msra.mxu1 %v17405_v38  ;;  %10775 = vmatprep.subr.mxu0 %v17503_v27  ;;  %v17508_v38 = vld [vmem:[#allocation379_spill] sm:$0xff]  ;;  %v17556_v27 = vld [vmem:[#allocation493_spill] sm:$0xff] }
 0x2ec   :  { %10802 = vmatprep.subr.mxu1 %v17407_v13  ;;  %10776 = vmatpush3.msra.mxu0 %v17504_v5  ;;  %v6486_v13 = vsub.f32 %v14875_v19, %v6485_v15  ;;  %v17557_v5 = vld [vmem:[#allocation477_spill] sm:$0xff] }
 0x2ed   :  { %10803 = vmatpush3.msra.mxu1 %v17409_v14  ;;  %10777 = vmatprep.subr.mxu0 %v17505_v10  ;;  %v17509_v14 = vld [vmem:[#allocation381_spill] sm:$0xff]  ;;  %v17558_v10 = vld [vmem:[#allocation496_spill] sm:$0xff] }
 0x2ee   :  { %10804 = vmatprep.subr.mxu1 %v17411_v24  ;;  %10778 = vmatpush3.msra.mxu0 %v17506_v51  ;;  %v17510_v24 = vld [vmem:[#allocation383_spill] sm:$0xff]  ;;  %v17559_v51 = vld [vmem:[#allocation480_spill] sm:$0xff] }
 0x2ef   :  { %10805 = vmatpush3.msra.mxu1 %v17413_v33  ;;  %10779 = vmatprep.subr.mxu0 %v17507_v55  ;;  %v17511_v33 = vld [vmem:[#allocation392_spill] sm:$0xff]  ;;  %v17560_v55 = vld [vmem:[#allocation499_spill] sm:$0xff] }
 0x2f0   :  { %10806 = vmatprep.subr.mxu1 %v17415_v8  ;;  %10780 = vmatpush3.msra.mxu0 %v17508_v38  ;;  %v6487_v8 = vand.u32 4294901760, %v6486_v13  ;;  %v17561_v38 = vld [vmem:[#allocation485_spill] sm:$0xff]  ;;  %v17562_v13 = vld [vmem:[#allocation504_spill] sm:$0xff] }
 0x2f1   :  { %10807 = vmatpush3.msra.mxu1 %v17417_v6  ;;  %10781 = vmatprep.subr.mxu0 %v17509_v14  ;;  %v17513_v6 = vld [vmem:[#allocation394_spill] sm:$0xff]  ;;  %v17563_v14 = vld [vmem:[#allocation488_spill] sm:$0xff] }
 0x2f2   :  { %10808 = vmatprep.subr.mxu1 %v17419_v20  ;;  %10782 = vmatpush3.msra.mxu0 %v17510_v24  ;;  %v17514_v20 = vld [vmem:[#allocation397_spill] sm:$0xff]  ;;  %v6493_v24 = vand.u32 4294901760, %v6492_v53 }
 0x2f3   :  { %10809 = vmatpush3.msra.mxu1 %v17421_v60  ;;  %6278 = vmatmul.mubr.f32.vlgmr.msra.gmra.mxu0 %v14701_v16  ;;  %v17515_v60 = vld [vmem:[#allocation399_spill] sm:$0xff]  ;;  %v17583_v53 = vld [vmem:[#allocation417_spill] sm:$0xff] }
 0x2f4   :  { %10810 = vmatprep.subr.mxu1 %v17423_v2  ;;  %10821 = vmatprep.subr.mxu0 %v17511_v33  ;;  %v17516_v2 = vld [vmem:[#allocation400_spill] sm:$0xff] }
 0x2f5   :  { %10811 = vmatpush3.msra.mxu1 %v17425_v21  ;;  %10822 = vmatpush3.msra.mxu0 %v17512_v57  ;;  %v17517_v21 = vld [vmem:[#allocation403_spill] sm:$0xff] }
 0x2f6   :  { %6488 = vmatprep.mubr.f32.mxu0 %v6487_v8  ;;  %10812 = vmatprep.subr.mxu1 %v17427_v48  ;;  %v17518_v48 = vld [vmem:[#allocation406_spill] sm:$0xff] }
 0x2f7   :  { %10823 = vmatprep.subr.mxu0 %v17513_v6  ;;  %10813 = vmatpush3.msra.mxu1 %v17429_v52  ;;  %v17519_v52 = vld [vmem:[#allocation407_spill] sm:$0xff]  ;;  %v17564_v8 = vld [vmem:[#allocation506_spill] sm:$0xff] }
 0x2f8   :  { %10824 = vmatpush3.msra.mxu0 %v17514_v20  ;;  %10814 = vmatprep.subr.mxu1 %v17431_v56  ;;  %v17521_v56 = vld [vmem:[#allocation410_spill] sm:$0xff] }
 0x2f9   :  { %10825 = vmatprep.subr.mxu0 %v17515_v60  ;;  %10815 = vmatpush3.msra.mxu1 %v17433_v50  ;;  %v17523_v50 = vld [vmem:[#allocation411_spill] sm:$0xff] }
 0x2fa   :  { %10826 = vmatpush3.msra.mxu0 %v17516_v2  ;;  %10816 = vmatprep.subr.mxu1 %v17435_v3  ;;  %v17524_v3 = vld [vmem:[#allocation425_spill] sm:$0xff] }
 0x2fb   :  { %10827 = vmatprep.subr.mxu0 %v17517_v21  ;;  %10817 = vmatpush3.msra.mxu1 %v17437_v40  ;;  %v17526_v40 = vld [vmem:[#allocation436_spill] sm:$0xff] }
 0x2fc   :  { %10828 = vmatpush3.msra.mxu0 %v17518_v48  ;;  %6382 = vmatmul.mubr.f32.vlgmr.msra.gmra.mxu1 %v14701_v16  ;;  %v17528_v16 = vld [vmem:[#allocation439_spill] sm:$0xff] }
 0x2fd   :  { %10829 = vmatprep.subr.mxu0 %v17519_v52  ;;  %10856 = vmatprep.subr.mxu1 %v17520_v59  ;;  %v17565_v59 = vld [vmem:[#allocation490_spill] sm:$0xff] }
 0x2fe   :  { %10830 = vmatpush3.msra.mxu0 %v17521_v56  ;;  %10857 = vmatpush3.msra.mxu1 %v17522_v54  ;;  %v17566_v54 = vld [vmem:[#allocation509_spill] sm:$0xff] }
 0x2ff   :  { %6724 = vmatprep.mubr.f32.mxu1 %v14864_v32  ;;  %10831 = vmatprep.subr.mxu0 %v17523_v50 }
 0x300   :  { %10858 = vmatprep.subr.mxu1 %v17524_v3  ;;  %10832 = vmatpush3.msra.mxu0 %v17525_v43  ;;  %v17567_v3 = vld [vmem:[#allocation511_spill] sm:$0xff] }
 0x301   :  { %10859 = vmatpush3.msra.mxu1 %v17526_v40  ;;  %10833 = vmatprep.subr.mxu0 %v17527_v35  ;;  %v17568_v40 = vld [vmem:[#allocation395_spill] sm:$0xff] }
 0x302   :  { %10860 = vmatprep.subr.mxu1 %v17528_v16  ;;  %10834 = vmatpush3.msra.mxu0 %v17529_v9  ;;  %v17569_v16 = vld [vmem:[#allocation512_spill] sm:$0xff] }
 0x303   :  { %10861 = vmatpush3.msra.mxu1 %v17530_v30  ;;  %10835 = vmatprep.subr.mxu0 %v17531_v0  ;;  %v17570_v30 = vld [vmem:[#allocation396_spill] sm:$0xff] }
 0x304   :  { %10862 = vmatprep.subr.mxu1 %v17532_v23  ;;  %10836 = vmatpush3.msra.mxu0 %v17533_v31  ;;  %v17571_v23 = vld [vmem:[#allocation513_spill] sm:$0xff] }
 0x305   :  { %10863 = vmatpush3.msra.mxu1 %v17534_v17  ;;  %10837 = vmatprep.subr.mxu0 %v17535_v46  ;;  %v17572_v17 = vld [vmem:[#allocation398_spill] sm:$0xff] }
 0x306   :  { %10864 = vmatprep.subr.mxu1 %v17536_v41  ;;  %10838 = vmatpush3.msra.mxu0 %v17537_v45  ;;  %v17573_v41 = vld [vmem:[#allocation514_spill] sm:$0xff] }
 0x307   :  { %10865 = vmatpush3.msra.mxu1 %v17538_v47  ;;  %10839 = vmatprep.subr.mxu0 %v17539_v62  ;;  %v17574_v47 = vld [vmem:[#allocation405_spill] sm:$0xff] }
 0x308   :  { %10866 = vmatprep.subr.mxu1 %v17540_v61  ;;  %10840 = vmatpush3.msra.mxu0 %v17541_v44  ;;  %v17575_v61 = vld [vmem:[#allocation515_spill] sm:$0xff] }
 0x309   :  { %10867 = vmatpush3.msra.mxu1 %v17542_v25  ;;  %10841 = vmatprep.subr.mxu0 %v17543_v37  ;;  %v17576_v25 = vld [vmem:[#allocation408_spill] sm:$0xff] }
 0x30a   :  { %10868 = vmatprep.subr.mxu1 %v17544_v63  ;;  %10842 = vmatpush3.msra.mxu0 %v17545_v29  ;;  %v17577_v63 = vld [vmem:[#allocation516_spill] sm:$0xff] }
 0x30b   :  { %10869 = vmatpush3.msra.mxu1 %v17546_v39  ;;  %10843 = vmatprep.subr.mxu0 %v17547_v11  ;;  %v17578_v39 = vld [vmem:[#allocation409_spill] sm:$0xff] }
 0x30c   :  { %10870 = vmatprep.subr.mxu1 %v17548_v49  ;;  %10844 = vmatpush3.msra.mxu0 %v17549_v4  ;;  %v17579_v49 = vld [vmem:[#allocation517_spill] sm:$0xff] }
 0x30d   :  { %10871 = vmatpush3.msra.mxu1 %v17550_v26  ;;  %10845 = vmatprep.subr.mxu0 %v17551_v58  ;;  %v17580_v26 = vld [vmem:[#allocation414_spill] sm:$0xff] }
 0x30e   :  { %10872 = vmatprep.subr.mxu1 %v17552_v36  ;;  %10846 = vmatpush3.msra.mxu0 %v17553_v34  ;;  %v17581_v36 = vld [vmem:[#allocation518_spill] sm:$0xff] }
 0x30f   :  { %10873 = vmatpush3.msra.mxu1 %v17554_v18  ;;  %10847 = vmatprep.subr.mxu0 %v17555_v12  ;;  %v17582_v18 = vld [vmem:[#allocation416_spill] sm:$0xff] }
 0x310   :  { %10874 = vmatprep.subr.mxu1 %v17556_v27  ;;  %10848 = vmatpush3.msra.mxu0 %v17557_v5  ;;  %v17584_v27 = vld [vmem:[#allocation423_spill] sm:$0xff] }
 0x311   :  { %10875 = vmatpush3.msra.mxu1 %v17558_v10  ;;  %10849 = vmatprep.subr.mxu0 %v17559_v51  ;;  %v17585_v10 = vld [vmem:[#allocation424_spill] sm:$0xff] }
 0x312   :  { %10876 = vmatprep.subr.mxu1 %v17560_v55  ;;  %10850 = vmatpush3.msra.mxu0 %v17561_v38  ;;  %v17586_v55 = vld [vmem:[#allocation427_spill] sm:$0xff] }
 0x313   :  { %10877 = vmatpush3.msra.mxu1 %v17562_v13  ;;  %10851 = vmatprep.subr.mxu0 %v17563_v14  ;;  %v17587_v13 = vld [vmem:[#allocation432_spill] sm:$0xff] }
 0x314   :  { %10878 = vmatprep.subr.mxu1 %v17564_v8  ;;  %10852 = vmatpush3.msra.mxu0 %v17565_v59  ;;  %v17589_v8 = vld [vmem:[#allocation440_spill] sm:$0xff] }
 0x315   :  { %10879 = vmatpush3.msra.mxu1 %v17566_v54  ;;  %6494 = vmatmul.mubr.f32.vlgmr.msra.gmra.mxu0 %v6493_v24  ;;  %v17588_v24 = vld [vmem:[#allocation435_spill] sm:$0xff]  ;;  %v17592_v54 = vld [vmem:[#allocation448_spill] sm:$0xff] }
 0x316   :  { %10880 = vmatprep.subr.mxu1 %v17567_v3  ;;  %10891 = vmatprep.subr.mxu0 %v17568_v40  ;;  %v17593_v3 = vld [vmem:[#allocation461_spill] sm:$0xff]  ;;  %v17594_v40 = vld [vmem:[#allocation464_spill] sm:$0xff] }
 0x317   :  { %10881 = vmatpush3.msra.mxu1 %v17569_v16  ;;  %10892 = vmatpush3.msra.mxu0 %v17570_v30  ;;  %v17595_v16 = vld [vmem:[#allocation466_spill] sm:$0xff]  ;;  %v17596_v30 = vld [vmem:[#allocation471_spill] sm:$0xff] }
 0x318   :  { %6861 = vmatprep.mubr.f32.mxu0 %v14875_v19  ;;  %10882 = vmatprep.subr.mxu1 %v17571_v23  ;;  %v17590_v19 = vld [vmem:[#allocation443_spill] sm:$0xff] }
 0x319   :  { %10893 = vmatprep.subr.mxu0 %v17572_v17  ;;  %10883 = vmatpush3.msra.mxu1 %v17573_v41  ;;  %v17597_v23 = vld [vmem:[#allocation475_spill] sm:$0xff]  ;;  %v17598_v17 = vld [vmem:[#allocation481_spill] sm:$0xff]  ;;  %v17599_v41 = vld [vmem:[#allocation484_spill] sm:$0xff] }
 0x31a   :  { %10894 = vmatpush3.msra.mxu0 %v17574_v47  ;;  %10884 = vmatprep.subr.mxu1 %v17575_v61  ;;  %v17600_v47 = vld [vmem:[#allocation487_spill] sm:$0xff]  ;;  %v17601_v61 = vld [vmem:[#allocation489_spill] sm:$0xff] }
 0x31b   :  { %10895 = vmatprep.subr.mxu0 %v17576_v25  ;;  %10885 = vmatpush3.msra.mxu1 %v17577_v63  ;;  %v17602_v25 = vld [vmem:[#allocation492_spill] sm:$0xff]  ;;  %v17603_v63 = vld [vmem:[#allocation495_spill] sm:$0xff] }
 0x31c   :  { %10896 = vmatpush3.msra.mxu0 %v17578_v39  ;;  %10886 = vmatprep.subr.mxu1 %v17579_v49  ;;  %v17604_v39 = vld [vmem:[#allocation498_spill] sm:$0xff]  ;;  %v17605_v49 = vld [vmem:[#allocation501_spill] sm:$0xff] }
 0x31d   :  { %10897 = vmatprep.subr.mxu0 %v17580_v26  ;;  %10887 = vmatpush3.msra.mxu1 %v17581_v36  ;;  %v17606_v26 = vld [vmem:[#allocation503_spill] sm:$0xff]  ;;  %v17607_v36 = vld [vmem:[#allocation401_spill] sm:$0xff] }
 0x31e   :  { %10898 = vmatpush3.msra.mxu0 %v17582_v18  ;;  %6726 = vmatmul.mubr.f32.vlgmr.msra.gmra.mxu1 %v14933_v7  ;;  %v17608_v18 = vld [vmem:[#allocation402_spill] sm:$0xff] }
 0x31f   :  { %10899 = vmatprep.subr.mxu0 %v17583_v53  ;;  %10926 = vmatprep.subr.mxu1 %v17511_v33  ;;  %v17609_v53 = vld [vmem:[#allocation404_spill] sm:$0xff] }
 0x320   :  { %10900 = vmatpush3.msra.mxu0 %v17584_v27  ;;  %10927 = vmatpush3.msra.mxu1 %v17512_v57  ;;  %v17610_v27 = vld [vmem:[#allocation413_spill] sm:$0xff] }
 0x321   :  { %6968 = vmatprep.mubr.f32.mxu1 %v6485_v15  ;;  %10901 = vmatprep.subr.mxu0 %v17585_v10  ;;  %v17591_v15 = vld [vmem:[#allocation445_spill] sm:$0xff]  ;;  %v17611_v10 = vld [vmem:[#allocation415_spill] sm:$0xff] }
 0x322   :  { %10928 = vmatprep.subr.mxu1 %v17513_v6  ;;  %10902 = vmatpush3.msra.mxu0 %v17586_v55  ;;  %v17612_v55 = vld [vmem:[#allocation420_spill] sm:$0xff] }
 0x323   :  { %10929 = vmatpush3.msra.mxu1 %v17514_v20  ;;  %10903 = vmatprep.subr.mxu0 %v17587_v13  ;;  %v17613_v13 = vld [vmem:[#allocation426_spill] sm:$0xff] }
 0x324   :  { %10930 = vmatprep.subr.mxu1 %v17515_v60  ;;  %10904 = vmatpush3.msra.mxu0 %v17588_v24  ;;  %v17614_v24 = vld [vmem:[#allocation429_spill] sm:$0xff] }
 0x325   :  { %10931 = vmatpush3.msra.mxu1 %v17516_v2  ;;  %10905 = vmatprep.subr.mxu0 %v17589_v8  ;;  %v17615_v8 = vld [vmem:[#allocation430_spill] sm:$0xff] }
 0x326   :  { %10932 = vmatprep.subr.mxu1 %v17517_v21  ;;  %10906 = vmatpush3.msra.mxu0 %v17590_v19  ;;  %v17616_v19 = vld [vmem:[#allocation433_spill] sm:$0xff] }
 0x327   :  { %10933 = vmatpush3.msra.mxu1 %v17518_v48  ;;  %10907 = vmatprep.subr.mxu0 %v17591_v15  ;;  %v17617_v15 = vld [vmem:[#allocation434_spill] sm:$0xff] }
 0x328   :  { %10934 = vmatprep.subr.mxu1 %v17519_v52  ;;  %10908 = vmatpush3.msra.mxu0 %v17592_v54  ;;  %v17618_v54 = vld [vmem:[#allocation438_spill] sm:$0xff] }
 0x329   :  { %10935 = vmatpush3.msra.mxu1 %v17521_v56  ;;  %10909 = vmatprep.subr.mxu0 %v17593_v3 }
 0x32a   :  { %10936 = vmatprep.subr.mxu1 %v17523_v50  ;;  %10910 = vmatpush3.msra.mxu0 %v17594_v40 }
 0x32b   :  { %10937 = vmatpush3.msra.mxu1 %v17525_v43  ;;  %10911 = vmatprep.subr.mxu0 %v17595_v16 }
 0x32c   :  { %10938 = vmatprep.subr.mxu1 %v17527_v35  ;;  %10912 = vmatpush3.msra.mxu0 %v17596_v30 }
 0x32d   :  { %10939 = vmatpush3.msra.mxu1 %v17529_v9  ;;  %10913 = vmatprep.subr.mxu0 %v17597_v23 }
 0x32e   :  { %10940 = vmatprep.subr.mxu1 %v17531_v0  ;;  %10914 = vmatpush3.msra.mxu0 %v17598_v17 }
 0x32f   :  { %10941 = vmatpush3.msra.mxu1 %v17533_v31  ;;  %10915 = vmatprep.subr.mxu0 %v17599_v41 }
 0x330   :  { %10942 = vmatprep.subr.mxu1 %v17535_v46  ;;  %10916 = vmatpush3.msra.mxu0 %v17600_v47 }
 0x331   :  { %10943 = vmatpush3.msra.mxu1 %v17537_v45  ;;  %10917 = vmatprep.subr.mxu0 %v17601_v61 }
 0x332   :  { %10944 = vmatprep.subr.mxu1 %v17539_v62  ;;  %10918 = vmatpush3.msra.mxu0 %v17602_v25 }
 0x333   :  { %10945 = vmatpush3.msra.mxu1 %v17541_v44  ;;  %10919 = vmatprep.subr.mxu0 %v17603_v63 }
 0x334   :  { %10946 = vmatprep.subr.mxu1 %v17543_v37  ;;  %10920 = vmatpush3.msra.mxu0 %v17604_v39 }
 0x335   :  { %10947 = vmatpush3.msra.mxu1 %v17545_v29  ;;  %10921 = vmatprep.subr.mxu0 %v17605_v49 }
 0x336   :  { %10948 = vmatprep.subr.mxu1 %v17547_v11  ;;  %10922 = vmatpush3.msra.mxu0 %v17606_v26 }
 0x337   :  { %10949 = vmatpush3.msra.mxu1 %v17549_v4  ;;  %6864 = vmatmul.mubr.f32.vlgmr.msra.gmra.mxu0 %v14947_v1  ;;  %v17619_v1 = vld [vmem:[#allocation442_spill] sm:$0xff] }
 0x338   :  { %10950 = vmatprep.subr.mxu1 %v17551_v58  ;;  %10961 = vmatprep.subr.mxu0 %v17607_v36 }
 0x339   :  { %10951 = vmatpush3.msra.mxu1 %v17553_v34  ;;  %10962 = vmatpush3.msra.mxu0 %v17608_v18 }
 0x33a   :  { %7138 = vmatprep.mubr.f32.mxu0 %v14864_v32  ;;  %10952 = vmatprep.subr.mxu1 %v17555_v12 }
 0x33b   :  { %10963 = vmatprep.subr.mxu0 %v17609_v53  ;;  %10953 = vmatpush3.msra.mxu1 %v17557_v5 }
 0x33c   :  { %10964 = vmatpush3.msra.mxu0 %v17610_v27  ;;  %10954 = vmatprep.subr.mxu1 %v17559_v51 }
 0x33d   :  { %10965 = vmatprep.subr.mxu0 %v17611_v10  ;;  %10955 = vmatpush3.msra.mxu1 %v17561_v38 }
 0x33e   :  { %10966 = vmatpush3.msra.mxu0 %v17612_v55  ;;  %10956 = vmatprep.subr.mxu1 %v17563_v14 }
 0x33f   :  { %10967 = vmatprep.subr.mxu0 %v17613_v13  ;;  %10957 = vmatpush3.msra.mxu1 %v17565_v59 }
 0x340   :  { %10968 = vmatpush3.msra.mxu0 %v17614_v24  ;;  %6972 = vmatmul.mubr.f32.vlgmr.msra.gmra.mxu1 %v6491_v28  ;;  %v17620_v28 = vld [vmem:[#allocation444_spill] sm:$0xff] }
 0x341   :  { %10969 = vmatprep.subr.mxu0 %v17615_v8  ;;  %10996 = vmatprep.subr.mxu1 %v17511_v33  ;;  %v17621_v33 = vld [vmem:[#allocation452_spill] sm:$0xff] }
 0x342   :  { %10970 = vmatpush3.msra.mxu0 %v17616_v19  ;;  %10997 = vmatpush3.msra.mxu1 %v17512_v57  ;;  %v17623_v57 = vld [vmem:[#allocation457_spill] sm:$0xff] }
 0x343   :  { %7242 = vmatprep.mubr.f32.mxu1 %v14864_v32  ;;  %10971 = vmatprep.subr.mxu0 %v17617_v15  ;;  %v17622_v32 = vld [vmem:[#allocation454_spill] sm:$0xff] }
 0x344   :  { %10998 = vmatprep.subr.mxu1 %v17513_v6  ;;  %10972 = vmatpush3.msra.mxu0 %v17618_v54  ;;  %v17624_v6 = vld [vmem:[#allocation460_spill] sm:$0xff] }
 0x345   :  { %10999 = vmatpush3.msra.mxu1 %v17514_v20  ;;  %10973 = vmatprep.subr.mxu0 %v17619_v1  ;;  %v17625_v20 = vld [vmem:[#allocation470_spill] sm:$0xff] }
 0x346   :  { %11000 = vmatprep.subr.mxu1 %v17515_v60  ;;  %10974 = vmatpush3.msra.mxu0 %v17620_v28  ;;  %v17626_v60 = vld [vmem:[#allocation474_spill] sm:$0xff] }
 0x347   :  { %11001 = vmatpush3.msra.mxu1 %v17516_v2  ;;  %10975 = vmatprep.subr.mxu0 %v17621_v33  ;;  %v17627_v2 = vld [vmem:[#allocation478_spill] sm:$0xff] }
 0x348   :  { %11002 = vmatprep.subr.mxu1 %v17517_v21  ;;  %10976 = vmatpush3.msra.mxu0 %v17622_v32  ;;  %v17628_v21 = vld [vmem:[#allocation483_spill] sm:$0xff] }
 0x349   :  { %11003 = vmatpush3.msra.mxu1 %v17518_v48  ;;  %10977 = vmatprep.subr.mxu0 %v17623_v57  ;;  %v17629_v48 = vld [vmem:[#allocation486_spill] sm:$0xff] }
 0x34a   :  { %11004 = vmatprep.subr.mxu1 %v17519_v52  ;;  %10978 = vmatpush3.msra.mxu0 %v17624_v6  ;;  %v17630_v52 = vld [vmem:[#allocation491_spill] sm:$0xff] }
 0x34b   :  { %11005 = vmatpush3.msra.mxu1 %v17521_v56  ;;  %10979 = vmatprep.subr.mxu0 %v17625_v20  ;;  %v17631_v56 = vld [vmem:[#allocation494_spill] sm:$0xff] }
 0x34c   :  { %11006 = vmatprep.subr.mxu1 %v17523_v50  ;;  %10980 = vmatpush3.msra.mxu0 %v17626_v60  ;;  %v17632_v50 = vld [vmem:[#allocation497_spill] sm:$0xff] }
 0x34d   :  { %11007 = vmatpush3.msra.mxu1 %v17525_v43  ;;  %10981 = vmatprep.subr.mxu0 %v17627_v2  ;;  %v17633_v43 = vld [vmem:[#allocation500_spill] sm:$0xff] }
 0x34e   :  { %11008 = vmatprep.subr.mxu1 %v17527_v35  ;;  %10982 = vmatpush3.msra.mxu0 %v17628_v21  ;;  %v17634_v35 = vld [vmem:[#allocation502_spill] sm:$0xff] }
 0x34f   :  { %11009 = vmatpush3.msra.mxu1 %v17529_v9  ;;  %10983 = vmatprep.subr.mxu0 %v17629_v48  ;;  %v17635_v9 = vld [vmem:[#allocation505_spill] sm:$0xff] }
 0x350   :  { %11010 = vmatprep.subr.mxu1 %v17531_v0  ;;  %10984 = vmatpush3.msra.mxu0 %v17630_v52  ;;  %v17636_v0 = vld [vmem:[#allocation507_spill] sm:$0xff] }
 0x351   :  { %11011 = vmatpush3.msra.mxu1 %v17533_v31  ;;  %10985 = vmatprep.subr.mxu0 %v17631_v56  ;;  %v17637_v31 = vld [vmem:[#allocation508_spill] sm:$0xff] }
 0x352   :  { %11012 = vmatprep.subr.mxu1 %v17535_v46  ;;  %10986 = vmatpush3.msra.mxu0 %v17632_v50  ;;  %v17638_v46 = vld [vmem:[#allocation510_spill] sm:$0xff] }
 0x353   :  { %11013 = vmatpush3.msra.mxu1 %v17537_v45  ;;  %10987 = vmatprep.subr.mxu0 %v17633_v43  ;;  %v10223_v45 = vpop.f32.mrf.mxu0 }
 0x354   :  { %11014 = vmatprep.subr.mxu1 %v17539_v62  ;;  %10988 = vmatpush3.msra.mxu0 %v17634_v35 }
 0x355   :  { %11015 = vmatpush3.msra.mxu1 %v17541_v44  ;;  %10989 = vmatprep.subr.mxu0 %v17635_v9  ;;  %v10224_v62 = vpop.f32.mrf.mxu0  ;;  %v10258_v44 = vpop.f32.mrf.mxu1 }
 0x356   :  { %11016 = vmatprep.subr.mxu1 %v17543_v37  ;;  %10990 = vmatpush3.msra.mxu0 %v17636_v0  ;;  %v10225_v41 = vadd.f32 %v10224_v62, %v10223_v45 }
 0x357   :  { %11017 = vmatpush3.msra.mxu1 %v17545_v29  ;;  %10991 = vmatprep.subr.mxu0 %v17637_v31  ;;  %v10293_v37 = vpop.f32.mrf.mxu0  ;;  %v10259_v29 = vpop.f32.mrf.mxu1 }
 0x358   :  { %11018 = vmatprep.subr.mxu1 %v17547_v11  ;;  %10992 = vmatpush3.msra.mxu0 %v17638_v46  ;;  %v10260_v23 = vadd.f32 %v10259_v29, %v10258_v44 }
 0x359   :  { %11019 = vmatpush3.msra.mxu1 %v17549_v4  ;;  %7140 = vmatmul.mubr.f32.vlgmr.msra.gmra.mxu0 %v14933_v7  ;;  %v10294_v11 = vpop.f32.mrf.mxu0  ;;  %v10328_v4 = vpop.f32.mrf.mxu1 }
 0x35a   :  { %11020 = vmatprep.subr.mxu1 %v17551_v58  ;;  %v10295_v47 = vadd.f32 %v10294_v11, %v10293_v37  ;;  %v4142_v63 = vadd.f32 %v10260_v23, %v10225_v41 }
 0x35b   :  { %11021 = vmatpush3.msra.mxu1 %v17553_v34  ;;  %v10363_v58 = vpop.f32.mrf.mxu0  ;;  %v10329_v34 = vpop.f32.mrf.mxu1 }
 0x35c   :  { %11022 = vmatprep.subr.mxu1 %v17555_v12  ;;  %v10330_v39 = vadd.f32 %v10329_v34, %v10328_v4  ;;  %v4280_v26 = vadd.f32 %v10295_v47, %v4142_v63 }
 0x35d   :  { %11023 = vmatpush3.msra.mxu1 %v17557_v5  ;;  %v10364_v12 = vpop.f32.mrf.mxu0  ;;  %v10398_v5 = vpop.f32.mrf.mxu1 }
 0x35e   :  { %11024 = vmatprep.subr.mxu1 %v17559_v51  ;;  %v10365_v36 = vadd.f32 %v10364_v12, %v10363_v58  ;;  %v4388_v53 = vadd.f32 %v10330_v39, %v4280_v26  ;;  %v3669_v12 = vpop.xlane.xlu0 %3668 }
 0x35f   :  { %11025 = vmatpush3.msra.mxu1 %v17561_v38  ;;  %v10433_v51 = vpop.f32.mrf.mxu0  ;;  %v10399_v3 = vpop.f32.mrf.mxu1 }
 0x360   :  { %11026 = vmatprep.subr.mxu1 %v17563_v14  ;;  %v10400_v27 = vadd.f32 %v10399_v3, %v10398_v5  ;;  %v4556_v13 = vadd.f32 %v10365_v36, %v4388_v53 }
 0x361   :  { %11027 = vmatpush3.msra.mxu1 %v17565_v59  ;;  %v10434_v38 = vpop.f32.mrf.mxu0  ;;  %v10468_v40 = vpop.f32.mrf.mxu1 }
 0x362   :  { %7244 = vmatmul.mubr.f32.vlgmr.msra.gmra.mxu1 %v14933_v7  ;;  %v10435_v24 = vadd.f32 %v10434_v38, %v10433_v51  ;;  %v4660_v19 = vadd.f32 %v10400_v27, %v4556_v13 }
 0x363   :  { %v10503_v14 = vpop.f32.mrf.mxu0  ;;  %v10469_v16 = vpop.f32.mrf.mxu1 }
 0x364   :  { %v10470_v15 = vadd.f32 %v10469_v16, %v10468_v40  ;;  %v4772_v1 = vadd.f32 %v10435_v24, %v4660_v19 }
 0x365   :  { %v10504_v59 = vpop.f32.mrf.mxu0  ;;  %v10538_v30 = vpop.f32.mrf.mxu1 }
 0x366   :  { %v10505_v28 = vadd.f32 %v10504_v59, %v10503_v14  ;;  %v5004_v57 = vadd.f32 %v10470_v15, %v4772_v1  ;;  %v3670_v14 = vsub.f32 %v14690_v22, %v3669_v12  ;;  %v11075_v12 = vmov 0.0  }
 0x367   :  { %v10573_v7 = vpop.f32.mrf.mxu0  ;;  %v10539_v17 = vpop.f32.mrf.mxu1  ;;  %7455 = vmatprep.mubr.f32.mxu1 %v11075_v12  ;;  %7359 = vmatprep.mubr.f32.mxu0 %v11075_v12 }
 0x368   :  { %v10540_v6 = vadd.f32 %v10539_v17, %v10538_v30  ;;  %v5142_v60 = vadd.f32 %v10505_v28, %v5004_v57  ;;  %v3671_v41 = vmul.f32 1.442695, %v3670_v14 }
 0x369   :  { %v10574_v61 = vpop.f32.mrf.mxu0  ;;  %v10608_v25 = vpop.f32.mrf.mxu1 }
 0x36a   :  { %v10575_v2 = vadd.f32 %v10574_v61, %v10573_v7  ;;  %v5250_v48 = vadd.f32 %v10540_v6, %v5142_v60  ;;  %11039 = vpow2.f32 %v3671_v41  ;;  %v157_v6 = vld [vmem:[%s15514_s2 + $0x40] sm:$0x3] }
 0x36b   :  { %v10609_v18 = vpop.f32.mrf.mxu1  ;;  %v7268_v60 = vsel %vm3726_vm0, %v157_v6, 0 }
 0x36c   :  { %v10610_v52 = vadd.f32 %v10609_v18, %v10608_v25  ;;  %v5418_v43 = vadd.f32 %v10575_v2, %v5250_v48  ;;  %v15145_v2 = vand.u32 4294901760, %v7268_v60 }
 0x36e   :  { %v5522_v0 = vadd.f32 %v10610_v52, %v5418_v43 }
 0x36f   :  { %v10643_v49 = vpop.f32.mrf.mxu0 }
 0x371   :  { %v10644_v10 = vpop.f32.mrf.mxu0 }
 0x372   :  { %v10645_v35 = vadd.f32 %v10644_v10, %v10643_v49 }
 0x374   :  { %v5634_v45 = vadd.f32 %v10645_v35, %v5522_v0 }
 0x377   :  { %v15130_v19 = vpop.eup %11039 }
 0x378   :  { %v10678_v55 = vpop.f32.mrf.mxu1  ;;  %v3673_v15 = vsel %vm3666_vm1, %v15130_v19, 0.0 }
 0x37a   :  { %v10679_v54 = vpop.f32.mrf.mxu1 }
 0x37b   :  { %v10680_v31 = vadd.f32 %v10679_v54, %v10678_v55 }
 0x37d   :  { %v5866_v29 = vadd.f32 %v10680_v31, %v5634_v45 }
 0x391   :  { %v10713_v8 = vpop.f32.mrf.mxu0 }
 0x393   :  { %v10714_v33 = vpop.f32.mrf.mxu0 }
 0x394   :  { %v10715_v62 = vadd.f32 %v10714_v33, %v10713_v8 }
 0x396   :  { %v6004_v58 = vadd.f32 %v10715_v62, %v5866_v29 }
 0x39a   :  { %v10748_v32 = vpop.f32.mrf.mxu1 }
 0x39c   :  { %v10749_v21 = vpop.f32.mrf.mxu1 }
 0x39d   :  { %v10750_v11 = vadd.f32 %v10749_v21, %v10748_v32  ;;  %v150_v21 = vld [vmem:[%s15514_s2 + $0x8] sm:$0xff] }
 0x39e   :  { %v15153_v52 = vand.u32 4294901760, %v150_v21 }
 0x39f   :  { %v6112_v51 = vadd.f32 %v10750_v11, %v6004_v58 }
 0x3b3   :  { %v10783_v20 = vpop.f32.mrf.mxu0 }
 0x3b5   :  { %v10784_v56 = vpop.f32.mrf.mxu0 }
 0x3b6   :  { %v10785_v34 = vadd.f32 %v10784_v56, %v10783_v20  ;;  %v149_v56 = vld [vmem:[%s15514_s2] sm:$0xff] }
 0x3b7   :  { %v15162_v43 = vand.u32 4294901760, %v149_v56 }
 0x3b8   :  { %v6280_v16 = vadd.f32 %v10785_v34, %v6112_v51 }
 0x3b9   :  { %v15172_v31 = vsub.f32 %v149_v56, %v15162_v43 }
 0x3bc   :  { %v10818_v50 = vpop.f32.mrf.mxu1 }
 0x3be   :  { %v10819_v46 = vpop.f32.mrf.mxu1 }
 0x3bf   :  { %v10820_v3 = vadd.f32 %v10819_v46, %v10818_v50  ;;  %v15160_v50 = vsub.f32 %v7268_v60, %v15145_v2 }
 0x3c1   :  { %v6384_v7 = vadd.f32 %v10820_v3, %v6280_v16  ;;  %v7407_v0 = vand.u32 4294901760, %v15160_v50  ;;  %v160_v3 = vld [vmem:[%s15514_s2 + $0x58] sm:$0x3] }
 0x3c2   :  { %v152_v16 = vld [vmem:[%s15514_s2 + $0x18] sm:$0xff] }
 0x3c3   :  { %v7408_v62 = vsub.f32 %v15160_v50, %v7407_v0 }
 0x3c5   :  { %v7409_v11 = vand.u32 4294901760, %v7408_v62 }
 0x3d5   :  { %v10853_v9 = vpop.f32.mrf.mxu0 }
 0x3d7   :  { %v10854_v44 = vpop.f32.mrf.mxu0 }
 0x3d8   :  { %v10855_v59 = vadd.f32 %v10854_v44, %v10853_v9  ;;  %v15167_v9 = vsub.f32 %v150_v21, %v15153_v52  ;;  %v7419_v44 = vand.u32 4294901760, %v15172_v31  ;;  %v154_v21 = vld [vmem:[%s15514_s2 + $0x28] sm:$0xff] }
 0x3da   :  { %v6496_v47 = vadd.f32 %v10855_v59, %v6384_v7  ;;  %v7413_v45 = vand.u32 4294901760, %v15167_v9 }
 0x3dc   :  { %v7414_v29 = vsub.f32 %v15167_v9, %v7413_v45 }
 0x3de   :  { %v10888_v37 = vpop.f32.mrf.mxu1  ;;  %v7415_v58 = vand.u32 4294901760, %v7414_v29 }
 0x3e0   :  { %v10889_v5 = vpop.f32.mrf.mxu1 }
 0x3e1   :  { %v10890_v23 = vadd.f32 %v10889_v5, %v10888_v37 }
 0x3e3   :  { %v6728_v63 = vadd.f32 %v10890_v23, %v6496_v47  ;;  %v151_v23 = vld [vmem:[%s15514_s2 + $0x10] sm:$0xff] }
 0x3f7   :  { %v10923_v4 = vpop.f32.mrf.mxu0 }
 0x3f9   :  { %v10924_v38 = vpop.f32.mrf.mxu0 }
 0x3fa   :  { %v10925_v61 = vadd.f32 %v10924_v38, %v10923_v4  ;;  %v7420_v4 = vsub.f32 %v15172_v31, %v7419_v44  ;;  %v159_v38 = vld [vmem:[%s15514_s2 + $0x50] sm:$0x3] }
 0x3fb   :  { %v7274_v14 = vsel %vm3726_vm0, %v159_v38, 0 }
 0x3fc   :  { %v6866_v49 = vadd.f32 %v10925_v61, %v6728_v63  ;;  %v7421_v34 = vand.u32 4294901760, %v7420_v4  ;;  %v15206_v7 = vand.u32 4294901760, %v7274_v14  ;;  %v15217_v63 = vand.u32 4294901760, %v151_v23 }
 0x400   :  { %v10958_v40 = vpop.f32.mrf.mxu1 }
 0x402   :  { %v10959_v17 = vpop.f32.mrf.mxu1 }
 0x403   :  { %v10960_v39 = vadd.f32 %v10959_v17, %v10958_v40  ;;  %v7277_v40 = vsel %vm3726_vm0, %v160_v3, 0  ;;  %v15211_v17 = vand.u32 4294901760, %v152_v16 }
 0x404   :  { %v15204_v59 = vand.u32 4294901760, %v7277_v40 }
 0x405   :  { %v6974_v18 = vadd.f32 %v10960_v39, %v6866_v49  ;;  %v15220_v39 = vsub.f32 %v7274_v14, %v15206_v7  ;;  %v156_v14 = vld [vmem:[%s15514_s2 + $0x38] sm:$0xff] }
 0x419   :  { %v10993_v30 = vpop.f32.mrf.mxu0 }
 0x41b   :  { %v10994_v25 = vpop.f32.mrf.mxu0 }
 0x41c   :  { %v10995_v26 = vadd.f32 %v10994_v25, %v10993_v30  ;;  %v15215_v25 = vsub.f32 %v7277_v40, %v15204_v59 }
 0x41e   :  { %v7142_v27 = vadd.f32 %v10995_v26, %v6974_v18  ;;  %v15223_v26 = vsub.f32 %v152_v16, %v15211_v17  ;;  %v7892_v18 = vand.u32 4294901760, %v15215_v25 }
 0x422   :  { %v11028_v36 = vpop.f32.mrf.mxu1 }
 0x424   :  { %v11029_v53 = vpop.f32.mrf.mxu1 }
 0x425   :  { %v11030_v10 = vadd.f32 %v11029_v53, %v11028_v36  ;;  %v15227_v53 = vsub.f32 %v151_v23, %v15217_v63 }
 0x427   :  { %v7246_v55 = vadd.f32 %v11030_v10, %v7142_v27  ;;  %v7898_v10 = vand.u32 4294901760, %v15220_v39 }
 0x429   :  { %v7249_v13 = vmul.f32 0.1, %v7246_v55  ;;  %v7904_v55 = vand.u32 4294901760, %v15223_v26 }
 0x42b   :  { %v7250_v24 = vadd.f32 %v7249_v13, %v14690_v22  ;;  %v158_v22 = vld [vmem:[%s15514_s2 + $0x48] sm:$0x3] }
 0x42c   :  { %v7271_v57 = vsel %vm3726_vm0, %v158_v22, 0 }
 0x42d   :  { %v7251_v8 = vsel %vm3666_vm1, %v7250_v24, -inf  ;;  %v15142_v20 = vand.u32 4294901760, %v7271_v57 }
 0x42e   :  { %7252 = vmax.xlane.f32.xlu1 %v7251_v8  ;;  %v7910_v8 = vand.u32 4294901760, %v15227_v53 }
 0x42f   :  { %v15151_v48 = vsub.f32 %v7271_v57, %v15142_v20  ;;  %7320 = vmatprep.subr.mxu0 %v15142_v20 }
 0x430   :  { %7322 = vmatpush1.msra.mxu0 %v15145_v2  ;;  %v7911_v57 = vsub.f32 %v15227_v53, %v7910_v8 }
 0x431   :  { %v7401_v35 = vand.u32 4294901760, %v15151_v48  ;;  %7324 = vmatprep.subr.mxu0 %v15153_v52 }
 0x432   :  { %3674 = vadd.xlane.f32.xlu1 %v3673_v15  ;;  %7326 = vmatpush1.msra.mxu0 %v15162_v43  ;;  %v7912_v62 = vand.u32 4294901760, %v7911_v57 }
 0x433   :  { %v7402_v46 = vsub.f32 %v15151_v48, %v7401_v35  ;;  %7493 = vmatprep.subr.mxu0 %v15151_v48 }
 0x435   :  { %v7403_v37 = vand.u32 4294901760, %v7402_v46 }
 0x437   :  { %7404 = vmatprep.subr.mxu1 %v7403_v37  ;;  %v15288_v37 = vand.u32 4294901760, %v154_v21 }
 0x438   :  { %7410 = vmatpush1.msra.mxu1 %v7409_v11 }
 0x439   :  { %7416 = vmatprep.subr.mxu1 %v7415_v58  ;;  %v15305_v4 = vsub.f32 %v154_v21, %v15288_v37 }
 0x43a   :  { %7422 = vmatpush1.msra.mxu1 %v7421_v34 }
 0x43b   :  { %7573 = vmatprep.subr.mxu1 %v15142_v20 }
 0x4b7   :  { %v7253_v54 = vpop.xlane.xlu1 %7252 }
 0x4b8   :  { %v7254_v1 = vsub.f32 %v7250_v24, %v7253_v54  ;;  %v7893_v24 = vsub.f32 %v15215_v25, %v7892_v18  ;;  %v7899_v54 = vsub.f32 %v15220_v39, %v7898_v10 }
 0x4ba   :  { %v7255_v28 = vmul.f32 1.442695, %v7254_v1  ;;  %v161_v1 = vld [vmem:[%s15514_s2 + $0x60] sm:$0x3]  ;;  %v7894_v22 = vand.u32 4294901760, %v7893_v24 }
 0x4bb   :  { %v3675_v5 = vpop.xlane.xlu1 %3674  ;;  %v7280_v6 = vsel %vm3726_vm0, %v161_v1, 0 }
 0x4bc   :  { %11041 = vpow2.f32 %v7255_v28  ;;  %v7905_v28 = vsub.f32 %v15223_v26, %v7904_v55  ;;  %v15282_v46 = vand.u32 4294901760, %v7280_v6 }
 0x4bd   :  { %11043 = vrcp.f32 %v3675_v5 }
 0x4be   :  { %v15301_v11 = vsub.f32 %v7280_v6, %v15282_v46 }
 0x4c0   :  { %v8389_v58 = vand.u32 4294901760, %v15301_v11 }
 0x4c9   :  { %v11042_v33 = vpop.eup %11041 }
 0x4ca   :  { %v7257_v32 = vsel %vm3666_vm1, %v11042_v33, 0.0  ;;  %v11044_v30 = vpop.eup %11043 }
 0x4cb   :  { %7258 = vadd.xlane.f32.xlu0 %v7257_v32  ;;  %v3677_v47 = vmul.f32 %v11044_v30, %v15130_v19  ;;  %v162_v19 = vld [vmem:[%s15514_s2 + $0x68] sm:$0x3] }
 0x4cc   :  { %v7283_v32 = vsel %vm3726_vm0, %v162_v19, 0 }
 0x4cd   :  { %v15278_v56 = vand.u32 4294901760, %v7283_v32 }
 0x554   :  { %v7259_v51 = vpop.xlane.xlu0 %7258 }
 0x555   :  { %11045 = vrcp.f32 %v7259_v51 }
 0x562   :  { %v11046_v41 = vpop.eup %11045 }
 0x563   :  { %v7261_v61 = vmul.f32 %v11046_v41, %v11042_v33 }
 0x565   :  { %v7262_v49 = vsub.f32 %v7261_v61, %v3677_v47 }
 0x567   :  { %v7265_v36 = vsel %vm7263_vm2, %v7262_v49, 0 }
 0x568   :  { %v15229_v27 = vand.u32 4294901760, %v7265_v36 }
 0x56a   :  { %v15234_v13 = vsub.f32 %v7265_v36, %v15229_v27  ;;  %7457 = vmatmul.mubr.f32.vlgmr.msra.gmra.mxu1 %v15229_v27 }
 0x56b   :  { %7575 = vmatpush1.msra.mxu1 %v15145_v2  ;;  %7612 = vmatprep.mubr.f32.mxu1 %v11075_v12 }
 0x56c   :  { %7577 = vmatprep.subr.mxu1 %v15153_v52  ;;  %v15248_v15 = vand.u32 4294901760, %v15234_v13 }
 0x56d   :  { %7579 = vmatpush1.msra.mxu1 %v15162_v43 }
 0x56e   :  { %7616 = vmatmul.mubr.f32.vlgmr.msra.gmra.mxu1 %v15248_v15  ;;  %7735 = vmatprep.subr.mxu1 %v15142_v20  ;;  %v7363_v33 = vsub.f32 %v15234_v13, %v15248_v15  ;;  %v7900_v20 = vand.u32 4294901760, %v7899_v54 }
 0x56f   :  { %7737 = vmatpush1.msra.mxu1 %v15145_v2  ;;  %7774 = vmatprep.mubr.f32.mxu1 %v11075_v12  ;;  %v7906_v2 = vand.u32 4294901760, %v7905_v28 }
 0x570   :  { %7739 = vmatprep.subr.mxu1 %v15153_v52  ;;  %v15272_v60 = vand.u32 4294901760, %v7363_v33  ;;  %v153_v52 = vld [vmem:[%s15514_s2 + $0x20] sm:$0xff] }
 0x571   :  { %7741 = vmatpush1.msra.mxu1 %v15162_v43  ;;  %v15293_v43 = vsub.f32 %v7283_v32, %v15278_v56  ;;  %v15295_v29 = vand.u32 4294901760, %v153_v52 }
 0x572   :  { %7365 = vmatmul.mubr.f32.vlgmr.msra.gmra.mxu0 %v15272_v60  ;;  %7776 = vmatmul.mubr.f32.vlgmr.msra.gmra.mxu1 %v15229_v27 }
 0x573   :  { %7496 = vmatpush1.msra.mxu0 %v15160_v50  ;;  %7895 = vmatprep.subr.mxu1 %v7894_v22  ;;  %v8383_v48 = vand.u32 4294901760, %v15293_v43  ;;  %v8395_v50 = vand.u32 4294901760, %v15305_v4 }
 0x574   :  { %7499 = vmatprep.subr.mxu0 %v15167_v9  ;;  %7901 = vmatpush1.msra.mxu1 %v7900_v20 }
 0x575   :  { %7502 = vmatpush1.msra.mxu0 %v15172_v31  ;;  %7907 = vmatprep.subr.mxu1 %v7906_v2  ;;  %v8384_v9 = vsub.f32 %v15293_v43, %v8383_v48  ;;  %v164_v31 = vld [vmem:[%s15514_s2 + $0x78] sm:$0x3]  ;;  %v8396_v34 = vsub.f32 %v15305_v4, %v8395_v50 }
 0x576   :  { %7535 = vmatprep.mubr.f32.mxu0 %v11075_v12  ;;  %7653 = vmatprep.subr.mxu0 %v7401_v35  ;;  %v15314_v35 = vsub.f32 %v153_v52, %v15295_v29  ;;  %v7289_v5 = vsel %vm3726_vm0, %v164_v31, 0 }
 0x577   :  { %7913 = vmatpush1.msra.mxu1 %v7912_v62  ;;  %7946 = vmatprep.mubr.f32.mxu1 %v11075_v12  ;;  %v8385_v51 = vand.u32 4294901760, %v8384_v9  ;;  %v8397_v16 = vand.u32 4294901760, %v8396_v34 }
 0x578   :  { %7538 = vmatmul.mubr.f32.vlgmr.msra.gmra.mxu0 %v15234_v13  ;;  %7948 = vmatmul.mubr.f32.vlgmr.msra.gmra.mxu1 %v15229_v27 }
 0x579   :  { %7657 = vmatpush1.msra.mxu0 %v7407_v0  ;;  %8064 = vmatprep.subr.mxu1 %v15204_v59  ;;  %v8401_v0 = vand.u32 4294901760, %v15314_v35 }
 0x57a   :  { %7661 = vmatprep.subr.mxu0 %v7413_v45  ;;  %8066 = vmatpush1.msra.mxu1 %v15206_v7  ;;  %v8390_v45 = vsub.f32 %v15301_v11, %v8389_v58 }
 0x57b   :  { %7665 = vmatpush1.msra.mxu0 %v7419_v44  ;;  %8068 = vmatprep.subr.mxu1 %v15211_v17  ;;  %v163_v44 = vld [vmem:[%s15514_s2 + $0x70] sm:$0x3]  ;;  %v8402_v3 = vsub.f32 %v15314_v35, %v8401_v0 }
 0x57c   :  { %7698 = vmatprep.mubr.f32.mxu0 %v11075_v12  ;;  %7811 = vmatprep.subr.mxu0 %v15204_v59  ;;  %v7286_v38 = vsel %vm3726_vm0, %v163_v44, 0  ;;  %v8391_v40 = vand.u32 4294901760, %v8390_v45 }
 0x57d   :  { %8070 = vmatpush1.msra.mxu1 %v15217_v63  ;;  %8103 = vmatprep.mubr.f32.mxu1 %v11075_v12  ;;  %v15368_v30 = vand.u32 4294901760, %v7286_v38  ;;  %v8403_v23 = vand.u32 4294901760, %v8402_v3 }
 0x57e   :  { %7700 = vmatmul.mubr.f32.vlgmr.msra.gmra.mxu0 %v15229_v27  ;;  %8107 = vmatmul.mubr.f32.vlgmr.msra.gmra.mxu1 %v15248_v15 }
 0x57f   :  { %7813 = vmatpush1.msra.mxu0 %v15206_v7  ;;  %8226 = vmatprep.subr.mxu1 %v15204_v59  ;;  %v15364_v59 = vand.u32 4294901760, %v7289_v5  ;;  %v15387_v61 = vsub.f32 %v7286_v38, %v15368_v30 }
 0x580   :  { %7815 = vmatprep.subr.mxu0 %v15211_v17  ;;  %8228 = vmatpush1.msra.mxu1 %v15206_v7  ;;  %v155_v7 = vld [vmem:[%s15514_s2 + $0x30] sm:$0xff]  ;;  %s11076_s2 = smov [#allocation2]  }
 0x581   :  { %7817 = vmatpush1.msra.mxu0 %v15217_v63  ;;  %8230 = vmatprep.subr.mxu1 %v15211_v17  ;;  %v15374_v17 = vand.u32 4294901760, %v156_v14  ;;  %v15379_v41 = vsub.f32 %v7289_v5, %v15364_v59  ;;  %v15381_v47 = vand.u32 4294901760, %v155_v7  ;;  %v8880_v36 = vand.u32 4294901760, %v15387_v61  ;;  %s9342_s9 = sshll.u32 %s11076_s2, 4  ;;  %s9343_s9 = int_to_ptr.vmem [resolvable:$true] %s9342_s9 }
 0x582   :  { %7850 = vmatprep.mubr.f32.mxu0 %v11075_v12  ;;  %7984 = vmatprep.subr.mxu0 %v15215_v25  ;;  %s11051_s10 = scalar_lea.vmem %s9343_s9, 256  ;;  %p11056_p1 = scmp.lt.s32.totalorder %s9343_s9, %s9343_s9 }
 0x583   :  { %8232 = vmatpush1.msra.mxu1 %v15217_v63  ;;  %8265 = vmatprep.mubr.f32.mxu1 %v11075_v12  ;;  %v15391_v63 = vsub.f32 %v156_v14, %v15374_v17  ;;  %v8874_v25 = vand.u32 4294901760, %v15379_v41  ;;  %v15400_v49 = vsub.f32 %v155_v7, %v15381_v47  ;;  %p11052_p0 = scmp.ne.s32.totalorder %s9343_s9, %s11051_s10  ;;  %p11057_p2 = scmp.lt.s32.totalorder %s11051_s10, %s11051_s10 }
 0x584   :  { %7856 = vmatmul.mubr.f32.vlgmr.msra.gmra.mxu0 %v15272_v60  ;;  %8267 = vmatmul.mubr.f32.vlgmr.msra.gmra.mxu1 %v15229_v27 }
 0x585   :  { %7987 = vmatpush1.msra.mxu0 %v15220_v39  ;;  %8386 = vmatprep.subr.mxu1 %v8385_v51  ;;  %v8886_v39 = vand.u32 4294901760, %v15391_v63  ;;  %p11058_p3 = por %p11057_p2, %p11056_p1 }
 0x586   :  { %7990 = vmatprep.subr.mxu0 %v15223_v26  ;;  %8392 = vmatpush1.msra.mxu1 %v8391_v40  ;;  %v8875_v26 = vsub.f32 %v15379_v41, %v8874_v25 }
 0x587   :  { %7993 = vmatpush1.msra.mxu0 %v15227_v53  ;;  %8398 = vmatprep.subr.mxu1 %v8397_v16  ;;  %v8881_v53 = vsub.f32 %v15387_v61, %v8880_v36  ;;  %p11059_p4 = pnand %p11058_p3, %p11052_p0 }
 0x588   :  { %8026 = vmatprep.mubr.f32.mxu0 %v11075_v12  ;;  %8144 = vmatprep.subr.mxu0 %v7892_v18  ;;  %v8892_v18 = vand.u32 4294901760, %v15400_v49 }
 0x589   :  { %8404 = vmatpush1.msra.mxu1 %v8403_v23  ;;  %8437 = vmatprep.mubr.f32.mxu1 %v11075_v12 }
 0x58a   :  { %8029 = vmatmul.mubr.f32.vlgmr.msra.gmra.mxu0 %v15234_v13  ;;  %8439 = vmatmul.mubr.f32.vlgmr.msra.gmra.mxu1 %v15229_v27  ;;  %v8893_v24 = vsub.f32 %v15400_v49, %v8892_v18 }
 0x58b   :  { %8148 = vmatpush1.msra.mxu0 %v7898_v10  ;;  %8555 = vmatprep.subr.mxu1 %v15278_v56  ;;  %v8887_v10 = vsub.f32 %v15391_v63, %v8886_v39 }
 0x58c   :  { %8152 = vmatprep.subr.mxu0 %v7904_v55  ;;  %8557 = vmatpush1.msra.mxu1 %v15282_v46  ;;  %v8876_v55 = vand.u32 4294901760, %v8875_v26  ;;  %v8894_v54 = vand.u32 4294901760, %v8893_v24 }
 0x58d   :  { %8156 = vmatpush1.msra.mxu0 %v7910_v8  ;;  %8559 = vmatprep.subr.mxu1 %v15288_v37  ;;  %v8882_v8 = vand.u32 4294901760, %v8881_v53  ;;  %v8888_v19 = vand.u32 4294901760, %v8887_v10 }
 0x58e   :  { %8189 = vmatprep.mubr.f32.mxu0 %v11075_v12  ;;  %8302 = vmatprep.subr.mxu0 %v15278_v56 }
 0x58f   :  { %8561 = vmatpush1.msra.mxu1 %v15295_v29  ;;  %8594 = vmatprep.mubr.f32.mxu1 %v11075_v12 }
 0x590   :  { %8191 = vmatmul.mubr.f32.vlgmr.msra.gmra.mxu0 %v15229_v27  ;;  %8598 = vmatmul.mubr.f32.vlgmr.msra.gmra.mxu1 %v15248_v15 }
 0x591   :  { %8304 = vmatpush1.msra.mxu0 %v15282_v46  ;;  %8717 = vmatprep.subr.mxu1 %v15278_v56 }
 0x592   :  { %8306 = vmatprep.subr.mxu0 %v15288_v37  ;;  %8719 = vmatpush1.msra.mxu1 %v15282_v46 }
 0x593   :  { %8308 = vmatpush1.msra.mxu0 %v15295_v29  ;;  %8721 = vmatprep.subr.mxu1 %v15288_v37 }
 0x594   :  { %8341 = vmatprep.mubr.f32.mxu0 %v11075_v12  ;;  %8475 = vmatprep.subr.mxu0 %v15293_v43 }
 0x595   :  { %8723 = vmatpush1.msra.mxu1 %v15295_v29  ;;  %8756 = vmatprep.mubr.f32.mxu1 %v11075_v12 }
 0x596   :  { %8347 = vmatmul.mubr.f32.vlgmr.msra.gmra.mxu0 %v15272_v60  ;;  %8758 = vmatmul.mubr.f32.vlgmr.msra.gmra.mxu1 %v15229_v27 }
 0x597   :  { %8478 = vmatpush1.msra.mxu0 %v15301_v11  ;;  %8877 = vmatprep.subr.mxu1 %v8876_v55 }
 0x598   :  { %8481 = vmatprep.subr.mxu0 %v15305_v4  ;;  %8883 = vmatpush1.msra.mxu1 %v8882_v8 }
 0x599   :  { %8484 = vmatpush1.msra.mxu0 %v15314_v35  ;;  %8889 = vmatprep.subr.mxu1 %v8888_v19 }
 0x59a   :  { %8517 = vmatprep.mubr.f32.mxu0 %v11075_v12  ;;  %8635 = vmatprep.subr.mxu0 %v8383_v48 }
 0x59b   :  { %8895 = vmatpush1.msra.mxu1 %v8894_v54  ;;  %8928 = vmatprep.mubr.f32.mxu1 %v11075_v12 }
 0x59c   :  { %8520 = vmatmul.mubr.f32.vlgmr.msra.gmra.mxu0 %v15234_v13  ;;  %8930 = vmatmul.mubr.f32.vlgmr.msra.gmra.mxu1 %v15229_v27 }
 0x59d   :  { %8639 = vmatpush1.msra.mxu0 %v8389_v58  ;;  %9046 = vmatprep.subr.mxu1 %v15364_v59 }
 0x59e   :  { %8643 = vmatprep.subr.mxu0 %v8395_v50  ;;  %9048 = vmatpush1.msra.mxu1 %v15368_v30 }
 0x59f   :  { %8647 = vmatpush1.msra.mxu0 %v8401_v0  ;;  %9050 = vmatprep.subr.mxu1 %v15374_v17 }
 0x5a0   :  { %8680 = vmatprep.mubr.f32.mxu0 %v11075_v12  ;;  %8793 = vmatprep.subr.mxu0 %v15364_v59 }
 0x5a1   :  { %9052 = vmatpush1.msra.mxu1 %v15381_v47  ;;  %9085 = vmatprep.mubr.f32.mxu1 %v11075_v12 }
 0x5a2   :  { %8682 = vmatmul.mubr.f32.vlgmr.msra.gmra.mxu0 %v15229_v27  ;;  %9089 = vmatmul.mubr.f32.vlgmr.msra.gmra.mxu1 %v15248_v15 }
 0x5a3   :  { %8795 = vmatpush1.msra.mxu0 %v15368_v30  ;;  %9208 = vmatprep.subr.mxu1 %v15364_v59 }
 0x5a4   :  { %8797 = vmatprep.subr.mxu0 %v15374_v17  ;;  %9210 = vmatpush1.msra.mxu1 %v15368_v30 }
 0x5a5   :  { %8799 = vmatpush1.msra.mxu0 %v15381_v47  ;;  %9212 = vmatprep.subr.mxu1 %v15374_v17 }
 0x5a6   :  { %8832 = vmatprep.mubr.f32.mxu0 %v11075_v12  ;;  %8966 = vmatprep.subr.mxu0 %v15379_v41 }
 0x5a7   :  { %9214 = vmatpush1.msra.mxu1 %v15381_v47  ;;  %9247 = vmatprep.mubr.f32.mxu1 %v11075_v12 }
 0x5a8   :  { %8838 = vmatmul.mubr.f32.vlgmr.msra.gmra.mxu0 %v15272_v60  ;;  %9249 = vmatmul.mubr.f32.vlgmr.msra.gmra.mxu1 %v15229_v27 }
 0x5a9   :  { %8969 = vmatpush1.msra.mxu0 %v15387_v61  ;;  %9008 = vmatprep.mubr.f32.mxu0 %v11075_v12 }
 0x5aa   :  { %8972 = vmatprep.subr.mxu0 %v15391_v63 }
 0x5ab   :  { %8975 = vmatpush1.msra.mxu0 %v15400_v49 }
 0x5ac   :  { %9126 = vmatprep.subr.mxu0 %v8874_v25  ;;  %9011 = vmatmul.mubr.f32.vlgmr.msra.gmra.mxu0 %v15234_v13 }
 0x5ad   :  { %9130 = vmatpush1.msra.mxu0 %v8880_v36  ;;  %9171 = vmatprep.mubr.f32.mxu0 %v11075_v12 }
 0x5ae   :  { %9134 = vmatprep.subr.mxu0 %v8886_v39 }
 0x5af   :  { %9138 = vmatpush1.msra.mxu0 %v8892_v18 }
 0x5b0   :  { %9173 = vmatmul.mubr.f32.vlgmr.msra.gmra.mxu0 %v15229_v27 }
 0x62a   :  { %v7458_v15 = vpop.f32.mrf.mxu1 }
 0x62c   :  { %v7460_v1 = vpop.f32.mrf.mxu1 }
 0x62e   :  { %v7617_v28 = vpop.f32.mrf.mxu1 }
 0x630   :  { %v7619_v33 = vpop.f32.mrf.mxu1 }
 0x632   :  { %v7366_v32 = vpop.f32.mrf.mxu0  ;;  %v7777_v22 = vpop.f32.mrf.mxu1 }
 0x633   :  { %v7459_v50 = vadd.f32 %v7458_v15, %v7366_v32 }
 0x634   :  { %v7368_v13 = vpop.f32.mrf.mxu0  ;;  %v7779_v57 = vpop.f32.mrf.mxu1 }
 0x635   :  { %v7461_v58 = vadd.f32 %v7460_v1, %v7368_v13 }
 0x638   :  { %v7539_v6 = vpop.f32.mrf.mxu0  ;;  %v7949_v60 = vpop.f32.mrf.mxu1 }
 0x639   :  { %v7540_v45 = vadd.f32 %v7539_v6, %v7459_v50 }
 0x63a   :  { %v7541_v20 = vpop.f32.mrf.mxu0  ;;  %v7951_v12 = vpop.f32.mrf.mxu1 }
 0x63b   :  { %v7542_v0 = vadd.f32 %v7541_v20, %v7461_v58  ;;  %v7618_v38 = vadd.f32 %v7617_v28, %v7540_v45 }
 0x63d   :  { %v7620_v51 = vadd.f32 %v7619_v33, %v7542_v0 }
 0x63e   :  { %v7701_v21 = vpop.f32.mrf.mxu0  ;;  %v8108_v2 = vpop.f32.mrf.mxu1 }
 0x63f   :  { %v7702_v23 = vadd.f32 %v7701_v21, %v7618_v38 }
 0x640   :  { %v7703_v56 = vpop.f32.mrf.mxu0  ;;  %v8110_v46 = vpop.f32.mrf.mxu1 }
 0x641   :  { %v7704_v30 = vadd.f32 %v7703_v56, %v7620_v51  ;;  %v7778_v53 = vadd.f32 %v7777_v22, %v7702_v23 }
 0x643   :  { %v15492_v36 = vadd.f32 %v7779_v57, %v7704_v30  ;;  %v9255_v28 = vmul.f32 %v7778_v53, %v7778_v53 }
 0x644   :  { %v7857_v52 = vpop.f32.mrf.mxu0  ;;  %v8268_v62 = vpop.f32.mrf.mxu1 }
 0x645   :  { %v7950_v31 = vadd.f32 %v7949_v60, %v7857_v52  ;;  %v9256_v8 = vmul.f32 %v15492_v36, %v15492_v36  ;;  %v9263_v22 = vsel %vm3726_vm0, %v9255_v28, 0.0 }
 0x646   :  { %v7859_v37 = vpop.f32.mrf.mxu0  ;;  %v8270_v27 = vpop.f32.mrf.mxu1 }
 0x647   :  { %v7952_v3 = vadd.f32 %v7951_v12, %v7859_v37  ;;  %v9264_v13 = vsel %vm3726_vm0, %v9256_v8, 0.0 }
 0x64a   :  { %v8030_v43 = vpop.f32.mrf.mxu0  ;;  %v8440_v29 = vpop.f32.mrf.mxu1 }
 0x64b   :  { %v8031_v34 = vadd.f32 %v8030_v43, %v7950_v31 }
 0x64c   :  { %v8032_v11 = vpop.f32.mrf.mxu0  ;;  %v8442_v4 = vpop.f32.mrf.mxu1 }
 0x64d   :  { %v8033_v16 = vadd.f32 %v8032_v11, %v7952_v3  ;;  %v8109_v59 = vadd.f32 %v8108_v2, %v8031_v34  ;;  %v9265_v2 = vadd.f32 %v9264_v13, %v9263_v22 }
 0x64f   :  { %v8111_v61 = vadd.f32 %v8110_v46, %v8033_v16 }
 0x650   :  { %v8192_v48 = vpop.f32.mrf.mxu0  ;;  %v8599_v35 = vpop.f32.mrf.mxu1 }
 0x651   :  { %v8193_v47 = vadd.f32 %v8192_v48, %v8109_v59 }
 0x652   :  { %v8194_v9 = vpop.f32.mrf.mxu0  ;;  %v8601_v44 = vpop.f32.mrf.mxu1 }
 0x653   :  { %v8269_v10 = vadd.f32 %v8268_v62, %v8193_v47  ;;  %v8195_v55 = vadd.f32 %v8194_v9, %v8111_v61 }
 0x655   :  { %v9257_v33 = vmul.f32 %v8269_v10, %v8269_v10  ;;  %v8271_v32 = vadd.f32 %v8270_v27, %v8195_v55 }
 0x656   :  { %v8348_v5 = vpop.f32.mrf.mxu0  ;;  %v8759_v40 = vpop.f32.mrf.mxu1 }
 0x657   :  { %v8441_v7 = vadd.f32 %v8440_v29, %v8348_v5  ;;  %v9266_v12 = vsel %vm3726_vm0, %v9257_v33, 0.0  ;;  %v9258_v21 = vmul.f32 %v8271_v32, %v8271_v32 }
 0x658   :  { %v8350_v14 = vpop.f32.mrf.mxu0  ;;  %v8761_v17 = vpop.f32.mrf.mxu1  ;;  %v9267_v37 = vadd.f32 %v9266_v12, %v9265_v2 }
 0x659   :  { %v8443_v63 = vadd.f32 %v8442_v4, %v8350_v14  ;;  %v9268_v27 = vsel %vm3726_vm0, %v9258_v21, 0.0 }
 0x65a   :  { %v9269_v0 = vadd.f32 %v9268_v27, %v9267_v37 }
 0x65c   :  { %v8521_v41 = vpop.f32.mrf.mxu0  ;;  %v8931_v18 = vpop.f32.mrf.mxu1 }
 0x65d   :  { %v8522_v25 = vadd.f32 %v8521_v41, %v8441_v7 }
 0x65e   :  { %v8523_v49 = vpop.f32.mrf.mxu0  ;;  %v8933_v15 = vpop.f32.mrf.mxu1 }
 0x65f   :  { %v8524_v39 = vadd.f32 %v8523_v49, %v8443_v63  ;;  %v8600_v26 = vadd.f32 %v8599_v35, %v8522_v25 }
 0x661   :  { %v8602_v54 = vadd.f32 %v8601_v44, %v8524_v39 }
 0x662   :  { %v8683_v24 = vpop.f32.mrf.mxu0  ;;  %v9090_v60 = vpop.f32.mrf.mxu1 }
 0x663   :  { %v8684_v19 = vadd.f32 %v8683_v24, %v8600_v26 }
 0x664   :  { %v8685_v1 = vpop.f32.mrf.mxu0  ;;  %v9092_v43 = vpop.f32.mrf.mxu1 }
 0x665   :  { %v8760_v57 = vadd.f32 %v8759_v40, %v8684_v19  ;;  %v8686_v6 = vadd.f32 %v8685_v1, %v8602_v54 }
 0x667   :  { %v9259_v46 = vmul.f32 %v8760_v57, %v8760_v57  ;;  %v8762_v52 = vadd.f32 %v8761_v17, %v8686_v6 }
 0x668   :  { %v8839_v20 = vpop.f32.mrf.mxu0  ;;  %v9250_v31 = vpop.f32.mrf.mxu1 }
 0x669   :  { %v8932_v62 = vadd.f32 %v8931_v18, %v8839_v20  ;;  %v9270_v35 = vsel %vm3726_vm0, %v9259_v46, 0.0  ;;  %v9260_v58 = vmul.f32 %v8762_v52, %v8762_v52 }
 0x66a   :  { %v8841_v56 = vpop.f32.mrf.mxu0  ;;  %v9271_v51 = vadd.f32 %v9270_v35, %v9269_v0  ;;  %v9252_v14 = vpop.f32.mrf.mxu1 }
 0x66b   :  { %v8934_v11 = vadd.f32 %v8933_v15, %v8841_v56  ;;  %v9272_v40 = vsel %vm3726_vm0, %v9260_v58, 0.0 }
 0x66c   :  { %v9012_v29 = vpop.f32.mrf.mxu0  ;;  %v9273_v30 = vadd.f32 %v9272_v40, %v9271_v51 }
 0x66d   :  { %v9013_v4 = vadd.f32 %v9012_v29, %v8932_v62 }
 0x66e   :  { %v9014_v48 = vpop.f32.mrf.mxu0 }
 0x66f   :  { %v9015_v50 = vadd.f32 %v9014_v48, %v8934_v11  ;;  %v9091_v9 = vadd.f32 %v9090_v60, %v9013_v4 }
 0x670   :  { %v9174_v45 = vpop.f32.mrf.mxu0 }
 0x671   :  { %v9175_v44 = vadd.f32 %v9174_v45, %v9091_v9  ;;  %v9093_v34 = vadd.f32 %v9092_v43, %v9015_v50 }
 0x672   :  { %v9176_v5 = vpop.f32.mrf.mxu0 }
 0x673   :  { %v9251_v3 = vadd.f32 %v9250_v31, %v9175_v44  ;;  %v9177_v38 = vadd.f32 %v9176_v5, %v9093_v34 }
 0x675   :  { %v9261_v16 = vmul.f32 %v9251_v3, %v9251_v3  ;;  %v9253_v59 = vadd.f32 %v9252_v14, %v9177_v38 }
 0x677   :  { %v9262_v7 = vmul.f32 %v9253_v59, %v9253_v59  ;;  %v9274_v23 = vsel %vm3726_vm0, %v9261_v16, 0.0 }
 0x678   :  { %v9275_v17 = vadd.f32 %v9274_v23, %v9273_v30 }
 0x679   :  { %v9276_v41 = vsel %vm3726_vm0, %v9262_v7, 0.0 }
 0x67a   :  { %v9277_v47 = vadd.f32 %v9276_v41, %v9275_v17 }
 0x67c   :  { %9278 = vadd.xlane.f32.xlu1 %v9277_v47 }
 0x705   :  { %v9279_v61 = vpop.xlane.xlu1 %9278 }
 0x706   :  { %v9280_v63 = vadd.f32 1e-16, %v9279_v61 }
 0x708   :  { %11047 = vrsqrt.f32 %v9280_v63 }
 0x715   :  { %v11048_v25 = vpop.eup %11047 }
 0x716   :  { %v9282_v49 = vmul.f32 %v11048_v25, %v7778_v53  ;;  %v9283_v39 = vmul.f32 %v11048_v25, %v15492_v36  ;;  %v9284_v26 = vmul.f32 %v11048_v25, %v8269_v10  ;;  %v9285_v18 = vmul.f32 %v11048_v25, %v8271_v32 }
 0x717   :  { %v9286_v55 = vmul.f32 %v11048_v25, %v8760_v57  ;;  %v9287_v24 = vmul.f32 %v11048_v25, %v8762_v52  ;;  %v9288_v8 = vmul.f32 %v11048_v25, %v9251_v3  ;;  %v9289_v19 = vmul.f32 %v11048_v25, %v9253_v59 }
 0x718   :  { %v9298_v54 = vcombine.low %v9282_v49, %v9283_v39  ;;  %v9299_v15 = vcombine.low %v9284_v26, %v9285_v18 }
 0x719   :  { %v9315_v1 = vcombine.low %v9286_v55, %v9287_v24  ;;  %v9316_v28 = vcombine.low %v9288_v8, %v9289_v19 }
 0x71a   :  { %v9306_v33 = vrot.slane %v9298_v54, %v17128_v42  ;;  %v9313_v13 = vrot.slane %v9299_v15, %v17128_v42 }
 0x71b   :  { %v9323_v53 = vrot.slane %v9315_v1, %v17128_v42  ;;  %v9330_v36 = vrot.slane %v9316_v28, %v17128_v42 }
 0x71c   :  { %v9314_v10 = vcombine.low %v9306_v33, %v9313_v13 }
 0x71d   :  { %v9331_v32 = vcombine.low %v9323_v53, %v9330_v36 }
 0x71e   :  { %9334 = vst [vmem:[#allocation2] sm:$0xff] %v9314_v10 }
 0x71f   :  { %9335 = vst [vmem:[#allocation2 + $0x8] sm:$0xff] %v9331_v32 }
 0x720   :  { %11062 = shalt.err (!%p11059_p4)
}
 0x721   :  { %9345 = dma.vmem_to_hbm [thread:$0]  %s9343_s9, 256, %s15517_s5, [#allocation3]  }
 0x722   :  { %11071 = dma.done.wait [#allocation3], 256  }
 0x723   :  { %11072 = vsyncadd [#allocation3], 4294967040 }
 0x724   :  { %9349 = vsyncpa [#allocation3], 1 }

</bundles_post_ra>
